<compile_context>
chip_gen: v5e
topology: v5e:2x2
jax: 0.10.0
libtpu: 0.0.40
codegen_flags: <defaults>
</compile_context>

<pallas_src>
import functools

import jax
import jax.numpy as jnp
from jax.experimental import pallas as pl
from jax.experimental.pallas import tpu as pltpu


NUM_HIDDENS = 128
NUM_RES_HIDDENS = 32
NUM_RES_LAYERS = 2
EMBEDDING_DIM = 4
NUM_EMBEDDINGS = 4096

VMEM_LIMIT_BYTES = 32 * 1024 * 1024   # explicit: > v5e's 16 MiB scoped default,
                                      # safely within v7x's 64 MiB physical VMEM
GEMM_TM = 512                         # M tile for conv / residual GEMMs (bf16 operands)
VQ_TM = 256                           # M tile for the fused VQ kernel ((TM,4096) f32 sim in VMEM)


def _round_up(x, m):
    return (x + m - 1) // m * m


def _pick_tiles(m, cap):
    """Pick an M tile (multiple of 16, <= cap) and the padded M (multiple of the tile)."""
    tm = min(cap, _round_up(m, 16))
    return tm, _round_up(m, tm)


# ----------------------------------------------------------------------------
# Pallas kernels
# ----------------------------------------------------------------------------
def _conv_gemm_kernel(x_ref, w_ref, b_ref, o_ref, *, post_relu):
    """One (TM, N) output tile: o = maybe_relu(x @ w + b). bf16 operands, f32 acc."""
    acc = jnp.dot(x_ref[...], w_ref[...], preferred_element_type=jnp.float32)
    acc = acc + b_ref[...]
    if post_relu:
        acc = jnp.maximum(acc, 0.0)
    o_ref[...] = acc


def _resblock_kernel(p_ref, w1_ref, b1_ref, w2_ref, b2_ref, h_ref, o_ref, *, final_relu):
    """Fused residual block: o = maybe_relu(h + conv1x1(relu(conv3x3(relu(h)))))
    with the (TM, 32) bottleneck kept entirely in vregs/VMEM."""
    t = jnp.dot(p_ref[...], w1_ref[...], preferred_element_type=jnp.float32)
    t = jnp.maximum(t + b1_ref[...], 0.0)
    t = jnp.dot(t.astype(jnp.bfloat16), w2_ref[...], preferred_element_type=jnp.float32)
    acc = t + b2_ref[...] + h_ref[...]
    if final_relu:
        acc = jnp.maximum(acc, 0.0)
    o_ref[...] = acc


def _vq_kernel(h_ref, wc_ref, bc_ref, idx_ref):
    """Fused pre-VQ 1x1 conv + cosine-similarity argmax.
    sim = h @ (Wq @ normalize(E)^T) + bq @ normalize(E)^T ; argmax(cosine) is
    invariant to ||z||, so z itself is never normalized (argmax-preserving)."""
    sim = jnp.dot(h_ref[...], wc_ref[...], preferred_element_type=jnp.float32)
    sim = sim + bc_ref[...]
    m = jnp.max(sim, axis=-1, keepdims=True)
    iota = jax.lax.broadcasted_iota(jnp.int32, sim.shape, 1)
    ne = sim.shape[-1]
    idx = jnp.min(jnp.where(sim >= m, iota, ne), axis=-1, keepdims=True)  # lowest-index tie-break
    idx_ref[...] = idx.astype(jnp.int32)


# ----------------------------------------------------------------------------
# Pallas wrappers
# ----------------------------------------------------------------------------
def conv_gemm(patches, w_mat, bias, *, post_relu):
    """Gridded (M-tiled, pipelined) GEMM: out = maybe_relu(patches @ w_mat + bias)."""
    M, K = patches.shape
    N = w_mat.shape[1]
    TM, M_pad = _pick_tiles(M, GEMM_TM)
    if M_pad != M:
        patches = jnp.pad(patches, ((0, M_pad - M), (0, 0)))
    x = patches.astype(jnp.bfloat16)
    w = w_mat.astype(jnp.bfloat16)
    b = bias.reshape(1, N).astype(jnp.float32)
    out = pl.pallas_call(
        functools.partial(_conv_gemm_kernel, post_relu=post_relu),
        out_shape=jax.ShapeDtypeStruct((M_pad, N), jnp.float32),
        grid_spec=pltpu.PrefetchScalarGridSpec(
            num_scalar_prefetch=0,
            grid=(M_pad // TM,),
            in_specs=[pl.BlockSpec((TM, K), lambda i: (i, 0)),
                      pl.BlockSpec((K, N), lambda i: (0, 0)),
                      pl.BlockSpec((1, N), lambda i: (0, 0))],
            out_specs=pl.BlockSpec((TM, N), lambda i: (i, 0))),
        compiler_params=pltpu.CompilerParams(
            dimension_semantics=("parallel",),
            vmem_limit_bytes=VMEM_LIMIT_BYTES),
    )(x, w, b)
    return out[:M] if M_pad != M else out


def extract_patches_nhwc(x, kh, kw, stride, pad):
    """x: NHWC -> (B*Ho*Wo, kh*kw*C) with column order (kh, kw, C).
    Single concat/reshape layout pass, no transposes."""
    if pad:
        x = jnp.pad(x, ((0, 0), (pad, pad), (pad, pad), (0, 0)))
    B, H, W, C = x.shape
    Ho = (H - kh) // stride + 1
    Wo = (W - kw) // stride + 1
    cols = [x[:, di:di + stride * Ho:stride, dj:dj + stride * Wo:stride, :]
            for di in range(kh) for dj in range(kw)]
    p = jnp.concatenate(cols, axis=-1)                 # (B, Ho, Wo, kh*kw*C)
    return p.reshape(B * Ho * Wo, kh * kw * C), Ho, Wo


def conv_layer(x, w, b, *, k, stride, pad, post_relu):
    """NHWC conv as a gridded im2col Pallas GEMM (+bias/ReLU), stays NHWC."""
    B = x.shape[0]
    C_in = x.shape[-1]
    C_out = w.shape[0]
    patches, Ho, Wo = extract_patches_nhwc(x, k, k, stride, pad)
    wm = jnp.transpose(w, (2, 3, 1, 0)).reshape(k * k * C_in, C_out)  # (kh,kw,Cin) rows
    out = conv_gemm(patches, wm, b, post_relu=post_relu)
    return out.reshape(B, Ho, Wo, C_out)


def res_block(h_img, w1, b1, w2, b2, *, final_relu):
    """One fused Pallas kernel per residual block (NHWC in / NHWC out)."""
    B, H, W, C = h_img.shape
    Cr = w1.shape[0]
    # ReLU commutes with (zero-padded) patch extraction; XLA fuses it into the
    # single im2col layout pass.
    patches, Ho, Wo = extract_patches_nhwc(jnp.maximum(h_img, 0.0), 3, 3, 1, 1)
    K = patches.shape[1]
    M = B * Ho * Wo
    TM, M_pad = _pick_tiles(M, GEMM_TM)
    h_flat = h_img.reshape(M, C)
    if M_pad != M:
        patches = jnp.pad(patches, ((0, M_pad - M), (0, 0)))
        h_flat = jnp.pad(h_flat, ((0, M_pad - M), (0, 0)))
    p = patches.astype(jnp.bfloat16)
    w1m = jnp.transpose(w1, (2, 3, 1, 0)).reshape(K, Cr).astype(jnp.bfloat16)   # (1152, 32)
    w2m = w2.reshape(C, Cr).T.astype(jnp.bfloat16)                               # (32, 128)
    b1m = b1.reshape(1, Cr).astype(jnp.float32)
    b2m = b2.reshape(1, C).astype(jnp.float32)
    out = pl.pallas_call(
        functools.partial(_resblock_kernel, final_relu=final_relu),
        out_shape=jax.ShapeDtypeStruct((M_pad, C), jnp.float32),
        grid_spec=pltpu.PrefetchScalarGridSpec(
            num_scalar_prefetch=0,
            grid=(M_pad // TM,),
            in_specs=[pl.BlockSpec((TM, K), lambda i: (i, 0)),
                      pl.BlockSpec((K, Cr), lambda i: (0, 0)),
                      pl.BlockSpec((1, Cr), lambda i: (0, 0)),
                      pl.BlockSpec((Cr, C), lambda i: (0, 0)),
                      pl.BlockSpec((1, C), lambda i: (0, 0)),
                      pl.BlockSpec((TM, C), lambda i: (i, 0))],
            out_specs=pl.BlockSpec((TM, C), lambda i: (i, 0))),
        compiler_params=pltpu.CompilerParams(
            dimension_semantics=("parallel",),
            vmem_limit_bytes=VMEM_LIMIT_BYTES),
    )(p, w1m, b1m, w2m, b2m, h_flat)
    out = out[:M] if M_pad != M else out
    return out.reshape(B, Ho, Wo, C)


def vq_nearest_indices(h_img, prevq_w, prevq_b, codebook):
    """Fused prevq(1x1) + cosine VQ: returns int32 nearest-codebook indices."""
    B, H, W, C = h_img.shape
    M = B * H * W
    TM, M_pad = _pick_tiles(M, VQ_TM)
    h_flat = h_img.reshape(M, C)
    if M_pad != M:
        h_flat = jnp.pad(h_flat, ((0, M_pad - M), (0, 0)))
    h_bf = h_flat.astype(jnp.bfloat16)
    # Frozen codebook: normalize once, fold the prevq projection into it.
    cb_n = codebook * jax.lax.rsqrt(
        jnp.sum(codebook * codebook, axis=-1, keepdims=True) + 1e-10)
    wq = prevq_w.reshape(EMBEDDING_DIM, C)                       # (4, 128)  (1x1 conv)
    wc = (wq.T @ cb_n.T).astype(jnp.bfloat16)                    # (128, 4096)
    bc = (prevq_b @ cb_n.T).reshape(1, NUM_EMBEDDINGS).astype(jnp.float32)
    idx = pl.pallas_call(
        _vq_kernel,
        out_shape=jax.ShapeDtypeStruct((M_pad, 1), jnp.int32),
        grid_spec=pltpu.PrefetchScalarGridSpec(
            num_scalar_prefetch=0,
            grid=(M_pad // TM,),
            in_specs=[pl.BlockSpec((TM, C), lambda i: (i, 0)),
                      pl.BlockSpec((C, NUM_EMBEDDINGS), lambda i: (0, 0)),
                      pl.BlockSpec((1, NUM_EMBEDDINGS), lambda i: (0, 0))],
            out_specs=pl.BlockSpec((TM, 1), lambda i: (i, 0))),
        compiler_params=pltpu.CompilerParams(
            dimension_semantics=("parallel",),
            vmem_limit_bytes=VMEM_LIMIT_BYTES),
    )(h_bf, wc, bc)
    idx = idx.reshape(M_pad)[:M]
    return idx.reshape(B, H, W)


# ----------------------------------------------------------------------------
# Parameters (synthetic, deterministic)
# ----------------------------------------------------------------------------
def init_params(key):
    ks = jax.random.split(key, 10)

    def conv_w(k, cout, cin, kh, kw):
        fan_in = cin * kh * kw
        return jax.random.normal(k, (cout, cin, kh, kw), jnp.float32) / jnp.sqrt(fan_in)

    p = {
        "conv1_w": conv_w(ks[0], NUM_HIDDENS // 2, 1, 4, 4),
        "conv1_b": jnp.zeros((NUM_HIDDENS // 2,), jnp.float32),
        "conv2_w": conv_w(ks[1], NUM_HIDDENS, NUM_HIDDENS // 2, 4, 4),
        "conv2_b": jnp.zeros((NUM_HIDDENS,), jnp.float32),
        "conv3_w": conv_w(ks[2], NUM_HIDDENS, NUM_HIDDENS, 3, 3),
        "conv3_b": jnp.zeros((NUM_HIDDENS,), jnp.float32),
        "prevq_w": conv_w(ks[3], EMBEDDING_DIM, NUM_HIDDENS, 1, 1),
        "prevq_b": jnp.zeros((EMBEDDING_DIM,), jnp.float32),
        "codebook": jax.random.normal(ks[4], (NUM_EMBEDDINGS, EMBEDDING_DIM), jnp.float32),
    }
    for i in range(NUM_RES_LAYERS):
        p[f"res{i}_w1"] = conv_w(ks[5 + 2 * i], NUM_RES_HIDDENS, NUM_HIDDENS, 3, 3)
        p[f"res{i}_b1"] = jnp.zeros((NUM_RES_HIDDENS,), jnp.float32)
        p[f"res{i}_w2"] = conv_w(ks[6 + 2 * i], NUM_HIDDENS, NUM_RES_HIDDENS, 1, 1)
        p[f"res{i}_b2"] = jnp.zeros((NUM_HIDDENS,), jnp.float32)
    return p


# ----------------------------------------------------------------------------
# Forward pass  (== LabelEmbedder_deeplesion2.forward)
# ----------------------------------------------------------------------------
def encode(params, x_nhwc):
    """CVQ-VAE encoder + cosine VQ. x_nhwc: (Bc, H, W, 1) -> (Bc, H/4, W/4, 4)."""
    h = conv_layer(x_nhwc, params["conv1_w"], params["conv1_b"],
                   k=4, stride=2, pad=1, post_relu=True)
    h = conv_layer(h, params["conv2_w"], params["conv2_b"],
                   k=4, stride=2, pad=1, post_relu=True)
    h = conv_layer(h, params["conv3_w"], params["conv3_b"],
                   k=3, stride=1, pad=1, post_relu=False)
    for i in range(NUM_RES_LAYERS):
        h = res_block(h, params[f"res{i}_w1"], params[f"res{i}_b1"],
                      params[f"res{i}_w2"], params[f"res{i}_b2"],
                      final_relu=(i == NUM_RES_LAYERS - 1))
    idx = vq_nearest_indices(h, params["prevq_w"], params["prevq_b"],
                             params["codebook"])
    # Tiny exact gather of the winning codebook rows (M x 4 f32).
    # TODO(synk): some CVQ-VAE cosine codebooks return L2-normalized embeddings;
    # raw codebook rows are returned here (same behavior as the prior version).
    return params["codebook"][idx]                              # (Bc, Ho, Wo, 4)


@jax.jit
def label_embedder_forward(params, condition):
    """condition: (B, 2, H, W) NCHW float32 -> (B, 2*EMBEDDING_DIM, H//4, W//4)."""
    B, nc, H, W = condition.shape
    # Both condition channels go through the SAME frozen encoder; batch them
    # together so every Pallas GEMM sees one larger M.
    x = condition.reshape(B * nc, 1, H, W).transpose(0, 2, 3, 1)   # NHWC, C=1 (free)
    q = encode(params, x)                                          # (B*nc, Ho, Wo, 4)
    _, Ho, Wo, D = q.shape
    q = q.reshape(B, nc, Ho, Wo, D)
    c_nhwc = jnp.concatenate([q[:, i] for i in range(nc)], axis=-1)  # (B, Ho, Wo, nc*D)
    return c_nhwc.transpose(0, 3, 1, 2)                              # NCHW, == torch.cat(dim=1)


if __name__ == "__main__":
    key = jax.random.PRNGKey(0)
    pkey, xkey = jax.random.split(key)
    params = init_params(pkey)

    # Small deterministic 2-channel condition image: (B=2, C=2, 16, 16)
    condition = jax.random.normal(xkey, (2, 2, 16, 16), jnp.float32)

    c = label_embedder_forward(params, condition)
    c = jax.block_until_ready(c)

    assert c.shape == (2, 2 * EMBEDDING_DIM, 4, 4), c.shape
    assert c.dtype == jnp.float32
    assert bool(jnp.all(jnp.isfinite(c)))
    print("KERNEL_OK")
</pallas_src>

<mosaic_0001>
module attributes {stable_mosaic.version = 11 : i64} {
  func.func @_conv_gemm_kernel(%arg0: i32, %arg1: memref<256x16xbf16, #tpu.memory_space<vmem>>, %arg2: memref<16x64xbf16, #tpu.memory_space<vmem>>, %arg3: memref<1x64xf32, #tpu.memory_space<vmem>>, %arg4: memref<256x64xf32, #tpu.memory_space<vmem>>) attributes {dimension_semantics = [#tpu.dimension_semantics<parallel>], iteration_bounds = array<i64: 1>, scalar_prefetch = 0 : i64, scratch_operands = 0 : i64, tpu.core_type = #tpu.core_type<tc>, window_params = [{transform_indices = @transform_0, window_bounds = array<i64: 256, 16>}, {pipeline_mode = #tpu.pipeline_mode<synchronous>, transform_indices = @transform_1, window_bounds = array<i64: 16, 64>}, {pipeline_mode = #tpu.pipeline_mode<synchronous>, transform_indices = @transform_2, window_bounds = array<i64: 1, 64>}, {transform_indices = @transform_3, window_bounds = array<i64: 256, 64>}]} {
    %c0 = arith.constant 0 : index
    %c0_0 = arith.constant 0 : index
    %0 = vector.load %arg1[%c0, %c0_0] : memref<256x16xbf16, #tpu.memory_space<vmem>>, vector<256x16xbf16>
    %c0_1 = arith.constant 0 : index
    %c0_2 = arith.constant 0 : index
    %1 = vector.load %arg2[%c0_1, %c0_2] : memref<16x64xbf16, #tpu.memory_space<vmem>>, vector<16x64xbf16>
    %cst = arith.constant dense<0.000000e+00> : vector<256x64xf32>
    %2 = tpu.matmul %0, %1, %cst {dimension_numbers = #tpu.dot_dimension_numbers<[1], [0], [0], [1], [0, 0, 1, 1], [], []>} : vector<256x16xbf16>, vector<16x64xbf16>, vector<256x64xf32> -> vector<256x64xf32>
    %c0_3 = arith.constant 0 : index
    %c0_4 = arith.constant 0 : index
    %3 = vector.load %arg3[%c0_3, %c0_4] : memref<1x64xf32, #tpu.memory_space<vmem>>, vector<1x64xf32>
    %4 = vector.broadcast %3 : vector<1x64xf32> to vector<256x64xf32>
    %5 = arith.addf %2, %4 : vector<256x64xf32>
    %cst_5 = arith.constant 0.000000e+00 : f32
    %6 = vector.broadcast %cst_5 : f32 to vector<256x64xf32>
    %7 = arith.maximumf %5, %6 : vector<256x64xf32>
    %c0_6 = arith.constant 0 : index
    %c0_7 = arith.constant 0 : index
    %8 = vector.load %arg4[%c0_6, %c0_7] : memref<256x64xf32, #tpu.memory_space<vmem>>, vector<256x64xf32>
    tpu.vector_store %arg4[%c0_6, %c0_7], %7 {strides = array<i32>} : memref<256x64xf32, #tpu.memory_space<vmem>>, vector<256x64xf32>,
    return
  }
  func.func @transform_0(%arg0: i32) -> (i32, i32) {
    %c0_i32 = arith.constant 0 : i32
    %c0_i32_0 = arith.constant 0 : i32
    return %arg0, %c0_i32 : i32, i32
  }
  func.func @transform_1(%arg0: i32) -> (i32, i32) {
    %c0_i32 = arith.constant 0 : i32
    %c0_i32_0 = arith.constant 0 : i32
    %c0_i32_1 = arith.constant 0 : i32
    return %c0_i32, %c0_i32_0 : i32, i32
  }
  func.func @transform_2(%arg0: i32) -> (i32, i32) {
    %c0_i32 = arith.constant 0 : i32
    %c0_i32_0 = arith.constant 0 : i32
    %c0_i32_1 = arith.constant 0 : i32
    return %c0_i32, %c0_i32_0 : i32, i32
  }
  func.func @transform_3(%arg0: i32) -> (i32, i32) {
    %c0_i32 = arith.constant 0 : i32
    %c0_i32_0 = arith.constant 0 : i32
    return %arg0, %c0_i32 : i32, i32
  }
}

module attributes {stable_mosaic.version = 11 : i64} {
  func.func @_conv_gemm_kernel(%arg0: i32, %arg1: memref<64x1024xbf16, #tpu.memory_space<vmem>>, %arg2: memref<1024x128xbf16, #tpu.memory_space<vmem>>, %arg3: memref<1x128xf32, #tpu.memory_space<vmem>>, %arg4: memref<64x128xf32, #tpu.memory_space<vmem>>) attributes {dimension_semantics = [#tpu.dimension_semantics<parallel>], iteration_bounds = array<i64: 1>, scalar_prefetch = 0 : i64, scratch_operands = 0 : i64, tpu.core_type = #tpu.core_type<tc>, window_params = [{transform_indices = @transform_0, window_bounds = array<i64: 64, 1024>}, {pipeline_mode = #tpu.pipeline_mode<synchronous>, transform_indices = @transform_1, window_bounds = array<i64: 1024, 128>}, {pipeline_mode = #tpu.pipeline_mode<synchronous>, transform_indices = @transform_2, window_bounds = array<i64: 1, 128>}, {transform_indices = @transform_3, window_bounds = array<i64: 64, 128>}]} {
    %c0 = arith.constant 0 : index
    %c0_0 = arith.constant 0 : index
    %0 = vector.load %arg1[%c0, %c0_0] : memref<64x1024xbf16, #tpu.memory_space<vmem>>, vector<64x1024xbf16>
    %c0_1 = arith.constant 0 : index
    %c0_2 = arith.constant 0 : index
    %1 = vector.load %arg2[%c0_1, %c0_2] : memref<1024x128xbf16, #tpu.memory_space<vmem>>, vector<1024x128xbf16>
    %cst = arith.constant dense<0.000000e+00> : vector<64x128xf32>
    %2 = tpu.matmul %0, %1, %cst {dimension_numbers = #tpu.dot_dimension_numbers<[1], [0], [0], [1], [0, 0, 1, 1], [], []>} : vector<64x1024xbf16>, vector<1024x128xbf16>, vector<64x128xf32> -> vector<64x128xf32>
    %c0_3 = arith.constant 0 : index
    %c0_4 = arith.constant 0 : index
    %3 = vector.load %arg3[%c0_3, %c0_4] : memref<1x128xf32, #tpu.memory_space<vmem>>, vector<1x128xf32>
    %4 = vector.broadcast %3 : vector<1x128xf32> to vector<64x128xf32>
    %5 = arith.addf %2, %4 : vector<64x128xf32>
    %cst_5 = arith.constant 0.000000e+00 : f32
    %6 = vector.broadcast %cst_5 : f32 to vector<64x128xf32>
    %7 = arith.maximumf %5, %6 : vector<64x128xf32>
    %c0_6 = arith.constant 0 : index
    %c0_7 = arith.constant 0 : index
    %8 = vector.load %arg4[%c0_6, %c0_7] : memref<64x128xf32, #tpu.memory_space<vmem>>, vector<64x128xf32>
    tpu.vector_store %arg4[%c0_6, %c0_7], %7 {strides = array<i32>} : memref<64x128xf32, #tpu.memory_space<vmem>>, vector<64x128xf32>,
    return
  }
  func.func @transform_0(%arg0: i32) -> (i32, i32) {
    %c0_i32 = arith.constant 0 : i32
    %c0_i32_0 = arith.constant 0 : i32
    return %arg0, %c0_i32 : i32, i32
  }
  func.func @transform_1(%arg0: i32) -> (i32, i32) {
    %c0_i32 = arith.constant 0 : i32
    %c0_i32_0 = arith.constant 0 : i32
    %c0_i32_1 = arith.constant 0 : i32
    return %c0_i32, %c0_i32_0 : i32, i32
  }
  func.func @transform_2(%arg0: i32) -> (i32, i32) {
    %c0_i32 = arith.constant 0 : i32
    %c0_i32_0 = arith.constant 0 : i32
    %c0_i32_1 = arith.constant 0 : i32
    return %c0_i32, %c0_i32_0 : i32, i32
  }
  func.func @transform_3(%arg0: i32) -> (i32, i32) {
    %c0_i32 = arith.constant 0 : i32
    %c0_i32_0 = arith.constant 0 : i32
    return %arg0, %c0_i32 : i32, i32
  }
}

module attributes {stable_mosaic.version = 11 : i64} {
  func.func @_conv_gemm_kernel(%arg0: i32, %arg1: memref<64x1152xbf16, #tpu.memory_space<vmem>>, %arg2: memref<1152x128xbf16, #tpu.memory_space<vmem>>, %arg3: memref<1x128xf32, #tpu.memory_space<vmem>>, %arg4: memref<64x128xf32, #tpu.memory_space<vmem>>) attributes {dimension_semantics = [#tpu.dimension_semantics<parallel>], iteration_bounds = array<i64: 1>, scalar_prefetch = 0 : i64, scratch_operands = 0 : i64, tpu.core_type = #tpu.core_type<tc>, window_params = [{transform_indices = @transform_0, window_bounds = array<i64: 64, 1152>}, {pipeline_mode = #tpu.pipeline_mode<synchronous>, transform_indices = @transform_1, window_bounds = array<i64: 1152, 128>}, {pipeline_mode = #tpu.pipeline_mode<synchronous>, transform_indices = @transform_2, window_bounds = array<i64: 1, 128>}, {transform_indices = @transform_3, window_bounds = array<i64: 64, 128>}]} {
    %c0 = arith.constant 0 : index
    %c0_0 = arith.constant 0 : index
    %0 = vector.load %arg1[%c0, %c0_0] : memref<64x1152xbf16, #tpu.memory_space<vmem>>, vector<64x1152xbf16>
    %c0_1 = arith.constant 0 : index
    %c0_2 = arith.constant 0 : index
    %1 = vector.load %arg2[%c0_1, %c0_2] : memref<1152x128xbf16, #tpu.memory_space<vmem>>, vector<1152x128xbf16>
    %cst = arith.constant dense<0.000000e+00> : vector<64x128xf32>
    %2 = tpu.matmul %0, %1, %cst {dimension_numbers = #tpu.dot_dimension_numbers<[1], [0], [0], [1], [0, 0, 1, 1], [], []>} : vector<64x1152xbf16>, vector<1152x128xbf16>, vector<64x128xf32> -> vector<64x128xf32>
    %c0_3 = arith.constant 0 : index
    %c0_4 = arith.constant 0 : index
    %3 = vector.load %arg3[%c0_3, %c0_4] : memref<1x128xf32, #tpu.memory_space<vmem>>, vector<1x128xf32>
    %4 = vector.broadcast %3 : vector<1x128xf32> to vector<64x128xf32>
    %5 = arith.addf %2, %4 : vector<64x128xf32>
    %c0_5 = arith.constant 0 : index
    %c0_6 = arith.constant 0 : index
    %6 = vector.load %arg4[%c0_5, %c0_6] : memref<64x128xf32, #tpu.memory_space<vmem>>, vector<64x128xf32>
    tpu.vector_store %arg4[%c0_5, %c0_6], %5 {strides = array<i32>} : memref<64x128xf32, #tpu.memory_space<vmem>>, vector<64x128xf32>,
    return
  }
  func.func @transform_0(%arg0: i32) -> (i32, i32) {
    %c0_i32 = arith.constant 0 : i32
    %c0_i32_0 = arith.constant 0 : i32
    return %arg0, %c0_i32 : i32, i32
  }
  func.func @transform_1(%arg0: i32) -> (i32, i32) {
    %c0_i32 = arith.constant 0 : i32
    %c0_i32_0 = arith.constant 0 : i32
    %c0_i32_1 = arith.constant 0 : i32
    return %c0_i32, %c0_i32_0 : i32, i32
  }
  func.func @transform_2(%arg0: i32) -> (i32, i32) {
    %c0_i32 = arith.constant 0 : i32
    %c0_i32_0 = arith.constant 0 : i32
    %c0_i32_1 = arith.constant 0 : i32
    return %c0_i32, %c0_i32_0 : i32, i32
  }
  func.func @transform_3(%arg0: i32) -> (i32, i32) {
    %c0_i32 = arith.constant 0 : i32
    %c0_i32_0 = arith.constant 0 : i32
    return %arg0, %c0_i32 : i32, i32
  }
}

module attributes {stable_mosaic.version = 11 : i64} {
  func.func @_resblock_kernel(%arg0: i32, %arg1: memref<64x1152xbf16, #tpu.memory_space<vmem>>, %arg2: memref<1152x32xbf16, #tpu.memory_space<vmem>>, %arg3: memref<1x32xf32, #tpu.memory_space<vmem>>, %arg4: memref<32x128xbf16, #tpu.memory_space<vmem>>, %arg5: memref<1x128xf32, #tpu.memory_space<vmem>>, %arg6: memref<64x128xf32, #tpu.memory_space<vmem>>, %arg7: memref<64x128xf32, #tpu.memory_space<vmem>>) attributes {dimension_semantics = [#tpu.dimension_semantics<parallel>], iteration_bounds = array<i64: 1>, scalar_prefetch = 0 : i64, scratch_operands = 0 : i64, tpu.core_type = #tpu.core_type<tc>, window_params = [{transform_indices = @transform_0, window_bounds = array<i64: 64, 1152>}, {pipeline_mode = #tpu.pipeline_mode<synchronous>, transform_indices = @transform_1, window_bounds = array<i64: 1152, 32>}, {pipeline_mode = #tpu.pipeline_mode<synchronous>, transform_indices = @transform_2, window_bounds = array<i64: 1, 32>}, {pipeline_mode = #tpu.pipeline_mode<synchronous>, transform_indices = @transform_3, window_bounds = array<i64: 32, 128>}, {pipeline_mode = #tpu.pipeline_mode<synchronous>, transform_indices = @transform_4, window_bounds = array<i64: 1, 128>}, {transform_indices = @transform_5, window_bounds = array<i64: 64, 128>}, {transform_indices = @transform_6, window_bounds = array<i64: 64, 128>}]} {
    %c0 = arith.constant 0 : index
    %c0_0 = arith.constant 0 : index
    %0 = vector.load %arg1[%c0, %c0_0] : memref<64x1152xbf16, #tpu.memory_space<vmem>>, vector<64x1152xbf16>
    %c0_1 = arith.constant 0 : index
    %c0_2 = arith.constant 0 : index
    %1 = vector.load %arg2[%c0_1, %c0_2] : memref<1152x32xbf16, #tpu.memory_space<vmem>>, vector<1152x32xbf16>
    %cst = arith.constant dense<0.000000e+00> : vector<64x32xf32>
    %2 = tpu.matmul %0, %1, %cst {dimension_numbers = #tpu.dot_dimension_numbers<[1], [0], [0], [1], [0, 0, 1, 1], [], []>} : vector<64x1152xbf16>, vector<1152x32xbf16>, vector<64x32xf32> -> vector<64x32xf32>
    %c0_3 = arith.constant 0 : index
    %c0_4 = arith.constant 0 : index
    %3 = vector.load %arg3[%c0_3, %c0_4] : memref<1x32xf32, #tpu.memory_space<vmem>>, vector<1x32xf32>
    %4 = vector.broadcast %3 : vector<1x32xf32> to vector<64x32xf32>
    %5 = arith.addf %2, %4 : vector<64x32xf32>
    %cst_5 = arith.constant 0.000000e+00 : f32
    %6 = vector.broadcast %cst_5 : f32 to vector<64x32xf32>
    %7 = arith.maximumf %5, %6 : vector<64x32xf32>
    %8 = arith.truncf %7 : vector<64x32xf32> to vector<64x32xbf16>
    %c0_6 = arith.constant 0 : index
    %c0_7 = arith.constant 0 : index
    %9 = vector.load %arg4[%c0_6, %c0_7] : memref<32x128xbf16, #tpu.memory_space<vmem>>, vector<32x128xbf16>
    %cst_8 = arith.constant dense<0.000000e+00> : vector<64x128xf32>
    %10 = tpu.matmul %8, %9, %cst_8 {dimension_numbers = #tpu.dot_dimension_numbers<[1], [0], [0], [1], [0, 0, 1, 1], [], []>} : vector<64x32xbf16>, vector<32x128xbf16>, vector<64x128xf32> -> vector<64x128xf32>
    %c0_9 = arith.constant 0 : index
    %c0_10 = arith.constant 0 : index
    %11 = vector.load %arg5[%c0_9, %c0_10] : memref<1x128xf32, #tpu.memory_space<vmem>>, vector<1x128xf32>
    %12 = vector.broadcast %11 : vector<1x128xf32> to vector<64x128xf32>
    %13 = arith.addf %10, %12 : vector<64x128xf32>
    %c0_11 = arith.constant 0 : index
    %c0_12 = arith.constant 0 : index
    %14 = vector.load %arg6[%c0_11, %c0_12] : memref<64x128xf32, #tpu.memory_space<vmem>>, vector<64x128xf32>
    %15 = arith.addf %13, %14 : vector<64x128xf32>
    %c0_13 = arith.constant 0 : index
    %c0_14 = arith.constant 0 : index
    %16 = vector.load %arg7[%c0_13, %c0_14] : memref<64x128xf32, #tpu.memory_space<vmem>>, vector<64x128xf32>
    tpu.vector_store %arg7[%c0_13, %c0_14], %15 {strides = array<i32>} : memref<64x128xf32, #tpu.memory_space<vmem>>, vector<64x128xf32>,
    return
  }
  func.func @transform_0(%arg0: i32) -> (i32, i32) {
    %c0_i32 = arith.constant 0 : i32
    %c0_i32_0 = arith.constant 0 : i32
    return %arg0, %c0_i32 : i32, i32
  }
  func.func @transform_1(%arg0: i32) -> (i32, i32) {
    %c0_i32 = arith.constant 0 : i32
    %c0_i32_0 = arith.constant 0 : i32
    %c0_i32_1 = arith.constant 0 : i32
    return %c0_i32, %c0_i32_0 : i32, i32
  }
  func.func @transform_2(%arg0: i32) -> (i32, i32) {
    %c0_i32 = arith.constant 0 : i32
    %c0_i32_0 = arith.constant 0 : i32
    %c0_i32_1 = arith.constant 0 : i32
    return %c0_i32, %c0_i32_0 : i32, i32
  }
  func.func @transform_3(%arg0: i32) -> (i32, i32) {
    %c0_i32 = arith.constant 0 : i32
    %c0_i32_0 = arith.constant 0 : i32
    %c0_i32_1 = arith.constant 0 : i32
    return %c0_i32, %c0_i32_0 : i32, i32
  }
  func.func @transform_4(%arg0: i32) -> (i32, i32) {
    %c0_i32 = arith.constant 0 : i32
    %c0_i32_0 = arith.constant 0 : i32
    %c0_i32_1 = arith.constant 0 : i32
    return %c0_i32, %c0_i32_0 : i32, i32
  }
  func.func @transform_5(%arg0: i32) -> (i32, i32) {
    %c0_i32 = arith.constant 0 : i32
    %c0_i32_0 = arith.constant 0 : i32
    return %arg0, %c0_i32 : i32, i32
  }
  func.func @transform_6(%arg0: i32) -> (i32, i32) {
    %c0_i32 = arith.constant 0 : i32
    %c0_i32_0 = arith.constant 0 : i32
    return %arg0, %c0_i32 : i32, i32
  }
}

module attributes {stable_mosaic.version = 11 : i64} {
  func.func @_resblock_kernel(%arg0: i32, %arg1: memref<64x1152xbf16, #tpu.memory_space<vmem>>, %arg2: memref<1152x32xbf16, #tpu.memory_space<vmem>>, %arg3: memref<1x32xf32, #tpu.memory_space<vmem>>, %arg4: memref<32x128xbf16, #tpu.memory_space<vmem>>, %arg5: memref<1x128xf32, #tpu.memory_space<vmem>>, %arg6: memref<64x128xf32, #tpu.memory_space<vmem>>, %arg7: memref<64x128xf32, #tpu.memory_space<vmem>>) attributes {dimension_semantics = [#tpu.dimension_semantics<parallel>], iteration_bounds = array<i64: 1>, scalar_prefetch = 0 : i64, scratch_operands = 0 : i64, tpu.core_type = #tpu.core_type<tc>, window_params = [{transform_indices = @transform_0, window_bounds = array<i64: 64, 1152>}, {pipeline_mode = #tpu.pipeline_mode<synchronous>, transform_indices = @transform_1, window_bounds = array<i64: 1152, 32>}, {pipeline_mode = #tpu.pipeline_mode<synchronous>, transform_indices = @transform_2, window_bounds = array<i64: 1, 32>}, {pipeline_mode = #tpu.pipeline_mode<synchronous>, transform_indices = @transform_3, window_bounds = array<i64: 32, 128>}, {pipeline_mode = #tpu.pipeline_mode<synchronous>, transform_indices = @transform_4, window_bounds = array<i64: 1, 128>}, {transform_indices = @transform_5, window_bounds = array<i64: 64, 128>}, {transform_indices = @transform_6, window_bounds = array<i64: 64, 128>}]} {
    %c0 = arith.constant 0 : index
    %c0_0 = arith.constant 0 : index
    %0 = vector.load %arg1[%c0, %c0_0] : memref<64x1152xbf16, #tpu.memory_space<vmem>>, vector<64x1152xbf16>
    %c0_1 = arith.constant 0 : index
    %c0_2 = arith.constant 0 : index
    %1 = vector.load %arg2[%c0_1, %c0_2] : memref<1152x32xbf16, #tpu.memory_space<vmem>>, vector<1152x32xbf16>
    %cst = arith.constant dense<0.000000e+00> : vector<64x32xf32>
    %2 = tpu.matmul %0, %1, %cst {dimension_numbers = #tpu.dot_dimension_numbers<[1], [0], [0], [1], [0, 0, 1, 1], [], []>} : vector<64x1152xbf16>, vector<1152x32xbf16>, vector<64x32xf32> -> vector<64x32xf32>
    %c0_3 = arith.constant 0 : index
    %c0_4 = arith.constant 0 : index
    %3 = vector.load %arg3[%c0_3, %c0_4] : memref<1x32xf32, #tpu.memory_space<vmem>>, vector<1x32xf32>
    %4 = vector.broadcast %3 : vector<1x32xf32> to vector<64x32xf32>
    %5 = arith.addf %2, %4 : vector<64x32xf32>
    %cst_5 = arith.constant 0.000000e+00 : f32
    %6 = vector.broadcast %cst_5 : f32 to vector<64x32xf32>
    %7 = arith.maximumf %5, %6 : vector<64x32xf32>
    %8 = arith.truncf %7 : vector<64x32xf32> to vector<64x32xbf16>
    %c0_6 = arith.constant 0 : index
    %c0_7 = arith.constant 0 : index
    %9 = vector.load %arg4[%c0_6, %c0_7] : memref<32x128xbf16, #tpu.memory_space<vmem>>, vector<32x128xbf16>
    %cst_8 = arith.constant dense<0.000000e+00> : vector<64x128xf32>
    %10 = tpu.matmul %8, %9, %cst_8 {dimension_numbers = #tpu.dot_dimension_numbers<[1], [0], [0], [1], [0, 0, 1, 1], [], []>} : vector<64x32xbf16>, vector<32x128xbf16>, vector<64x128xf32> -> vector<64x128xf32>
    %c0_9 = arith.constant 0 : index
    %c0_10 = arith.constant 0 : index
    %11 = vector.load %arg5[%c0_9, %c0_10] : memref<1x128xf32, #tpu.memory_space<vmem>>, vector<1x128xf32>
    %12 = vector.broadcast %11 : vector<1x128xf32> to vector<64x128xf32>
    %13 = arith.addf %10, %12 : vector<64x128xf32>
    %c0_11 = arith.constant 0 : index
    %c0_12 = arith.constant 0 : index
    %14 = vector.load %arg6[%c0_11, %c0_12] : memref<64x128xf32, #tpu.memory_space<vmem>>, vector<64x128xf32>
    %15 = arith.addf %13, %14 : vector<64x128xf32>
    %cst_13 = arith.constant 0.000000e+00 : f32
    %16 = vector.broadcast %cst_13 : f32 to vector<64x128xf32>
    %17 = arith.maximumf %15, %16 : vector<64x128xf32>
    %c0_14 = arith.constant 0 : index
    %c0_15 = arith.constant 0 : index
    %18 = vector.load %arg7[%c0_14, %c0_15] : memref<64x128xf32, #tpu.memory_space<vmem>>, vector<64x128xf32>
    tpu.vector_store %arg7[%c0_14, %c0_15], %17 {strides = array<i32>} : memref<64x128xf32, #tpu.memory_space<vmem>>, vector<64x128xf32>,
    return
  }
  func.func @transform_0(%arg0: i32) -> (i32, i32) {
    %c0_i32 = arith.constant 0 : i32
    %c0_i32_0 = arith.constant 0 : i32
    return %arg0, %c0_i32 : i32, i32
  }
  func.func @transform_1(%arg0: i32) -> (i32, i32) {
    %c0_i32 = arith.constant 0 : i32
    %c0_i32_0 = arith.constant 0 : i32
    %c0_i32_1 = arith.constant 0 : i32
    return %c0_i32, %c0_i32_0 : i32, i32
  }
  func.func @transform_2(%arg0: i32) -> (i32, i32) {
    %c0_i32 = arith.constant 0 : i32
    %c0_i32_0 = arith.constant 0 : i32
    %c0_i32_1 = arith.constant 0 : i32
    return %c0_i32, %c0_i32_0 : i32, i32
  }
  func.func @transform_3(%arg0: i32) -> (i32, i32) {
    %c0_i32 = arith.constant 0 : i32
    %c0_i32_0 = arith.constant 0 : i32
    %c0_i32_1 = arith.constant 0 : i32
    return %c0_i32, %c0_i32_0 : i32, i32
  }
  func.func @transform_4(%arg0: i32) -> (i32, i32) {
    %c0_i32 = arith.constant 0 : i32
    %c0_i32_0 = arith.constant 0 : i32
    %c0_i32_1 = arith.constant 0 : i32
    return %c0_i32, %c0_i32_0 : i32, i32
  }
  func.func @transform_5(%arg0: i32) -> (i32, i32) {
    %c0_i32 = arith.constant 0 : i32
    %c0_i32_0 = arith.constant 0 : i32
    return %arg0, %c0_i32 : i32, i32
  }
  func.func @transform_6(%arg0: i32) -> (i32, i32) {
    %c0_i32 = arith.constant 0 : i32
    %c0_i32_0 = arith.constant 0 : i32
    return %arg0, %c0_i32 : i32, i32
  }
}

module attributes {stable_mosaic.version = 11 : i64} {
  func.func @_vq_kernel(%arg0: i32, %arg1: memref<64x128xbf16, #tpu.memory_space<vmem>>, %arg2: memref<128x4096xbf16, #tpu.memory_space<vmem>>, %arg3: memref<1x4096xf32, #tpu.memory_space<vmem>>, %arg4: memref<64x1xi32, #tpu.memory_space<vmem>>) attributes {dimension_semantics = [#tpu.dimension_semantics<parallel>], iteration_bounds = array<i64: 1>, scalar_prefetch = 0 : i64, scratch_operands = 0 : i64, tpu.core_type = #tpu.core_type<tc>, window_params = [{transform_indices = @transform_0, window_bounds = array<i64: 64, 128>}, {pipeline_mode = #tpu.pipeline_mode<synchronous>, transform_indices = @transform_1, window_bounds = array<i64: 128, 4096>}, {pipeline_mode = #tpu.pipeline_mode<synchronous>, transform_indices = @transform_2, window_bounds = array<i64: 1, 4096>}, {transform_indices = @transform_3, window_bounds = array<i64: 64, 1>}]} {
    %c0 = arith.constant 0 : index
    %c0_0 = arith.constant 0 : index
    %0 = vector.load %arg1[%c0, %c0_0] : memref<64x128xbf16, #tpu.memory_space<vmem>>, vector<64x128xbf16>
    %c0_1 = arith.constant 0 : index
    %c0_2 = arith.constant 0 : index
    %1 = vector.load %arg2[%c0_1, %c0_2] : memref<128x4096xbf16, #tpu.memory_space<vmem>>, vector<128x4096xbf16>
    %cst = arith.constant dense<0.000000e+00> : vector<64x4096xf32>
    %2 = tpu.matmul %0, %1, %cst {dimension_numbers = #tpu.dot_dimension_numbers<[1], [0], [0], [1], [0, 0, 1, 1], [], []>} : vector<64x128xbf16>, vector<128x4096xbf16>, vector<64x4096xf32> -> vector<64x4096xf32>
    %c0_3 = arith.constant 0 : index
    %c0_4 = arith.constant 0 : index
    %3 = vector.load %arg3[%c0_3, %c0_4] : memref<1x4096xf32, #tpu.memory_space<vmem>>, vector<1x4096xf32>
    %4 = vector.broadcast %3 : vector<1x4096xf32> to vector<64x4096xf32>
    %5 = arith.addf %2, %4 : vector<64x4096xf32>
    %cst_5 = arith.constant dense<0xFF800000> : vector<64xf32>
    %6 = vector.multi_reduction <maximumf>, %5, %cst_5 [1] : vector<64x4096xf32> to vector<64xf32>
    %7 = vector.shape_cast %6 : vector<64xf32> to vector<64x1xf32>
    %8 = tpu.iota {dimensions = array<i32: 1>} : vector<64x4096xi32>
    %9 = vector.broadcast %7 : vector<64x1xf32> to vector<64x4096xf32>
    %10 = arith.cmpf oge, %5, %9 : vector<64x4096xf32>
    %c4096_i32 = arith.constant 4096 : i32
    %11 = vector.broadcast %c4096_i32 : i32 to vector<64x4096xi32>
    %12 = arith.select %10, %8, %11 : vector<64x4096xi1>, vector<64x4096xi32>
    %cst_6 = arith.constant dense<2147483647> : vector<64xi32>
    %13 = vector.multi_reduction <minsi>, %12, %cst_6 [1] : vector<64x4096xi32> to vector<64xi32>
    %14 = vector.shape_cast %13 : vector<64xi32> to vector<64x1xi32>
    %c0_7 = arith.constant 0 : index
    %c0_8 = arith.constant 0 : index
    %15 = vector.load %arg4[%c0_7, %c0_8] : memref<64x1xi32, #tpu.memory_space<vmem>>, vector<64x1xi32>
    tpu.vector_store %arg4[%c0_7, %c0_8], %14 {strides = array<i32>} : memref<64x1xi32, #tpu.memory_space<vmem>>, vector<64x1xi32>,
    return
  }
  func.func @transform_0(%arg0: i32) -> (i32, i32) {
    %c0_i32 = arith.constant 0 : i32
    %c0_i32_0 = arith.constant 0 : i32
    return %arg0, %c0_i32 : i32, i32
  }
  func.func @transform_1(%arg0: i32) -> (i32, i32) {
    %c0_i32 = arith.constant 0 : i32
    %c0_i32_0 = arith.constant 0 : i32
    %c0_i32_1 = arith.constant 0 : i32
    return %c0_i32, %c0_i32_0 : i32, i32
  }
  func.func @transform_2(%arg0: i32) -> (i32, i32) {
    %c0_i32 = arith.constant 0 : i32
    %c0_i32_0 = arith.constant 0 : i32
    %c0_i32_1 = arith.constant 0 : i32
    return %c0_i32, %c0_i32_0 : i32, i32
  }
  func.func @transform_3(%arg0: i32) -> (i32, i32) {
    %c0_i32 = arith.constant 0 : i32
    %c0_i32_0 = arith.constant 0 : i32
    return %arg0, %c0_i32 : i32, i32
  }
}

</mosaic_0001>

<bundles_post_ra>
// kernel: label_embedder_forward.6
= control target key start
LH: loop header
LB: loop body
LE: loop exit
PB: predicated region body
PF: predicated region fallthrough
CT: control target
= control target key end

     0   :  { %vm139_vm0 = vcmask 130048   ;;  %vm309_vm1 = vcmask 523264   ;;  %s703_s1 = inlined_call_operand.vmem [shape: bf16[16,64], index: 1, kind: input, shape index: {}]   ;;  %s704_s0 = inlined_call_operand.vmem [shape: bf16[256,16], index: 0, kind: input, shape index: {}]   ;;  %s705_s2 = inlined_call_operand.vmem [shape: f32[1,64], index: 2, kind: input, shape index: {}]   ;;  %s706_s3 = inlined_call_operand.vmem [shape: f32[256,64], index: 3, kind: output, shape index: {}]  }
   0x1   :  { %v446_v0 = vld [vmem:[%s703_s1] sm:$0xff]  ;;  %v431_v5 = vld [vmem:[%s704_s0 + $0x8] sm:$0xff]  ;;  %v432_v9 = vld [vmem:[%s704_s0 + $0x10] sm:$0xff] }
   0x2   :  { %v430_v1 = vld [vmem:[%s704_s0] sm:$0xff]  ;;  %195 = vmatpush.bf16.msra.mxu0 %v446_v0  ;;  %447 = vmatpush.bf16.msra.mxu1 %v446_v0  ;;  %v435_v6 = vld [vmem:[%s704_s0 + $0x28] sm:$0xff]  ;;  %v436_v10 = vld [vmem:[%s704_s0 + $0x30] sm:$0xff] }
   0x3   :  { %v434_v2 = vld [vmem:[%s704_s0 + $0x20] sm:$0xff]  ;;  %448 = vmatpush.bf16.msra.mxu2 %v446_v0  ;;  %449 = vmatpush.bf16.msra.mxu3 %v446_v0  ;;  %v439_v7 = vld [vmem:[%s704_s0 + $0x48] sm:$0xff]  ;;  %v440_v11 = vld [vmem:[%s704_s0 + $0x50] sm:$0xff] }
   0x4   :  { %v438_v3 = vld [vmem:[%s704_s0 + $0x40] sm:$0xff]  ;;  %v443_v8 = vld [vmem:[%s704_s0 + $0x68] sm:$0xff]  ;;  %v444_v12 = vld [vmem:[%s704_s0 + $0x70] sm:$0xff] }
   0x5   :  { %v442_v4 = vld [vmem:[%s704_s0 + $0x60] sm:$0xff]  ;;  %414 = vmatmul.msk.bf16.vlgmr.msra.gmra.mxu0 %vm139_vm0, %v430_v1  ;;  %418 = vmatmul.msk.bf16.vlgmr.msra.gmra.mxu1 %vm139_vm0, %v434_v2  ;;  %v433_v13 = vld [vmem:[%s704_s0 + $0x18] sm:$0xff] }
   0x6   :  { %422 = vmatmul.msk.bf16.vlgmr.msra.gmra.mxu2 %vm139_vm0, %v438_v3  ;;  %426 = vmatmul.msk.bf16.vlgmr.msra.gmra.mxu3 %vm139_vm0, %v442_v4  ;;  %v437_v14 = vld [vmem:[%s704_s0 + $0x38] sm:$0xff]  ;;  %v541_v17 = vld [vmem:[%s705_s2] ss:$0 sm:$0xff] }
   0x7   :  { %v441_v15 = vld [vmem:[%s704_s0 + $0x58] sm:$0xff] }
   0x8   :  { %v445_v16 = vld [vmem:[%s704_s0 + $0x78] sm:$0xff] }
  0x15   :  { %415 = vmatmul.msk.bf16.gmra.mxu0 %vm139_vm0, %v431_v5  ;;  %419 = vmatmul.msk.bf16.gmra.mxu1 %vm139_vm0, %v435_v6 }
  0x16   :  { %423 = vmatmul.msk.bf16.gmra.mxu2 %vm139_vm0, %v439_v7  ;;  %427 = vmatmul.msk.bf16.gmra.mxu3 %vm139_vm0, %v443_v8 }
  0x25   :  { %416 = vmatmul.msk.bf16.gmra.mxu0 %vm139_vm0, %v432_v9  ;;  %420 = vmatmul.msk.bf16.gmra.mxu1 %vm139_vm0, %v436_v10 }
  0x26   :  { %424 = vmatmul.msk.bf16.gmra.mxu2 %vm139_vm0, %v440_v11  ;;  %428 = vmatmul.msk.bf16.gmra.mxu3 %vm139_vm0, %v444_v12 }
  0x35   :  { %417 = vmatmul.msk.bf16.gmra.mxu0 %vm139_vm0, %v433_v13  ;;  %421 = vmatmul.msk.bf16.gmra.mxu1 %vm139_vm0, %v437_v14 }
  0x36   :  { %425 = vmatmul.msk.bf16.gmra.mxu2 %vm139_vm0, %v441_v15  ;;  %429 = vmatmul.msk.bf16.gmra.mxu3 %vm139_vm0, %v445_v16 }
  0x82   :  { %v197_v18 = vpop.f32.mrf.mxu0  ;;  %v217_v19 = vpop.f32.mrf.mxu1 }
  0x83   :  { %v198_v20 = vadd.f32 %v541_v17, %v197_v18  ;;  %v218_v21 = vadd.f32 %v541_v17, %v217_v19 }
  0x85   :  { %v277_v22 = vmax.f32 %v198_v20, 0.0  ;;  %v285_v23 = vmax.f32 %v218_v21, 0.0 }
  0x87   :  { %310 = vst.msk [vmem:[%s706_s3] sm:$0xff] %vm309_vm1, %v277_v22 }
  0x88   :  { %318 = vst.msk [vmem:[%s706_s3 + $0x40] sm:$0xff] %vm309_vm1, %v285_v23 }
  0x89   :  { %v237_v24 = vpop.f32.mrf.mxu2  ;;  %v257_v25 = vpop.f32.mrf.mxu3 }
  0x8a   :  { %v238_v26 = vadd.f32 %v541_v17, %v237_v24  ;;  %v258_v27 = vadd.f32 %v541_v17, %v257_v25  ;;  %v199_v28 = vpop.f32.mrf.mxu0  ;;  %v219_v29 = vpop.f32.mrf.mxu1 }
  0x8b   :  { %v200_v30 = vadd.f32 %v541_v17, %v199_v28  ;;  %v220_v31 = vadd.f32 %v541_v17, %v219_v29 }
  0x8c   :  { %v293_v32 = vmax.f32 %v238_v26, 0.0  ;;  %v301_v33 = vmax.f32 %v258_v27, 0.0 }
  0x8d   :  { %v278_v34 = vmax.f32 %v200_v30, 0.0  ;;  %v286_v35 = vmax.f32 %v220_v31, 0.0 }
  0x8e   :  { %326 = vst.msk [vmem:[%s706_s3 + $0x80] sm:$0xff] %vm309_vm1, %v293_v32 }
  0x8f   :  { %334 = vst.msk [vmem:[%s706_s3 + $0xc0] sm:$0xff] %vm309_vm1, %v301_v33 }
  0x90   :  { %311 = vst.msk [vmem:[%s706_s3 + $0x8] sm:$0xff] %vm309_vm1, %v278_v34 }
  0x91   :  { %319 = vst.msk [vmem:[%s706_s3 + $0x48] sm:$0xff] %vm309_vm1, %v286_v35  ;;  %v239_v36 = vpop.f32.mrf.mxu2  ;;  %v259_v37 = vpop.f32.mrf.mxu3 }
  0x92   :  { %v240_v38 = vadd.f32 %v541_v17, %v239_v36  ;;  %v260_v39 = vadd.f32 %v541_v17, %v259_v37  ;;  %v202_v40 = vpop.f32.mrf.mxu0  ;;  %v222_v41 = vpop.f32.mrf.mxu1 }
  0x93   :  { %v203_v42 = vadd.f32 %v541_v17, %v202_v40  ;;  %v223_v43 = vadd.f32 %v541_v17, %v222_v41 }
  0x94   :  { %v294_v44 = vmax.f32 %v240_v38, 0.0  ;;  %v302_v45 = vmax.f32 %v260_v39, 0.0 }
  0x95   :  { %v279_v46 = vmax.f32 %v203_v42, 0.0  ;;  %v287_v47 = vmax.f32 %v223_v43, 0.0 }
  0x96   :  { %327 = vst.msk [vmem:[%s706_s3 + $0x88] sm:$0xff] %vm309_vm1, %v294_v44 }
  0x97   :  { %335 = vst.msk [vmem:[%s706_s3 + $0xc8] sm:$0xff] %vm309_vm1, %v302_v45 }
  0x98   :  { %312 = vst.msk [vmem:[%s706_s3 + $0x10] sm:$0xff] %vm309_vm1, %v279_v46 }
  0x99   :  { %320 = vst.msk [vmem:[%s706_s3 + $0x50] sm:$0xff] %vm309_vm1, %v287_v47  ;;  %v242_v48 = vpop.f32.mrf.mxu2  ;;  %v262_v49 = vpop.f32.mrf.mxu3 }
  0x9a   :  { %v243_v50 = vadd.f32 %v541_v17, %v242_v48  ;;  %v263_v51 = vadd.f32 %v541_v17, %v262_v49  ;;  %v204_v52 = vpop.f32.mrf.mxu0  ;;  %v224_v53 = vpop.f32.mrf.mxu1 }
  0x9b   :  { %v205_v54 = vadd.f32 %v541_v17, %v204_v52  ;;  %v225_v55 = vadd.f32 %v541_v17, %v224_v53 }
  0x9c   :  { %v295_v56 = vmax.f32 %v243_v50, 0.0  ;;  %v303_v57 = vmax.f32 %v263_v51, 0.0 }
  0x9d   :  { %v280_v58 = vmax.f32 %v205_v54, 0.0  ;;  %v288_v59 = vmax.f32 %v225_v55, 0.0 }
  0x9e   :  { %328 = vst.msk [vmem:[%s706_s3 + $0x90] sm:$0xff] %vm309_vm1, %v295_v56 }
  0x9f   :  { %336 = vst.msk [vmem:[%s706_s3 + $0xd0] sm:$0xff] %vm309_vm1, %v303_v57 }
  0xa0   :  { %313 = vst.msk [vmem:[%s706_s3 + $0x18] sm:$0xff] %vm309_vm1, %v280_v58 }
  0xa1   :  { %321 = vst.msk [vmem:[%s706_s3 + $0x58] sm:$0xff] %vm309_vm1, %v288_v59  ;;  %v244_v60 = vpop.f32.mrf.mxu2  ;;  %v264_v61 = vpop.f32.mrf.mxu3 }
  0xa2   :  { %v245_v62 = vadd.f32 %v541_v17, %v244_v60  ;;  %v265_v63 = vadd.f32 %v541_v17, %v264_v61  ;;  %v207_v0 = vpop.f32.mrf.mxu0  ;;  %v227_v1 = vpop.f32.mrf.mxu1 }
  0xa3   :  { %v208_v2 = vadd.f32 %v541_v17, %v207_v0  ;;  %v228_v3 = vadd.f32 %v541_v17, %v227_v1 }
  0xa4   :  { %v296_v4 = vmax.f32 %v245_v62, 0.0  ;;  %v304_v5 = vmax.f32 %v265_v63, 0.0 }
  0xa5   :  { %v281_v6 = vmax.f32 %v208_v2, 0.0  ;;  %v289_v7 = vmax.f32 %v228_v3, 0.0 }
  0xa6   :  { %329 = vst.msk [vmem:[%s706_s3 + $0x98] sm:$0xff] %vm309_vm1, %v296_v4 }
  0xa7   :  { %337 = vst.msk [vmem:[%s706_s3 + $0xd8] sm:$0xff] %vm309_vm1, %v304_v5 }
  0xa8   :  { %314 = vst.msk [vmem:[%s706_s3 + $0x20] sm:$0xff] %vm309_vm1, %v281_v6 }
  0xa9   :  { %322 = vst.msk [vmem:[%s706_s3 + $0x60] sm:$0xff] %vm309_vm1, %v289_v7  ;;  %v247_v8 = vpop.f32.mrf.mxu2  ;;  %v267_v9 = vpop.f32.mrf.mxu3 }
  0xaa   :  { %v248_v10 = vadd.f32 %v541_v17, %v247_v8  ;;  %v268_v11 = vadd.f32 %v541_v17, %v267_v9  ;;  %v209_v12 = vpop.f32.mrf.mxu0  ;;  %v229_v13 = vpop.f32.mrf.mxu1 }
  0xab   :  { %v210_v14 = vadd.f32 %v541_v17, %v209_v12  ;;  %v230_v15 = vadd.f32 %v541_v17, %v229_v13 }
  0xac   :  { %v297_v16 = vmax.f32 %v248_v10, 0.0  ;;  %v305_v18 = vmax.f32 %v268_v11, 0.0 }
  0xad   :  { %v282_v19 = vmax.f32 %v210_v14, 0.0  ;;  %v290_v20 = vmax.f32 %v230_v15, 0.0 }
  0xae   :  { %330 = vst.msk [vmem:[%s706_s3 + $0xa0] sm:$0xff] %vm309_vm1, %v297_v16 }
  0xaf   :  { %338 = vst.msk [vmem:[%s706_s3 + $0xe0] sm:$0xff] %vm309_vm1, %v305_v18 }
  0xb0   :  { %315 = vst.msk [vmem:[%s706_s3 + $0x28] sm:$0xff] %vm309_vm1, %v282_v19 }
  0xb1   :  { %323 = vst.msk [vmem:[%s706_s3 + $0x68] sm:$0xff] %vm309_vm1, %v290_v20  ;;  %v249_v21 = vpop.f32.mrf.mxu2  ;;  %v269_v22 = vpop.f32.mrf.mxu3 }
  0xb2   :  { %v250_v23 = vadd.f32 %v541_v17, %v249_v21  ;;  %v270_v24 = vadd.f32 %v541_v17, %v269_v22  ;;  %v212_v25 = vpop.f32.mrf.mxu0  ;;  %v232_v26 = vpop.f32.mrf.mxu1 }
  0xb3   :  { %v213_v27 = vadd.f32 %v541_v17, %v212_v25  ;;  %v233_v28 = vadd.f32 %v541_v17, %v232_v26 }
  0xb4   :  { %v298_v29 = vmax.f32 %v250_v23, 0.0  ;;  %v306_v30 = vmax.f32 %v270_v24, 0.0 }
  0xb5   :  { %v283_v31 = vmax.f32 %v213_v27, 0.0  ;;  %v291_v32 = vmax.f32 %v233_v28, 0.0 }
  0xb6   :  { %331 = vst.msk [vmem:[%s706_s3 + $0xa8] sm:$0xff] %vm309_vm1, %v298_v29 }
  0xb7   :  { %339 = vst.msk [vmem:[%s706_s3 + $0xe8] sm:$0xff] %vm309_vm1, %v306_v30 }
  0xb8   :  { %316 = vst.msk [vmem:[%s706_s3 + $0x30] sm:$0xff] %vm309_vm1, %v283_v31 }
  0xb9   :  { %324 = vst.msk [vmem:[%s706_s3 + $0x70] sm:$0xff] %vm309_vm1, %v291_v32  ;;  %v252_v33 = vpop.f32.mrf.mxu2  ;;  %v272_v34 = vpop.f32.mrf.mxu3 }
  0xba   :  { %v253_v35 = vadd.f32 %v541_v17, %v252_v33  ;;  %v273_v36 = vadd.f32 %v541_v17, %v272_v34  ;;  %v214_v37 = vpop.f32.mrf.mxu0  ;;  %v234_v38 = vpop.f32.mrf.mxu1 }
  0xbb   :  { %v215_v39 = vadd.f32 %v541_v17, %v214_v37  ;;  %v235_v40 = vadd.f32 %v541_v17, %v234_v38 }
  0xbc   :  { %v299_v41 = vmax.f32 %v253_v35, 0.0  ;;  %v307_v42 = vmax.f32 %v273_v36, 0.0 }
  0xbd   :  { %v284_v43 = vmax.f32 %v215_v39, 0.0  ;;  %v292_v44 = vmax.f32 %v235_v40, 0.0 }
  0xbe   :  { %332 = vst.msk [vmem:[%s706_s3 + $0xb0] sm:$0xff] %vm309_vm1, %v299_v41 }
  0xbf   :  { %340 = vst.msk [vmem:[%s706_s3 + $0xf0] sm:$0xff] %vm309_vm1, %v307_v42 }
  0xc0   :  { %317 = vst.msk [vmem:[%s706_s3 + $0x38] sm:$0xff] %vm309_vm1, %v284_v43 }
  0xc1   :  { %325 = vst.msk [vmem:[%s706_s3 + $0x78] sm:$0xff] %vm309_vm1, %v292_v44  ;;  %v254_v45 = vpop.f32.mrf.mxu2  ;;  %v274_v46 = vpop.f32.mrf.mxu3 }
  0xc2   :  { %v255_v47 = vadd.f32 %v541_v17, %v254_v45  ;;  %v275_v48 = vadd.f32 %v541_v17, %v274_v46 }
  0xc4   :  { %v300_v49 = vmax.f32 %v255_v47, 0.0  ;;  %v308_v50 = vmax.f32 %v275_v48, 0.0 }
  0xc6   :  { %333 = vst.msk [vmem:[%s706_s3 + $0xb8] sm:$0xff] %vm309_vm1, %v300_v49 }
  0xc7   :  { %341 = vst.msk [vmem:[%s706_s3 + $0xf8] sm:$0xff] %vm309_vm1, %v308_v50 }

// kernel: label_embedder_forward.7
= control target key start
LH: loop header
LB: loop body
LE: loop exit
PB: predicated region body
PF: predicated region fallthrough
CT: control target
= control target key end

     0   :  { %s1938_s1 = inlined_call_operand.vmem [shape: bf16[1024,128], index: 1, kind: input, shape index: {}]   ;;  %s1939_s2 = inlined_call_operand.vmem [shape: f32[1,128], index: 2, kind: input, shape index: {}]   ;;  %s1940_s0 = inlined_call_operand.vmem [shape: bf16[64,1024], index: 0, kind: input, shape index: {}]   ;;  %s1941_s3 = inlined_call_operand.vmem [shape: f32[64,128], index: 3, kind: output, shape index: {}]  }
   0x1   :  { %v1397_v0 = vld [vmem:[%s1938_s1 + $0x38] sm:$0xff]  ;;  %v1396_v4 = vld [vmem:[%s1938_s1 + $0x30] sm:$0xff]  ;;  %v1395_v8 = vld [vmem:[%s1938_s1 + $0x28] sm:$0xff] }
   0x2   :  { %v1405_v1 = vld [vmem:[%s1938_s1 + $0x78] sm:$0xff]  ;;  %722 = vmatpush.bf16.msra.mxu0 %v1397_v0  ;;  %v1404_v5 = vld [vmem:[%s1938_s1 + $0x70] sm:$0xff]  ;;  %v1403_v9 = vld [vmem:[%s1938_s1 + $0x68] sm:$0xff] }
   0x3   :  { %v1413_v2 = vld [vmem:[%s1938_s1 + $0xb8] sm:$0xff]  ;;  %751 = vmatpush.bf16.msra.mxu1 %v1405_v1  ;;  %v1412_v6 = vld [vmem:[%s1938_s1 + $0xb0] sm:$0xff]  ;;  %v1411_v10 = vld [vmem:[%s1938_s1 + $0xa8] sm:$0xff] }
   0x4   :  { %v1421_v3 = vld [vmem:[%s1938_s1 + $0xf8] sm:$0xff]  ;;  %780 = vmatpush.bf16.msra.mxu2 %v1413_v2  ;;  %v1420_v7 = vld [vmem:[%s1938_s1 + $0xf0] sm:$0xff]  ;;  %v1419_v11 = vld [vmem:[%s1938_s1 + $0xe8] sm:$0xff] }
   0x5   :  { %809 = vmatpush.bf16.msra.mxu3 %v1421_v3  ;;  %v1394_v12 = vld [vmem:[%s1938_s1 + $0x20] sm:$0xff]  ;;  %v1393_v16 = vld [vmem:[%s1938_s1 + $0x18] sm:$0xff]  ;;  %v1392_v20 = vld [vmem:[%s1938_s1 + $0x10] sm:$0xff] }
   0x6   :  { %723 = vmatpush.bf16.msra.mxu0 %v1396_v4  ;;  %v1402_v13 = vld [vmem:[%s1938_s1 + $0x60] sm:$0xff]  ;;  %v1401_v17 = vld [vmem:[%s1938_s1 + $0x58] sm:$0xff]  ;;  %v1400_v21 = vld [vmem:[%s1938_s1 + $0x50] sm:$0xff] }
   0x7   :  { %752 = vmatpush.bf16.msra.mxu1 %v1404_v5  ;;  %v1410_v14 = vld [vmem:[%s1938_s1 + $0xa0] sm:$0xff]  ;;  %v1409_v18 = vld [vmem:[%s1938_s1 + $0x98] sm:$0xff]  ;;  %v1408_v22 = vld [vmem:[%s1938_s1 + $0x90] sm:$0xff] }
   0x8   :  { %781 = vmatpush.bf16.msra.mxu2 %v1412_v6  ;;  %v1418_v15 = vld [vmem:[%s1938_s1 + $0xe0] sm:$0xff]  ;;  %v1417_v19 = vld [vmem:[%s1938_s1 + $0xd8] sm:$0xff]  ;;  %v1416_v23 = vld [vmem:[%s1938_s1 + $0xd0] sm:$0xff] }
   0x9   :  { %810 = vmatpush.bf16.msra.mxu3 %v1420_v7  ;;  %v1391_v24 = vld [vmem:[%s1938_s1 + $0x8] sm:$0xff]  ;;  %v1390_v28 = vld [vmem:[%s1938_s1] sm:$0xff]  ;;  %v1445_v40 = vld [vmem:[%s1938_s1 + $0x1b8] sm:$0xff] }
   0xa   :  { %724 = vmatpush.bf16.msra.mxu0 %v1395_v8  ;;  %v1399_v25 = vld [vmem:[%s1938_s1 + $0x48] sm:$0xff]  ;;  %v1398_v29 = vld [vmem:[%s1938_s1 + $0x40] sm:$0xff]  ;;  %v1429_v41 = vld [vmem:[%s1938_s1 + $0x138] sm:$0xff] }
   0xb   :  { %753 = vmatpush.bf16.msra.mxu1 %v1403_v9  ;;  %v1407_v26 = vld [vmem:[%s1938_s1 + $0x88] sm:$0xff]  ;;  %v1406_v30 = vld [vmem:[%s1938_s1 + $0x80] sm:$0xff]  ;;  %v1453_v46 = vld [vmem:[%s1938_s1 + $0x1f8] sm:$0xff] }
   0xc   :  { %782 = vmatpush.bf16.msra.mxu2 %v1411_v10  ;;  %v1415_v27 = vld [vmem:[%s1938_s1 + $0xc8] sm:$0xff]  ;;  %v1414_v31 = vld [vmem:[%s1938_s1 + $0xc0] sm:$0xff]  ;;  %v1437_v47 = vld [vmem:[%s1938_s1 + $0x178] sm:$0xff] }
   0xd   :  { %811 = vmatpush.bf16.msra.mxu3 %v1419_v11  ;;  %v976_v32 = vld [vmem:[%s1940_s0] sm:$0xf]  ;;  %v1358_v34 = vld [vmem:[%s1940_s0 + $0x4] sm:$0xf]  ;;  %v984_v36 = vld [vmem:[%s1940_s0 + $0x8] sm:$0xf] }
   0xe   :  { %725 = vmatpush.bf16.msra.mxu0 %v1394_v12  ;;  %v1362_v33 = vld [vmem:[%s1940_s0 + $0x1c] sm:$0xf0]  ;;  %v978_v35 = vld [vmem:[%s1940_s0 + $0x20] sm:$0xf0]  ;;  %v1363_v37 = vld [vmem:[%s1940_s0 + $0x24] sm:$0xf0] }
   0xf   :  { %754 = vmatpush.bf16.msra.mxu1 %v1402_v13  ;;  %v1359_v38 = vld [vmem:[%s1940_s0 + $0xc] sm:$0xf]  ;;  %v977_v42 = vor.u32 %v1362_v33, %v976_v32  ;;  %v981_v43 = vor.u32 %v1358_v34, %v978_v35  ;;  %v985_v44 = vor.u32 %v1363_v37, %v984_v36  ;;  %v1444_v48 = vld [vmem:[%s1938_s1 + $0x1b0] sm:$0xff]  ;;  %v1008_v56 = vld [vmem:[%s1940_s0 + $0x40] sm:$0xf] }
  0x10   :  { %783 = vmatpush.bf16.msra.mxu2 %v1410_v14  ;;  %v986_v39 = vld [vmem:[%s1940_s0 + $0x28] sm:$0xf0]  ;;  %v1428_v49 = vld [vmem:[%s1938_s1 + $0x130] sm:$0xff]  ;;  %v1442_v57 = vld [vmem:[%s1938_s1 + $0x1a0] sm:$0xff] }
  0x11   :  { %812 = vmatpush.bf16.msra.mxu3 %v1418_v15  ;;  %v989_v45 = vor.u32 %v1359_v38, %v986_v39  ;;  %v1452_v50 = vld [vmem:[%s1938_s1 + $0x1f0] sm:$0xff]  ;;  %v1443_v52 = vld [vmem:[%s1938_s1 + $0x1a8] sm:$0xff]  ;;  %v1426_v58 = vld [vmem:[%s1938_s1 + $0x120] sm:$0xff] }
  0x12   :  { %726 = vmatpush.bf16.msra.mxu0 %v1393_v16  ;;  %v1436_v51 = vld [vmem:[%s1938_s1 + $0x170] sm:$0xff]  ;;  %v1427_v53 = vld [vmem:[%s1938_s1 + $0x128] sm:$0xff]  ;;  %v1370_v59 = vld [vmem:[%s1940_s0 + $0x5c] sm:$0xf0] }
  0x13   :  { %755 = vmatpush.bf16.msra.mxu1 %v1401_v17  ;;  %v1451_v54 = vld [vmem:[%s1938_s1 + $0x1e8] sm:$0xff]  ;;  %v1366_v60 = vld [vmem:[%s1940_s0 + $0x44] sm:$0xf]  ;;  %v1441_v4 = vld [vmem:[%s1938_s1 + $0x198] sm:$0xff]  ;;  %v1009_v6 = vor.u32 %v1370_v59, %v1008_v56 }
  0x14   :  { %784 = vmatpush.bf16.msra.mxu2 %v1409_v18  ;;  %v1435_v55 = vld [vmem:[%s1938_s1 + $0x168] sm:$0xff]  ;;  %v1010_v61 = vld [vmem:[%s1940_s0 + $0x60] sm:$0xf0]  ;;  %v1425_v5 = vld [vmem:[%s1938_s1 + $0x118] sm:$0xff] }
  0x15   :  { %813 = vmatpush.bf16.msra.mxu3 %v1417_v19  ;;  %v1016_v62 = vld [vmem:[%s1940_s0 + $0x48] sm:$0xf]  ;;  %v1367_v0 = vld [vmem:[%s1940_s0 + $0x4c] sm:$0xf]  ;;  %v1450_v2 = vld [vmem:[%s1938_s1 + $0x1e0] sm:$0xff]  ;;  %v1013_v7 = vor.u32 %v1366_v60, %v1010_v61 }
  0x16   :  { %727 = vmatpush.bf16.msra.mxu0 %v1392_v20  ;;  %v1371_v63 = vld [vmem:[%s1940_s0 + $0x64] sm:$0xf0]  ;;  %v1018_v1 = vld [vmem:[%s1940_s0 + $0x68] sm:$0xf0]  ;;  %v1434_v3 = vld [vmem:[%s1938_s1 + $0x160] sm:$0xff] }
  0x17   :  { %756 = vmatpush.bf16.msra.mxu1 %v1400_v21  ;;  %v1017_v8 = vor.u32 %v1371_v63, %v1016_v62  ;;  %v1021_v9 = vor.u32 %v1367_v0, %v1018_v1  ;;  %v1449_v10 = vld [vmem:[%s1938_s1 + $0x1d8] sm:$0xff]  ;;  %v1440_v12 = vld [vmem:[%s1938_s1 + $0x190] sm:$0xff]  ;;  %v1439_v16 = vld [vmem:[%s1938_s1 + $0x188] sm:$0xff] }
  0x18   :  { %785 = vmatpush.bf16.msra.mxu2 %v1408_v22  ;;  %v1433_v11 = vld [vmem:[%s1938_s1 + $0x158] sm:$0xff]  ;;  %v1424_v13 = vld [vmem:[%s1938_s1 + $0x110] sm:$0xff]  ;;  %v1423_v17 = vld [vmem:[%s1938_s1 + $0x108] sm:$0xff] }
  0x19   :  { %814 = vmatpush.bf16.msra.mxu3 %v1416_v23  ;;  %v1448_v14 = vld [vmem:[%s1938_s1 + $0x1d0] sm:$0xff]  ;;  %v1447_v18 = vld [vmem:[%s1938_s1 + $0x1c8] sm:$0xff]  ;;  %v1040_v20 = vld [vmem:[%s1940_s0 + $0x80] sm:$0xf] }
  0x1a   :  { %728 = vmatpush.bf16.msra.mxu0 %v1391_v24  ;;  %v1432_v15 = vld [vmem:[%s1938_s1 + $0x150] sm:$0xff]  ;;  %v1431_v19 = vld [vmem:[%s1938_s1 + $0x148] sm:$0xff]  ;;  %v1438_v21 = vld [vmem:[%s1938_s1 + $0x180] sm:$0xff] }
  0x1b   :  { %757 = vmatpush.bf16.msra.mxu1 %v1399_v25  ;;  %v1422_v22 = vld [vmem:[%s1938_s1 + $0x100] sm:$0xff]  ;;  %v1024_v60 = vld [vmem:[%s1940_s0 + $0x50] sm:$0xf]  ;;  %v1368_v62 = vld [vmem:[%s1940_s0 + $0x54] sm:$0xf] }
  0x1c   :  { %786 = vmatpush.bf16.msra.mxu2 %v1407_v26  ;;  %v1378_v23 = vld [vmem:[%s1940_s0 + $0x9c] sm:$0xf0]  ;;  %v1374_v24 = vld [vmem:[%s1940_s0 + $0x84] sm:$0xf]  ;;  %v1048_v26 = vld [vmem:[%s1940_s0 + $0x88] sm:$0xf] }
  0x1d   :  { %815 = vmatpush.bf16.msra.mxu3 %v1415_v27  ;;  %v1042_v25 = vld [vmem:[%s1940_s0 + $0xa0] sm:$0xf0]  ;;  %v1379_v27 = vld [vmem:[%s1940_s0 + $0xa4] sm:$0xf0]  ;;  %v1041_v32 = vor.u32 %v1378_v23, %v1040_v20  ;;  %v1072_v36 = vld [vmem:[%s1940_s0 + $0xc0] sm:$0xf] }
  0x1e   :  { %729 = vmatpush.bf16.msra.mxu0 %v1390_v28  ;;  %v1375_v28 = vld [vmem:[%s1940_s0 + $0x8c] sm:$0xf]  ;;  %v1045_v33 = vor.u32 %v1374_v24, %v1042_v25  ;;  %v1049_v34 = vor.u32 %v1379_v27, %v1048_v26  ;;  %v1386_v37 = vld [vmem:[%s1940_s0 + $0xdc] sm:$0xf0]  ;;  %v1382_v38 = vld [vmem:[%s1940_s0 + $0xc4] sm:$0xf] }
  0x1f   :  { %758 = vmatpush.bf16.msra.mxu1 %v1398_v29  ;;  %v1050_v29 = vld [vmem:[%s1940_s0 + $0xa8] sm:$0xf0]  ;;  %v1074_v39 = vld [vmem:[%s1940_s0 + $0xe0] sm:$0xf0]  ;;  %v1372_v61 = vld [vmem:[%s1940_s0 + $0x6c] sm:$0xf0] }
  0x20   :  { %787 = vmatpush.bf16.msra.mxu2 %v1406_v30  ;;  %v1446_v30 = vld [vmem:[%s1938_s1 + $0x1c0] sm:$0xff]  ;;  %v1053_v35 = vor.u32 %v1375_v28, %v1050_v29  ;;  %v1026_v63 = vld [vmem:[%s1940_s0 + $0x70] sm:$0xf0]  ;;  %v1032_v0 = vld [vmem:[%s1940_s0 + $0x58] sm:$0xf] }
  0x21   :  { %816 = vmatpush.bf16.msra.mxu3 %v1414_v31  ;;  %730 = vmatmul.bf16.vlgmr.msra.gmra.mxu0 %v977_v42  ;;  %v1430_v31 = vld [vmem:[%s1938_s1 + $0x140] sm:$0xff]  ;;  %v1383_v42 = vld [vmem:[%s1940_s0 + $0xcc] sm:$0xf]  ;;  %v1373_v1 = vld [vmem:[%s1940_s0 + $0x74] sm:$0xf0] }
  0x22   :  { %838 = vmatpush.bf16.msrb.mxu0 %v1429_v41  ;;  %759 = vmatmul.bf16.vlgmr.msra.gmra.mxu1 %v981_v43  ;;  %v1387_v41 = vld [vmem:[%s1940_s0 + $0xe4] sm:$0xf0]  ;;  %v1082_v43 = vld [vmem:[%s1940_s0 + $0xe8] sm:$0xf0]  ;;  %v1088_v20 = vld [vmem:[%s1940_s0 + $0xd0] sm:$0xf] }
  0x23   :  { %788 = vmatmul.bf16.vlgmr.msra.gmra.mxu2 %v985_v44  ;;  %867 = vmatpush.bf16.msrb.mxu1 %v1437_v47  ;;  %v1073_v44 = vor.u32 %v1386_v37, %v1072_v36  ;;  %v1085_v47 = vor.u32 %v1383_v42, %v1082_v43  ;;  %v1090_v23 = vld [vmem:[%s1940_s0 + $0xf0] sm:$0xf0]  ;;  %v1096_v24 = vld [vmem:[%s1940_s0 + $0xd8] sm:$0xf]  ;;  %v1385_v26 = vld [vmem:[%s1940_s0 + $0xdc] sm:$0xf] }
  0x24   :  { %896 = vmatpush.bf16.msrb.mxu2 %v1445_v40  ;;  %817 = vmatmul.bf16.vlgmr.msra.gmra.mxu3 %v989_v45  ;;  %v1080_v40 = vld [vmem:[%s1940_s0 + $0xc8] sm:$0xf]  ;;  %v1077_v45 = vor.u32 %v1382_v38, %v1074_v39  ;;  %v1389_v25 = vld [vmem:[%s1940_s0 + $0xf4] sm:$0xf0]  ;;  %v1098_v27 = vld [vmem:[%s1940_s0 + $0xf8] sm:$0xf0] }
  0x25   :  { %925 = vmatpush.bf16.msrb.mxu3 %v1453_v46  ;;  %v1081_v46 = vor.u32 %v1387_v41, %v1080_v40 }
  0x26   :  { %839 = vmatpush.bf16.msrb.mxu0 %v1428_v49  ;;  %v1364_v49 = vld [vmem:[%s1940_s0 + $0x2c] sm:$0xf0] }
  0x27   :  { %868 = vmatpush.bf16.msrb.mxu1 %v1436_v51  ;;  %v994_v51 = vld [vmem:[%s1940_s0 + $0x30] sm:$0xf0] }
  0x28   :  { %897 = vmatpush.bf16.msrb.mxu2 %v1444_v48  ;;  %v992_v48 = vld [vmem:[%s1940_s0 + $0x10] sm:$0xf] }
  0x29   :  { %926 = vmatpush.bf16.msrb.mxu3 %v1452_v50  ;;  %v1360_v50 = vld [vmem:[%s1940_s0 + $0x14] sm:$0xf]  ;;  %v993_v56 = vor.u32 %v1364_v49, %v992_v48 }
  0x2a   :  { %840 = vmatpush.bf16.msrb.mxu0 %v1427_v53  ;;  %v1365_v53 = vld [vmem:[%s1940_s0 + $0x34] sm:$0xf0] }
  0x2b   :  { %869 = vmatpush.bf16.msrb.mxu1 %v1435_v55  ;;  %v1002_v55 = vld [vmem:[%s1940_s0 + $0x38] sm:$0xf0] }
  0x2c   :  { %898 = vmatpush.bf16.msrb.mxu2 %v1443_v52  ;;  %v1000_v52 = vld [vmem:[%s1940_s0 + $0x18] sm:$0xf] }
  0x2d   :  { %927 = vmatpush.bf16.msrb.mxu3 %v1451_v54  ;;  %v1361_v54 = vld [vmem:[%s1940_s0 + $0x1c] sm:$0xf] }
  0x2e   :  { %841 = vmatpush.bf16.msrb.mxu0 %v1426_v58  ;;  %v1001_v58 = vor.u32 %v1365_v53, %v1000_v52  ;;  %v1005_v59 = vor.u32 %v1361_v54, %v1002_v55 }
  0x2f   :  { %870 = vmatpush.bf16.msrb.mxu1 %v1434_v3  ;;  %v1034_v3 = vld [vmem:[%s1940_s0 + $0x78] sm:$0xf0] }
  0x30   :  { %899 = vmatpush.bf16.msrb.mxu2 %v1442_v57  ;;  %v997_v57 = vor.u32 %v1360_v50, %v994_v51 }
  0x31   :  { %928 = vmatpush.bf16.msrb.mxu3 %v1450_v2  ;;  %735 = vmatmul.bf16.gmra.mxu0 %v1009_v6  ;;  %v1369_v2 = vld [vmem:[%s1940_s0 + $0x5c] sm:$0xf]  ;;  %v1033_v6 = vor.u32 %v1373_v1, %v1032_v0 }
  0x32   :  { %842 = vmatpush.bf16.msrb.mxu0 %v1425_v5  ;;  %764 = vmatmul.bf16.gmra.mxu1 %v1013_v7  ;;  %v1029_v5 = vor.u32 %v1368_v62, %v1026_v63  ;;  %v1037_v7 = vor.u32 %v1369_v2, %v1034_v3 }
  0x33   :  { %793 = vmatmul.bf16.gmra.mxu2 %v1017_v8  ;;  %871 = vmatpush.bf16.msrb.mxu1 %v1433_v11  ;;  %v1056_v8 = vld [vmem:[%s1940_s0 + $0x90] sm:$0xf]  ;;  %v1058_v11 = vld [vmem:[%s1940_s0 + $0xb0] sm:$0xf0] }
  0x34   :  { %900 = vmatpush.bf16.msrb.mxu2 %v1441_v4  ;;  %822 = vmatmul.bf16.gmra.mxu3 %v1021_v9  ;;  %v1025_v4 = vor.u32 %v1372_v61, %v1024_v60  ;;  %v1380_v9 = vld [vmem:[%s1940_s0 + $0xac] sm:$0xf0] }
  0x35   :  { %929 = vmatpush.bf16.msrb.mxu3 %v1449_v10  ;;  %v1376_v10 = vld [vmem:[%s1940_s0 + $0x94] sm:$0xf] }
  0x36   :  { %843 = vmatpush.bf16.msrb.mxu0 %v1424_v13  ;;  %v1381_v13 = vld [vmem:[%s1940_s0 + $0xb4] sm:$0xf0] }
  0x37   :  { %872 = vmatpush.bf16.msrb.mxu1 %v1432_v15  ;;  %v1066_v15 = vld [vmem:[%s1940_s0 + $0xb8] sm:$0xf0] }
  0x38   :  { %901 = vmatpush.bf16.msrb.mxu2 %v1440_v12  ;;  %v1064_v12 = vld [vmem:[%s1940_s0 + $0x98] sm:$0xf] }
  0x39   :  { %930 = vmatpush.bf16.msrb.mxu3 %v1448_v14  ;;  %v1377_v14 = vld [vmem:[%s1940_s0 + $0x9c] sm:$0xf] }
  0x3a   :  { %844 = vmatpush.bf16.msrb.mxu0 %v1423_v17  ;;  %v1061_v17 = vor.u32 %v1376_v10, %v1058_v11 }
  0x3b   :  { %873 = vmatpush.bf16.msrb.mxu1 %v1431_v19  ;;  %v1069_v19 = vor.u32 %v1377_v14, %v1066_v15 }
  0x3c   :  { %902 = vmatpush.bf16.msrb.mxu2 %v1439_v16  ;;  %v1057_v16 = vor.u32 %v1380_v9, %v1056_v8 }
  0x3d   :  { %931 = vmatpush.bf16.msrb.mxu3 %v1447_v18  ;;  %v1065_v18 = vor.u32 %v1381_v13, %v1064_v12 }
  0x3e   :  { %845 = vmatpush.bf16.msrb.mxu0 %v1422_v22  ;;  %v1384_v22 = vld [vmem:[%s1940_s0 + $0xd4] sm:$0xf] }
  0x3f   :  { %874 = vmatpush.bf16.msrb.mxu1 %v1430_v31  ;;  %v1093_v29 = vor.u32 %v1384_v22, %v1090_v23  ;;  %v1101_v31 = vor.u32 %v1385_v26, %v1098_v27 }
  0x40   :  { %903 = vmatpush.bf16.msrb.mxu2 %v1438_v21  ;;  %v1388_v21 = vld [vmem:[%s1940_s0 + $0xec] sm:$0xf0] }
  0x41   :  { %932 = vmatpush.bf16.msrb.mxu3 %v1446_v30  ;;  %740 = vmatmul.bf16.gmra.mxu0 %v1041_v32  ;;  %v1089_v28 = vor.u32 %v1388_v21, %v1088_v20  ;;  %v1097_v30 = vor.u32 %v1389_v25, %v1096_v24 }
  0x42   :  { %769 = vmatmul.bf16.gmra.mxu1 %v1045_v33 }
  0x43   :  { %798 = vmatmul.bf16.gmra.mxu2 %v1049_v34 }
  0x44   :  { %827 = vmatmul.bf16.gmra.mxu3 %v1053_v35 }
  0x51   :  { %745 = vmatmul.bf16.gmra.mxu0 %v1073_v44 }
  0x52   :  { %774 = vmatmul.bf16.gmra.mxu1 %v1077_v45 }
  0x53   :  { %803 = vmatmul.bf16.gmra.mxu2 %v1081_v46 }
  0x54   :  { %832 = vmatmul.bf16.gmra.mxu3 %v1085_v47 }
  0x61   :  { %846 = vmatmul.bf16.vlgmr.msrb.gmra.mxu0 %v993_v56  ;;  %v1874_v56 = vld [vmem:[%s1939_s2] ss:$0 sm:$0xff] }
  0x62   :  { %875 = vmatmul.bf16.vlgmr.msrb.gmra.mxu1 %v997_v57 }
  0x63   :  { %904 = vmatmul.bf16.vlgmr.msrb.gmra.mxu2 %v1001_v58 }
  0x64   :  { %933 = vmatmul.bf16.vlgmr.msrb.gmra.mxu3 %v1005_v59 }
  0x71   :  { %851 = vmatmul.bf16.gmra.mxu0 %v1025_v4 }
  0x72   :  { %880 = vmatmul.bf16.gmra.mxu1 %v1029_v5 }
  0x73   :  { %909 = vmatmul.bf16.gmra.mxu2 %v1033_v6 }
  0x74   :  { %938 = vmatmul.bf16.gmra.mxu3 %v1037_v7 }
  0x81   :  { %856 = vmatmul.bf16.gmra.mxu0 %v1057_v16 }
  0x82   :  { %885 = vmatmul.bf16.gmra.mxu1 %v1061_v17 }
  0x83   :  { %914 = vmatmul.bf16.gmra.mxu2 %v1065_v18 }
  0x84   :  { %943 = vmatmul.bf16.gmra.mxu3 %v1069_v19 }
  0x91   :  { %861 = vmatmul.bf16.gmra.mxu0 %v1089_v28 }
  0x92   :  { %890 = vmatmul.bf16.gmra.mxu1 %v1093_v29 }
  0x93   :  { %919 = vmatmul.bf16.gmra.mxu2 %v1097_v30 }
  0x94   :  { %948 = vmatmul.bf16.gmra.mxu3 %v1101_v31 }
  0x9e   :  { %v731_v32 = vpop.f32.mrf.mxu0 }
  0x9f   :  { %v760_v33 = vpop.f32.mrf.mxu1  ;;  %v732_v59 = vadd.f32 %v1874_v56, %v731_v32 }
  0xa1   :  { %v761_v62 = vadd.f32 %v760_v33, %v732_v59 }
  0xa6   :  { %v789_v34 = vpop.f32.mrf.mxu2  ;;  %v733_v36 = vpop.f32.mrf.mxu0 }
  0xa7   :  { %v818_v35 = vpop.f32.mrf.mxu3  ;;  %v762_v37 = vpop.f32.mrf.mxu1  ;;  %v790_v1 = vadd.f32 %v789_v34, %v761_v62  ;;  %v734_v2 = vadd.f32 %v1874_v56, %v733_v36 }
  0xa9   :  { %v819_v5 = vadd.f32 %v818_v35, %v790_v1  ;;  %v763_v8 = vadd.f32 %v762_v37, %v734_v2 }
  0xae   :  { %v791_v38 = vpop.f32.mrf.mxu2  ;;  %v736_v40 = vpop.f32.mrf.mxu0 }
  0xaf   :  { %v820_v39 = vpop.f32.mrf.mxu3  ;;  %v765_v41 = vpop.f32.mrf.mxu1  ;;  %v792_v10 = vadd.f32 %v791_v38, %v763_v8  ;;  %v737_v11 = vadd.f32 %v1874_v56, %v736_v40 }
  0xb1   :  { %v821_v15 = vadd.f32 %v820_v39, %v792_v10  ;;  %v766_v16 = vadd.f32 %v765_v41, %v737_v11 }
  0xb6   :  { %v794_v42 = vpop.f32.mrf.mxu2  ;;  %v738_v44 = vpop.f32.mrf.mxu0 }
  0xb7   :  { %v823_v43 = vpop.f32.mrf.mxu3  ;;  %v767_v45 = vpop.f32.mrf.mxu1  ;;  %v795_v22 = vadd.f32 %v794_v42, %v766_v16  ;;  %v739_v24 = vadd.f32 %v1874_v56, %v738_v44 }
  0xb9   :  { %v824_v28 = vadd.f32 %v823_v43, %v795_v22  ;;  %v768_v32 = vadd.f32 %v767_v45, %v739_v24 }
  0xbe   :  { %v796_v46 = vpop.f32.mrf.mxu2  ;;  %v741_v48 = vpop.f32.mrf.mxu0 }
  0xbf   :  { %v825_v47 = vpop.f32.mrf.mxu3  ;;  %v770_v49 = vpop.f32.mrf.mxu1  ;;  %v797_v35 = vadd.f32 %v796_v46, %v768_v32  ;;  %v742_v36 = vadd.f32 %v1874_v56, %v741_v48 }
  0xc1   :  { %v826_v41 = vadd.f32 %v825_v47, %v797_v35  ;;  %v771_v42 = vadd.f32 %v770_v49, %v742_v36 }
  0xc6   :  { %v1859_v50 = vpop.f32.mrf.mxu2  ;;  %v1863_v52 = vpop.f32.mrf.mxu0 }
  0xc7   :  { %v1861_v51 = vpop.f32.mrf.mxu3  ;;  %v1865_v53 = vpop.f32.mrf.mxu1  ;;  %v800_v1 = vadd.f32 %v1859_v50, %v771_v42  ;;  %v744_v48 = vadd.f32 %v1874_v56, %v1863_v52 }
  0xc9   :  { %v829_v47 = vadd.f32 %v1861_v51, %v800_v1 }
  0xce   :  { %v1867_v54 = vpop.f32.mrf.mxu2  ;;  %v1876_v57 = vpop.f32.mrf.mxu0 }
  0xcf   :  { %v1869_v55 = vpop.f32.mrf.mxu3  ;;  %v1878_v58 = vpop.f32.mrf.mxu1  ;;  %v747_v52 = vadd.f32 %v1874_v56, %v1876_v57 }
  0xd1   :  { %v776_v16 = vadd.f32 %v1878_v58, %v747_v52 }
  0xd6   :  { %v1881_v60 = vpop.f32.mrf.mxu2  ;;  %v1885_v63 = vpop.f32.mrf.mxu0 }
  0xd7   :  { %v1883_v61 = vpop.f32.mrf.mxu3  ;;  %v1887_v0 = vpop.f32.mrf.mxu1 }
  0xde   :  { %v1890_v3 = vpop.f32.mrf.mxu2  ;;  %v847_v6 = vpop.f32.mrf.mxu0 }
  0xdf   :  { %v1892_v4 = vpop.f32.mrf.mxu3  ;;  %v876_v7 = vpop.f32.mrf.mxu1  ;;  %v848_v9 = vadd.f32 %v847_v6, %v819_v5 }
  0xe1   :  { %v877_v12 = vadd.f32 %v876_v7, %v848_v9  ;;  %v773_v9 = vadd.f32 %v1865_v53, %v744_v48 }
  0xe3   :  { %v802_v11 = vadd.f32 %v1867_v54, %v773_v9 }
  0xe6   :  { %v905_v13 = vpop.f32.mrf.mxu2  ;;  %v849_v18 = vpop.f32.mrf.mxu0 }
  0xe7   :  { %v934_v14 = vpop.f32.mrf.mxu3  ;;  %v906_v17 = vadd.f32 %v905_v13, %v877_v12  ;;  %v878_v19 = vpop.f32.mrf.mxu1  ;;  %v850_v21 = vadd.f32 %v849_v18, %v821_v15  ;;  %v831_v15 = vadd.f32 %v1869_v55, %v802_v11 }
  0xe9   :  { %v935_v20 = vadd.f32 %v934_v14, %v906_v17  ;;  %v879_v25 = vadd.f32 %v878_v19, %v850_v21  ;;  %v749_v21 = vadd.f32 %v1874_v56, %v1885_v63 }
  0xeb   :  { %v954_v23 = vmax.f32 %v935_v20, 0.0  ;;  %v805_v20 = vadd.f32 %v1881_v60, %v776_v16 }
  0xed   :  { %962 = vst [vmem:[%s1941_s3] sm:$0xff] %v954_v23  ;;  %v834_v58 = vadd.f32 %v1883_v61, %v805_v20 }
  0xee   :  { %v907_v26 = vpop.f32.mrf.mxu2  ;;  %v852_v30 = vpop.f32.mrf.mxu0 }
  0xef   :  { %v936_v27 = vpop.f32.mrf.mxu3  ;;  %v908_v29 = vadd.f32 %v907_v26, %v879_v25  ;;  %v881_v31 = vpop.f32.mrf.mxu1  ;;  %v853_v34 = vadd.f32 %v852_v30, %v824_v28  ;;  %v778_v26 = vadd.f32 %v1887_v0, %v749_v21 }
  0xf1   :  { %v937_v33 = vadd.f32 %v936_v27, %v908_v29  ;;  %v882_v38 = vadd.f32 %v881_v31, %v853_v34  ;;  %v807_v29 = vadd.f32 %v1890_v3, %v778_v26 }
  0xf3   :  { %v955_v37 = vmax.f32 %v937_v33, 0.0  ;;  %v836_v32 = vadd.f32 %v1892_v4, %v807_v29 }
  0xf5   :  { %963 = vst [vmem:[%s1941_s3 + $0x8] sm:$0xff] %v955_v37 }
  0xf6   :  { %v910_v39 = vpop.f32.mrf.mxu2  ;;  %v854_v44 = vpop.f32.mrf.mxu0 }
  0xf7   :  { %v939_v40 = vpop.f32.mrf.mxu3  ;;  %v911_v43 = vadd.f32 %v910_v39, %v882_v38  ;;  %v883_v59 = vpop.f32.mrf.mxu1  ;;  %v855_v45 = vadd.f32 %v854_v44, %v826_v41 }
  0xf9   :  { %v940_v62 = vadd.f32 %v939_v40, %v911_v43  ;;  %v884_v2 = vadd.f32 %v883_v59, %v855_v45 }
  0xfb   :  { %v956_v46 = vmax.f32 %v940_v62, 0.0 }
  0xfd   :  { %964 = vst [vmem:[%s1941_s3 + $0x10] sm:$0xff] %v956_v46 }
  0xfe   :  { %v912_v5 = vpop.f32.mrf.mxu2  ;;  %v857_v7 = vpop.f32.mrf.mxu0 }
  0xff   :  { %v941_v6 = vpop.f32.mrf.mxu3  ;;  %v913_v49 = vadd.f32 %v912_v5, %v884_v2  ;;  %v886_v8 = vpop.f32.mrf.mxu1  ;;  %v858_v50 = vadd.f32 %v857_v7, %v829_v47 }
 0x101   :  { %v942_v10 = vadd.f32 %v941_v6, %v913_v49  ;;  %v887_v13 = vadd.f32 %v886_v8, %v858_v50 }
 0x103   :  { %v957_v12 = vmax.f32 %v942_v10, 0.0 }
 0x105   :  { %965 = vst [vmem:[%s1941_s3 + $0x18] sm:$0xff] %v957_v12 }
 0x106   :  { %v915_v14 = vpop.f32.mrf.mxu2  ;;  %v859_v17 = vpop.f32.mrf.mxu0 }
 0x107   :  { %v944_v51 = vpop.f32.mrf.mxu3  ;;  %v916_v53 = vadd.f32 %v915_v14, %v887_v13  ;;  %v888_v18 = vpop.f32.mrf.mxu1  ;;  %v860_v54 = vadd.f32 %v859_v17, %v831_v15 }
 0x109   :  { %v945_v19 = vadd.f32 %v944_v51, %v916_v53  ;;  %v889_v22 = vadd.f32 %v888_v18, %v860_v54 }
 0x10b   :  { %v958_v57 = vmax.f32 %v945_v19, 0.0 }
 0x10d   :  { %966 = vst [vmem:[%s1941_s3 + $0x20] sm:$0xff] %v958_v57 }
 0x10e   :  { %v917_v23 = vpop.f32.mrf.mxu2  ;;  %v862_v25 = vpop.f32.mrf.mxu0 }
 0x10f   :  { %v946_v55 = vpop.f32.mrf.mxu3  ;;  %v918_v24 = vadd.f32 %v917_v23, %v889_v22  ;;  %v863_v28 = vadd.f32 %v862_v25, %v834_v58  ;;  %v891_v60 = vpop.f32.mrf.mxu1 }
 0x111   :  { %v947_v27 = vadd.f32 %v946_v55, %v918_v24  ;;  %v892_v56 = vadd.f32 %v891_v60, %v863_v28 }
 0x113   :  { %v959_v30 = vmax.f32 %v947_v27, 0.0 }
 0x115   :  { %967 = vst [vmem:[%s1941_s3 + $0x28] sm:$0xff] %v959_v30 }
 0x116   :  { %v920_v63 = vpop.f32.mrf.mxu2  ;;  %v864_v33 = vpop.f32.mrf.mxu0 }
 0x117   :  { %v949_v31 = vpop.f32.mrf.mxu3  ;;  %v921_v61 = vadd.f32 %v920_v63, %v892_v56  ;;  %v865_v35 = vadd.f32 %v864_v33, %v836_v32  ;;  %v893_v36 = vpop.f32.mrf.mxu1 }
 0x119   :  { %v950_v34 = vadd.f32 %v949_v31, %v921_v61  ;;  %v894_v3 = vadd.f32 %v893_v36, %v865_v35 }
 0x11b   :  { %v960_v0 = vmax.f32 %v950_v34, 0.0 }
 0x11d   :  { %968 = vst [vmem:[%s1941_s3 + $0x30] sm:$0xff] %v960_v0 }
 0x11e   :  { %v922_v37 = vpop.f32.mrf.mxu2 }
 0x11f   :  { %v923_v38 = vadd.f32 %v922_v37, %v894_v3  ;;  %v951_v39 = vpop.f32.mrf.mxu3 }
 0x121   :  { %v952_v40 = vadd.f32 %v951_v39, %v923_v38 }
 0x123   :  { %v961_v41 = vmax.f32 %v952_v40, 0.0 }
 0x125   :  { %969 = vst [vmem:[%s1941_s3 + $0x38] sm:$0xff] %v961_v41 }

// kernel: label_embedder_forward.8
= control target key start
LH: loop header
LB: loop body
LE: loop exit
PB: predicated region body
PF: predicated region fallthrough
CT: control target
= control target key end

     0   :  { %s2175_s1 = inlined_call_operand.vmem [shape: bf16[1152,128], index: 1, kind: input, shape index: {}]   ;;  %s2176_s2 = inlined_call_operand.vmem [shape: f32[1,128], index: 2, kind: input, shape index: {}]   ;;  %s2177_s0 = inlined_call_operand.vmem [shape: bf16[64,1152], index: 0, kind: input, shape index: {}]   ;;  %s2178_s3 = inlined_call_operand.vmem [shape: f32[64,128], index: 3, kind: output, shape index: {}]  }
   0x1   :  { %v1566_v0 = vld [vmem:[%s2175_s1 + $0x38] sm:$0xff]  ;;  %v1565_v2 = vld [vmem:[%s2175_s1 + $0x30] sm:$0xff]  ;;  %v1564_v6 = vld [vmem:[%s2175_s1 + $0x28] sm:$0xff] }
   0x2   :  { %v1582_v1 = vld [vmem:[%s2175_s1 + $0xb8] sm:$0xff]  ;;  %1631 = vmatpush.bf16.msra.mxu1 %v1566_v0  ;;  %818 = vmatpush.bf16.msra.mxu0 %v1566_v0  ;;  %v1581_v3 = vld [vmem:[%s2175_s1 + $0xb0] sm:$0xff]  ;;  %v1580_v7 = vld [vmem:[%s2175_s1 + $0xa8] sm:$0xff] }
   0x3   :  { %876 = vmatpush.bf16.msra.mxu2 %v1582_v1  ;;  %v1590_v4 = vld [vmem:[%s2175_s1 + $0xf8] sm:$0xff]  ;;  %v1589_v5 = vld [vmem:[%s2175_s1 + $0xf0] sm:$0xff]  ;;  %v1588_v8 = vld [vmem:[%s2175_s1 + $0xe8] sm:$0xff] }
   0x4   :  { %905 = vmatpush.bf16.msra.mxu3 %v1590_v4  ;;  %v1563_v9 = vld [vmem:[%s2175_s1 + $0x20] sm:$0xff]  ;;  %v1562_v12 = vld [vmem:[%s2175_s1 + $0x18] sm:$0xff]  ;;  %v1561_v15 = vld [vmem:[%s2175_s1 + $0x10] sm:$0xff] }
   0x5   :  { %v1579_v10 = vld [vmem:[%s2175_s1 + $0xa0] sm:$0xff]  ;;  %v1578_v13 = vld [vmem:[%s2175_s1 + $0x98] sm:$0xff]  ;;  %v1577_v16 = vld [vmem:[%s2175_s1 + $0x90] sm:$0xff] }
   0x6   :  { %1632 = vmatpush.bf16.msra.mxu1 %v1565_v2  ;;  %819 = vmatpush.bf16.msra.mxu0 %v1565_v2  ;;  %v1587_v11 = vld [vmem:[%s2175_s1 + $0xe0] sm:$0xff]  ;;  %v1586_v14 = vld [vmem:[%s2175_s1 + $0xd8] sm:$0xff]  ;;  %v1585_v17 = vld [vmem:[%s2175_s1 + $0xd0] sm:$0xff] }
   0x7   :  { %877 = vmatpush.bf16.msra.mxu2 %v1581_v3  ;;  %v1560_v18 = vld [vmem:[%s2175_s1 + $0x8] sm:$0xff]  ;;  %v1559_v20 = vld [vmem:[%s2175_s1] sm:$0xff]  ;;  %v1165_v21 = vld [vmem:[%s2177_s0 + $0x90] sm:$0xf] }
   0x8   :  { %906 = vmatpush.bf16.msra.mxu3 %v1589_v5  ;;  %v1576_v19 = vld [vmem:[%s2175_s1 + $0x88] sm:$0xff]  ;;  %v1545_v22 = vld [vmem:[%s2177_s0 + $0xb0] sm:$0xf0]  ;;  %v1574_v24 = vld [vmem:[%s2175_s1 + $0x78] sm:$0xff] }
   0x9   :  { %v1584_v23 = vld [vmem:[%s2175_s1 + $0xc8] sm:$0xff]  ;;  %v1093_v25 = vld [vmem:[%s2177_s0] sm:$0xf]  ;;  %v1527_v26 = vld [vmem:[%s2177_s0 + $0x20] sm:$0xf0]  ;;  %v1166_v32 = vor.u32 %v1545_v22, %v1165_v21 }
   0xa   :  { %1633 = vmatpush.bf16.msra.mxu1 %v1564_v6  ;;  %820 = vmatpush.bf16.msra.mxu0 %v1564_v6  ;;  %v1575_v27 = vld [vmem:[%s2175_s1 + $0x80] sm:$0xff]  ;;  %v1101_v28 = vld [vmem:[%s2177_s0 + $0x8] sm:$0xf]  ;;  %v1528_v29 = vld [vmem:[%s2177_s0 + $0x28] sm:$0xf0]  ;;  %v1094_v33 = vor.u32 %v1527_v26, %v1093_v25 }
   0xb   :  { %878 = vmatpush.bf16.msra.mxu2 %v1580_v7  ;;  %v1598_v30 = vld [vmem:[%s2175_s1 + $0x138] sm:$0xff]  ;;  %v1102_v34 = vor.u32 %v1528_v29, %v1101_v28  ;;  %v1583_v35 = vld [vmem:[%s2175_s1 + $0xc0] sm:$0xff]  ;;  %v1524_v36 = vld [vmem:[%s2177_s0 + $0xc] sm:$0xf] }
   0xc   :  { %907 = vmatpush.bf16.msra.mxu3 %v1588_v8  ;;  %v1614_v31 = vld [vmem:[%s2175_s1 + $0x1b8] sm:$0xff]  ;;  %v1103_v37 = vld [vmem:[%s2177_s0 + $0x2c] sm:$0xf0]  ;;  %v1572_v43 = vld [vmem:[%s2175_s1 + $0x68] sm:$0xff] }
   0xd   :  { %v1573_v38 = vld [vmem:[%s2175_s1 + $0x70] sm:$0xff]  ;;  %v1622_v39 = vld [vmem:[%s2175_s1 + $0x1f8] sm:$0xff]  ;;  %v1106_v42 = vor.u32 %v1524_v36, %v1103_v37  ;;  %v1596_v45 = vld [vmem:[%s2175_s1 + $0x128] sm:$0xff] }
   0xe   :  { %1634 = vmatpush.bf16.msra.mxu1 %v1563_v9  ;;  %821 = vmatpush.bf16.msra.mxu0 %v1563_v9  ;;  %v1597_v40 = vld [vmem:[%s2175_s1 + $0x130] sm:$0xff]  ;;  %v1612_v46 = vld [vmem:[%s2175_s1 + $0x1a8] sm:$0xff]  ;;  %v1571_v47 = vld [vmem:[%s2175_s1 + $0x60] sm:$0xff] }
   0xf   :  { %879 = vmatpush.bf16.msra.mxu2 %v1579_v10  ;;  %v1613_v41 = vld [vmem:[%s2175_s1 + $0x1b0] sm:$0xff]  ;;  %v1620_v48 = vld [vmem:[%s2175_s1 + $0x1e8] sm:$0xff]  ;;  %v1595_v49 = vld [vmem:[%s2175_s1 + $0x120] sm:$0xff] }
  0x10   :  { %908 = vmatpush.bf16.msra.mxu3 %v1587_v11  ;;  %v1621_v44 = vld [vmem:[%s2175_s1 + $0x1f0] sm:$0xff]  ;;  %v1611_v50 = vld [vmem:[%s2175_s1 + $0x1a0] sm:$0xff]  ;;  %v1201_v51 = vld [vmem:[%s2177_s0 + $0xd8] sm:$0xf] }
  0x11   :  { %v1554_v52 = vld [vmem:[%s2177_s0 + $0xf8] sm:$0xf0]  ;;  %v1129_v53 = vld [vmem:[%s2177_s0 + $0x48] sm:$0xf]  ;;  %v1536_v54 = vld [vmem:[%s2177_s0 + $0x68] sm:$0xf0] }
  0x12   :  { %1635 = vmatpush.bf16.msra.mxu1 %v1562_v12  ;;  %822 = vmatpush.bf16.msra.mxu0 %v1562_v12  ;;  %v1570_v55 = vld [vmem:[%s2175_s1 + $0x58] sm:$0xff]  ;;  %v1137_v56 = vld [vmem:[%s2177_s0 + $0x50] sm:$0xf]  ;;  %v1537_v57 = vld [vmem:[%s2177_s0 + $0x70] sm:$0xf0]  ;;  %v1202_v59 = vor.u32 %v1554_v52, %v1201_v51  ;;  %v1130_v60 = vor.u32 %v1536_v54, %v1129_v53 }
  0x13   :  { %880 = vmatpush.bf16.msra.mxu2 %v1578_v13  ;;  %v1594_v58 = vld [vmem:[%s2175_s1 + $0x118] sm:$0xff]  ;;  %v1138_v61 = vor.u32 %v1537_v57, %v1137_v56  ;;  %v1533_v62 = vld [vmem:[%s2177_s0 + $0x54] sm:$0xf]  ;;  %v1568_v4 = vld [vmem:[%s2175_s1 + $0x48] sm:$0xff] }
  0x14   :  { %909 = vmatpush.bf16.msra.mxu3 %v1586_v14  ;;  %v1139_v63 = vld [vmem:[%s2177_s0 + $0x74] sm:$0xf0]  ;;  %v1569_v0 = vld [vmem:[%s2175_s1 + $0x50] sm:$0xff]  ;;  %v1619_v5 = vld [vmem:[%s2175_s1 + $0x1e0] sm:$0xff] }
  0x15   :  { %v1593_v1 = vld [vmem:[%s2175_s1 + $0x110] sm:$0xff]  ;;  %v1142_v2 = vor.u32 %v1533_v62, %v1139_v63  ;;  %v1610_v3 = vld [vmem:[%s2175_s1 + $0x198] sm:$0xff]  ;;  %v1592_v6 = vld [vmem:[%s2175_s1 + $0x108] sm:$0xff] }
  0x16   :  { %1636 = vmatpush.bf16.msra.mxu1 %v1561_v15  ;;  %823 = vmatpush.bf16.msra.mxu0 %v1561_v15  ;;  %v1609_v7 = vld [vmem:[%s2175_s1 + $0x190] sm:$0xff]  ;;  %v1618_v8 = vld [vmem:[%s2175_s1 + $0x1d8] sm:$0xff]  ;;  %v1567_v9 = vld [vmem:[%s2175_s1 + $0x40] sm:$0xff] }
  0x17   :  { %881 = vmatpush.bf16.msra.mxu2 %v1577_v16  ;;  %v1606_v10 = vld [vmem:[%s2175_s1 + $0x178] sm:$0xff]  ;;  %v1591_v11 = vld [vmem:[%s2175_s1 + $0x100] sm:$0xff]  ;;  %v1095_v14 = vld [vmem:[%s2177_s0 + $0x24] sm:$0xf0] }
  0x18   :  { %910 = vmatpush.bf16.msra.mxu3 %v1585_v17  ;;  %v1523_v12 = vld [vmem:[%s2177_s0 + $0x4] sm:$0xf]  ;;  %v1630_v13 = vld [vmem:[%s2175_s1 + $0x238] sm:$0xff]  ;;  %v1109_v15 = vld [vmem:[%s2177_s0 + $0x10] sm:$0xf] }
  0x19   :  { %v1529_v16 = vld [vmem:[%s2177_s0 + $0x30] sm:$0xf0]  ;;  %v1173_v17 = vld [vmem:[%s2177_s0 + $0x98] sm:$0xf]  ;;  %v1604_v26 = vld [vmem:[%s2175_s1 + $0x168] sm:$0xff] }
  0x1a   :  { %1637 = vmatpush.bf16.msra.mxu1 %v1560_v18  ;;  %824 = vmatpush.bf16.msra.mxu0 %v1560_v18  ;;  %v1546_v18 = vld [vmem:[%s2177_s0 + $0xb8] sm:$0xf0]  ;;  %v1110_v21 = vor.u32 %v1529_v16, %v1109_v15  ;;  %v1629_v25 = vld [vmem:[%s2175_s1 + $0x230] sm:$0xff]  ;;  %v1607_v29 = vld [vmem:[%s2175_s1 + $0x180] sm:$0xff] }
  0x1b   :  { %882 = vmatpush.bf16.msra.mxu2 %v1576_v19  ;;  %v1605_v19 = vld [vmem:[%s2175_s1 + $0x170] sm:$0xff]  ;;  %v1174_v22 = vor.u32 %v1546_v18, %v1173_v17  ;;  %v1532_v36 = vld [vmem:[%s2177_s0 + $0x4c] sm:$0xf]  ;;  %v1626_v51 = vld [vmem:[%s2175_s1 + $0x218] sm:$0xff] }
  0x1c   :  { %911 = vmatpush.bf16.msra.mxu3 %v1584_v23  ;;  %v1542_v23 = vld [vmem:[%s2177_s0 + $0x9c] sm:$0xf]  ;;  %v1131_v37 = vld [vmem:[%s2177_s0 + $0x6c] sm:$0xf0]  ;;  %v1599_v52 = vld [vmem:[%s2175_s1 + $0x140] sm:$0xff] }
  0x1d   :  { %v1625_v53 = vld [vmem:[%s2175_s1 + $0x210] sm:$0xff]  ;;  %v1167_v56 = vld [vmem:[%s2177_s0 + $0xb4] sm:$0xf0]  ;;  %v1181_v57 = vld [vmem:[%s2177_s0 + $0xa0] sm:$0xf] }
  0x1e   :  { %1638 = vmatpush.bf16.msra.mxu1 %v1559_v20  ;;  %825 = vmatpush.bf16.msra.mxu0 %v1559_v20  ;;  %v1098_v20 = vor.u32 %v1523_v12, %v1095_v14  ;;  %v1541_v54 = vld [vmem:[%s2177_s0 + $0x94] sm:$0xf]  ;;  %v1155_v14 = vld [vmem:[%s2177_s0 + $0x84] sm:$0xf0]  ;;  %v1111_v17 = vld [vmem:[%s2177_s0 + $0x34] sm:$0xf0] }
  0x1f   :  { %883 = vmatpush.bf16.msra.mxu2 %v1575_v27  ;;  %v1608_v27 = vld [vmem:[%s2175_s1 + $0x188] sm:$0xff]  ;;  %v1525_v16 = vld [vmem:[%s2177_s0 + $0x14] sm:$0xf]  ;;  %v1125_v18 = vld [vmem:[%s2177_s0 + $0x20] sm:$0xf] }
  0x20   :  { %912 = vmatpush.bf16.msra.mxu3 %v1583_v35  ;;  %v1602_v35 = vld [vmem:[%s2175_s1 + $0x158] sm:$0xff] }
  0x21   :  { %836 = vmatmul.bf16.vlgmr.msra.gmra.mxu1 %v1166_v32  ;;  %826 = vmatmul.bf16.vlgmr.msra.gmra.mxu0 %v1094_v33  ;;  %v1603_v32 = vld [vmem:[%s2175_s1 + $0x160] sm:$0xff]  ;;  %v1616_v33 = vld [vmem:[%s2175_s1 + $0x1c8] sm:$0xff] }
  0x22   :  { %847 = vmatpush.bf16.msrb.mxu1 %v1574_v24  ;;  %934 = vmatpush.bf16.msrb.mxu0 %v1598_v30  ;;  %v1175_v24 = vld [vmem:[%s2177_s0 + $0xbc] sm:$0xf0]  ;;  %v1617_v30 = vld [vmem:[%s2175_s1 + $0x1d0] sm:$0xff] }
  0x23   :  { %992 = vmatpush.bf16.msrb.mxu2 %v1614_v31  ;;  %913 = vmatmul.bf16.vlgmr.msra.gmra.mxu3 %v1106_v42  ;;  %v1178_v28 = vor.u32 %v1542_v23, %v1175_v24  ;;  %v1628_v31 = vld [vmem:[%s2175_s1 + $0x228] sm:$0xff]  ;;  %v1601_v42 = vld [vmem:[%s2175_s1 + $0x150] sm:$0xff] }
  0x24   :  { %884 = vmatmul.bf16.vlgmr.msra.gmra.mxu2 %v1102_v34  ;;  %1021 = vmatpush.bf16.msrb.mxu3 %v1622_v39  ;;  %v1627_v34 = vld [vmem:[%s2175_s1 + $0x220] sm:$0xff]  ;;  %v1538_v39 = vld [vmem:[%s2177_s0 + $0x78] sm:$0xf0] }
  0x26   :  { %848 = vmatpush.bf16.msrb.mxu1 %v1573_v38  ;;  %935 = vmatpush.bf16.msrb.mxu0 %v1597_v40  ;;  %v1145_v38 = vld [vmem:[%s2177_s0 + $0x58] sm:$0xf]  ;;  %v1209_v40 = vld [vmem:[%s2177_s0 + $0xe0] sm:$0xf] }
  0x27   :  { %993 = vmatpush.bf16.msrb.mxu2 %v1613_v41  ;;  %v1555_v41 = vld [vmem:[%s2177_s0 + $0x100] sm:$0xf0] }
  0x28   :  { %1022 = vmatpush.bf16.msrb.mxu3 %v1621_v44  ;;  %v1146_v44 = vor.u32 %v1538_v39, %v1145_v38  ;;  %v1227_v38 = vld [vmem:[%s2177_s0 + $0x114] sm:$0xf0] }
  0x2a   :  { %849 = vmatpush.bf16.msrb.mxu1 %v1572_v43  ;;  %936 = vmatpush.bf16.msrb.mxu0 %v1596_v45  ;;  %v1134_v43 = vor.u32 %v1532_v36, %v1131_v37  ;;  %v1210_v45 = vor.u32 %v1555_v41, %v1209_v40  ;;  %v1553_v37 = vld [vmem:[%s2177_s0 + $0xf4] sm:$0xf]  ;;  %v1543_v40 = vld [vmem:[%s2177_s0 + $0xa4] sm:$0xf]  ;;  %v1183_v41 = vld [vmem:[%s2177_s0 + $0xc4] sm:$0xf0] }
  0x2b   :  { %994 = vmatpush.bf16.msrb.mxu2 %v1612_v46  ;;  %v1551_v46 = vld [vmem:[%s2177_s0 + $0xe4] sm:$0xf]  ;;  %v1230_v39 = vor.u32 %v1553_v37, %v1227_v38 }
  0x2c   :  { %1023 = vmatpush.bf16.msrb.mxu3 %v1620_v48 }
  0x2e   :  { %850 = vmatpush.bf16.msrb.mxu1 %v1571_v47  ;;  %937 = vmatpush.bf16.msrb.mxu0 %v1595_v49  ;;  %v1211_v47 = vld [vmem:[%s2177_s0 + $0x104] sm:$0xf0] }
  0x2f   :  { %995 = vmatpush.bf16.msrb.mxu2 %v1611_v50  ;;  %v1214_v48 = vor.u32 %v1551_v46, %v1211_v47  ;;  %v1600_v49 = vld [vmem:[%s2175_s1 + $0x148] sm:$0xff]  ;;  %v1615_v50 = vld [vmem:[%s2175_s1 + $0x1c0] sm:$0xff]  ;;  %v1186_v46 = vor.u32 %v1543_v40, %v1183_v41 }
  0x30   :  { %1024 = vmatpush.bf16.msrb.mxu3 %v1619_v5  ;;  %v1203_v5 = vld [vmem:[%s2177_s0 + $0xfc] sm:$0xf0] }
  0x31   :  { %841 = vmatmul.bf16.gmra.mxu1 %v1202_v59  ;;  %831 = vmatmul.bf16.gmra.mxu0 %v1130_v60  ;;  %v1117_v59 = vld [vmem:[%s2177_s0 + $0x18] sm:$0xf]  ;;  %v1530_v60 = vld [vmem:[%s2177_s0 + $0x38] sm:$0xf0] }
  0x32   :  { %851 = vmatpush.bf16.msrb.mxu1 %v1570_v55  ;;  %938 = vmatpush.bf16.msrb.mxu0 %v1594_v58  ;;  %v1624_v55 = vld [vmem:[%s2175_s1 + $0x208] sm:$0xff]  ;;  %v1547_v58 = vld [vmem:[%s2177_s0 + $0xc0] sm:$0xf0]  ;;  %v1118_v63 = vor.u32 %v1530_v60, %v1117_v59 }
  0x33   :  { %996 = vmatpush.bf16.msrb.mxu2 %v1610_v3  ;;  %918 = vmatmul.bf16.gmra.mxu3 %v1142_v2  ;;  %v1182_v62 = vor.u32 %v1547_v58, %v1181_v57  ;;  %v1623_v3 = vld [vmem:[%s2175_s1 + $0x200] sm:$0xff] }
  0x34   :  { %889 = vmatmul.bf16.gmra.mxu2 %v1138_v61  ;;  %1025 = vmatpush.bf16.msrb.mxu3 %v1618_v8  ;;  %v1170_v61 = vor.u32 %v1541_v54, %v1167_v56  ;;  %v1153_v8 = vld [vmem:[%s2177_s0 + $0x60] sm:$0xf]  ;;  %v1219_v56 = vld [vmem:[%s2177_s0 + $0x10c] sm:$0xf0] }
  0x36   :  { %852 = vmatpush.bf16.msrb.mxu1 %v1569_v0  ;;  %939 = vmatpush.bf16.msrb.mxu0 %v1593_v1  ;;  %v1526_v0 = vld [vmem:[%s2177_s0 + $0x1c] sm:$0xf]  ;;  %v1119_v1 = vld [vmem:[%s2177_s0 + $0x3c] sm:$0xf0] }
  0x37   :  { %997 = vmatpush.bf16.msrb.mxu2 %v1609_v7  ;;  %v1122_v2 = vor.u32 %v1526_v0, %v1119_v1  ;;  %v1556_v7 = vld [vmem:[%s2177_s0 + $0x108] sm:$0xf0] }
  0x38   :  { %1026 = vmatpush.bf16.msrb.mxu3 %v1617_v30  ;;  %v1161_v30 = vld [vmem:[%s2177_s0 + $0x68] sm:$0xf] }
  0x3a   :  { %853 = vmatpush.bf16.msrb.mxu1 %v1568_v4  ;;  %940 = vmatpush.bf16.msrb.mxu0 %v1592_v6  ;;  %v1550_v4 = vld [vmem:[%s2177_s0 + $0xdc] sm:$0xf]  ;;  %v1217_v6 = vld [vmem:[%s2177_s0 + $0xe8] sm:$0xf] }
  0x3b   :  { %998 = vmatpush.bf16.msrb.mxu2 %v1608_v27 }
  0x3c   :  { %1027 = vmatpush.bf16.msrb.mxu3 %v1616_v33  ;;  %v1557_v33 = vld [vmem:[%s2177_s0 + $0x110] sm:$0xf0] }
  0x3e   :  { %854 = vmatpush.bf16.msrb.mxu1 %v1567_v9  ;;  %941 = vmatpush.bf16.msrb.mxu0 %v1591_v11  ;;  %v1539_v9 = vld [vmem:[%s2177_s0 + $0x80] sm:$0xf0]  ;;  %v1218_v11 = vor.u32 %v1556_v7, %v1217_v6 }
  0x3f   :  { %999 = vmatpush.bf16.msrb.mxu2 %v1607_v29  ;;  %v1154_v12 = vor.u32 %v1539_v9, %v1153_v8  ;;  %v1147_v29 = vld [vmem:[%s2177_s0 + $0x7c] sm:$0xf0] }
  0x40   :  { %1028 = vmatpush.bf16.msrb.mxu3 %v1615_v50 }
  0x41   :  { %855 = vmatmul.bf16.vlgmr.msrb.gmra.mxu1 %v1098_v20  ;;  %942 = vmatmul.bf16.vlgmr.msrb.gmra.mxu0 %v1110_v21  ;;  %v1189_v20 = vld [vmem:[%s2177_s0 + $0xa8] sm:$0xf]  ;;  %v1548_v21 = vld [vmem:[%s2177_s0 + $0xc8] sm:$0xf0] }
  0x42   :  { %963 = vmatpush.bf16.msra.mxu1 %v1606_v10  ;;  %1050 = vmatpush.bf16.msra.mxu0 %v1630_v13  ;;  %v1206_v10 = vor.u32 %v1550_v4, %v1203_v5  ;;  %v1190_v24 = vor.u32 %v1548_v21, %v1189_v20 }
  0x43   :  { %923 = vmatmul.bf16.gmra.mxu3 %v1178_v28  ;;  %1639 = vmatpush.bf16.msra.mxu2 %v1630_v13  ;;  %v1535_v13 = vld [vmem:[%s2177_s0 + $0x64] sm:$0xf]  ;;  %v1534_v28 = vld [vmem:[%s2177_s0 + $0x5c] sm:$0xf] }
  0x44   :  { %894 = vmatmul.bf16.gmra.mxu2 %v1174_v22  ;;  %v1158_v15 = vor.u32 %v1535_v13, %v1155_v14  ;;  %v1114_v22 = vor.u32 %v1525_v16, %v1111_v17 }
  0x46   :  { %964 = vmatpush.bf16.msra.mxu1 %v1605_v19  ;;  %1051 = vmatpush.bf16.msra.mxu0 %v1629_v25  ;;  %v1531_v19 = vld [vmem:[%s2177_s0 + $0x40] sm:$0xf0] }
  0x47   :  { %1640 = vmatpush.bf16.msra.mxu2 %v1629_v25  ;;  %v1126_v23 = vor.u32 %v1531_v19, %v1125_v18  ;;  %v1544_v25 = vld [vmem:[%s2177_s0 + $0xac] sm:$0xf] }
  0x4a   :  { %965 = vmatpush.bf16.msra.mxu1 %v1604_v26  ;;  %1052 = vmatpush.bf16.msra.mxu0 %v1628_v31  ;;  %v1191_v26 = vld [vmem:[%s2177_s0 + $0xcc] sm:$0xf0] }
  0x4b   :  { %1641 = vmatpush.bf16.msra.mxu2 %v1628_v31  ;;  %v1194_v27 = vor.u32 %v1544_v25, %v1191_v26  ;;  %v1540_v31 = vld [vmem:[%s2177_s0 + $0x88] sm:$0xf0] }
  0x4e   :  { %966 = vmatpush.bf16.msra.mxu1 %v1603_v32  ;;  %1053 = vmatpush.bf16.msra.mxu0 %v1627_v34  ;;  %v1225_v32 = vld [vmem:[%s2177_s0 + $0xf0] sm:$0xf] }
  0x4f   :  { %1642 = vmatpush.bf16.msra.mxu2 %v1627_v34  ;;  %v1150_v34 = vor.u32 %v1534_v28, %v1147_v29  ;;  %v1226_v36 = vor.u32 %v1557_v33, %v1225_v32 }
  0x51   :  { %860 = vmatmul.bf16.gmra.mxu1 %v1134_v43  ;;  %947 = vmatmul.bf16.gmra.mxu0 %v1146_v44  ;;  %v1549_v43 = vld [vmem:[%s2177_s0 + $0xd0] sm:$0xf0]  ;;  %v1233_v44 = vld [vmem:[%s2177_s0 + $0xf8] sm:$0xf] }
  0x52   :  { %967 = vmatpush.bf16.msra.mxu1 %v1602_v35  ;;  %1054 = vmatpush.bf16.msra.mxu0 %v1626_v51  ;;  %v1162_v35 = vor.u32 %v1540_v31, %v1161_v30 }
  0x53   :  { %928 = vmatmul.bf16.gmra.mxu3 %v1214_v48  ;;  %1643 = vmatpush.bf16.msra.mxu2 %v1626_v51 }
  0x54   :  { %899 = vmatmul.bf16.gmra.mxu2 %v1210_v45  ;;  %v1558_v45 = vld [vmem:[%s2177_s0 + $0x118] sm:$0xf0] }
  0x55   :  { %v1234_v50 = vor.u32 %v1558_v45, %v1233_v44 }
  0x56   :  { %968 = vmatpush.bf16.msra.mxu1 %v1601_v42  ;;  %1055 = vmatpush.bf16.msra.mxu0 %v1625_v53  ;;  %v1197_v42 = vld [vmem:[%s2177_s0 + $0xb0] sm:$0xf] }
  0x57   :  { %1644 = vmatpush.bf16.msra.mxu2 %v1625_v53  ;;  %v1198_v47 = vor.u32 %v1549_v43, %v1197_v42 }
  0x5a   :  { %969 = vmatpush.bf16.msra.mxu1 %v1600_v49  ;;  %1056 = vmatpush.bf16.msra.mxu0 %v1624_v55 }
  0x5b   :  { %1645 = vmatpush.bf16.msra.mxu2 %v1624_v55  ;;  %v1552_v55 = vld [vmem:[%s2177_s0 + $0xec] sm:$0xf] }
  0x5c   :  { %v1222_v57 = vor.u32 %v1552_v55, %v1219_v56 }
  0x5e   :  { %970 = vmatpush.bf16.msra.mxu1 %v1599_v52  ;;  %1057 = vmatpush.bf16.msra.mxu0 %v1623_v3 }
  0x5f   :  { %1646 = vmatpush.bf16.msra.mxu2 %v1623_v3 }
  0x61   :  { %865 = vmatmul.bf16.gmra.mxu1 %v1170_v61  ;;  %952 = vmatmul.bf16.gmra.mxu0 %v1182_v62 }
  0x63   :  { %1029 = vmatmul.bf16.vlgmr.msrb.gmra.mxu3 %v1122_v2  ;;  %v1647_v2 = vld [vmem:[%s2176_s2] ss:$0 sm:$0xff] }
  0x64   :  { %1000 = vmatmul.bf16.vlgmr.msrb.gmra.mxu2 %v1118_v63 }
  0x71   :  { %870 = vmatmul.bf16.gmra.mxu1 %v1206_v10  ;;  %957 = vmatmul.bf16.gmra.mxu0 %v1218_v11 }
  0x73   :  { %1034 = vmatmul.bf16.gmra.mxu3 %v1158_v15 }
  0x74   :  { %1005 = vmatmul.bf16.gmra.mxu2 %v1154_v12 }
  0x81   :  { %971 = vmatmul.bf16.vlgmr.msra.gmra.mxu1 %v1114_v22  ;;  %1058 = vmatmul.bf16.vlgmr.msra.gmra.mxu0 %v1126_v23 }
  0x83   :  { %1039 = vmatmul.bf16.gmra.mxu3 %v1194_v27 }
  0x84   :  { %1010 = vmatmul.bf16.gmra.mxu2 %v1190_v24 }
  0x91   :  { %976 = vmatmul.bf16.gmra.mxu1 %v1150_v34  ;;  %1063 = vmatmul.bf16.gmra.mxu0 %v1162_v35 }
  0x93   :  { %1044 = vmatmul.bf16.gmra.mxu3 %v1230_v39 }
  0x94   :  { %1015 = vmatmul.bf16.gmra.mxu2 %v1226_v36 }
  0x9e   :  { %v837_v48 = vpop.f32.mrf.mxu1  ;;  %v827_v49 = vpop.f32.mrf.mxu0 }
  0x9f   :  { %v828_v3 = vadd.f32 %v1647_v2, %v827_v49  ;;  %v838_v30 = vadd.f32 %v1647_v2, %v837_v48 }
  0xa1   :  { %981 = vmatmul.bf16.gmra.mxu1 %v1186_v46  ;;  %1068 = vmatmul.bf16.gmra.mxu0 %v1198_v47 }
  0xa4   :  { %1073 = vmatmul.bf16.vlgmr.msra.gmra.mxu2 %v1234_v50 }
  0xa6   :  { %v839_v52 = vpop.f32.mrf.mxu1  ;;  %v829_v53 = vpop.f32.mrf.mxu0 }
  0xa7   :  { %v885_v51 = vpop.f32.mrf.mxu2  ;;  %v2094_v54 = vpop.f32.mrf.mxu3  ;;  %v830_v10 = vadd.f32 %v1647_v2, %v829_v53  ;;  %v840_v37 = vadd.f32 %v1647_v2, %v839_v52 }
  0xae   :  { %v842_v59 = vpop.f32.mrf.mxu1  ;;  %v832_v60 = vpop.f32.mrf.mxu0 }
  0xaf   :  { %v887_v58 = vpop.f32.mrf.mxu2  ;;  %v2102_v61 = vpop.f32.mrf.mxu3  ;;  %v833_v17 = vadd.f32 %v1647_v2, %v832_v60  ;;  %v843_v44 = vadd.f32 %v1647_v2, %v842_v59 }
  0xb1   :  { %986 = vmatmul.bf16.gmra.mxu1 %v1222_v57 }
  0xb6   :  { %v844_v63 = vpop.f32.mrf.mxu1  ;;  %v834_v0 = vpop.f32.mrf.mxu0 }
  0xb7   :  { %v890_v62 = vpop.f32.mrf.mxu2  ;;  %v2104_v1 = vpop.f32.mrf.mxu3  ;;  %v835_v23 = vadd.f32 %v1647_v2, %v834_v0 }
  0xbe   :  { %v856_v5 = vpop.f32.mrf.mxu1  ;;  %v943_v6 = vpop.f32.mrf.mxu0 }
  0xbf   :  { %v892_v4 = vpop.f32.mrf.mxu2  ;;  %v857_v7 = vadd.f32 %v856_v5, %v828_v3  ;;  %v2109_v9 = vpop.f32.mrf.mxu3 }
  0xc1   :  { %v886_v8 = vadd.f32 %v885_v51, %v857_v7  ;;  %v845_v51 = vadd.f32 %v1647_v2, %v844_v63 }
  0xc3   :  { %v915_v57 = vadd.f32 %v2094_v54, %v886_v8 }
  0xc5   :  { %v944_v60 = vadd.f32 %v943_v6, %v915_v57 }
  0xc6   :  { %v858_v12 = vpop.f32.mrf.mxu1  ;;  %v945_v13 = vpop.f32.mrf.mxu0 }
  0xc7   :  { %v895_v11 = vpop.f32.mrf.mxu2  ;;  %v859_v14 = vadd.f32 %v858_v12, %v830_v10  ;;  %v2111_v16 = vpop.f32.mrf.mxu3 }
  0xc9   :  { %v888_v15 = vadd.f32 %v887_v58, %v859_v14 }
  0xcb   :  { %v917_v5 = vadd.f32 %v2102_v61, %v888_v15 }
  0xcd   :  { %v946_v63 = vadd.f32 %v945_v13, %v917_v5 }
  0xce   :  { %v861_v19 = vpop.f32.mrf.mxu1  ;;  %v948_v20 = vpop.f32.mrf.mxu0 }
  0xcf   :  { %v897_v18 = vpop.f32.mrf.mxu2  ;;  %v862_v21 = vadd.f32 %v861_v19, %v833_v17  ;;  %v2113_v25 = vpop.f32.mrf.mxu3 }
  0xd1   :  { %v891_v22 = vadd.f32 %v890_v62, %v862_v21 }
  0xd3   :  { %v920_v6 = vadd.f32 %v2104_v1, %v891_v22 }
  0xd5   :  { %v949_v19 = vadd.f32 %v948_v20, %v920_v6 }
  0xd6   :  { %v863_v26 = vpop.f32.mrf.mxu1  ;;  %v2115_v27 = vpop.f32.mrf.mxu0 }
  0xd7   :  { %v900_v24 = vpop.f32.mrf.mxu2  ;;  %v864_v28 = vadd.f32 %v863_v26, %v835_v23  ;;  %v2119_v35 = vpop.f32.mrf.mxu3 }
  0xd9   :  { %v893_v29 = vadd.f32 %v892_v4, %v864_v28 }
  0xdb   :  { %v922_v23 = vadd.f32 %v2109_v9, %v893_v29 }
  0xdd   :  { %v951_v1 = vadd.f32 %v2115_v27, %v922_v23 }
  0xde   :  { %v866_v32 = vpop.f32.mrf.mxu1  ;;  %v2117_v33 = vpop.f32.mrf.mxu0 }
  0xdf   :  { %v902_v31 = vpop.f32.mrf.mxu2  ;;  %v867_v34 = vadd.f32 %v866_v32, %v838_v30  ;;  %v2125_v43 = vpop.f32.mrf.mxu3 }
  0xe1   :  { %v896_v36 = vadd.f32 %v895_v11, %v867_v34 }
  0xe3   :  { %v925_v34 = vadd.f32 %v2111_v16, %v896_v36 }
  0xe5   :  { %v954_v9 = vadd.f32 %v2117_v33, %v925_v34 }
  0xe6   :  { %v868_v39 = vpop.f32.mrf.mxu1  ;;  %v2121_v40 = vpop.f32.mrf.mxu0 }
  0xe7   :  { %v1001_v38 = vpop.f32.mrf.mxu2  ;;  %v869_v41 = vadd.f32 %v868_v39, %v840_v37  ;;  %v1030_v50 = vpop.f32.mrf.mxu3 }
  0xe9   :  { %v2123_v42 = vadd.f32 %v897_v18, %v869_v41 }
  0xee   :  { %v871_v46 = vpop.f32.mrf.mxu1  ;;  %v2127_v47 = vpop.f32.mrf.mxu0 }
  0xef   :  { %v1003_v45 = vpop.f32.mrf.mxu2  ;;  %v872_v48 = vadd.f32 %v871_v46, %v843_v44  ;;  %v1032_v59 = vpop.f32.mrf.mxu3  ;;  %v927_v46 = vadd.f32 %v2113_v25, %v2123_v42 }
  0xf1   :  { %v2129_v49 = vadd.f32 %v900_v24, %v872_v48  ;;  %v956_v16 = vadd.f32 %v2121_v40, %v927_v46 }
  0xf6   :  { %v873_v53 = vpop.f32.mrf.mxu1  ;;  %v2131_v55 = vpop.f32.mrf.mxu0 }
  0xf7   :  { %v1006_v52 = vpop.f32.mrf.mxu2  ;;  %v874_v56 = vadd.f32 %v873_v53, %v845_v51  ;;  %v1035_v8 = vpop.f32.mrf.mxu3 }
  0xf9   :  { %v2134_v58 = vadd.f32 %v902_v31, %v874_v56  ;;  %v930_v56 = vadd.f32 %v2119_v35, %v2129_v49 }
  0xfb   :  { %v959_v25 = vadd.f32 %v2127_v47, %v930_v56 }
  0xfe   :  { %v972_v62 = vpop.f32.mrf.mxu1  ;;  %v1059_v0 = vpop.f32.mrf.mxu0 }
  0xff   :  { %v973_v3 = vadd.f32 %v972_v62, %v944_v60  ;;  %v1008_v4 = vpop.f32.mrf.mxu2  ;;  %v1037_v26 = vpop.f32.mrf.mxu3 }
 0x101   :  { %v1002_v7 = vadd.f32 %v1001_v38, %v973_v3  ;;  %v932_v3 = vadd.f32 %v2125_v43, %v2134_v58 }
 0x103   :  { %v1031_v10 = vadd.f32 %v1030_v50, %v1002_v7  ;;  %v961_v35 = vadd.f32 %v2131_v55, %v932_v3 }
 0x105   :  { %v1060_v2 = vadd.f32 %v1059_v0, %v1031_v10 }
 0x106   :  { %v974_v11 = vpop.f32.mrf.mxu1  ;;  %v1061_v12 = vpop.f32.mrf.mxu0 }
 0x107   :  { %1079 = vst [vmem:[%s2178_s3] sm:$0xff] %v1060_v2  ;;  %v975_v54 = vadd.f32 %v974_v11, %v946_v63  ;;  %v1011_v17 = vpop.f32.mrf.mxu2  ;;  %v1040_v39 = vpop.f32.mrf.mxu3 }
 0x109   :  { %v1004_v14 = vadd.f32 %v1003_v45, %v975_v54 }
 0x10b   :  { %v1033_v18 = vadd.f32 %v1032_v59, %v1004_v14 }
 0x10d   :  { %v1062_v21 = vadd.f32 %v1061_v12, %v1033_v18 }
 0x10e   :  { %v977_v61 = vpop.f32.mrf.mxu1  ;;  %v1064_v15 = vpop.f32.mrf.mxu0 }
 0x10f   :  { %1080 = vst [vmem:[%s2178_s3 + $0x8] sm:$0xff] %v1062_v21  ;;  %v978_v13 = vadd.f32 %v977_v61, %v949_v19  ;;  %v1013_v30 = vpop.f32.mrf.mxu2  ;;  %v1042_v51 = vpop.f32.mrf.mxu3 }
 0x111   :  { %v1007_v24 = vadd.f32 %v1006_v52, %v978_v13 }
 0x113   :  { %v1036_v28 = vadd.f32 %v1035_v8, %v1007_v24 }
 0x115   :  { %v1065_v22 = vadd.f32 %v1064_v15, %v1036_v28 }
 0x116   :  { %v979_v31 = vpop.f32.mrf.mxu1  ;;  %v1066_v32 = vpop.f32.mrf.mxu0 }
 0x117   :  { %1081 = vst [vmem:[%s2178_s3 + $0x10] sm:$0xff] %v1065_v22  ;;  %v980_v20 = vadd.f32 %v979_v31, %v951_v1  ;;  %v1016_v41 = vpop.f32.mrf.mxu2  ;;  %v1045_v0 = vpop.f32.mrf.mxu3 }
 0x119   :  { %v1009_v37 = vadd.f32 %v1008_v4, %v980_v20 }
 0x11b   :  { %v1038_v38 = vadd.f32 %v1037_v26, %v1009_v37 }
 0x11d   :  { %v1067_v29 = vadd.f32 %v1066_v32, %v1038_v38 }
 0x11e   :  { %v982_v44 = vpop.f32.mrf.mxu1  ;;  %v1069_v45 = vpop.f32.mrf.mxu0 }
 0x11f   :  { %1082 = vst [vmem:[%s2178_s3 + $0x18] sm:$0xff] %v1067_v29  ;;  %v983_v27 = vadd.f32 %v982_v44, %v954_v9  ;;  %v1018_v53 = vpop.f32.mrf.mxu2  ;;  %v1047_v2 = vpop.f32.mrf.mxu3 }
 0x121   :  { %v1012_v48 = vadd.f32 %v1011_v17, %v983_v27 }
 0x123   :  { %v1041_v50 = vadd.f32 %v1040_v39, %v1012_v48 }
 0x125   :  { %v1070_v36 = vadd.f32 %v1069_v45, %v1041_v50 }
 0x126   :  { %v984_v52 = vpop.f32.mrf.mxu1  ;;  %v1071_v60 = vpop.f32.mrf.mxu0 }
 0x127   :  { %1083 = vst [vmem:[%s2178_s3 + $0x20] sm:$0xff] %v1070_v36  ;;  %v985_v33 = vadd.f32 %v984_v52, %v956_v16  ;;  %v1074_v5 = vpop.f32.mrf.mxu2 }
 0x129   :  { %v1014_v57 = vadd.f32 %v1013_v30, %v985_v33 }
 0x12b   :  { %v1043_v59 = vadd.f32 %v1042_v51, %v1014_v57 }
 0x12d   :  { %v1072_v42 = vadd.f32 %v1071_v60, %v1043_v59 }
 0x12e   :  { %v987_v62 = vpop.f32.mrf.mxu1 }
 0x12f   :  { %1084 = vst [vmem:[%s2178_s3 + $0x28] sm:$0xff] %v1072_v42  ;;  %v988_v40 = vadd.f32 %v987_v62, %v959_v25  ;;  %v1076_v12 = vpop.f32.mrf.mxu2 }
 0x131   :  { %v1017_v4 = vadd.f32 %v1016_v41, %v988_v40 }
 0x133   :  { %v1046_v7 = vadd.f32 %v1045_v0, %v1017_v4 }
 0x135   :  { %v1075_v49 = vadd.f32 %v1074_v5, %v1046_v7 }
 0x136   :  { %v989_v10 = vpop.f32.mrf.mxu1 }
 0x137   :  { %1085 = vst [vmem:[%s2178_s3 + $0x30] sm:$0xff] %v1075_v49  ;;  %v990_v47 = vadd.f32 %v989_v10, %v961_v35 }
 0x139   :  { %v1019_v63 = vadd.f32 %v1018_v53, %v990_v47 }
 0x13b   :  { %v1048_v11 = vadd.f32 %v1047_v2, %v1019_v63 }
 0x13d   :  { %v1077_v54 = vadd.f32 %v1076_v12, %v1048_v11 }
 0x13f   :  { %1086 = vst [vmem:[%s2178_s3 + $0x38] sm:$0xff] %v1077_v54 }

// kernel: label_embedder_forward.9
= control target key start
LH: loop header
LB: loop body
LE: loop exit
PB: predicated region body
PF: predicated region fallthrough
CT: control target
= control target key end

     0   :  { %vm1121_vm0 = vcmask 261120   ;;  %s2334_s1 = inlined_call_operand.vmem [shape: bf16[1152,32], index: 1, kind: input, shape index: {}]   ;;  %s2335_s2 = inlined_call_operand.vmem [shape: f32[1,32], index: 2, kind: input, shape index: {}]   ;;  %s2336_s0 = inlined_call_operand.vmem [shape: bf16[64,1152], index: 0, kind: input, shape index: {}]   ;;  %s2337_s3 = inlined_call_operand.vmem [shape: bf16[32,128], index: 3, kind: input, shape index: {}]   ;;  %s2338_s4 = inlined_call_operand.vmem [shape: f32[1,128], index: 4, kind: input, shape index: {}]   ;;  %s2339_s5 = inlined_call_operand.vmem [shape: f32[64,128], index: 5, kind: input, shape index: {}]   ;;  %s2340_s6 = inlined_call_operand.vmem [shape: f32[64,128], index: 6, kind: output, shape index: {}]  }
   0x1   :  { %v1678_v0 = vld [vmem:[%s2334_s1 + $0x38] sm:$0xff]  ;;  %v1677_v2 = vld [vmem:[%s2334_s1 + $0x30] sm:$0xff]  ;;  %v1676_v4 = vld [vmem:[%s2334_s1 + $0x28] sm:$0xff] }
   0x2   :  { %v1686_v1 = vld [vmem:[%s2334_s1 + $0x78] sm:$0xff]  ;;  %1745 = vmatpush.bf16.msra.mxu2 %v1678_v0  ;;  %v1685_v3 = vld [vmem:[%s2334_s1 + $0x70] sm:$0xff]  ;;  %828 = vmatpush.bf16.msra.mxu0 %v1678_v0  ;;  %v1684_v5 = vld [vmem:[%s2334_s1 + $0x68] sm:$0xff] }
   0x3   :  { %1753 = vmatpush.bf16.msra.mxu3 %v1686_v1  ;;  %857 = vmatpush.bf16.msra.mxu1 %v1686_v1  ;;  %v1675_v6 = vld [vmem:[%s2334_s1 + $0x20] sm:$0xff]  ;;  %v1674_v8 = vld [vmem:[%s2334_s1 + $0x18] sm:$0xff]  ;;  %v1673_v10 = vld [vmem:[%s2334_s1 + $0x10] sm:$0xff] }
   0x4   :  { %v1683_v7 = vld [vmem:[%s2334_s1 + $0x60] sm:$0xff]  ;;  %v1682_v9 = vld [vmem:[%s2334_s1 + $0x58] sm:$0xff]  ;;  %v1681_v11 = vld [vmem:[%s2334_s1 + $0x50] sm:$0xff] }
   0x5   :  { %v1672_v12 = vld [vmem:[%s2334_s1 + $0x8] sm:$0xff]  ;;  %v1671_v14 = vld [vmem:[%s2334_s1] sm:$0xff]  ;;  %v1265_v16 = vld [vmem:[%s2336_s0 + $0x90] sm:$0xf] }
   0x6   :  { %1746 = vmatpush.bf16.msra.mxu2 %v1677_v2  ;;  %829 = vmatpush.bf16.msra.mxu0 %v1677_v2  ;;  %v1680_v13 = vld [vmem:[%s2334_s1 + $0x48] sm:$0xff]  ;;  %v1679_v15 = vld [vmem:[%s2334_s1 + $0x40] sm:$0xff]  ;;  %v1657_v17 = vld [vmem:[%s2336_s0 + $0xb0] sm:$0xf0] }
   0x7   :  { %1754 = vmatpush.bf16.msra.mxu3 %v1685_v3  ;;  %858 = vmatpush.bf16.msra.mxu1 %v1685_v3  ;;  %v1653_v18 = vld [vmem:[%s2336_s0 + $0x94] sm:$0xf]  ;;  %v1267_v19 = vld [vmem:[%s2336_s0 + $0xb4] sm:$0xf0]  ;;  %v1193_v21 = vld [vmem:[%s2336_s0] sm:$0xf]  ;;  %v1266_v26 = vor.u32 %v1657_v17, %v1265_v16 }
   0x8   :  { %v1694_v20 = vld [vmem:[%s2334_s1 + $0xb8] sm:$0xff]  ;;  %v1639_v22 = vld [vmem:[%s2336_s0 + $0x20] sm:$0xf0]  ;;  %v1195_v25 = vld [vmem:[%s2336_s0 + $0x24] sm:$0xf0]  ;;  %v1270_v27 = vor.u32 %v1653_v18, %v1267_v19 }
   0x9   :  { %v1702_v23 = vld [vmem:[%s2334_s1 + $0xf8] sm:$0xff]  ;;  %v1635_v24 = vld [vmem:[%s2336_s0 + $0x4] sm:$0xf]  ;;  %v1194_v28 = vor.u32 %v1639_v22, %v1193_v21  ;;  %v1693_v32 = vld [vmem:[%s2334_s1 + $0xb0] sm:$0xff] }
   0xa   :  { %1747 = vmatpush.bf16.msra.mxu2 %v1676_v4  ;;  %830 = vmatpush.bf16.msra.mxu0 %v1676_v4  ;;  %v1718_v29 = vld [vmem:[%s2334_s1 + $0x178] sm:$0xff]  ;;  %v1198_v31 = vor.u32 %v1635_v24, %v1195_v25  ;;  %v1701_v33 = vld [vmem:[%s2334_s1 + $0xf0] sm:$0xff]  ;;  %v1692_v36 = vld [vmem:[%s2334_s1 + $0xa8] sm:$0xff] }
   0xb   :  { %1755 = vmatpush.bf16.msra.mxu3 %v1684_v5  ;;  %859 = vmatpush.bf16.msra.mxu1 %v1684_v5  ;;  %v1710_v30 = vld [vmem:[%s2334_s1 + $0x138] sm:$0xff]  ;;  %v1717_v34 = vld [vmem:[%s2334_s1 + $0x170] sm:$0xff]  ;;  %v1700_v37 = vld [vmem:[%s2334_s1 + $0xe8] sm:$0xff] }
   0xc   :  { %v1709_v35 = vld [vmem:[%s2334_s1 + $0x130] sm:$0xff]  ;;  %v1716_v38 = vld [vmem:[%s2334_s1 + $0x168] sm:$0xff]  ;;  %v1691_v40 = vld [vmem:[%s2334_s1 + $0xa0] sm:$0xff] }
   0xd   :  { %v1708_v39 = vld [vmem:[%s2334_s1 + $0x128] sm:$0xff]  ;;  %v1699_v41 = vld [vmem:[%s2334_s1 + $0xe0] sm:$0xff]  ;;  %v1301_v43 = vld [vmem:[%s2336_s0 + $0xd8] sm:$0xf] }
   0xe   :  { %1748 = vmatpush.bf16.msra.mxu2 %v1675_v6  ;;  %831 = vmatpush.bf16.msra.mxu0 %v1675_v6  ;;  %v1707_v42 = vld [vmem:[%s2334_s1 + $0x120] sm:$0xff]  ;;  %v1666_v44 = vld [vmem:[%s2336_s0 + $0xf8] sm:$0xf0]  ;;  %v1229_v49 = vld [vmem:[%s2336_s0 + $0x48] sm:$0xf] }
   0xf   :  { %1756 = vmatpush.bf16.msra.mxu3 %v1683_v7  ;;  %860 = vmatpush.bf16.msra.mxu1 %v1683_v7  ;;  %v1662_v45 = vld [vmem:[%s2336_s0 + $0xdc] sm:$0xf]  ;;  %v1303_v46 = vld [vmem:[%s2336_s0 + $0xfc] sm:$0xf0]  ;;  %v1648_v50 = vld [vmem:[%s2336_s0 + $0x68] sm:$0xf0]  ;;  %v1302_v54 = vor.u32 %v1666_v44, %v1301_v43 }
  0x10   :  { %v1715_v47 = vld [vmem:[%s2334_s1 + $0x160] sm:$0xff]  ;;  %v1690_v48 = vld [vmem:[%s2334_s1 + $0x98] sm:$0xff]  ;;  %v1644_v52 = vld [vmem:[%s2336_s0 + $0x4c] sm:$0xf]  ;;  %v1306_v55 = vor.u32 %v1662_v45, %v1303_v46  ;;  %v1230_v56 = vor.u32 %v1648_v50, %v1229_v49 }
  0x11   :  { %v1698_v51 = vld [vmem:[%s2334_s1 + $0xd8] sm:$0xff]  ;;  %v1231_v53 = vld [vmem:[%s2336_s0 + $0x6c] sm:$0xf0]  ;;  %v1688_v0 = vld [vmem:[%s2334_s1 + $0x88] sm:$0xff] }
  0x12   :  { %1749 = vmatpush.bf16.msra.mxu2 %v1674_v8  ;;  %832 = vmatpush.bf16.msra.mxu0 %v1674_v8  ;;  %v1714_v57 = vld [vmem:[%s2334_s1 + $0x158] sm:$0xff]  ;;  %v1234_v59 = vor.u32 %v1644_v52, %v1231_v53  ;;  %v1689_v60 = vld [vmem:[%s2334_s1 + $0x90] sm:$0xff]  ;;  %v1696_v1 = vld [vmem:[%s2334_s1 + $0xc8] sm:$0xff] }
  0x13   :  { %1757 = vmatpush.bf16.msra.mxu3 %v1682_v9  ;;  %861 = vmatpush.bf16.msra.mxu1 %v1682_v9  ;;  %v1706_v58 = vld [vmem:[%s2334_s1 + $0x118] sm:$0xff]  ;;  %v1697_v61 = vld [vmem:[%s2334_s1 + $0xd0] sm:$0xff]  ;;  %v1712_v2 = vld [vmem:[%s2334_s1 + $0x148] sm:$0xff] }
  0x14   :  { %v1713_v62 = vld [vmem:[%s2334_s1 + $0x150] sm:$0xff]  ;;  %v1704_v3 = vld [vmem:[%s2334_s1 + $0x108] sm:$0xff]  ;;  %v1687_v4 = vld [vmem:[%s2334_s1 + $0x80] sm:$0xff] }
  0x15   :  { %v1705_v63 = vld [vmem:[%s2334_s1 + $0x110] sm:$0xff]  ;;  %v1695_v5 = vld [vmem:[%s2334_s1 + $0xc0] sm:$0xff]  ;;  %v1201_v6 = vld [vmem:[%s2336_s0 + $0x8] sm:$0xf] }
  0x16   :  { %1750 = vmatpush.bf16.msra.mxu2 %v1673_v10  ;;  %833 = vmatpush.bf16.msra.mxu0 %v1673_v10  ;;  %v1640_v7 = vld [vmem:[%s2336_s0 + $0x28] sm:$0xf0]  ;;  %v1726_v8 = vld [vmem:[%s2334_s1 + $0x1b8] sm:$0xff]  ;;  %v1637_v17 = vld [vmem:[%s2336_s0 + $0x14] sm:$0xf] }
  0x17   :  { %1758 = vmatpush.bf16.msra.mxu3 %v1681_v11  ;;  %862 = vmatpush.bf16.msra.mxu1 %v1681_v11  ;;  %v1734_v9 = vld [vmem:[%s2334_s1 + $0x1f8] sm:$0xff]  ;;  %v1636_v10 = vld [vmem:[%s2336_s0 + $0xc] sm:$0xf]  ;;  %v1203_v11 = vld [vmem:[%s2336_s0 + $0x2c] sm:$0xf0]  ;;  %v1202_v19 = vor.u32 %v1640_v7, %v1201_v6 }
  0x18   :  { %v1742_v16 = vld [vmem:[%s2334_s1 + $0x238] sm:$0xff]  ;;  %v1725_v22 = vld [vmem:[%s2334_s1 + $0x1b0] sm:$0xff]  ;;  %v1720_v49 = vld [vmem:[%s2334_s1 + $0x188] sm:$0xff] }
  0x19   :  { %v1211_v18 = vld [vmem:[%s2336_s0 + $0x34] sm:$0xf0]  ;;  %v1741_v25 = vld [vmem:[%s2334_s1 + $0x230] sm:$0xff]  ;;  %v1736_v52 = vld [vmem:[%s2334_s1 + $0x208] sm:$0xff] }
  0x1a   :  { %1751 = vmatpush.bf16.msra.mxu2 %v1672_v12  ;;  %834 = vmatpush.bf16.msra.mxu0 %v1672_v12  ;;  %v1711_v12 = vld [vmem:[%s2334_s1 + $0x140] sm:$0xff]  ;;  %v1214_v24 = vor.u32 %v1637_v17, %v1211_v18  ;;  %v1721_v46 = vld [vmem:[%s2334_s1 + $0x190] sm:$0xff]  ;;  %v1311_v7 = vld [vmem:[%s2336_s0 + $0x104] sm:$0xf0] }
  0x1b   :  { %1759 = vmatpush.bf16.msra.mxu3 %v1680_v13  ;;  %863 = vmatpush.bf16.msra.mxu1 %v1680_v13  ;;  %v1703_v13 = vld [vmem:[%s2334_s1 + $0x100] sm:$0xff]  ;;  %v1737_v50 = vld [vmem:[%s2334_s1 + $0x210] sm:$0xff]  ;;  %v1642_v17 = vld [vmem:[%s2336_s0 + $0x38] sm:$0xf0] }
  0x1c   :  { %v1719_v53 = vld [vmem:[%s2334_s1 + $0x180] sm:$0xff]  ;;  %v1638_v18 = vld [vmem:[%s2336_s0 + $0x1c] sm:$0xf] }
  0x1d   :  { %v1663_v6 = vld [vmem:[%s2336_s0 + $0xe4] sm:$0xf] }
  0x1e   :  { %1752 = vmatpush.bf16.msra.mxu2 %v1671_v14  ;;  %835 = vmatpush.bf16.msra.mxu0 %v1671_v14  ;;  %v1209_v14 = vld [vmem:[%s2336_s0 + $0x10] sm:$0xf] }
  0x1f   :  { %1760 = vmatpush.bf16.msra.mxu3 %v1679_v15  ;;  %864 = vmatpush.bf16.msra.mxu1 %v1679_v15  ;;  %v1641_v15 = vld [vmem:[%s2336_s0 + $0x30] sm:$0xf0] }
  0x20   :  { %v1210_v21 = vor.u32 %v1641_v15, %v1209_v14 }
  0x21   :  { %846 = vmatmul.bf16.vlgmr.msra.gmra.mxu2 %v1266_v26  ;;  %836 = vmatmul.bf16.vlgmr.msra.gmra.mxu0 %v1194_v28  ;;  %v1724_v26 = vld [vmem:[%s2334_s1 + $0x1a8] sm:$0xff] }
  0x22   :  { %886 = vmatpush.bf16.msrb.mxu2 %v1694_v20  ;;  %875 = vmatmul.bf16.vlgmr.msra.gmra.mxu3 %v1270_v27  ;;  %v1206_v20 = vor.u32 %v1636_v10, %v1203_v11  ;;  %v1732_v27 = vld [vmem:[%s2334_s1 + $0x1e8] sm:$0xff]  ;;  %v1319_v11 = vld [vmem:[%s2336_s0 + $0x10c] sm:$0xf0] }
  0x23   :  { %915 = vmatpush.bf16.msrb.mxu3 %v1702_v23  ;;  %973 = vmatpush.bf16.msrb.mxu1 %v1718_v29  ;;  %v1733_v23 = vld [vmem:[%s2334_s1 + $0x1f0] sm:$0xff]  ;;  %v1740_v28 = vld [vmem:[%s2334_s1 + $0x228] sm:$0xff]  ;;  %v1723_v29 = vld [vmem:[%s2334_s1 + $0x1a0] sm:$0xff] }
  0x24   :  { %944 = vmatpush.bf16.msrb.mxu0 %v1710_v30  ;;  %865 = vmatmul.bf16.vlgmr.msra.gmra.mxu1 %v1198_v31  ;;  %v1731_v30 = vld [vmem:[%s2334_s1 + $0x1e0] sm:$0xff]  ;;  %v1664_v10 = vld [vmem:[%s2336_s0 + $0xec] sm:$0xf] }
  0x25   :  { %v1739_v31 = vld [vmem:[%s2334_s1 + $0x220] sm:$0xff]  ;;  %v1322_v15 = vor.u32 %v1664_v10, %v1319_v11 }
  0x26   :  { %887 = vmatpush.bf16.msrb.mxu2 %v1693_v32  ;;  %v1237_v32 = vld [vmem:[%s2336_s0 + $0x50] sm:$0xf] }
  0x27   :  { %916 = vmatpush.bf16.msrb.mxu3 %v1701_v33  ;;  %974 = vmatpush.bf16.msrb.mxu1 %v1717_v34  ;;  %v1649_v33 = vld [vmem:[%s2336_s0 + $0x70] sm:$0xf0] }
  0x28   :  { %945 = vmatpush.bf16.msrb.mxu0 %v1709_v35  ;;  %v1645_v34 = vld [vmem:[%s2336_s0 + $0x54] sm:$0xf]  ;;  %v1239_v35 = vld [vmem:[%s2336_s0 + $0x74] sm:$0xf0]  ;;  %v1238_v43 = vor.u32 %v1649_v33, %v1237_v32 }
  0x29   :  { %v1242_v44 = vor.u32 %v1645_v34, %v1239_v35  ;;  %v1289_v34 = vld [vmem:[%s2336_s0 + $0xa8] sm:$0xf]  ;;  %v1660_v35 = vld [vmem:[%s2336_s0 + $0xc8] sm:$0xf0] }
  0x2a   :  { %888 = vmatpush.bf16.msrb.mxu2 %v1692_v36  ;;  %v1722_v36 = vld [vmem:[%s2334_s1 + $0x198] sm:$0xff] }
  0x2b   :  { %917 = vmatpush.bf16.msrb.mxu3 %v1700_v37  ;;  %975 = vmatpush.bf16.msrb.mxu1 %v1716_v38  ;;  %v1245_v37 = vld [vmem:[%s2336_s0 + $0x58] sm:$0xf]  ;;  %v1650_v38 = vld [vmem:[%s2336_s0 + $0x78] sm:$0xf0] }
  0x2c   :  { %946 = vmatpush.bf16.msrb.mxu0 %v1708_v39  ;;  %v1730_v39 = vld [vmem:[%s2334_s1 + $0x1d8] sm:$0xff]  ;;  %v1246_v45 = vor.u32 %v1650_v38, %v1245_v37  ;;  %v1291_v37 = vld [vmem:[%s2336_s0 + $0xcc] sm:$0xf0] }
  0x2d   :  { %v1297_v38 = vld [vmem:[%s2336_s0 + $0xb0] sm:$0xf] }
  0x2e   :  { %889 = vmatpush.bf16.msrb.mxu2 %v1691_v40  ;;  %v1646_v40 = vld [vmem:[%s2336_s0 + $0x5c] sm:$0xf] }
  0x2f   :  { %918 = vmatpush.bf16.msrb.mxu3 %v1699_v41  ;;  %976 = vmatpush.bf16.msrb.mxu1 %v1715_v47  ;;  %v1247_v41 = vld [vmem:[%s2336_s0 + $0x7c] sm:$0xf0] }
  0x30   :  { %947 = vmatpush.bf16.msrb.mxu0 %v1707_v42  ;;  %v1738_v42 = vld [vmem:[%s2334_s1 + $0x218] sm:$0xff]  ;;  %v1250_v47 = vor.u32 %v1646_v40, %v1247_v41  ;;  %v1290_v40 = vor.u32 %v1660_v35, %v1289_v34 }
  0x31   :  { %851 = vmatmul.bf16.gmra.mxu2 %v1302_v54  ;;  %841 = vmatmul.bf16.gmra.mxu0 %v1230_v56  ;;  %v1727_v54 = vld [vmem:[%s2334_s1 + $0x1c0] sm:$0xff]  ;;  %v1273_v56 = vld [vmem:[%s2336_s0 + $0x98] sm:$0xf] }
  0x32   :  { %890 = vmatpush.bf16.msrb.mxu2 %v1690_v48  ;;  %880 = vmatmul.bf16.gmra.mxu3 %v1306_v55  ;;  %v1729_v48 = vld [vmem:[%s2334_s1 + $0x1d0] sm:$0xff]  ;;  %v1735_v55 = vld [vmem:[%s2334_s1 + $0x200] sm:$0xff] }
  0x33   :  { %919 = vmatpush.bf16.msrb.mxu3 %v1698_v51  ;;  %977 = vmatpush.bf16.msrb.mxu1 %v1714_v57  ;;  %v1728_v51 = vld [vmem:[%s2334_s1 + $0x1c8] sm:$0xff]  ;;  %v1658_v57 = vld [vmem:[%s2336_s0 + $0xb8] sm:$0xf0] }
  0x34   :  { %948 = vmatpush.bf16.msrb.mxu0 %v1706_v58  ;;  %870 = vmatmul.bf16.gmra.mxu1 %v1234_v59  ;;  %v1654_v58 = vld [vmem:[%s2336_s0 + $0x9c] sm:$0xf]  ;;  %v1275_v59 = vld [vmem:[%s2336_s0 + $0xbc] sm:$0xf0] }
  0x36   :  { %891 = vmatpush.bf16.msrb.mxu2 %v1689_v60  ;;  %v1281_v60 = vld [vmem:[%s2336_s0 + $0xa0] sm:$0xf] }
  0x37   :  { %920 = vmatpush.bf16.msrb.mxu3 %v1697_v61  ;;  %978 = vmatpush.bf16.msrb.mxu1 %v1713_v62  ;;  %v1659_v61 = vld [vmem:[%s2336_s0 + $0xc0] sm:$0xf0] }
  0x38   :  { %949 = vmatpush.bf16.msrb.mxu0 %v1705_v63  ;;  %v1655_v62 = vld [vmem:[%s2336_s0 + $0xa4] sm:$0xf]  ;;  %v1283_v63 = vld [vmem:[%s2336_s0 + $0xc4] sm:$0xf0] }
  0x3a   :  { %892 = vmatpush.bf16.msrb.mxu2 %v1688_v0  ;;  %v1274_v0 = vor.u32 %v1658_v57, %v1273_v56 }
  0x3b   :  { %921 = vmatpush.bf16.msrb.mxu3 %v1696_v1  ;;  %979 = vmatpush.bf16.msrb.mxu1 %v1712_v2  ;;  %v1278_v1 = vor.u32 %v1654_v58, %v1275_v59  ;;  %v1282_v2 = vor.u32 %v1659_v61, %v1281_v60 }
  0x3c   :  { %950 = vmatpush.bf16.msrb.mxu0 %v1704_v3  ;;  %v1286_v3 = vor.u32 %v1655_v62, %v1283_v63 }
  0x3e   :  { %893 = vmatpush.bf16.msrb.mxu2 %v1687_v4  ;;  %v1309_v4 = vld [vmem:[%s2336_s0 + $0xe0] sm:$0xf] }
  0x3f   :  { %922 = vmatpush.bf16.msrb.mxu3 %v1695_v5  ;;  %980 = vmatpush.bf16.msrb.mxu1 %v1711_v12  ;;  %v1667_v5 = vld [vmem:[%s2336_s0 + $0x100] sm:$0xf0] }
  0x40   :  { %951 = vmatpush.bf16.msrb.mxu0 %v1703_v13  ;;  %v1310_v12 = vor.u32 %v1667_v5, %v1309_v4  ;;  %v1314_v13 = vor.u32 %v1663_v6, %v1311_v7  ;;  %v1744_v5 = vld [vmem:[%s2337_s3 + $0x8] sm:$0xff] }
  0x41   :  { %894 = vmatmul.bf16.vlgmr.msrb.gmra.mxu2 %v1202_v19  ;;  %v1219_v19 = vld [vmem:[%s2336_s0 + $0x3c] sm:$0xf0] }
  0x42   :  { %1002 = vmatpush.bf16.msra.mxu2 %v1726_v8  ;;  %923 = vmatmul.bf16.vlgmr.msrb.gmra.mxu3 %v1206_v20  ;;  %v1317_v8 = vld [vmem:[%s2336_s0 + $0xe8] sm:$0xf]  ;;  %v1225_v20 = vld [vmem:[%s2336_s0 + $0x20] sm:$0xf] }
  0x43   :  { %1031 = vmatpush.bf16.msra.mxu3 %v1734_v9  ;;  %952 = vmatmul.bf16.vlgmr.msrb.gmra.mxu0 %v1210_v21  ;;  %v1668_v9 = vld [vmem:[%s2336_s0 + $0x108] sm:$0xf0]  ;;  %v1643_v21 = vld [vmem:[%s2336_s0 + $0x40] sm:$0xf0] }
  0x44   :  { %1060 = vmatpush.bf16.msra.mxu0 %v1742_v16  ;;  %981 = vmatmul.bf16.vlgmr.msrb.gmra.mxu1 %v1214_v24  ;;  %v1318_v14 = vor.u32 %v1668_v9, %v1317_v8  ;;  %v1217_v16 = vld [vmem:[%s2336_s0 + $0x18] sm:$0xf]  ;;  %v1226_v24 = vor.u32 %v1643_v21, %v1225_v20 }
  0x45   :  { %1140 = vmatpush.bf16.msra.mxu1 %v1744_v5 }
  0x46   :  { %1003 = vmatpush.bf16.msra.mxu2 %v1725_v22  ;;  %v1218_v22 = vor.u32 %v1642_v17, %v1217_v16 }
  0x47   :  { %1032 = vmatpush.bf16.msra.mxu3 %v1733_v23  ;;  %v1222_v23 = vor.u32 %v1638_v18, %v1219_v19 }
  0x48   :  { %1061 = vmatpush.bf16.msra.mxu0 %v1741_v25  ;;  %v1253_v25 = vld [vmem:[%s2336_s0 + $0x60] sm:$0xf] }
  0x4a   :  { %1004 = vmatpush.bf16.msra.mxu2 %v1724_v26  ;;  %v1651_v26 = vld [vmem:[%s2336_s0 + $0x80] sm:$0xf0] }
  0x4b   :  { %1033 = vmatpush.bf16.msra.mxu3 %v1732_v27  ;;  %v1647_v27 = vld [vmem:[%s2336_s0 + $0x64] sm:$0xf] }
  0x4c   :  { %1062 = vmatpush.bf16.msra.mxu0 %v1740_v28  ;;  %v1255_v28 = vld [vmem:[%s2336_s0 + $0x84] sm:$0xf0] }
  0x4d   :  { %v1258_v32 = vor.u32 %v1647_v27, %v1255_v28 }
  0x4e   :  { %1005 = vmatpush.bf16.msra.mxu2 %v1723_v29  ;;  %v1261_v29 = vld [vmem:[%s2336_s0 + $0x68] sm:$0xf] }
  0x4f   :  { %1034 = vmatpush.bf16.msra.mxu3 %v1731_v30  ;;  %v1652_v30 = vld [vmem:[%s2336_s0 + $0x88] sm:$0xf0] }
  0x50   :  { %1063 = vmatpush.bf16.msra.mxu0 %v1739_v31  ;;  %v1254_v31 = vor.u32 %v1651_v26, %v1253_v25  ;;  %v1262_v33 = vor.u32 %v1652_v30, %v1261_v29 }
  0x51   :  { %899 = vmatmul.bf16.gmra.mxu2 %v1238_v43 }
  0x52   :  { %1006 = vmatpush.bf16.msra.mxu2 %v1722_v36  ;;  %928 = vmatmul.bf16.gmra.mxu3 %v1242_v44  ;;  %v1656_v36 = vld [vmem:[%s2336_s0 + $0xac] sm:$0xf]  ;;  %v2215_v44 = vld [vmem:[%s2335_s2] ss:$0 sm:$0xff] }
  0x53   :  { %1035 = vmatpush.bf16.msra.mxu3 %v1730_v39  ;;  %957 = vmatmul.bf16.gmra.mxu0 %v1246_v45  ;;  %v1661_v39 = vld [vmem:[%s2336_s0 + $0xd0] sm:$0xf0]  ;;  %v1294_v41 = vor.u32 %v1656_v36, %v1291_v37 }
  0x54   :  { %1064 = vmatpush.bf16.msra.mxu0 %v1738_v42  ;;  %986 = vmatmul.bf16.gmra.mxu1 %v1250_v47  ;;  %v1298_v42 = vor.u32 %v1661_v39, %v1297_v38 }
  0x56   :  { %1007 = vmatpush.bf16.msra.mxu2 %v1721_v46 }
  0x57   :  { %1036 = vmatpush.bf16.msra.mxu3 %v1729_v48 }
  0x58   :  { %1065 = vmatpush.bf16.msra.mxu0 %v1737_v50  ;;  %v1325_v50 = vld [vmem:[%s2336_s0 + $0xf0] sm:$0xf] }
  0x5a   :  { %1008 = vmatpush.bf16.msra.mxu2 %v1720_v49 }
  0x5b   :  { %1037 = vmatpush.bf16.msra.mxu3 %v1728_v51  ;;  %v1669_v51 = vld [vmem:[%s2336_s0 + $0x110] sm:$0xf0] }
  0x5c   :  { %1066 = vmatpush.bf16.msra.mxu0 %v1736_v52  ;;  %v1665_v52 = vld [vmem:[%s2336_s0 + $0xf4] sm:$0xf]  ;;  %v1326_v59 = vor.u32 %v1669_v51, %v1325_v50 }
  0x5e   :  { %1009 = vmatpush.bf16.msra.mxu2 %v1719_v53  ;;  %v1327_v53 = vld [vmem:[%s2336_s0 + $0x114] sm:$0xf0] }
  0x5f   :  { %1038 = vmatpush.bf16.msra.mxu3 %v1727_v54  ;;  %v1333_v54 = vld [vmem:[%s2336_s0 + $0xf8] sm:$0xf]  ;;  %v1330_v60 = vor.u32 %v1665_v52, %v1327_v53 }
  0x60   :  { %1067 = vmatpush.bf16.msra.mxu0 %v1735_v55  ;;  %v1670_v55 = vld [vmem:[%s2336_s0 + $0x118] sm:$0xf0] }
  0x61   :  { %904 = vmatmul.bf16.gmra.mxu2 %v1274_v0  ;;  %v1334_v61 = vor.u32 %v1670_v55, %v1333_v54 }
  0x62   :  { %933 = vmatmul.bf16.gmra.mxu3 %v1278_v1 }
  0x63   :  { %962 = vmatmul.bf16.gmra.mxu0 %v1282_v2 }
  0x64   :  { %991 = vmatmul.bf16.gmra.mxu1 %v1286_v3 }
  0x71   :  { %909 = vmatmul.bf16.gmra.mxu2 %v1310_v12 }
  0x72   :  { %938 = vmatmul.bf16.gmra.mxu3 %v1314_v13 }
  0x73   :  { %967 = vmatmul.bf16.gmra.mxu0 %v1318_v14 }
  0x74   :  { %996 = vmatmul.bf16.gmra.mxu1 %v1322_v15 }
  0x81   :  { %1010 = vmatmul.bf16.vlgmr.msra.gmra.mxu2 %v1218_v22 }
  0x82   :  { %1039 = vmatmul.bf16.vlgmr.msra.gmra.mxu3 %v1222_v23 }
  0x83   :  { %1068 = vmatmul.bf16.vlgmr.msra.gmra.mxu0 %v1226_v24 }
  0x91   :  { %1015 = vmatmul.bf16.gmra.mxu2 %v1254_v31 }
  0x92   :  { %1044 = vmatmul.bf16.gmra.mxu3 %v1258_v32  ;;  %v1743_v32 = vld [vmem:[%s2337_s3] sm:$0xff] }
  0x93   :  { %1073 = vmatmul.bf16.gmra.mxu0 %v1262_v33  ;;  %1141 = vmatpush.bf16.msra.mxu1 %v1743_v32 }
  0x9e   :  { %v837_v43 = vpop.f32.mrf.mxu0 }
  0x9f   :  { %v838_v10 = vadd.f32 %v2215_v44, %v837_v43 }
  0xa1   :  { %1020 = vmatmul.bf16.gmra.mxu2 %v1290_v40  ;;  %v866_v9 = vpop.f32.mrf.mxu1 }
  0xa2   :  { %1049 = vmatmul.bf16.gmra.mxu3 %v1294_v41  ;;  %v867_v13 = vadd.f32 %v866_v9, %v838_v10 }
  0xa3   :  { %1078 = vmatmul.bf16.gmra.mxu0 %v1298_v42 }
  0xa4   :  { %v847_v45 = vpop.f32.mrf.mxu2 }
  0xa5   :  { %v876_v46 = vpop.f32.mrf.mxu3  ;;  %v848_v47 = vadd.f32 %v2215_v44, %v847_v45 }
  0xa6   :  { %v2218_v49 = vpop.f32.mrf.mxu0 }
  0xa7   :  { %v877_v48 = vadd.f32 %v876_v46, %v848_v47 }
  0xa9   :  { %v868_v19 = vpop.f32.mrf.mxu1 }
  0xac   :  { %v849_v56 = vpop.f32.mrf.mxu2 }
  0xad   :  { %v878_v57 = vpop.f32.mrf.mxu3  ;;  %v850_v58 = vadd.f32 %v2215_v44, %v849_v56  ;;  %v840_v56 = vadd.f32 %v2215_v44, %v2218_v49 }
  0xae   :  { %v842_v63 = vpop.f32.mrf.mxu0 }
  0xaf   :  { %v2239_v62 = vadd.f32 %v878_v57, %v850_v58  ;;  %v843_v23 = vadd.f32 %v2215_v44, %v842_v63 }
  0xb1   :  { %1025 = vmatmul.bf16.gmra.mxu2 %v1326_v59  ;;  %v871_v25 = vpop.f32.mrf.mxu1 }
  0xb2   :  { %1054 = vmatmul.bf16.gmra.mxu3 %v1330_v60  ;;  %v872_v26 = vadd.f32 %v871_v25, %v843_v23  ;;  %v869_v60 = vadd.f32 %v868_v19, %v840_v56 }
  0xb3   :  { %1083 = vmatmul.bf16.gmra.mxu0 %v1334_v61 }
  0xb4   :  { %v852_v0 = vpop.f32.mrf.mxu2 }
  0xb5   :  { %v881_v1 = vpop.f32.mrf.mxu3  ;;  %v853_v2 = vadd.f32 %v2215_v44, %v852_v0 }
  0xb6   :  { %v2242_v4 = vpop.f32.mrf.mxu0 }
  0xb7   :  { %v882_v3 = vadd.f32 %v881_v1, %v853_v2  ;;  %v845_v49 = vadd.f32 %v2215_v44, %v2242_v4 }
  0xb9   :  { %v873_v42 = vpop.f32.mrf.mxu1 }
  0xbc   :  { %v854_v6 = vpop.f32.mrf.mxu2 }
  0xbd   :  { %v883_v7 = vpop.f32.mrf.mxu3  ;;  %v855_v8 = vadd.f32 %v2215_v44, %v854_v6 }
  0xbf   :  { %v2249_v11 = vadd.f32 %v883_v7, %v855_v8 }
  0xc0   :  { %v953_v12 = vpop.f32.mrf.mxu0 }
  0xc1   :  { %v982_v50 = vpop.f32.mrf.mxu1 }
  0xc4   :  { %v895_v14 = vpop.f32.mrf.mxu2 }
  0xc5   :  { %v924_v15 = vpop.f32.mrf.mxu3  ;;  %v896_v16 = vadd.f32 %v895_v14, %v867_v13  ;;  %v874_v14 = vadd.f32 %v873_v42, %v845_v49 }
  0xc7   :  { %v925_v17 = vadd.f32 %v924_v15, %v896_v16 }
  0xc8   :  { %v955_v18 = vpop.f32.mrf.mxu0 }
  0xc9   :  { %v954_v20 = vadd.f32 %v953_v12, %v925_v17  ;;  %v984_v57 = vpop.f32.mrf.mxu1 }
  0xcc   :  { %v897_v21 = vpop.f32.mrf.mxu2 }
  0xcd   :  { %v926_v22 = vpop.f32.mrf.mxu3  ;;  %v898_v61 = vadd.f32 %v897_v21, %v869_v60 }
  0xcf   :  { %v927_v0 = vadd.f32 %v926_v22, %v898_v61 }
  0xd0   :  { %v958_v24 = vpop.f32.mrf.mxu0 }
  0xd1   :  { %v987_v5 = vpop.f32.mrf.mxu1  ;;  %v956_v6 = vadd.f32 %v955_v18, %v927_v0 }
  0xd3   :  { %v985_v9 = vadd.f32 %v984_v57, %v956_v6 }
  0xd4   :  { %v900_v27 = vpop.f32.mrf.mxu2 }
  0xd5   :  { %v929_v28 = vpop.f32.mrf.mxu3  ;;  %v901_v29 = vadd.f32 %v900_v27, %v872_v26 }
  0xd7   :  { %v930_v30 = vadd.f32 %v929_v28, %v901_v29 }
  0xd8   :  { %v960_v31 = vpop.f32.mrf.mxu0 }
  0xd9   :  { %v959_v33 = vadd.f32 %v958_v24, %v930_v30  ;;  %v989_v17 = vpop.f32.mrf.mxu1 }
  0xdb   :  { %v988_v27 = vadd.f32 %v987_v5, %v959_v33 }
  0xdc   :  { %v902_v34 = vpop.f32.mrf.mxu2 }
  0xdd   :  { %v931_v35 = vpop.f32.mrf.mxu3  ;;  %v903_v16 = vadd.f32 %v902_v34, %v874_v14 }
  0xe0   :  { %v963_v36 = vpop.f32.mrf.mxu0 }
  0xe1   :  { %v992_v30 = vpop.f32.mrf.mxu1 }
  0xe4   :  { %v905_v37 = vpop.f32.mrf.mxu2 }
  0xe5   :  { %v934_v38 = vpop.f32.mrf.mxu3  ;;  %v906_v39 = vadd.f32 %v905_v37, %v877_v48 }
  0xe7   :  { %v935_v40 = vadd.f32 %v934_v38, %v906_v39 }
  0xe8   :  { %v2255_v41 = vpop.f32.mrf.mxu0 }
  0xe9   :  { %v2257_v43 = vadd.f32 %v963_v36, %v935_v40  ;;  %v994_v33 = vpop.f32.mrf.mxu1 }
  0xec   :  { %v907_v45 = vpop.f32.mrf.mxu2 }
  0xed   :  { %v936_v46 = vpop.f32.mrf.mxu3 }
  0xf0   :  { %v968_v47 = vpop.f32.mrf.mxu0 }
  0xf4   :  { %v910_v51 = vpop.f32.mrf.mxu2 }
  0xf5   :  { %v939_v52 = vpop.f32.mrf.mxu3  ;;  %v911_v53 = vadd.f32 %v910_v51, %v882_v3  ;;  %v983_v3 = vadd.f32 %v982_v50, %v954_v20  ;;  %v932_v20 = vadd.f32 %v931_v35, %v903_v16  ;;  %v908_v35 = vadd.f32 %v907_v45, %v2239_v62 }
  0xf7   :  { %v940_v54 = vadd.f32 %v939_v52, %v911_v53  ;;  %v961_v4 = vadd.f32 %v960_v31, %v932_v20  ;;  %v937_v50 = vadd.f32 %v936_v46, %v908_v35  ;;  %v997_v46 = vpop.f32.mrf.mxu1 }
  0xf8   :  { %v2259_v55 = vpop.f32.mrf.mxu0 }
  0xf9   :  { %v2263_v48 = vadd.f32 %v968_v47, %v940_v54  ;;  %v990_v32 = vadd.f32 %v989_v17, %v961_v4  ;;  %v993_v54 = vadd.f32 %v992_v30, %v2257_v43  ;;  %v966_v57 = vadd.f32 %v2255_v41, %v937_v50  ;;  %v1164_v4 = vld [vmem:[%s2339_s5 + $0x8] sm:$0xff] }
  0xfb   :  { %v995_v61 = vadd.f32 %v994_v33, %v966_v57 }
  0xfc   :  { %v2265_v58 = vpop.f32.mrf.mxu2 }
  0xfd   :  { %v2267_v59 = vpop.f32.mrf.mxu3 }
 0x100   :  { %v1069_v63 = vpop.f32.mrf.mxu0 }
 0x104   :  { %v1011_v1 = vpop.f32.mrf.mxu2 }
 0x105   :  { %v1040_v2 = vpop.f32.mrf.mxu3  ;;  %v1012_v7 = vadd.f32 %v1011_v1, %v983_v3 }
 0x107   :  { %v1041_v10 = vadd.f32 %v1040_v2, %v1012_v7  ;;  %v913_v2 = vadd.f32 %v2265_v58, %v2249_v11 }
 0x108   :  { %v1071_v8 = vpop.f32.mrf.mxu0 }
 0x109   :  { %v1070_v19 = vadd.f32 %v1069_v63, %v1041_v10  ;;  %v942_v43 = vadd.f32 %v2267_v59, %v913_v2 }
 0x10b   :  { %v1089_v24 = vmax.f32 %v1070_v19, 0.0 }
 0x10c   :  { %v1013_v12 = vpop.f32.mrf.mxu2 }
 0x10d   :  { %v1042_v13 = vpop.f32.mrf.mxu3  ;;  %v1014_v15 = vadd.f32 %v1013_v12, %v985_v9  ;;  %v998_v9 = vadd.f32 %v997_v46, %v2263_v48 }
 0x10f   :  { %v1043_v21 = vadd.f32 %v1042_v13, %v1014_v15  ;;  %v971_v13 = vadd.f32 %v2259_v55, %v942_v43  ;;  %v999_v15 = vpop.f32.mrf.mxu1  ;;  %v1762_v55 = vld [vmem:[%s2338_s4] ss:$0 sm:$0xff] }
 0x110   :  { %v1074_v22 = vpop.f32.mrf.mxu0 }
 0x111   :  { %v1072_v23 = vadd.f32 %v1071_v8, %v1043_v21  ;;  %v1000_v11 = vadd.f32 %v999_v15, %v971_v13 }
 0x113   :  { %v1090_v18 = vmax.f32 %v1072_v23, 0.0 }
 0x114   :  { %v1016_v25 = vpop.f32.mrf.mxu2 }
 0x115   :  { %v1045_v26 = vpop.f32.mrf.mxu3  ;;  %v1097_v44 = vpack.c.bf16 %v1090_v18, %v1089_v24  ;;  %v1017_v28 = vadd.f32 %v1016_v25, %v988_v27  ;;  %v1163_v25 = vld [vmem:[%s2339_s5] sm:$0xff] }
 0x117   :  { %1631 = vmatmul.msk.bf16.vlgmr.msra.gmra.mxu1 %vm1121_vm0, %v1097_v44  ;;  %v1046_v34 = vadd.f32 %v1045_v26, %v1017_v28 }
 0x118   :  { %v1076_v29 = vpop.f32.mrf.mxu0 }
 0x119   :  { %v1075_v39 = vadd.f32 %v1074_v22, %v1046_v34 }
 0x11b   :  { %v1091_v51 = vmax.f32 %v1075_v39, 0.0 }
 0x11c   :  { %v1018_v36 = vpop.f32.mrf.mxu2 }
 0x11d   :  { %v1047_v37 = vpop.f32.mrf.mxu3  ;;  %v1019_v38 = vadd.f32 %v1018_v36, %v990_v32  ;;  %v1165_v32 = vld [vmem:[%s2339_s5 + $0x10] sm:$0xff] }
 0x11f   :  { %v1048_v40 = vadd.f32 %v1047_v37, %v1019_v38  ;;  %v1166_v38 = vld [vmem:[%s2339_s5 + $0x18] sm:$0xff] }
 0x120   :  { %v1079_v47 = vpop.f32.mrf.mxu0 }
 0x121   :  { %v1077_v42 = vadd.f32 %v1076_v29, %v1048_v40 }
 0x123   :  { %v1092_v31 = vmax.f32 %v1077_v42, 0.0  ;;  %v1167_v42 = vld [vmem:[%s2339_s5 + $0x20] sm:$0xff] }
 0x124   :  { %v1021_v52 = vpop.f32.mrf.mxu2 }
 0x125   :  { %v1050_v53 = vpop.f32.mrf.mxu3  ;;  %v1098_v56 = vpack.c.bf16 %v1092_v31, %v1091_v51  ;;  %v1022_v60 = vadd.f32 %v1021_v52, %v993_v54  ;;  %v1168_v51 = vld [vmem:[%s2339_s5 + $0x28] sm:$0xff]  ;;  %v1169_v54 = vld [vmem:[%s2339_s5 + $0x30] sm:$0xff] }
 0x127   :  { %1632 = vmatmul.msk.bf16.gmra.mxu1 %vm1121_vm0, %v1098_v56  ;;  %v1051_v62 = vadd.f32 %v1050_v53, %v1022_v60 }
 0x128   :  { %v1081_v45 = vpop.f32.mrf.mxu0 }
 0x129   :  { %v1080_v3 = vadd.f32 %v1079_v47, %v1051_v62 }
 0x12b   :  { %v1093_v7 = vmax.f32 %v1080_v3, 0.0 }
 0x12c   :  { %v1023_v63 = vpop.f32.mrf.mxu2 }
 0x12d   :  { %v1052_v0 = vpop.f32.mrf.mxu3  ;;  %v1024_v1 = vadd.f32 %v1023_v63, %v995_v61  ;;  %v1170_v61 = vld [vmem:[%s2339_s5 + $0x38] sm:$0xff] }
 0x12f   :  { %v1053_v5 = vadd.f32 %v1052_v0, %v1024_v1 }
 0x130   :  { %v1084_v12 = vpop.f32.mrf.mxu0 }
 0x131   :  { %v1082_v6 = vadd.f32 %v1081_v45, %v1053_v5 }
 0x133   :  { %v1094_v41 = vmax.f32 %v1082_v6, 0.0 }
 0x134   :  { %v1026_v8 = vpop.f32.mrf.mxu2 }
 0x135   :  { %v1055_v49 = vpop.f32.mrf.mxu3  ;;  %v1099_v10 = vpack.c.bf16 %v1094_v41, %v1093_v7  ;;  %v1027_v14 = vadd.f32 %v1026_v8, %v998_v9 }
 0x137   :  { %1633 = vmatmul.msk.bf16.gmra.mxu1 %vm1121_vm0, %v1099_v10  ;;  %v1056_v58 = vadd.f32 %v1055_v49, %v1027_v14 }
 0x138   :  { %v1086_v22 = vpop.f32.mrf.mxu0 }
 0x139   :  { %v1085_v59 = vadd.f32 %v1084_v12, %v1056_v58 }
 0x13b   :  { %v1095_v20 = vmax.f32 %v1085_v59, 0.0 }
 0x13c   :  { %v1028_v16 = vpop.f32.mrf.mxu2 }
 0x13d   :  { %v1029_v17 = vadd.f32 %v1028_v16, %v1000_v11  ;;  %v1057_v19 = vpop.f32.mrf.mxu3 }
 0x13f   :  { %v1058_v21 = vadd.f32 %v1057_v19, %v1029_v17 }
 0x141   :  { %v1087_v23 = vadd.f32 %v1086_v22, %v1058_v21 }
 0x143   :  { %v1096_v24 = vmax.f32 %v1087_v23, 0.0 }
 0x145   :  { %v1100_v48 = vpack.c.bf16 %v1096_v24, %v1095_v20 }
 0x147   :  { %1634 = vmatmul.msk.bf16.gmra.mxu1 %vm1121_vm0, %v1100_v48 }
 0x194   :  { %v1143_v18 = vpop.f32.mrf.mxu1 }
 0x195   :  { %v1144_v26 = vadd.f32 %v1762_v55, %v1143_v18 }
 0x197   :  { %v1171_v27 = vadd.f32 %v1163_v25, %v1144_v26 }
 0x199   :  { %1179 = vst [vmem:[%s2340_s6] sm:$0xff] %v1171_v27 }
 0x19c   :  { %v1145_v44 = vpop.f32.mrf.mxu1 }
 0x19d   :  { %v1146_v28 = vadd.f32 %v1762_v55, %v1145_v44 }
 0x19f   :  { %v1172_v29 = vadd.f32 %v1164_v4, %v1146_v28 }
 0x1a1   :  { %1180 = vst [vmem:[%s2340_s6 + $0x8] sm:$0xff] %v1172_v29 }
 0x1a4   :  { %v1148_v30 = vpop.f32.mrf.mxu1 }
 0x1a5   :  { %v1149_v34 = vadd.f32 %v1762_v55, %v1148_v30 }
 0x1a7   :  { %v1173_v36 = vadd.f32 %v1165_v32, %v1149_v34 }
 0x1a9   :  { %1181 = vst [vmem:[%s2340_s6 + $0x10] sm:$0xff] %v1173_v36 }
 0x1ac   :  { %v1150_v37 = vpop.f32.mrf.mxu1 }
 0x1ad   :  { %v1151_v35 = vadd.f32 %v1762_v55, %v1150_v37 }
 0x1af   :  { %v1174_v39 = vadd.f32 %v1166_v38, %v1151_v35 }
 0x1b1   :  { %1182 = vst [vmem:[%s2340_s6 + $0x18] sm:$0xff] %v1174_v39 }
 0x1b4   :  { %v1153_v40 = vpop.f32.mrf.mxu1 }
 0x1b5   :  { %v1154_v47 = vadd.f32 %v1762_v55, %v1153_v40 }
 0x1b7   :  { %v1175_v50 = vadd.f32 %v1167_v42, %v1154_v47 }
 0x1b9   :  { %1183 = vst [vmem:[%s2340_s6 + $0x20] sm:$0xff] %v1175_v50 }
 0x1bc   :  { %v1155_v33 = vpop.f32.mrf.mxu1 }
 0x1bd   :  { %v1156_v31 = vadd.f32 %v1762_v55, %v1155_v33 }
 0x1bf   :  { %v1176_v52 = vadd.f32 %v1168_v51, %v1156_v31 }
 0x1c1   :  { %1184 = vst [vmem:[%s2340_s6 + $0x28] sm:$0xff] %v1176_v52 }
 0x1c4   :  { %v1158_v53 = vpop.f32.mrf.mxu1 }
 0x1c5   :  { %v1159_v56 = vadd.f32 %v1762_v55, %v1158_v53 }
 0x1c7   :  { %v1177_v57 = vadd.f32 %v1169_v54, %v1159_v56 }
 0x1c9   :  { %1185 = vst [vmem:[%s2340_s6 + $0x30] sm:$0xff] %v1177_v57 }
 0x1cc   :  { %v1160_v60 = vpop.f32.mrf.mxu1 }
 0x1cd   :  { %v1161_v62 = vadd.f32 %v1762_v55, %v1160_v60 }
 0x1cf   :  { %v1178_v45 = vadd.f32 %v1170_v61, %v1161_v62 }
 0x1d1   :  { %1186 = vst [vmem:[%s2340_s6 + $0x38] sm:$0xff] %v1178_v45 }

// kernel: label_embedder_forward.10
= control target key start
LH: loop header
LB: loop body
LE: loop exit
PB: predicated region body
PF: predicated region fallthrough
CT: control target
= control target key end

     0   :  { %vm1121_vm0 = vcmask 261120   ;;  %s2342_s1 = inlined_call_operand.vmem [shape: bf16[1152,32], index: 1, kind: input, shape index: {}]   ;;  %s2343_s2 = inlined_call_operand.vmem [shape: f32[1,32], index: 2, kind: input, shape index: {}]   ;;  %s2344_s0 = inlined_call_operand.vmem [shape: bf16[64,1152], index: 0, kind: input, shape index: {}]   ;;  %s2345_s3 = inlined_call_operand.vmem [shape: bf16[32,128], index: 3, kind: input, shape index: {}]   ;;  %s2346_s4 = inlined_call_operand.vmem [shape: f32[1,128], index: 4, kind: input, shape index: {}]   ;;  %s2347_s5 = inlined_call_operand.vmem [shape: f32[64,128], index: 5, kind: input, shape index: {}]   ;;  %s2348_s6 = inlined_call_operand.vmem [shape: f32[64,128], index: 6, kind: output, shape index: {}]  }
   0x1   :  { %v1686_v0 = vld [vmem:[%s2342_s1 + $0x38] sm:$0xff]  ;;  %v1685_v2 = vld [vmem:[%s2342_s1 + $0x30] sm:$0xff]  ;;  %v1684_v4 = vld [vmem:[%s2342_s1 + $0x28] sm:$0xff] }
   0x2   :  { %v1694_v1 = vld [vmem:[%s2342_s1 + $0x78] sm:$0xff]  ;;  %1753 = vmatpush.bf16.msra.mxu2 %v1686_v0  ;;  %v1693_v3 = vld [vmem:[%s2342_s1 + $0x70] sm:$0xff]  ;;  %828 = vmatpush.bf16.msra.mxu0 %v1686_v0  ;;  %v1692_v5 = vld [vmem:[%s2342_s1 + $0x68] sm:$0xff] }
   0x3   :  { %1761 = vmatpush.bf16.msra.mxu3 %v1694_v1  ;;  %857 = vmatpush.bf16.msra.mxu1 %v1694_v1  ;;  %v1683_v6 = vld [vmem:[%s2342_s1 + $0x20] sm:$0xff]  ;;  %v1682_v8 = vld [vmem:[%s2342_s1 + $0x18] sm:$0xff]  ;;  %v1681_v10 = vld [vmem:[%s2342_s1 + $0x10] sm:$0xff] }
   0x4   :  { %v1691_v7 = vld [vmem:[%s2342_s1 + $0x60] sm:$0xff]  ;;  %v1690_v9 = vld [vmem:[%s2342_s1 + $0x58] sm:$0xff]  ;;  %v1689_v11 = vld [vmem:[%s2342_s1 + $0x50] sm:$0xff] }
   0x5   :  { %v1680_v12 = vld [vmem:[%s2342_s1 + $0x8] sm:$0xff]  ;;  %v1679_v14 = vld [vmem:[%s2342_s1] sm:$0xff]  ;;  %v1273_v16 = vld [vmem:[%s2344_s0 + $0x90] sm:$0xf] }
   0x6   :  { %1754 = vmatpush.bf16.msra.mxu2 %v1685_v2  ;;  %829 = vmatpush.bf16.msra.mxu0 %v1685_v2  ;;  %v1688_v13 = vld [vmem:[%s2342_s1 + $0x48] sm:$0xff]  ;;  %v1687_v15 = vld [vmem:[%s2342_s1 + $0x40] sm:$0xff]  ;;  %v1665_v17 = vld [vmem:[%s2344_s0 + $0xb0] sm:$0xf0] }
   0x7   :  { %1762 = vmatpush.bf16.msra.mxu3 %v1693_v3  ;;  %858 = vmatpush.bf16.msra.mxu1 %v1693_v3  ;;  %v1661_v18 = vld [vmem:[%s2344_s0 + $0x94] sm:$0xf]  ;;  %v1275_v19 = vld [vmem:[%s2344_s0 + $0xb4] sm:$0xf0]  ;;  %v1201_v21 = vld [vmem:[%s2344_s0] sm:$0xf]  ;;  %v1274_v26 = vor.u32 %v1665_v17, %v1273_v16 }
   0x8   :  { %v1702_v20 = vld [vmem:[%s2342_s1 + $0xb8] sm:$0xff]  ;;  %v1647_v22 = vld [vmem:[%s2344_s0 + $0x20] sm:$0xf0]  ;;  %v1203_v25 = vld [vmem:[%s2344_s0 + $0x24] sm:$0xf0]  ;;  %v1278_v27 = vor.u32 %v1661_v18, %v1275_v19 }
   0x9   :  { %v1710_v23 = vld [vmem:[%s2342_s1 + $0xf8] sm:$0xff]  ;;  %v1643_v24 = vld [vmem:[%s2344_s0 + $0x4] sm:$0xf]  ;;  %v1202_v28 = vor.u32 %v1647_v22, %v1201_v21  ;;  %v1701_v32 = vld [vmem:[%s2342_s1 + $0xb0] sm:$0xff] }
   0xa   :  { %1755 = vmatpush.bf16.msra.mxu2 %v1684_v4  ;;  %830 = vmatpush.bf16.msra.mxu0 %v1684_v4  ;;  %v1726_v29 = vld [vmem:[%s2342_s1 + $0x178] sm:$0xff]  ;;  %v1206_v31 = vor.u32 %v1643_v24, %v1203_v25  ;;  %v1709_v33 = vld [vmem:[%s2342_s1 + $0xf0] sm:$0xff]  ;;  %v1700_v36 = vld [vmem:[%s2342_s1 + $0xa8] sm:$0xff] }
   0xb   :  { %1763 = vmatpush.bf16.msra.mxu3 %v1692_v5  ;;  %859 = vmatpush.bf16.msra.mxu1 %v1692_v5  ;;  %v1718_v30 = vld [vmem:[%s2342_s1 + $0x138] sm:$0xff]  ;;  %v1725_v34 = vld [vmem:[%s2342_s1 + $0x170] sm:$0xff]  ;;  %v1708_v37 = vld [vmem:[%s2342_s1 + $0xe8] sm:$0xff] }
   0xc   :  { %v1717_v35 = vld [vmem:[%s2342_s1 + $0x130] sm:$0xff]  ;;  %v1724_v38 = vld [vmem:[%s2342_s1 + $0x168] sm:$0xff]  ;;  %v1699_v40 = vld [vmem:[%s2342_s1 + $0xa0] sm:$0xff] }
   0xd   :  { %v1716_v39 = vld [vmem:[%s2342_s1 + $0x128] sm:$0xff]  ;;  %v1707_v41 = vld [vmem:[%s2342_s1 + $0xe0] sm:$0xff]  ;;  %v1309_v43 = vld [vmem:[%s2344_s0 + $0xd8] sm:$0xf] }
   0xe   :  { %1756 = vmatpush.bf16.msra.mxu2 %v1683_v6  ;;  %831 = vmatpush.bf16.msra.mxu0 %v1683_v6  ;;  %v1715_v42 = vld [vmem:[%s2342_s1 + $0x120] sm:$0xff]  ;;  %v1674_v44 = vld [vmem:[%s2344_s0 + $0xf8] sm:$0xf0]  ;;  %v1237_v49 = vld [vmem:[%s2344_s0 + $0x48] sm:$0xf] }
   0xf   :  { %1764 = vmatpush.bf16.msra.mxu3 %v1691_v7  ;;  %860 = vmatpush.bf16.msra.mxu1 %v1691_v7  ;;  %v1670_v45 = vld [vmem:[%s2344_s0 + $0xdc] sm:$0xf]  ;;  %v1311_v46 = vld [vmem:[%s2344_s0 + $0xfc] sm:$0xf0]  ;;  %v1656_v50 = vld [vmem:[%s2344_s0 + $0x68] sm:$0xf0]  ;;  %v1310_v54 = vor.u32 %v1674_v44, %v1309_v43 }
  0x10   :  { %v1723_v47 = vld [vmem:[%s2342_s1 + $0x160] sm:$0xff]  ;;  %v1698_v48 = vld [vmem:[%s2342_s1 + $0x98] sm:$0xff]  ;;  %v1652_v52 = vld [vmem:[%s2344_s0 + $0x4c] sm:$0xf]  ;;  %v1314_v55 = vor.u32 %v1670_v45, %v1311_v46  ;;  %v1238_v56 = vor.u32 %v1656_v50, %v1237_v49 }
  0x11   :  { %v1706_v51 = vld [vmem:[%s2342_s1 + $0xd8] sm:$0xff]  ;;  %v1239_v53 = vld [vmem:[%s2344_s0 + $0x6c] sm:$0xf0]  ;;  %v1696_v0 = vld [vmem:[%s2342_s1 + $0x88] sm:$0xff] }
  0x12   :  { %1757 = vmatpush.bf16.msra.mxu2 %v1682_v8  ;;  %832 = vmatpush.bf16.msra.mxu0 %v1682_v8  ;;  %v1722_v57 = vld [vmem:[%s2342_s1 + $0x158] sm:$0xff]  ;;  %v1242_v59 = vor.u32 %v1652_v52, %v1239_v53  ;;  %v1697_v60 = vld [vmem:[%s2342_s1 + $0x90] sm:$0xff]  ;;  %v1704_v1 = vld [vmem:[%s2342_s1 + $0xc8] sm:$0xff] }
  0x13   :  { %1765 = vmatpush.bf16.msra.mxu3 %v1690_v9  ;;  %861 = vmatpush.bf16.msra.mxu1 %v1690_v9  ;;  %v1714_v58 = vld [vmem:[%s2342_s1 + $0x118] sm:$0xff]  ;;  %v1705_v61 = vld [vmem:[%s2342_s1 + $0xd0] sm:$0xff]  ;;  %v1720_v2 = vld [vmem:[%s2342_s1 + $0x148] sm:$0xff] }
  0x14   :  { %v1721_v62 = vld [vmem:[%s2342_s1 + $0x150] sm:$0xff]  ;;  %v1712_v3 = vld [vmem:[%s2342_s1 + $0x108] sm:$0xff]  ;;  %v1695_v4 = vld [vmem:[%s2342_s1 + $0x80] sm:$0xff] }
  0x15   :  { %v1713_v63 = vld [vmem:[%s2342_s1 + $0x110] sm:$0xff]  ;;  %v1703_v5 = vld [vmem:[%s2342_s1 + $0xc0] sm:$0xff]  ;;  %v1209_v6 = vld [vmem:[%s2344_s0 + $0x8] sm:$0xf] }
  0x16   :  { %1758 = vmatpush.bf16.msra.mxu2 %v1681_v10  ;;  %833 = vmatpush.bf16.msra.mxu0 %v1681_v10  ;;  %v1648_v7 = vld [vmem:[%s2344_s0 + $0x28] sm:$0xf0]  ;;  %v1734_v8 = vld [vmem:[%s2342_s1 + $0x1b8] sm:$0xff]  ;;  %v1645_v17 = vld [vmem:[%s2344_s0 + $0x14] sm:$0xf] }
  0x17   :  { %1766 = vmatpush.bf16.msra.mxu3 %v1689_v11  ;;  %862 = vmatpush.bf16.msra.mxu1 %v1689_v11  ;;  %v1742_v9 = vld [vmem:[%s2342_s1 + $0x1f8] sm:$0xff]  ;;  %v1644_v10 = vld [vmem:[%s2344_s0 + $0xc] sm:$0xf]  ;;  %v1211_v11 = vld [vmem:[%s2344_s0 + $0x2c] sm:$0xf0]  ;;  %v1210_v19 = vor.u32 %v1648_v7, %v1209_v6 }
  0x18   :  { %v1750_v16 = vld [vmem:[%s2342_s1 + $0x238] sm:$0xff]  ;;  %v1733_v22 = vld [vmem:[%s2342_s1 + $0x1b0] sm:$0xff]  ;;  %v1728_v49 = vld [vmem:[%s2342_s1 + $0x188] sm:$0xff] }
  0x19   :  { %v1219_v18 = vld [vmem:[%s2344_s0 + $0x34] sm:$0xf0]  ;;  %v1749_v25 = vld [vmem:[%s2342_s1 + $0x230] sm:$0xff]  ;;  %v1744_v52 = vld [vmem:[%s2342_s1 + $0x208] sm:$0xff] }
  0x1a   :  { %1759 = vmatpush.bf16.msra.mxu2 %v1680_v12  ;;  %834 = vmatpush.bf16.msra.mxu0 %v1680_v12  ;;  %v1719_v12 = vld [vmem:[%s2342_s1 + $0x140] sm:$0xff]  ;;  %v1222_v24 = vor.u32 %v1645_v17, %v1219_v18  ;;  %v1729_v46 = vld [vmem:[%s2342_s1 + $0x190] sm:$0xff]  ;;  %v1319_v7 = vld [vmem:[%s2344_s0 + $0x104] sm:$0xf0] }
  0x1b   :  { %1767 = vmatpush.bf16.msra.mxu3 %v1688_v13  ;;  %863 = vmatpush.bf16.msra.mxu1 %v1688_v13  ;;  %v1711_v13 = vld [vmem:[%s2342_s1 + $0x100] sm:$0xff]  ;;  %v1745_v50 = vld [vmem:[%s2342_s1 + $0x210] sm:$0xff]  ;;  %v1650_v17 = vld [vmem:[%s2344_s0 + $0x38] sm:$0xf0] }
  0x1c   :  { %v1727_v53 = vld [vmem:[%s2342_s1 + $0x180] sm:$0xff]  ;;  %v1646_v18 = vld [vmem:[%s2344_s0 + $0x1c] sm:$0xf] }
  0x1d   :  { %v1671_v6 = vld [vmem:[%s2344_s0 + $0xe4] sm:$0xf] }
  0x1e   :  { %1760 = vmatpush.bf16.msra.mxu2 %v1679_v14  ;;  %835 = vmatpush.bf16.msra.mxu0 %v1679_v14  ;;  %v1217_v14 = vld [vmem:[%s2344_s0 + $0x10] sm:$0xf] }
  0x1f   :  { %1768 = vmatpush.bf16.msra.mxu3 %v1687_v15  ;;  %864 = vmatpush.bf16.msra.mxu1 %v1687_v15  ;;  %v1649_v15 = vld [vmem:[%s2344_s0 + $0x30] sm:$0xf0] }
  0x20   :  { %v1218_v21 = vor.u32 %v1649_v15, %v1217_v14 }
  0x21   :  { %846 = vmatmul.bf16.vlgmr.msra.gmra.mxu2 %v1274_v26  ;;  %836 = vmatmul.bf16.vlgmr.msra.gmra.mxu0 %v1202_v28  ;;  %v1732_v26 = vld [vmem:[%s2342_s1 + $0x1a8] sm:$0xff] }
  0x22   :  { %886 = vmatpush.bf16.msrb.mxu2 %v1702_v20  ;;  %875 = vmatmul.bf16.vlgmr.msra.gmra.mxu3 %v1278_v27  ;;  %v1214_v20 = vor.u32 %v1644_v10, %v1211_v11  ;;  %v1740_v27 = vld [vmem:[%s2342_s1 + $0x1e8] sm:$0xff]  ;;  %v1327_v11 = vld [vmem:[%s2344_s0 + $0x10c] sm:$0xf0] }
  0x23   :  { %915 = vmatpush.bf16.msrb.mxu3 %v1710_v23  ;;  %973 = vmatpush.bf16.msrb.mxu1 %v1726_v29  ;;  %v1741_v23 = vld [vmem:[%s2342_s1 + $0x1f0] sm:$0xff]  ;;  %v1748_v28 = vld [vmem:[%s2342_s1 + $0x228] sm:$0xff]  ;;  %v1731_v29 = vld [vmem:[%s2342_s1 + $0x1a0] sm:$0xff] }
  0x24   :  { %944 = vmatpush.bf16.msrb.mxu0 %v1718_v30  ;;  %865 = vmatmul.bf16.vlgmr.msra.gmra.mxu1 %v1206_v31  ;;  %v1739_v30 = vld [vmem:[%s2342_s1 + $0x1e0] sm:$0xff]  ;;  %v1672_v10 = vld [vmem:[%s2344_s0 + $0xec] sm:$0xf] }
  0x25   :  { %v1747_v31 = vld [vmem:[%s2342_s1 + $0x220] sm:$0xff]  ;;  %v1330_v15 = vor.u32 %v1672_v10, %v1327_v11 }
  0x26   :  { %887 = vmatpush.bf16.msrb.mxu2 %v1701_v32  ;;  %v1245_v32 = vld [vmem:[%s2344_s0 + $0x50] sm:$0xf] }
  0x27   :  { %916 = vmatpush.bf16.msrb.mxu3 %v1709_v33  ;;  %974 = vmatpush.bf16.msrb.mxu1 %v1725_v34  ;;  %v1657_v33 = vld [vmem:[%s2344_s0 + $0x70] sm:$0xf0] }
  0x28   :  { %945 = vmatpush.bf16.msrb.mxu0 %v1717_v35  ;;  %v1653_v34 = vld [vmem:[%s2344_s0 + $0x54] sm:$0xf]  ;;  %v1247_v35 = vld [vmem:[%s2344_s0 + $0x74] sm:$0xf0]  ;;  %v1246_v43 = vor.u32 %v1657_v33, %v1245_v32 }
  0x29   :  { %v1250_v44 = vor.u32 %v1653_v34, %v1247_v35  ;;  %v1297_v34 = vld [vmem:[%s2344_s0 + $0xa8] sm:$0xf]  ;;  %v1668_v35 = vld [vmem:[%s2344_s0 + $0xc8] sm:$0xf0] }
  0x2a   :  { %888 = vmatpush.bf16.msrb.mxu2 %v1700_v36  ;;  %v1730_v36 = vld [vmem:[%s2342_s1 + $0x198] sm:$0xff] }
  0x2b   :  { %917 = vmatpush.bf16.msrb.mxu3 %v1708_v37  ;;  %975 = vmatpush.bf16.msrb.mxu1 %v1724_v38  ;;  %v1253_v37 = vld [vmem:[%s2344_s0 + $0x58] sm:$0xf]  ;;  %v1658_v38 = vld [vmem:[%s2344_s0 + $0x78] sm:$0xf0] }
  0x2c   :  { %946 = vmatpush.bf16.msrb.mxu0 %v1716_v39  ;;  %v1738_v39 = vld [vmem:[%s2342_s1 + $0x1d8] sm:$0xff]  ;;  %v1254_v45 = vor.u32 %v1658_v38, %v1253_v37  ;;  %v1299_v37 = vld [vmem:[%s2344_s0 + $0xcc] sm:$0xf0] }
  0x2d   :  { %v1305_v38 = vld [vmem:[%s2344_s0 + $0xb0] sm:$0xf] }
  0x2e   :  { %889 = vmatpush.bf16.msrb.mxu2 %v1699_v40  ;;  %v1654_v40 = vld [vmem:[%s2344_s0 + $0x5c] sm:$0xf] }
  0x2f   :  { %918 = vmatpush.bf16.msrb.mxu3 %v1707_v41  ;;  %976 = vmatpush.bf16.msrb.mxu1 %v1723_v47  ;;  %v1255_v41 = vld [vmem:[%s2344_s0 + $0x7c] sm:$0xf0] }
  0x30   :  { %947 = vmatpush.bf16.msrb.mxu0 %v1715_v42  ;;  %v1746_v42 = vld [vmem:[%s2342_s1 + $0x218] sm:$0xff]  ;;  %v1258_v47 = vor.u32 %v1654_v40, %v1255_v41  ;;  %v1298_v40 = vor.u32 %v1668_v35, %v1297_v34 }
  0x31   :  { %851 = vmatmul.bf16.gmra.mxu2 %v1310_v54  ;;  %841 = vmatmul.bf16.gmra.mxu0 %v1238_v56  ;;  %v1735_v54 = vld [vmem:[%s2342_s1 + $0x1c0] sm:$0xff]  ;;  %v1281_v56 = vld [vmem:[%s2344_s0 + $0x98] sm:$0xf] }
  0x32   :  { %890 = vmatpush.bf16.msrb.mxu2 %v1698_v48  ;;  %880 = vmatmul.bf16.gmra.mxu3 %v1314_v55  ;;  %v1737_v48 = vld [vmem:[%s2342_s1 + $0x1d0] sm:$0xff]  ;;  %v1743_v55 = vld [vmem:[%s2342_s1 + $0x200] sm:$0xff] }
  0x33   :  { %919 = vmatpush.bf16.msrb.mxu3 %v1706_v51  ;;  %977 = vmatpush.bf16.msrb.mxu1 %v1722_v57  ;;  %v1736_v51 = vld [vmem:[%s2342_s1 + $0x1c8] sm:$0xff]  ;;  %v1666_v57 = vld [vmem:[%s2344_s0 + $0xb8] sm:$0xf0] }
  0x34   :  { %948 = vmatpush.bf16.msrb.mxu0 %v1714_v58  ;;  %870 = vmatmul.bf16.gmra.mxu1 %v1242_v59  ;;  %v1662_v58 = vld [vmem:[%s2344_s0 + $0x9c] sm:$0xf]  ;;  %v1283_v59 = vld [vmem:[%s2344_s0 + $0xbc] sm:$0xf0] }
  0x36   :  { %891 = vmatpush.bf16.msrb.mxu2 %v1697_v60  ;;  %v1289_v60 = vld [vmem:[%s2344_s0 + $0xa0] sm:$0xf] }
  0x37   :  { %920 = vmatpush.bf16.msrb.mxu3 %v1705_v61  ;;  %978 = vmatpush.bf16.msrb.mxu1 %v1721_v62  ;;  %v1667_v61 = vld [vmem:[%s2344_s0 + $0xc0] sm:$0xf0] }
  0x38   :  { %949 = vmatpush.bf16.msrb.mxu0 %v1713_v63  ;;  %v1663_v62 = vld [vmem:[%s2344_s0 + $0xa4] sm:$0xf]  ;;  %v1291_v63 = vld [vmem:[%s2344_s0 + $0xc4] sm:$0xf0] }
  0x3a   :  { %892 = vmatpush.bf16.msrb.mxu2 %v1696_v0  ;;  %v1282_v0 = vor.u32 %v1666_v57, %v1281_v56 }
  0x3b   :  { %921 = vmatpush.bf16.msrb.mxu3 %v1704_v1  ;;  %979 = vmatpush.bf16.msrb.mxu1 %v1720_v2  ;;  %v1286_v1 = vor.u32 %v1662_v58, %v1283_v59  ;;  %v1290_v2 = vor.u32 %v1667_v61, %v1289_v60 }
  0x3c   :  { %950 = vmatpush.bf16.msrb.mxu0 %v1712_v3  ;;  %v1294_v3 = vor.u32 %v1663_v62, %v1291_v63 }
  0x3e   :  { %893 = vmatpush.bf16.msrb.mxu2 %v1695_v4  ;;  %v1317_v4 = vld [vmem:[%s2344_s0 + $0xe0] sm:$0xf] }
  0x3f   :  { %922 = vmatpush.bf16.msrb.mxu3 %v1703_v5  ;;  %980 = vmatpush.bf16.msrb.mxu1 %v1719_v12  ;;  %v1675_v5 = vld [vmem:[%s2344_s0 + $0x100] sm:$0xf0] }
  0x40   :  { %951 = vmatpush.bf16.msrb.mxu0 %v1711_v13  ;;  %v1318_v12 = vor.u32 %v1675_v5, %v1317_v4  ;;  %v1322_v13 = vor.u32 %v1671_v6, %v1319_v7  ;;  %v1752_v5 = vld [vmem:[%s2345_s3 + $0x8] sm:$0xff] }
  0x41   :  { %894 = vmatmul.bf16.vlgmr.msrb.gmra.mxu2 %v1210_v19  ;;  %v1227_v19 = vld [vmem:[%s2344_s0 + $0x3c] sm:$0xf0] }
  0x42   :  { %1002 = vmatpush.bf16.msra.mxu2 %v1734_v8  ;;  %923 = vmatmul.bf16.vlgmr.msrb.gmra.mxu3 %v1214_v20  ;;  %v1325_v8 = vld [vmem:[%s2344_s0 + $0xe8] sm:$0xf]  ;;  %v1233_v20 = vld [vmem:[%s2344_s0 + $0x20] sm:$0xf] }
  0x43   :  { %1031 = vmatpush.bf16.msra.mxu3 %v1742_v9  ;;  %952 = vmatmul.bf16.vlgmr.msrb.gmra.mxu0 %v1218_v21  ;;  %v1676_v9 = vld [vmem:[%s2344_s0 + $0x108] sm:$0xf0]  ;;  %v1651_v21 = vld [vmem:[%s2344_s0 + $0x40] sm:$0xf0] }
  0x44   :  { %1060 = vmatpush.bf16.msra.mxu0 %v1750_v16  ;;  %981 = vmatmul.bf16.vlgmr.msrb.gmra.mxu1 %v1222_v24  ;;  %v1326_v14 = vor.u32 %v1676_v9, %v1325_v8  ;;  %v1225_v16 = vld [vmem:[%s2344_s0 + $0x18] sm:$0xf]  ;;  %v1234_v24 = vor.u32 %v1651_v21, %v1233_v20 }
  0x45   :  { %1140 = vmatpush.bf16.msra.mxu1 %v1752_v5 }
  0x46   :  { %1003 = vmatpush.bf16.msra.mxu2 %v1733_v22  ;;  %v1226_v22 = vor.u32 %v1650_v17, %v1225_v16 }
  0x47   :  { %1032 = vmatpush.bf16.msra.mxu3 %v1741_v23  ;;  %v1230_v23 = vor.u32 %v1646_v18, %v1227_v19 }
  0x48   :  { %1061 = vmatpush.bf16.msra.mxu0 %v1749_v25  ;;  %v1261_v25 = vld [vmem:[%s2344_s0 + $0x60] sm:$0xf] }
  0x4a   :  { %1004 = vmatpush.bf16.msra.mxu2 %v1732_v26  ;;  %v1659_v26 = vld [vmem:[%s2344_s0 + $0x80] sm:$0xf0] }
  0x4b   :  { %1033 = vmatpush.bf16.msra.mxu3 %v1740_v27  ;;  %v1655_v27 = vld [vmem:[%s2344_s0 + $0x64] sm:$0xf] }
  0x4c   :  { %1062 = vmatpush.bf16.msra.mxu0 %v1748_v28  ;;  %v1263_v28 = vld [vmem:[%s2344_s0 + $0x84] sm:$0xf0] }
  0x4d   :  { %v1266_v32 = vor.u32 %v1655_v27, %v1263_v28 }
  0x4e   :  { %1005 = vmatpush.bf16.msra.mxu2 %v1731_v29  ;;  %v1269_v29 = vld [vmem:[%s2344_s0 + $0x68] sm:$0xf] }
  0x4f   :  { %1034 = vmatpush.bf16.msra.mxu3 %v1739_v30  ;;  %v1660_v30 = vld [vmem:[%s2344_s0 + $0x88] sm:$0xf0] }
  0x50   :  { %1063 = vmatpush.bf16.msra.mxu0 %v1747_v31  ;;  %v1262_v31 = vor.u32 %v1659_v26, %v1261_v25  ;;  %v1270_v33 = vor.u32 %v1660_v30, %v1269_v29 }
  0x51   :  { %899 = vmatmul.bf16.gmra.mxu2 %v1246_v43 }
  0x52   :  { %1006 = vmatpush.bf16.msra.mxu2 %v1730_v36  ;;  %928 = vmatmul.bf16.gmra.mxu3 %v1250_v44  ;;  %v1664_v36 = vld [vmem:[%s2344_s0 + $0xac] sm:$0xf]  ;;  %v2223_v44 = vld [vmem:[%s2343_s2] ss:$0 sm:$0xff] }
  0x53   :  { %1035 = vmatpush.bf16.msra.mxu3 %v1738_v39  ;;  %957 = vmatmul.bf16.gmra.mxu0 %v1254_v45  ;;  %v1669_v39 = vld [vmem:[%s2344_s0 + $0xd0] sm:$0xf0]  ;;  %v1302_v41 = vor.u32 %v1664_v36, %v1299_v37 }
  0x54   :  { %1064 = vmatpush.bf16.msra.mxu0 %v1746_v42  ;;  %986 = vmatmul.bf16.gmra.mxu1 %v1258_v47  ;;  %v1306_v42 = vor.u32 %v1669_v39, %v1305_v38 }
  0x56   :  { %1007 = vmatpush.bf16.msra.mxu2 %v1729_v46 }
  0x57   :  { %1036 = vmatpush.bf16.msra.mxu3 %v1737_v48 }
  0x58   :  { %1065 = vmatpush.bf16.msra.mxu0 %v1745_v50  ;;  %v1333_v50 = vld [vmem:[%s2344_s0 + $0xf0] sm:$0xf] }
  0x5a   :  { %1008 = vmatpush.bf16.msra.mxu2 %v1728_v49 }
  0x5b   :  { %1037 = vmatpush.bf16.msra.mxu3 %v1736_v51  ;;  %v1677_v51 = vld [vmem:[%s2344_s0 + $0x110] sm:$0xf0] }
  0x5c   :  { %1066 = vmatpush.bf16.msra.mxu0 %v1744_v52  ;;  %v1673_v52 = vld [vmem:[%s2344_s0 + $0xf4] sm:$0xf]  ;;  %v1334_v59 = vor.u32 %v1677_v51, %v1333_v50 }
  0x5e   :  { %1009 = vmatpush.bf16.msra.mxu2 %v1727_v53  ;;  %v1335_v53 = vld [vmem:[%s2344_s0 + $0x114] sm:$0xf0] }
  0x5f   :  { %1038 = vmatpush.bf16.msra.mxu3 %v1735_v54  ;;  %v1341_v54 = vld [vmem:[%s2344_s0 + $0xf8] sm:$0xf]  ;;  %v1338_v60 = vor.u32 %v1673_v52, %v1335_v53 }
  0x60   :  { %1067 = vmatpush.bf16.msra.mxu0 %v1743_v55  ;;  %v1678_v55 = vld [vmem:[%s2344_s0 + $0x118] sm:$0xf0] }
  0x61   :  { %904 = vmatmul.bf16.gmra.mxu2 %v1282_v0  ;;  %v1342_v61 = vor.u32 %v1678_v55, %v1341_v54 }
  0x62   :  { %933 = vmatmul.bf16.gmra.mxu3 %v1286_v1 }
  0x63   :  { %962 = vmatmul.bf16.gmra.mxu0 %v1290_v2 }
  0x64   :  { %991 = vmatmul.bf16.gmra.mxu1 %v1294_v3 }
  0x71   :  { %909 = vmatmul.bf16.gmra.mxu2 %v1318_v12 }
  0x72   :  { %938 = vmatmul.bf16.gmra.mxu3 %v1322_v13 }
  0x73   :  { %967 = vmatmul.bf16.gmra.mxu0 %v1326_v14 }
  0x74   :  { %996 = vmatmul.bf16.gmra.mxu1 %v1330_v15 }
  0x81   :  { %1010 = vmatmul.bf16.vlgmr.msra.gmra.mxu2 %v1226_v22 }
  0x82   :  { %1039 = vmatmul.bf16.vlgmr.msra.gmra.mxu3 %v1230_v23 }
  0x83   :  { %1068 = vmatmul.bf16.vlgmr.msra.gmra.mxu0 %v1234_v24 }
  0x91   :  { %1015 = vmatmul.bf16.gmra.mxu2 %v1262_v31 }
  0x92   :  { %1044 = vmatmul.bf16.gmra.mxu3 %v1266_v32  ;;  %v1751_v32 = vld [vmem:[%s2345_s3] sm:$0xff] }
  0x93   :  { %1073 = vmatmul.bf16.gmra.mxu0 %v1270_v33  ;;  %1141 = vmatpush.bf16.msra.mxu1 %v1751_v32 }
  0x9e   :  { %v837_v43 = vpop.f32.mrf.mxu0 }
  0x9f   :  { %v838_v10 = vadd.f32 %v2223_v44, %v837_v43 }
  0xa1   :  { %1020 = vmatmul.bf16.gmra.mxu2 %v1298_v40  ;;  %v866_v9 = vpop.f32.mrf.mxu1 }
  0xa2   :  { %1049 = vmatmul.bf16.gmra.mxu3 %v1302_v41  ;;  %v867_v13 = vadd.f32 %v866_v9, %v838_v10 }
  0xa3   :  { %1078 = vmatmul.bf16.gmra.mxu0 %v1306_v42 }
  0xa4   :  { %v847_v45 = vpop.f32.mrf.mxu2 }
  0xa5   :  { %v876_v46 = vpop.f32.mrf.mxu3  ;;  %v848_v47 = vadd.f32 %v2223_v44, %v847_v45 }
  0xa6   :  { %v2226_v49 = vpop.f32.mrf.mxu0 }
  0xa7   :  { %v877_v48 = vadd.f32 %v876_v46, %v848_v47 }
  0xa9   :  { %v868_v19 = vpop.f32.mrf.mxu1 }
  0xac   :  { %v849_v56 = vpop.f32.mrf.mxu2 }
  0xad   :  { %v878_v57 = vpop.f32.mrf.mxu3  ;;  %v850_v58 = vadd.f32 %v2223_v44, %v849_v56  ;;  %v840_v56 = vadd.f32 %v2223_v44, %v2226_v49 }
  0xae   :  { %v842_v63 = vpop.f32.mrf.mxu0 }
  0xaf   :  { %v2247_v62 = vadd.f32 %v878_v57, %v850_v58  ;;  %v843_v23 = vadd.f32 %v2223_v44, %v842_v63 }
  0xb1   :  { %1025 = vmatmul.bf16.gmra.mxu2 %v1334_v59  ;;  %v871_v25 = vpop.f32.mrf.mxu1 }
  0xb2   :  { %1054 = vmatmul.bf16.gmra.mxu3 %v1338_v60  ;;  %v872_v26 = vadd.f32 %v871_v25, %v843_v23  ;;  %v869_v60 = vadd.f32 %v868_v19, %v840_v56 }
  0xb3   :  { %1083 = vmatmul.bf16.gmra.mxu0 %v1342_v61 }
  0xb4   :  { %v852_v0 = vpop.f32.mrf.mxu2 }
  0xb5   :  { %v881_v1 = vpop.f32.mrf.mxu3  ;;  %v853_v2 = vadd.f32 %v2223_v44, %v852_v0 }
  0xb6   :  { %v2250_v4 = vpop.f32.mrf.mxu0 }
  0xb7   :  { %v882_v3 = vadd.f32 %v881_v1, %v853_v2  ;;  %v845_v49 = vadd.f32 %v2223_v44, %v2250_v4 }
  0xb9   :  { %v873_v42 = vpop.f32.mrf.mxu1 }
  0xbc   :  { %v854_v6 = vpop.f32.mrf.mxu2 }
  0xbd   :  { %v883_v7 = vpop.f32.mrf.mxu3  ;;  %v855_v8 = vadd.f32 %v2223_v44, %v854_v6 }
  0xbf   :  { %v2257_v11 = vadd.f32 %v883_v7, %v855_v8 }
  0xc0   :  { %v953_v12 = vpop.f32.mrf.mxu0 }
  0xc1   :  { %v982_v50 = vpop.f32.mrf.mxu1 }
  0xc4   :  { %v895_v14 = vpop.f32.mrf.mxu2 }
  0xc5   :  { %v924_v15 = vpop.f32.mrf.mxu3  ;;  %v896_v16 = vadd.f32 %v895_v14, %v867_v13  ;;  %v874_v14 = vadd.f32 %v873_v42, %v845_v49 }
  0xc7   :  { %v925_v17 = vadd.f32 %v924_v15, %v896_v16 }
  0xc8   :  { %v955_v18 = vpop.f32.mrf.mxu0 }
  0xc9   :  { %v954_v20 = vadd.f32 %v953_v12, %v925_v17  ;;  %v984_v57 = vpop.f32.mrf.mxu1 }
  0xcc   :  { %v897_v21 = vpop.f32.mrf.mxu2 }
  0xcd   :  { %v926_v22 = vpop.f32.mrf.mxu3  ;;  %v898_v61 = vadd.f32 %v897_v21, %v869_v60 }
  0xcf   :  { %v927_v0 = vadd.f32 %v926_v22, %v898_v61 }
  0xd0   :  { %v958_v24 = vpop.f32.mrf.mxu0 }
  0xd1   :  { %v987_v5 = vpop.f32.mrf.mxu1  ;;  %v956_v6 = vadd.f32 %v955_v18, %v927_v0 }
  0xd3   :  { %v985_v9 = vadd.f32 %v984_v57, %v956_v6 }
  0xd4   :  { %v900_v27 = vpop.f32.mrf.mxu2 }
  0xd5   :  { %v929_v28 = vpop.f32.mrf.mxu3  ;;  %v901_v29 = vadd.f32 %v900_v27, %v872_v26 }
  0xd7   :  { %v930_v30 = vadd.f32 %v929_v28, %v901_v29 }
  0xd8   :  { %v960_v31 = vpop.f32.mrf.mxu0 }
  0xd9   :  { %v959_v33 = vadd.f32 %v958_v24, %v930_v30  ;;  %v989_v17 = vpop.f32.mrf.mxu1 }
  0xdb   :  { %v988_v27 = vadd.f32 %v987_v5, %v959_v33 }
  0xdc   :  { %v902_v34 = vpop.f32.mrf.mxu2 }
  0xdd   :  { %v931_v35 = vpop.f32.mrf.mxu3  ;;  %v903_v16 = vadd.f32 %v902_v34, %v874_v14 }
  0xe0   :  { %v963_v36 = vpop.f32.mrf.mxu0 }
  0xe1   :  { %v992_v30 = vpop.f32.mrf.mxu1 }
  0xe4   :  { %v905_v37 = vpop.f32.mrf.mxu2 }
  0xe5   :  { %v934_v38 = vpop.f32.mrf.mxu3  ;;  %v906_v39 = vadd.f32 %v905_v37, %v877_v48 }
  0xe7   :  { %v935_v40 = vadd.f32 %v934_v38, %v906_v39 }
  0xe8   :  { %v2263_v41 = vpop.f32.mrf.mxu0 }
  0xe9   :  { %v2265_v43 = vadd.f32 %v963_v36, %v935_v40  ;;  %v994_v33 = vpop.f32.mrf.mxu1 }
  0xec   :  { %v907_v45 = vpop.f32.mrf.mxu2 }
  0xed   :  { %v936_v46 = vpop.f32.mrf.mxu3 }
  0xf0   :  { %v968_v47 = vpop.f32.mrf.mxu0 }
  0xf4   :  { %v910_v51 = vpop.f32.mrf.mxu2 }
  0xf5   :  { %v939_v52 = vpop.f32.mrf.mxu3  ;;  %v911_v53 = vadd.f32 %v910_v51, %v882_v3  ;;  %v983_v3 = vadd.f32 %v982_v50, %v954_v20  ;;  %v932_v20 = vadd.f32 %v931_v35, %v903_v16  ;;  %v908_v35 = vadd.f32 %v907_v45, %v2247_v62 }
  0xf7   :  { %v940_v54 = vadd.f32 %v939_v52, %v911_v53  ;;  %v961_v4 = vadd.f32 %v960_v31, %v932_v20  ;;  %v937_v50 = vadd.f32 %v936_v46, %v908_v35  ;;  %v997_v46 = vpop.f32.mrf.mxu1 }
  0xf8   :  { %v2267_v55 = vpop.f32.mrf.mxu0 }
  0xf9   :  { %v2271_v48 = vadd.f32 %v968_v47, %v940_v54  ;;  %v990_v32 = vadd.f32 %v989_v17, %v961_v4  ;;  %v993_v54 = vadd.f32 %v992_v30, %v2265_v43  ;;  %v966_v57 = vadd.f32 %v2263_v41, %v937_v50 }
  0xfb   :  { %v995_v61 = vadd.f32 %v994_v33, %v966_v57 }
  0xfc   :  { %v2273_v58 = vpop.f32.mrf.mxu2 }
  0xfd   :  { %v2275_v59 = vpop.f32.mrf.mxu3 }
 0x100   :  { %v1069_v63 = vpop.f32.mrf.mxu0 }
 0x104   :  { %v1011_v1 = vpop.f32.mrf.mxu2 }
 0x105   :  { %v1040_v2 = vpop.f32.mrf.mxu3  ;;  %v1012_v7 = vadd.f32 %v1011_v1, %v983_v3 }
 0x107   :  { %v1041_v10 = vadd.f32 %v1040_v2, %v1012_v7  ;;  %v913_v2 = vadd.f32 %v2273_v58, %v2257_v11 }
 0x108   :  { %v1071_v8 = vpop.f32.mrf.mxu0 }
 0x109   :  { %v1070_v19 = vadd.f32 %v1069_v63, %v1041_v10  ;;  %v942_v43 = vadd.f32 %v2275_v59, %v913_v2  ;;  %v1170_v2 = vld [vmem:[%s2347_s5 + $0x38] sm:$0xff] }
 0x10b   :  { %v1089_v24 = vmax.f32 %v1070_v19, 0.0 }
 0x10c   :  { %v1013_v12 = vpop.f32.mrf.mxu2 }
 0x10d   :  { %v1042_v13 = vpop.f32.mrf.mxu3  ;;  %v1014_v15 = vadd.f32 %v1013_v12, %v985_v9  ;;  %v998_v9 = vadd.f32 %v997_v46, %v2271_v48 }
 0x10f   :  { %v1043_v21 = vadd.f32 %v1042_v13, %v1014_v15  ;;  %v971_v13 = vadd.f32 %v2267_v55, %v942_v43  ;;  %v999_v15 = vpop.f32.mrf.mxu1  ;;  %v1770_v55 = vld [vmem:[%s2346_s4] ss:$0 sm:$0xff] }
 0x110   :  { %v1074_v22 = vpop.f32.mrf.mxu0 }
 0x111   :  { %v1072_v23 = vadd.f32 %v1071_v8, %v1043_v21  ;;  %v1000_v11 = vadd.f32 %v999_v15, %v971_v13 }
 0x113   :  { %v1090_v18 = vmax.f32 %v1072_v23, 0.0 }
 0x114   :  { %v1016_v25 = vpop.f32.mrf.mxu2 }
 0x115   :  { %v1045_v26 = vpop.f32.mrf.mxu3  ;;  %v1097_v44 = vpack.c.bf16 %v1090_v18, %v1089_v24  ;;  %v1017_v28 = vadd.f32 %v1016_v25, %v988_v27  ;;  %v1163_v25 = vld [vmem:[%s2347_s5] sm:$0xff] }
 0x117   :  { %1639 = vmatmul.msk.bf16.vlgmr.msra.gmra.mxu1 %vm1121_vm0, %v1097_v44  ;;  %v1046_v34 = vadd.f32 %v1045_v26, %v1017_v28  ;;  %v1164_v28 = vld [vmem:[%s2347_s5 + $0x8] sm:$0xff] }
 0x118   :  { %v1076_v29 = vpop.f32.mrf.mxu0 }
 0x119   :  { %v1075_v39 = vadd.f32 %v1074_v22, %v1046_v34 }
 0x11b   :  { %v1091_v51 = vmax.f32 %v1075_v39, 0.0 }
 0x11c   :  { %v1018_v36 = vpop.f32.mrf.mxu2 }
 0x11d   :  { %v1047_v37 = vpop.f32.mrf.mxu3  ;;  %v1019_v38 = vadd.f32 %v1018_v36, %v990_v32  ;;  %v1165_v36 = vld [vmem:[%s2347_s5 + $0x10] sm:$0xff] }
 0x11f   :  { %v1048_v40 = vadd.f32 %v1047_v37, %v1019_v38 }
 0x120   :  { %v1079_v47 = vpop.f32.mrf.mxu0 }
 0x121   :  { %v1077_v42 = vadd.f32 %v1076_v29, %v1048_v40  ;;  %v1166_v40 = vld [vmem:[%s2347_s5 + $0x18] sm:$0xff] }
 0x123   :  { %v1092_v31 = vmax.f32 %v1077_v42, 0.0 }
 0x124   :  { %v1021_v52 = vpop.f32.mrf.mxu2 }
 0x125   :  { %v1050_v53 = vpop.f32.mrf.mxu3  ;;  %v1098_v56 = vpack.c.bf16 %v1092_v31, %v1091_v51  ;;  %v1022_v60 = vadd.f32 %v1021_v52, %v993_v54  ;;  %v1167_v51 = vld [vmem:[%s2347_s5 + $0x20] sm:$0xff] }
 0x127   :  { %1640 = vmatmul.msk.bf16.gmra.mxu1 %vm1121_vm0, %v1098_v56  ;;  %v1051_v62 = vadd.f32 %v1050_v53, %v1022_v60  ;;  %v1168_v56 = vld [vmem:[%s2347_s5 + $0x28] sm:$0xff] }
 0x128   :  { %v1081_v45 = vpop.f32.mrf.mxu0 }
 0x129   :  { %v1080_v3 = vadd.f32 %v1079_v47, %v1051_v62 }
 0x12b   :  { %v1093_v7 = vmax.f32 %v1080_v3, 0.0 }
 0x12c   :  { %v1023_v63 = vpop.f32.mrf.mxu2 }
 0x12d   :  { %v1052_v0 = vpop.f32.mrf.mxu3  ;;  %v1024_v1 = vadd.f32 %v1023_v63, %v995_v61 }
 0x12f   :  { %v1053_v5 = vadd.f32 %v1052_v0, %v1024_v1 }
 0x130   :  { %v1084_v12 = vpop.f32.mrf.mxu0 }
 0x131   :  { %v1082_v6 = vadd.f32 %v1081_v45, %v1053_v5  ;;  %v1169_v45 = vld [vmem:[%s2347_s5 + $0x30] sm:$0xff] }
 0x133   :  { %v1094_v41 = vmax.f32 %v1082_v6, 0.0 }
 0x134   :  { %v1026_v8 = vpop.f32.mrf.mxu2 }
 0x135   :  { %v1055_v49 = vpop.f32.mrf.mxu3  ;;  %v1099_v10 = vpack.c.bf16 %v1094_v41, %v1093_v7  ;;  %v1027_v14 = vadd.f32 %v1026_v8, %v998_v9 }
 0x137   :  { %1641 = vmatmul.msk.bf16.gmra.mxu1 %vm1121_vm0, %v1099_v10  ;;  %v1056_v58 = vadd.f32 %v1055_v49, %v1027_v14 }
 0x138   :  { %v1086_v22 = vpop.f32.mrf.mxu0 }
 0x139   :  { %v1085_v59 = vadd.f32 %v1084_v12, %v1056_v58 }
 0x13b   :  { %v1095_v20 = vmax.f32 %v1085_v59, 0.0 }
 0x13c   :  { %v1028_v16 = vpop.f32.mrf.mxu2 }
 0x13d   :  { %v1029_v17 = vadd.f32 %v1028_v16, %v1000_v11  ;;  %v1057_v19 = vpop.f32.mrf.mxu3 }
 0x13f   :  { %v1058_v21 = vadd.f32 %v1057_v19, %v1029_v17 }
 0x141   :  { %v1087_v23 = vadd.f32 %v1086_v22, %v1058_v21 }
 0x143   :  { %v1096_v24 = vmax.f32 %v1087_v23, 0.0 }
 0x145   :  { %v1100_v48 = vpack.c.bf16 %v1096_v24, %v1095_v20 }
 0x147   :  { %1642 = vmatmul.msk.bf16.gmra.mxu1 %vm1121_vm0, %v1100_v48 }
 0x194   :  { %v1143_v18 = vpop.f32.mrf.mxu1 }
 0x195   :  { %v1144_v26 = vadd.f32 %v1770_v55, %v1143_v18 }
 0x197   :  { %v1171_v27 = vadd.f32 %v1163_v25, %v1144_v26 }
 0x199   :  { %v1179_v44 = vmax.f32 %v1171_v27, 0.0 }
 0x19b   :  { %1187 = vst [vmem:[%s2348_s6] sm:$0xff] %v1179_v44 }
 0x19c   :  { %v1145_v4 = vpop.f32.mrf.mxu1 }
 0x19d   :  { %v1146_v29 = vadd.f32 %v1770_v55, %v1145_v4 }
 0x19f   :  { %v1172_v30 = vadd.f32 %v1164_v28, %v1146_v29 }
 0x1a1   :  { %v1180_v32 = vmax.f32 %v1172_v30, 0.0 }
 0x1a3   :  { %1188 = vst [vmem:[%s2348_s6 + $0x8] sm:$0xff] %v1180_v32 }
 0x1a4   :  { %v1148_v34 = vpop.f32.mrf.mxu1 }
 0x1a5   :  { %v1149_v37 = vadd.f32 %v1770_v55, %v1148_v34 }
 0x1a7   :  { %v1173_v38 = vadd.f32 %v1165_v36, %v1149_v37 }
 0x1a9   :  { %v1181_v35 = vmax.f32 %v1173_v38, 0.0 }
 0x1ab   :  { %1189 = vst [vmem:[%s2348_s6 + $0x10] sm:$0xff] %v1181_v35 }
 0x1ac   :  { %v1150_v39 = vpop.f32.mrf.mxu1 }
 0x1ad   :  { %v1151_v42 = vadd.f32 %v1770_v55, %v1150_v39 }
 0x1af   :  { %v1174_v47 = vadd.f32 %v1166_v40, %v1151_v42 }
 0x1b1   :  { %v1182_v50 = vmax.f32 %v1174_v47, 0.0 }
 0x1b3   :  { %1190 = vst [vmem:[%s2348_s6 + $0x18] sm:$0xff] %v1182_v50 }
 0x1b4   :  { %v1153_v33 = vpop.f32.mrf.mxu1 }
 0x1b5   :  { %v1154_v31 = vadd.f32 %v1770_v55, %v1153_v33 }
 0x1b7   :  { %v1175_v52 = vadd.f32 %v1167_v51, %v1154_v31 }
 0x1b9   :  { %v1183_v53 = vmax.f32 %v1175_v52, 0.0 }
 0x1bb   :  { %1191 = vst [vmem:[%s2348_s6 + $0x20] sm:$0xff] %v1183_v53 }
 0x1bc   :  { %v1155_v54 = vpop.f32.mrf.mxu1 }
 0x1bd   :  { %v1156_v57 = vadd.f32 %v1770_v55, %v1155_v54 }
 0x1bf   :  { %v1176_v60 = vadd.f32 %v1168_v56, %v1156_v57 }
 0x1c1   :  { %v1184_v61 = vmax.f32 %v1176_v60, 0.0 }
 0x1c3   :  { %1192 = vst [vmem:[%s2348_s6 + $0x28] sm:$0xff] %v1184_v61 }
 0x1c4   :  { %v1158_v62 = vpop.f32.mrf.mxu1 }
 0x1c5   :  { %v1159_v63 = vadd.f32 %v1770_v55, %v1158_v62 }
 0x1c7   :  { %v1177_v0 = vadd.f32 %v1169_v45, %v1159_v63 }
 0x1c9   :  { %v1185_v1 = vmax.f32 %v1177_v0, 0.0 }
 0x1cb   :  { %1193 = vst [vmem:[%s2348_s6 + $0x30] sm:$0xff] %v1185_v1 }
 0x1cc   :  { %v1160_v46 = vpop.f32.mrf.mxu1 }
 0x1cd   :  { %v1161_v3 = vadd.f32 %v1770_v55, %v1160_v46 }
 0x1cf   :  { %v1178_v5 = vadd.f32 %v1170_v2, %v1161_v3 }
 0x1d1   :  { %v1186_v6 = vmax.f32 %v1178_v5, 0.0 }
 0x1d3   :  { %1194 = vst [vmem:[%s2348_s6 + $0x38] sm:$0xff] %v1186_v6 }

// kernel: label_embedder_forward.11
= control target key start
LH: loop header
LB: loop body
LE: loop exit
PB: predicated region body
PF: predicated region fallthrough
CT: control target
= control target key end

     0   :  { %s10148_s1 = inlined_call_operand.vmem [shape: bf16[128,4096], index: 1, kind: input, shape index: {}]   ;;  %s10149_s0 = inlined_call_operand.vmem [shape: bf16[64,128], index: 0, kind: input, shape index: {}]   ;;  %s10150_s2 = inlined_call_operand.vmem [shape: f32[1,4096], index: 2, kind: input, shape index: {}]   ;;  %s10151_s3 = inlined_call_operand.vmem [shape: s32[64,1], index: 3, kind: output, shape index: {}]  }
   0x1   :  { %v4926_v0 = vld [vmem:[%s10148_s1 + $0x700] sm:$0xf]  ;;  %v5280_v2 = vld [vmem:[%s10148_s1 + $0x704] sm:$0xf]  ;;  %v4934_v5 = vld [vmem:[%s10148_s1 + $0x708] sm:$0xf] }
   0x2   :  { %v5296_v1 = vld [vmem:[%s10148_s1 + $0x77c] sm:$0xf0]  ;;  %v4928_v4 = vld [vmem:[%s10148_s1 + $0x780] sm:$0xf0]  ;;  %v5297_v6 = vld [vmem:[%s10148_s1 + $0x784] sm:$0xf0] }
   0x3   :  { %v4927_v3 = vor.u32 %v5296_v1, %v4926_v0  ;;  %v4931_v7 = vor.u32 %v5280_v2, %v4928_v4  ;;  %v4935_v8 = vor.u32 %v5297_v6, %v4934_v5  ;;  %v5281_v9 = vld [vmem:[%s10148_s1 + $0x70c] sm:$0xf]  ;;  %v4798_v11 = vld [vmem:[%s10148_s1 + $0x600] sm:$0xf]  ;;  %v5248_v14 = vld [vmem:[%s10148_s1 + $0x604] sm:$0xf] }
   0x4   :  { %v4936_v10 = vld [vmem:[%s10148_s1 + $0x788] sm:$0xf0]  ;;  %v5264_v13 = vld [vmem:[%s10148_s1 + $0x67c] sm:$0xf0]  ;;  %v4800_v15 = vld [vmem:[%s10148_s1 + $0x680] sm:$0xf0] }
   0x5   :  { %1654 = vmatpush.bf16.msra.mxu0 %v4927_v3  ;;  %v4939_v12 = vor.u32 %v5281_v9, %v4936_v10  ;;  %1683 = vmatpush.bf16.msra.mxu1 %v4931_v7  ;;  %v4799_v16 = vor.u32 %v5264_v13, %v4798_v11  ;;  %v4803_v17 = vor.u32 %v5248_v14, %v4800_v15  ;;  %v4806_v18 = vld [vmem:[%s10148_s1 + $0x608] sm:$0xf]  ;;  %v5249_v20 = vld [vmem:[%s10148_s1 + $0x60c] sm:$0xf]  ;;  %v4670_v23 = vld [vmem:[%s10148_s1 + $0x500] sm:$0xf] }
   0x6   :  { %1712 = vmatpush.bf16.msra.mxu2 %v4935_v8  ;;  %v5265_v19 = vld [vmem:[%s10148_s1 + $0x684] sm:$0xf0]  ;;  %v4808_v22 = vld [vmem:[%s10148_s1 + $0x688] sm:$0xf0]  ;;  %v5232_v24 = vld [vmem:[%s10148_s1 + $0x57c] sm:$0xf0] }
   0x7   :  { %1741 = vmatpush.bf16.msra.mxu3 %v4939_v12  ;;  %v4807_v21 = vor.u32 %v5265_v19, %v4806_v18  ;;  %v4811_v25 = vor.u32 %v5249_v20, %v4808_v22  ;;  %v5216_v26 = vld [vmem:[%s10148_s1 + $0x504] sm:$0xf]  ;;  %v4678_v28 = vld [vmem:[%s10148_s1 + $0x508] sm:$0xf]  ;;  %v4671_v29 = vor.u32 %v5232_v24, %v4670_v23  ;;  %v5217_v31 = vld [vmem:[%s10148_s1 + $0x50c] sm:$0xf] }
   0x8   :  { %v4672_v27 = vld [vmem:[%s10148_s1 + $0x580] sm:$0xf0]  ;;  %v5233_v30 = vld [vmem:[%s10148_s1 + $0x584] sm:$0xf0]  ;;  %v4680_v32 = vld [vmem:[%s10148_s1 + $0x588] sm:$0xf0] }
   0x9   :  { %1655 = vmatpush.bf16.msra.mxu0 %v4799_v16  ;;  %1684 = vmatpush.bf16.msra.mxu1 %v4803_v17  ;;  %v4675_v33 = vor.u32 %v5216_v26, %v4672_v27  ;;  %v4679_v34 = vor.u32 %v5233_v30, %v4678_v28  ;;  %v4542_v35 = vld [vmem:[%s10148_s1 + $0x400] sm:$0xf]  ;;  %v5184_v37 = vld [vmem:[%s10148_s1 + $0x404] sm:$0xf]  ;;  %v4683_v38 = vor.u32 %v5217_v31, %v4680_v32  ;;  %v4550_v40 = vld [vmem:[%s10148_s1 + $0x408] sm:$0xf] }
   0xa   :  { %1713 = vmatpush.bf16.msra.mxu2 %v4807_v21  ;;  %v5200_v36 = vld [vmem:[%s10148_s1 + $0x47c] sm:$0xf0]  ;;  %v4544_v39 = vld [vmem:[%s10148_s1 + $0x480] sm:$0xf0]  ;;  %v5201_v41 = vld [vmem:[%s10148_s1 + $0x484] sm:$0xf0] }
   0xb   :  { %1742 = vmatpush.bf16.msra.mxu3 %v4811_v25  ;;  %v5185_v42 = vld [vmem:[%s10148_s1 + $0x40c] sm:$0xf]  ;;  %v4543_v44 = vor.u32 %v5200_v36, %v4542_v35  ;;  %v4547_v45 = vor.u32 %v5184_v37, %v4544_v39  ;;  %v4551_v46 = vor.u32 %v5201_v41, %v4550_v40  ;;  %v4414_v47 = vld [vmem:[%s10148_s1 + $0x300] sm:$0xf]  ;;  %v5152_v49 = vld [vmem:[%s10148_s1 + $0x304] sm:$0xf] }
   0xc   :  { %v4552_v43 = vld [vmem:[%s10148_s1 + $0x488] sm:$0xf0]  ;;  %v5168_v48 = vld [vmem:[%s10148_s1 + $0x37c] sm:$0xf0]  ;;  %v4416_v51 = vld [vmem:[%s10148_s1 + $0x380] sm:$0xf0] }
   0xd   :  { %1656 = vmatpush.bf16.msra.mxu0 %v4671_v29  ;;  %1685 = vmatpush.bf16.msra.mxu1 %v4675_v33  ;;  %v4555_v50 = vor.u32 %v5185_v42, %v4552_v43  ;;  %v4422_v52 = vld [vmem:[%s10148_s1 + $0x308] sm:$0xf]  ;;  %v5153_v54 = vld [vmem:[%s10148_s1 + $0x30c] sm:$0xf]  ;;  %v4415_v56 = vor.u32 %v5168_v48, %v4414_v47  ;;  %v4419_v57 = vor.u32 %v5152_v49, %v4416_v51  ;;  %v4286_v59 = vld [vmem:[%s10148_s1 + $0x200] sm:$0xf] }
   0xe   :  { %1714 = vmatpush.bf16.msra.mxu2 %v4679_v34  ;;  %v5169_v53 = vld [vmem:[%s10148_s1 + $0x384] sm:$0xf0]  ;;  %v4424_v55 = vld [vmem:[%s10148_s1 + $0x388] sm:$0xf0]  ;;  %v5136_v60 = vld [vmem:[%s10148_s1 + $0x27c] sm:$0xf0] }
   0xf   :  { %1743 = vmatpush.bf16.msra.mxu3 %v4683_v38  ;;  %v4423_v58 = vor.u32 %v5169_v53, %v4422_v52  ;;  %v5120_v61 = vld [vmem:[%s10148_s1 + $0x204] sm:$0xf]  ;;  %v4427_v62 = vor.u32 %v5153_v54, %v4424_v55  ;;  %v4294_v0 = vld [vmem:[%s10148_s1 + $0x208] sm:$0xf]  ;;  %v5121_v2 = vld [vmem:[%s10148_s1 + $0x20c] sm:$0xf]  ;;  %v4287_v4 = vor.u32 %v5136_v60, %v4286_v59 }
  0x10   :  { %v4288_v63 = vld [vmem:[%s10148_s1 + $0x280] sm:$0xf0]  ;;  %v5137_v1 = vld [vmem:[%s10148_s1 + $0x284] sm:$0xf0]  ;;  %v4296_v3 = vld [vmem:[%s10148_s1 + $0x288] sm:$0xf0] }
  0x11   :  { %1657 = vmatpush.bf16.msra.mxu0 %v4543_v44  ;;  %1686 = vmatpush.bf16.msra.mxu1 %v4547_v45  ;;  %v4291_v5 = vor.u32 %v5120_v61, %v4288_v63  ;;  %v4295_v6 = vor.u32 %v5137_v1, %v4294_v0  ;;  %v4158_v7 = vld [vmem:[%s10148_s1 + $0x100] sm:$0xf]  ;;  %v5088_v9 = vld [vmem:[%s10148_s1 + $0x104] sm:$0xf]  ;;  %v4299_v10 = vor.u32 %v5121_v2, %v4296_v3  ;;  %v4166_v12 = vld [vmem:[%s10148_s1 + $0x108] sm:$0xf] }
  0x12   :  { %1715 = vmatpush.bf16.msra.mxu2 %v4551_v46  ;;  %v5104_v8 = vld [vmem:[%s10148_s1 + $0x17c] sm:$0xf0]  ;;  %v4160_v11 = vld [vmem:[%s10148_s1 + $0x180] sm:$0xf0]  ;;  %v5105_v13 = vld [vmem:[%s10148_s1 + $0x184] sm:$0xf0] }
  0x13   :  { %1744 = vmatpush.bf16.msra.mxu3 %v4555_v50  ;;  %v5089_v14 = vld [vmem:[%s10148_s1 + $0x10c] sm:$0xf]  ;;  %v4159_v16 = vor.u32 %v5104_v8, %v4158_v7  ;;  %v4030_v17 = vld [vmem:[%s10148_s1] sm:$0xf]  ;;  %v4163_v18 = vor.u32 %v5088_v9, %v4160_v11  ;;  %v4167_v19 = vor.u32 %v5105_v13, %v4166_v12  ;;  %v5056_v21 = vld [vmem:[%s10148_s1 + $0x4] sm:$0xf] }
  0x14   :  { %v4168_v15 = vld [vmem:[%s10148_s1 + $0x188] sm:$0xf0]  ;;  %v5072_v20 = vld [vmem:[%s10148_s1 + $0x7c] sm:$0xf0]  ;;  %v4032_v22 = vld [vmem:[%s10148_s1 + $0x80] sm:$0xf0] }
  0x15   :  { %1658 = vmatpush.bf16.msra.mxu0 %v4415_v56  ;;  %1687 = vmatpush.bf16.msra.mxu1 %v4419_v57  ;;  %v4171_v23 = vor.u32 %v5089_v14, %v4168_v15  ;;  %v4038_v24 = vld [vmem:[%s10148_s1 + $0x8] sm:$0xf]  ;;  %v5057_v26 = vld [vmem:[%s10148_s1 + $0xc] sm:$0xf]  ;;  %v4950_v28 = vld [vmem:[%s10148_s1 + $0x718] sm:$0xf]  ;;  %v4031_v30 = vor.u32 %v5072_v20, %v4030_v17  ;;  %v4035_v33 = vor.u32 %v5056_v21, %v4032_v22 }
  0x16   :  { %1716 = vmatpush.bf16.msra.mxu2 %v4423_v58  ;;  %v5073_v25 = vld [vmem:[%s10148_s1 + $0x84] sm:$0xf0]  ;;  %v4040_v27 = vld [vmem:[%s10148_s1 + $0x88] sm:$0xf0]  ;;  %v5299_v29 = vld [vmem:[%s10148_s1 + $0x794] sm:$0xf0] }
  0x17   :  { %1745 = vmatpush.bf16.msra.mxu3 %v4427_v62  ;;  %v5283_v31 = vld [vmem:[%s10148_s1 + $0x71c] sm:$0xf]  ;;  %v4039_v34 = vor.u32 %v5073_v25, %v4038_v24  ;;  %v5545_v35 = vld [vmem:[%s10149_s0] sm:$0xff]  ;;  %v4043_v36 = vor.u32 %v5057_v26, %v4040_v27  ;;  %v4951_v37 = vor.u32 %v5299_v29, %v4950_v28  ;;  %v4942_v38 = vld [vmem:[%s10148_s1 + $0x710] sm:$0xf] }
  0x18   :  { %v4952_v32 = vld [vmem:[%s10148_s1 + $0x798] sm:$0xf0]  ;;  %v5298_v39 = vld [vmem:[%s10148_s1 + $0x78c] sm:$0xf0]  ;;  %v5282_v40 = vld [vmem:[%s10148_s1 + $0x714] sm:$0xf] }
  0x19   :  { %1659 = vmatpush.bf16.msra.mxu0 %v4287_v4  ;;  %1688 = vmatpush.bf16.msra.mxu1 %v4291_v5  ;;  %v4955_v41 = vor.u32 %v5283_v31, %v4952_v32  ;;  %v4944_v42 = vld [vmem:[%s10148_s1 + $0x790] sm:$0xf0]  ;;  %v4822_v43 = vld [vmem:[%s10148_s1 + $0x618] sm:$0xf]  ;;  %v5251_v45 = vld [vmem:[%s10148_s1 + $0x61c] sm:$0xf]  ;;  %v4943_v47 = vor.u32 %v5298_v39, %v4942_v38 }
  0x1a   :  { %1717 = vmatpush.bf16.msra.mxu2 %v4295_v6  ;;  %v5267_v44 = vld [vmem:[%s10148_s1 + $0x694] sm:$0xf0]  ;;  %v4824_v46 = vld [vmem:[%s10148_s1 + $0x698] sm:$0xf0]  ;;  %v4947_v48 = vor.u32 %v5282_v40, %v4944_v42  ;;  %v4814_v50 = vld [vmem:[%s10148_s1 + $0x610] sm:$0xf] }
  0x1b   :  { %1746 = vmatpush.bf16.msra.mxu3 %v4299_v10  ;;  %v4823_v49 = vor.u32 %v5267_v44, %v4822_v43  ;;  %v5266_v51 = vld [vmem:[%s10148_s1 + $0x68c] sm:$0xf0]  ;;  %v5250_v52 = vld [vmem:[%s10148_s1 + $0x614] sm:$0xf]  ;;  %v4827_v53 = vor.u32 %v5251_v45, %v4824_v46  ;;  %v4694_v55 = vld [vmem:[%s10148_s1 + $0x518] sm:$0xf] }
  0x1c   :  { %v4816_v54 = vld [vmem:[%s10148_s1 + $0x690] sm:$0xf0]  ;;  %v5235_v56 = vld [vmem:[%s10148_s1 + $0x594] sm:$0xf0]  ;;  %v5219_v57 = vld [vmem:[%s10148_s1 + $0x51c] sm:$0xf]  ;;  %v4815_v59 = vor.u32 %v5266_v51, %v4814_v50 }
  0x1d   :  { %1660 = vmatpush.bf16.msra.mxu0 %v4159_v16  ;;  %1689 = vmatpush.bf16.msra.mxu1 %v4163_v18  ;;  %v4696_v58 = vld [vmem:[%s10148_s1 + $0x598] sm:$0xf0]  ;;  %v4819_v60 = vor.u32 %v5250_v52, %v4816_v54  ;;  %v4695_v61 = vor.u32 %v5235_v56, %v4694_v55  ;;  %v4686_v62 = vld [vmem:[%s10148_s1 + $0x510] sm:$0xf]  ;;  %v5218_v0 = vld [vmem:[%s10148_s1 + $0x514] sm:$0xf] }
  0x1e   :  { %1718 = vmatpush.bf16.msra.mxu2 %v4167_v19  ;;  %v5234_v63 = vld [vmem:[%s10148_s1 + $0x58c] sm:$0xf0]  ;;  %v4699_v1 = vor.u32 %v5219_v57, %v4696_v58  ;;  %v4688_v2 = vld [vmem:[%s10148_s1 + $0x590] sm:$0xf0]  ;;  %v4566_v3 = vld [vmem:[%s10148_s1 + $0x418] sm:$0xf] }
  0x1f   :  { %1747 = vmatpush.bf16.msra.mxu3 %v4171_v23  ;;  %v5203_v4 = vld [vmem:[%s10148_s1 + $0x494] sm:$0xf0]  ;;  %v5187_v5 = vld [vmem:[%s10148_s1 + $0x41c] sm:$0xf]  ;;  %v4687_v7 = vor.u32 %v5234_v63, %v4686_v62  ;;  %v4691_v8 = vor.u32 %v5218_v0, %v4688_v2  ;;  %v4558_v10 = vld [vmem:[%s10148_s1 + $0x410] sm:$0xf] }
  0x20   :  { %v4568_v6 = vld [vmem:[%s10148_s1 + $0x498] sm:$0xf0]  ;;  %v4567_v9 = vor.u32 %v5203_v4, %v4566_v3  ;;  %v5202_v11 = vld [vmem:[%s10148_s1 + $0x48c] sm:$0xf0]  ;;  %v5186_v12 = vld [vmem:[%s10148_s1 + $0x414] sm:$0xf] }
  0x21   :  { %1661 = vmatpush.bf16.msra.mxu0 %v4031_v30  ;;  %1690 = vmatpush.bf16.msra.mxu1 %v4035_v33  ;;  %v4571_v13 = vor.u32 %v5187_v5, %v4568_v6  ;;  %v4560_v14 = vld [vmem:[%s10148_s1 + $0x490] sm:$0xf0]  ;;  %v4438_v15 = vld [vmem:[%s10148_s1 + $0x318] sm:$0xf]  ;;  %v5155_v17 = vld [vmem:[%s10148_s1 + $0x31c] sm:$0xf]  ;;  %v4559_v20 = vor.u32 %v5202_v11, %v4558_v10 }
  0x22   :  { %1719 = vmatpush.bf16.msra.mxu2 %v4039_v34  ;;  %v5171_v16 = vld [vmem:[%s10148_s1 + $0x394] sm:$0xf0]  ;;  %v4440_v18 = vld [vmem:[%s10148_s1 + $0x398] sm:$0xf0]  ;;  %v5650_v19 = vld [vmem:[%s10149_s0 + $0x8] sm:$0xff]  ;;  %v4563_v21 = vor.u32 %v5186_v12, %v4560_v14 }
  0x23   :  { %1748 = vmatpush.bf16.msra.mxu3 %v4043_v36  ;;  %v4439_v22 = vor.u32 %v5171_v16, %v4438_v15  ;;  %v4430_v23 = vld [vmem:[%s10148_s1 + $0x310] sm:$0xf]  ;;  %v5154_v25 = vld [vmem:[%s10148_s1 + $0x314] sm:$0xf]  ;;  %v4443_v26 = vor.u32 %v5155_v17, %v4440_v18  ;;  %v4310_v28 = vld [vmem:[%s10148_s1 + $0x218] sm:$0xf] }
  0x24   :  { %1662 = vmatmul.bf16.vlgmr.msra.gmra.mxu0 %v5545_v35  ;;  %1691 = vmatmul.bf16.vlgmr.msra.gmra.mxu1 %v5545_v35  ;;  %v5170_v24 = vld [vmem:[%s10148_s1 + $0x38c] sm:$0xf0]  ;;  %v4432_v27 = vld [vmem:[%s10148_s1 + $0x390] sm:$0xf0]  ;;  %v5139_v29 = vld [vmem:[%s10148_s1 + $0x294] sm:$0xf0] }
  0x25   :  { %1720 = vmatmul.bf16.vlgmr.msra.gmra.mxu2 %v5545_v35  ;;  %1770 = vmatpush.bf16.msrb.mxu0 %v4943_v47  ;;  %v5123_v30 = vld [vmem:[%s10148_s1 + $0x21c] sm:$0xf]  ;;  %v4431_v32 = vor.u32 %v5170_v24, %v4430_v23  ;;  %v4435_v33 = vor.u32 %v5154_v25, %v4432_v27  ;;  %v4311_v34 = vor.u32 %v5139_v29, %v4310_v28  ;;  %v4302_v36 = vld [vmem:[%s10148_s1 + $0x210] sm:$0xf]  ;;  %v5122_v39 = vld [vmem:[%s10148_s1 + $0x214] sm:$0xf] }
  0x26   :  { %1828 = vmatpush.bf16.msrb.mxu2 %v4951_v37  ;;  %1749 = vmatmul.bf16.vlgmr.msra.gmra.mxu3 %v5545_v35  ;;  %v4312_v31 = vld [vmem:[%s10148_s1 + $0x298] sm:$0xf0]  ;;  %v5138_v37 = vld [vmem:[%s10148_s1 + $0x28c] sm:$0xf0]  ;;  %v4304_v40 = vld [vmem:[%s10148_s1 + $0x290] sm:$0xf0] }
  0x27   :  { %1857 = vmatpush.bf16.msrb.mxu3 %v4955_v41  ;;  %1799 = vmatpush.bf16.msrb.mxu1 %v4947_v48  ;;  %v4315_v38 = vor.u32 %v5123_v30, %v4312_v31  ;;  %v4303_v41 = vor.u32 %v5138_v37, %v4302_v36  ;;  %v4182_v42 = vld [vmem:[%s10148_s1 + $0x118] sm:$0xf]  ;;  %v4174_v44 = vld [vmem:[%s10148_s1 + $0x110] sm:$0xf]  ;;  %v4307_v45 = vor.u32 %v5122_v39, %v4304_v40  ;;  %v5091_v48 = vld [vmem:[%s10148_s1 + $0x11c] sm:$0xf] }
  0x28   :  { %v5107_v43 = vld [vmem:[%s10148_s1 + $0x194] sm:$0xf0]  ;;  %v5106_v47 = vld [vmem:[%s10148_s1 + $0x18c] sm:$0xf0]  ;;  %v5090_v51 = vld [vmem:[%s10148_s1 + $0x114] sm:$0xf] }
  0x29   :  { %1771 = vmatpush.bf16.msrb.mxu0 %v4815_v59  ;;  %v4183_v46 = vor.u32 %v5107_v43, %v4182_v42  ;;  %v4176_v52 = vld [vmem:[%s10148_s1 + $0x190] sm:$0xf0]  ;;  %v5075_v54 = vld [vmem:[%s10148_s1 + $0x94] sm:$0xf0]  ;;  %v4175_v55 = vor.u32 %v5106_v47, %v4174_v44  ;;  %v5059_v56 = vld [vmem:[%s10148_s1 + $0x1c] sm:$0xf] }
  0x2a   :  { %1829 = vmatpush.bf16.msrb.mxu2 %v4823_v49  ;;  %v4184_v49 = vld [vmem:[%s10148_s1 + $0x198] sm:$0xf0]  ;;  %v4179_v58 = vor.u32 %v5090_v51, %v4176_v52  ;;  %v5058_v63 = vld [vmem:[%s10148_s1 + $0x14] sm:$0xf]  ;;  %v4966_v4 = vld [vmem:[%s10148_s1 + $0x728] sm:$0xf] }
  0x2b   :  { %1858 = vmatpush.bf16.msrb.mxu3 %v4827_v53  ;;  %1800 = vmatpush.bf16.msrb.mxu1 %v4819_v60  ;;  %v4187_v50 = vor.u32 %v5091_v48, %v4184_v49  ;;  %v4054_v53 = vld [vmem:[%s10148_s1 + $0x18] sm:$0xf]  ;;  %v4056_v57 = vld [vmem:[%s10148_s1 + $0x98] sm:$0xf0]  ;;  %v4046_v60 = vld [vmem:[%s10148_s1 + $0x10] sm:$0xf] }
  0x2c   :  { %v4055_v59 = vor.u32 %v5075_v54, %v4054_v53  ;;  %v4059_v62 = vor.u32 %v5059_v56, %v4056_v57  ;;  %v4048_v0 = vld [vmem:[%s10148_s1 + $0x90] sm:$0xf0]  ;;  %v5301_v5 = vld [vmem:[%s10148_s1 + $0x7a4] sm:$0xf0]  ;;  %v4958_v6 = vld [vmem:[%s10148_s1 + $0x720] sm:$0xf] }
  0x2d   :  { %1772 = vmatpush.bf16.msrb.mxu0 %v4687_v7  ;;  %v4051_v2 = vor.u32 %v5058_v63, %v4048_v0  ;;  %v5743_v3 = vld [vmem:[%s10149_s0 + $0x10] sm:$0xff]  ;;  %v4967_v7 = vor.u32 %v5301_v5, %v4966_v4  ;;  %v4968_v10 = vld [vmem:[%s10148_s1 + $0x7a8] sm:$0xf0]  ;;  %v4960_v14 = vld [vmem:[%s10148_s1 + $0x7a0] sm:$0xf0] }
  0x2e   :  { %1830 = vmatpush.bf16.msrb.mxu2 %v4695_v61  ;;  %v5074_v61 = vld [vmem:[%s10148_s1 + $0x8c] sm:$0xf0]  ;;  %v4838_v15 = vld [vmem:[%s10148_s1 + $0x628] sm:$0xf]  ;;  %v4830_v18 = vld [vmem:[%s10148_s1 + $0x620] sm:$0xf] }
  0x2f   :  { %1859 = vmatpush.bf16.msrb.mxu3 %v4699_v1  ;;  %1801 = vmatpush.bf16.msrb.mxu1 %v4691_v8  ;;  %v4047_v1 = vor.u32 %v5074_v61, %v4046_v60  ;;  %v5300_v8 = vld [vmem:[%s10148_s1 + $0x79c] sm:$0xf0]  ;;  %v5269_v17 = vld [vmem:[%s10148_s1 + $0x6a4] sm:$0xf0]  ;;  %v5253_v23 = vld [vmem:[%s10148_s1 + $0x62c] sm:$0xf] }
  0x30   :  { %v4959_v11 = vor.u32 %v5300_v8, %v4958_v6  ;;  %v4840_v24 = vld [vmem:[%s10148_s1 + $0x6a8] sm:$0xf0]  ;;  %v5252_v25 = vld [vmem:[%s10148_s1 + $0x624] sm:$0xf]  ;;  %v5800_v29 = vld [vmem:[%s10149_s0 + $0x18] sm:$0xff] }
  0x31   :  { %1773 = vmatpush.bf16.msrb.mxu0 %v4559_v20  ;;  %v5268_v20 = vld [vmem:[%s10148_s1 + $0x69c] sm:$0xf0]  ;;  %v4832_v27 = vld [vmem:[%s10148_s1 + $0x6a0] sm:$0xf0]  ;;  %v4710_v30 = vld [vmem:[%s10148_s1 + $0x528] sm:$0xf] }
  0x32   :  { %1831 = vmatpush.bf16.msrb.mxu2 %v4567_v9  ;;  %v5285_v9 = vld [vmem:[%s10148_s1 + $0x72c] sm:$0xf]  ;;  %v4835_v28 = vor.u32 %v5252_v25, %v4832_v27  ;;  %v5237_v31 = vld [vmem:[%s10148_s1 + $0x5a4] sm:$0xf0]  ;;  %v5220_v40 = vld [vmem:[%s10148_s1 + $0x524] sm:$0xf] }
  0x33   :  { %1860 = vmatpush.bf16.msrb.mxu3 %v4571_v13  ;;  %1802 = vmatpush.bf16.msrb.mxu1 %v4563_v21  ;;  %v4971_v12 = vor.u32 %v5285_v9, %v4968_v10  ;;  %v5284_v13 = vld [vmem:[%s10148_s1 + $0x724] sm:$0xf]  ;;  %v4839_v21 = vor.u32 %v5269_v17, %v4838_v15  ;;  %v5221_v36 = vld [vmem:[%s10148_s1 + $0x52c] sm:$0xf]  ;;  %v4582_v42 = vld [vmem:[%s10148_s1 + $0x428] sm:$0xf] }
  0x34   :  { %1667 = vmatmul.bf16.gmra.mxu0 %v5650_v19  ;;  %1696 = vmatmul.bf16.gmra.mxu1 %v5650_v19  ;;  %v4963_v16 = vor.u32 %v5284_v13, %v4960_v14  ;;  %v4712_v37 = vld [vmem:[%s10148_s1 + $0x5a8] sm:$0xf0]  ;;  %v5205_v44 = vld [vmem:[%s10148_s1 + $0x4a4] sm:$0xf0]  ;;  %v5188_v51 = vld [vmem:[%s10148_s1 + $0x424] sm:$0xf] }
  0x35   :  { %1725 = vmatmul.bf16.gmra.mxu2 %v5650_v19  ;;  %1774 = vmatpush.bf16.msrb.mxu0 %v4431_v32  ;;  %v4702_v32 = vld [vmem:[%s10148_s1 + $0x520] sm:$0xf]  ;;  %v4715_v39 = vor.u32 %v5221_v36, %v4712_v37  ;;  %v4583_v47 = vor.u32 %v5205_v44, %v4582_v42  ;;  %v5189_v49 = vld [vmem:[%s10148_s1 + $0x42c] sm:$0xf]  ;;  %v4576_v53 = vld [vmem:[%s10148_s1 + $0x4a0] sm:$0xf0] }
  0x36   :  { %1832 = vmatpush.bf16.msrb.mxu2 %v4439_v22  ;;  %1754 = vmatmul.bf16.gmra.mxu3 %v5650_v19  ;;  %v4831_v22 = vor.u32 %v5268_v20, %v4830_v18  ;;  %v4579_v54 = vor.u32 %v5188_v51, %v4576_v53  ;;  %v5173_v56 = vld [vmem:[%s10148_s1 + $0x3a4] sm:$0xf0]  ;;  %v4446_v57 = vld [vmem:[%s10148_s1 + $0x320] sm:$0xf]  ;;  %v5157_v60 = vld [vmem:[%s10148_s1 + $0x32c] sm:$0xf] }
  0x37   :  { %1861 = vmatpush.bf16.msrb.mxu3 %v4443_v26  ;;  %1803 = vmatpush.bf16.msrb.mxu1 %v4435_v33  ;;  %v4843_v26 = vor.u32 %v5253_v23, %v4840_v24  ;;  %v4711_v33 = vor.u32 %v5237_v31, %v4710_v30  ;;  %v4456_v61 = vld [vmem:[%s10148_s1 + $0x3a8] sm:$0xf0]  ;;  %v5156_v0 = vld [vmem:[%s10148_s1 + $0x324] sm:$0xf]  ;;  %v5141_v5 = vld [vmem:[%s10148_s1 + $0x2a4] sm:$0xf0] }
  0x38   :  { %v4459_v63 = vor.u32 %v5157_v60, %v4456_v61  ;;  %v4318_v6 = vld [vmem:[%s10148_s1 + $0x220] sm:$0xf]  ;;  %v5125_v10 = vld [vmem:[%s10148_s1 + $0x22c] sm:$0xf]  ;;  %v4320_v14 = vld [vmem:[%s10148_s1 + $0x2a0] sm:$0xf0] }
  0x39   :  { %1775 = vmatpush.bf16.msrb.mxu0 %v4303_v41  ;;  %v4704_v41 = vld [vmem:[%s10148_s1 + $0x5a0] sm:$0xf0]  ;;  %v5109_v17 = vld [vmem:[%s10148_s1 + $0x1a4] sm:$0xf0]  ;;  %v4190_v18 = vld [vmem:[%s10148_s1 + $0x120] sm:$0xf] }
  0x3a   :  { %1833 = vmatpush.bf16.msrb.mxu2 %v4311_v34  ;;  %v5236_v34 = vld [vmem:[%s10148_s1 + $0x59c] sm:$0xf0]  ;;  %v4707_v43 = vor.u32 %v5220_v40, %v4704_v41  ;;  %v4200_v23 = vld [vmem:[%s10148_s1 + $0x1a8] sm:$0xf0]  ;;  %v4192_v27 = vld [vmem:[%s10148_s1 + $0x1a0] sm:$0xf0] }
  0x3b   :  { %1862 = vmatpush.bf16.msrb.mxu3 %v4315_v38  ;;  %1804 = vmatpush.bf16.msrb.mxu1 %v4307_v45  ;;  %v4703_v38 = vor.u32 %v5236_v34, %v4702_v32  ;;  %v4574_v45 = vld [vmem:[%s10148_s1 + $0x420] sm:$0xf]  ;;  %v5077_v31 = vld [vmem:[%s10148_s1 + $0xa4] sm:$0xf0]  ;;  %v5061_v37 = vld [vmem:[%s10148_s1 + $0x2c] sm:$0xf] }
  0x3c   :  { %v4062_v32 = vld [vmem:[%s10148_s1 + $0x20] sm:$0xf]  ;;  %v4064_v41 = vld [vmem:[%s10148_s1 + $0xa0] sm:$0xf0]  ;;  %v5303_v44 = vld [vmem:[%s10148_s1 + $0x7b4] sm:$0xf0] }
  0x3d   :  { %1776 = vmatpush.bf16.msrb.mxu0 %v4175_v55  ;;  %v4454_v55 = vld [vmem:[%s10148_s1 + $0x328] sm:$0xf]  ;;  %v4976_v53 = vld [vmem:[%s10148_s1 + $0x7b0] sm:$0xf0]  ;;  %v5255_v61 = vld [vmem:[%s10148_s1 + $0x63c] sm:$0xf] }
  0x3e   :  { %1834 = vmatpush.bf16.msrb.mxu2 %v4183_v46  ;;  %v5204_v46 = vld [vmem:[%s10148_s1 + $0x49c] sm:$0xf0] }
  0x3f   :  { %1863 = vmatpush.bf16.msrb.mxu3 %v4187_v50  ;;  %1805 = vmatpush.bf16.msrb.mxu1 %v4179_v58  ;;  %v4575_v48 = vor.u32 %v5204_v46, %v4574_v45  ;;  %v4584_v50 = vld [vmem:[%s10148_s1 + $0x4a8] sm:$0xf0]  ;;  %v4455_v58 = vor.u32 %v5173_v56, %v4454_v55  ;;  %v4974_v45 = vld [vmem:[%s10148_s1 + $0x730] sm:$0xf]  ;;  %v5271_v56 = vld [vmem:[%s10148_s1 + $0x6b4] sm:$0xf0] }
  0x40   :  { %v4587_v52 = vor.u32 %v5189_v49, %v4584_v50  ;;  %v4984_v49 = vld [vmem:[%s10148_s1 + $0x7b8] sm:$0xf0] }
  0x41   :  { %1777 = vmatpush.bf16.msrb.mxu0 %v4047_v1  ;;  %v4448_v1 = vld [vmem:[%s10148_s1 + $0x3a0] sm:$0xf0] }
  0x42   :  { %1835 = vmatpush.bf16.msrb.mxu2 %v4055_v59  ;;  %v5172_v59 = vld [vmem:[%s10148_s1 + $0x39c] sm:$0xf0]  ;;  %v4451_v4 = vor.u32 %v5156_v0, %v4448_v1  ;;  %v5254_v0 = vld [vmem:[%s10148_s1 + $0x634] sm:$0xf] }
  0x43   :  { %1864 = vmatpush.bf16.msrb.mxu3 %v4059_v62  ;;  %1806 = vmatpush.bf16.msrb.mxu1 %v4051_v2  ;;  %v4447_v62 = vor.u32 %v5172_v59, %v4446_v57  ;;  %v4326_v2 = vld [vmem:[%s10148_s1 + $0x228] sm:$0xf]  ;;  %v4846_v57 = vld [vmem:[%s10148_s1 + $0x630] sm:$0xf]  ;;  %v4848_v1 = vld [vmem:[%s10148_s1 + $0x6b0] sm:$0xf0] }
  0x44   :  { %1672 = vmatmul.bf16.gmra.mxu0 %v5743_v3  ;;  %1701 = vmatmul.bf16.gmra.mxu1 %v5743_v3  ;;  %v4327_v8 = vor.u32 %v5141_v5, %v4326_v2  ;;  %v4851_v2 = vor.u32 %v5254_v0, %v4848_v1  ;;  %v5239_v5 = vld [vmem:[%s10148_s1 + $0x5b4] sm:$0xf0] }
  0x45   :  { %1730 = vmatmul.bf16.gmra.mxu2 %v5743_v3  ;;  %1886 = vmatpush.bf16.msra.mxu0 %v4959_v11  ;;  %v4328_v11 = vld [vmem:[%s10148_s1 + $0x2a8] sm:$0xf0]  ;;  %v4214_v0 = vld [vmem:[%s10148_s1 + $0x138] sm:$0xf] }
  0x46   :  { %1759 = vmatmul.bf16.gmra.mxu3 %v5743_v3  ;;  %1944 = vmatpush.bf16.msra.mxu2 %v4967_v7  ;;  %v5140_v7 = vld [vmem:[%s10148_s1 + $0x29c] sm:$0xf0]  ;;  %v4331_v13 = vor.u32 %v5125_v10, %v4328_v11  ;;  %v4728_v10 = vld [vmem:[%s10148_s1 + $0x5b8] sm:$0xf0]  ;;  %v5111_v1 = vld [vmem:[%s10148_s1 + $0x1b4] sm:$0xf0] }
  0x47   :  { %1973 = vmatpush.bf16.msra.mxu3 %v4971_v12  ;;  %1915 = vmatpush.bf16.msra.mxu1 %v4963_v16  ;;  %v4319_v9 = vor.u32 %v5140_v7, %v4318_v6  ;;  %v5124_v12 = vld [vmem:[%s10148_s1 + $0x224] sm:$0xf]  ;;  %v4198_v16 = vld [vmem:[%s10148_s1 + $0x128] sm:$0xf]  ;;  %v4718_v6 = vld [vmem:[%s10148_s1 + $0x530] sm:$0xf] }
  0x48   :  { %v4323_v15 = vor.u32 %v5124_v12, %v4320_v14  ;;  %v4199_v20 = vor.u32 %v5109_v17, %v4198_v16  ;;  %v4720_v14 = vld [vmem:[%s10148_s1 + $0x5b0] sm:$0xf0]  ;;  %v5207_v17 = vld [vmem:[%s10148_s1 + $0x4b4] sm:$0xf0] }
  0x49   :  { %1887 = vmatpush.bf16.msra.mxu0 %v4831_v22  ;;  %v5093_v22 = vld [vmem:[%s10148_s1 + $0x12c] sm:$0xf] }
  0x4a   :  { %1945 = vmatpush.bf16.msra.mxu2 %v4839_v21  ;;  %v5108_v21 = vld [vmem:[%s10148_s1 + $0x19c] sm:$0xf0]  ;;  %v4203_v25 = vor.u32 %v5093_v22, %v4200_v23  ;;  %v5191_v23 = vld [vmem:[%s10148_s1 + $0x43c] sm:$0xf] }
  0x4b   :  { %1974 = vmatpush.bf16.msra.mxu3 %v4843_v26  ;;  %1916 = vmatpush.bf16.msra.mxu1 %v4835_v28  ;;  %v4191_v24 = vor.u32 %v5108_v21, %v4190_v18  ;;  %v5092_v26 = vld [vmem:[%s10148_s1 + $0x124] sm:$0xf]  ;;  %v4070_v28 = vld [vmem:[%s10148_s1 + $0x28] sm:$0xf]  ;;  %v4590_v18 = vld [vmem:[%s10148_s1 + $0x430] sm:$0xf] }
  0x4c   :  { %v4195_v30 = vor.u32 %v5092_v26, %v4192_v27  ;;  %v4071_v34 = vor.u32 %v5077_v31, %v4070_v28  ;;  %v5190_v28 = vld [vmem:[%s10148_s1 + $0x434] sm:$0xf] }
  0x4d   :  { %1888 = vmatpush.bf16.msra.mxu0 %v4703_v38  ;;  %v4072_v38 = vld [vmem:[%s10148_s1 + $0xa8] sm:$0xf0] }
  0x4e   :  { %1946 = vmatpush.bf16.msra.mxu2 %v4711_v33  ;;  %v5076_v33 = vld [vmem:[%s10148_s1 + $0x9c] sm:$0xf0]  ;;  %v4075_v40 = vor.u32 %v5061_v37, %v4072_v38  ;;  %v5174_v37 = vld [vmem:[%s10148_s1 + $0x3ac] sm:$0xf0]  ;;  %v4472_v38 = vld [vmem:[%s10148_s1 + $0x3b8] sm:$0xf0] }
  0x4f   :  { %1975 = vmatpush.bf16.msra.mxu3 %v4715_v39  ;;  %1917 = vmatpush.bf16.msra.mxu1 %v4707_v43  ;;  %v4063_v36 = vor.u32 %v5076_v33, %v4062_v32  ;;  %v5060_v39 = vld [vmem:[%s10148_s1 + $0x24] sm:$0xf]  ;;  %v4982_v43 = vld [vmem:[%s10148_s1 + $0x738] sm:$0xf] }
  0x50   :  { %v4067_v42 = vor.u32 %v5060_v39, %v4064_v41  ;;  %v4983_v46 = vor.u32 %v5303_v44, %v4982_v43  ;;  %v4470_v32 = vld [vmem:[%s10148_s1 + $0x338] sm:$0xf] }
  0x51   :  { %1889 = vmatpush.bf16.msra.mxu0 %v4575_v48  ;;  %v5287_v48 = vld [vmem:[%s10148_s1 + $0x73c] sm:$0xf]  ;;  %v5175_v33 = vld [vmem:[%s10148_s1 + $0x3b4] sm:$0xf0] }
  0x52   :  { %1947 = vmatpush.bf16.msra.mxu2 %v4583_v47  ;;  %v5302_v47 = vld [vmem:[%s10148_s1 + $0x7ac] sm:$0xf0]  ;;  %v4987_v51 = vor.u32 %v5287_v48, %v4984_v49  ;;  %v5143_v49 = vld [vmem:[%s10148_s1 + $0x2b4] sm:$0xf0] }
  0x53   :  { %1976 = vmatpush.bf16.msra.mxu3 %v4587_v52  ;;  %1918 = vmatpush.bf16.msra.mxu1 %v4579_v54  ;;  %v4975_v50 = vor.u32 %v5302_v47, %v4974_v45  ;;  %v5286_v52 = vld [vmem:[%s10148_s1 + $0x734] sm:$0xf]  ;;  %v4854_v54 = vld [vmem:[%s10148_s1 + $0x638] sm:$0xf] }
  0x54   :  { %1677 = vmatmul.bf16.gmra.mxu0 %v5800_v29  ;;  %1706 = vmatmul.bf16.gmra.mxu1 %v5800_v29  ;;  %v4979_v55 = vor.u32 %v5286_v52, %v4976_v53  ;;  %v4855_v59 = vor.u32 %v5271_v56, %v4854_v54  ;;  %v5158_v45 = vld [vmem:[%s10148_s1 + $0x334] sm:$0xf]  ;;  %v4342_v47 = vld [vmem:[%s10148_s1 + $0x238] sm:$0xf]  ;;  %v5127_v54 = vld [vmem:[%s10148_s1 + $0x23c] sm:$0xf] }
  0x55   :  { %1735 = vmatmul.bf16.gmra.mxu2 %v5800_v29  ;;  %1890 = vmatpush.bf16.msra.mxu0 %v4447_v62  ;;  %v4856_v62 = vld [vmem:[%s10148_s1 + $0x6b8] sm:$0xf0]  ;;  %v4343_v52 = vor.u32 %v5143_v49, %v4342_v47  ;;  %v5000_v47 = vld [vmem:[%s10148_s1 + $0x7c8] sm:$0xf0] }
  0x56   :  { %1764 = vmatmul.bf16.gmra.mxu3 %v5800_v29  ;;  %1948 = vmatpush.bf16.msra.mxu2 %v4455_v58  ;;  %v5270_v58 = vld [vmem:[%s10148_s1 + $0x6ac] sm:$0xf0] }
  0x57   :  { %1977 = vmatpush.bf16.msra.mxu3 %v4459_v63  ;;  %1919 = vmatpush.bf16.msra.mxu1 %v4451_v4  ;;  %v4847_v60 = vor.u32 %v5270_v58, %v4846_v57  ;;  %v4859_v63 = vor.u32 %v5255_v61, %v4856_v62  ;;  %v4726_v4 = vld [vmem:[%s10148_s1 + $0x538] sm:$0xf]  ;;  %v5126_v61 = vld [vmem:[%s10148_s1 + $0x234] sm:$0xf] }
  0x58   :  { %v4727_v7 = vor.u32 %v5239_v5, %v4726_v4  ;;  %v4336_v62 = vld [vmem:[%s10148_s1 + $0x2b0] sm:$0xf0]  ;;  %v4215_v4 = vor.u32 %v5111_v1, %v4214_v0  ;;  %v5110_v5 = vld [vmem:[%s10148_s1 + $0x1ac] sm:$0xf0]  ;;  %v5272_v1 = vld [vmem:[%s10148_s1 + $0x6bc] sm:$0xf0] }
  0x59   :  { %1891 = vmatpush.bf16.msra.mxu0 %v4319_v9  ;;  %v5223_v9 = vld [vmem:[%s10148_s1 + $0x53c] sm:$0xf] }
  0x5a   :  { %1949 = vmatpush.bf16.msra.mxu2 %v4327_v8  ;;  %v5238_v8 = vld [vmem:[%s10148_s1 + $0x5ac] sm:$0xf0]  ;;  %v4731_v12 = vor.u32 %v5223_v9, %v4728_v10 }
  0x5b   :  { %1978 = vmatpush.bf16.msra.mxu3 %v4331_v13  ;;  %1920 = vmatpush.bf16.msra.mxu1 %v4323_v15  ;;  %v4719_v11 = vor.u32 %v5238_v8, %v4718_v6  ;;  %v5222_v13 = vld [vmem:[%s10148_s1 + $0x534] sm:$0xf]  ;;  %v4598_v15 = vld [vmem:[%s10148_s1 + $0x438] sm:$0xf]  ;;  %v5095_v6 = vld [vmem:[%s10148_s1 + $0x13c] sm:$0xf] }
  0x5c   :  { %v4723_v16 = vor.u32 %v5222_v13, %v4720_v14  ;;  %v4599_v21 = vor.u32 %v5207_v17, %v4598_v15  ;;  %v5094_v14 = vld [vmem:[%s10148_s1 + $0x134] sm:$0xf]  ;;  %v4086_v17 = vld [vmem:[%s10148_s1 + $0x38] sm:$0xf] }
  0x5d   :  { %1892 = vmatpush.bf16.msra.mxu0 %v4191_v24  ;;  %v4600_v24 = vld [vmem:[%s10148_s1 + $0x4b8] sm:$0xf0]  ;;  %v4208_v15 = vld [vmem:[%s10148_s1 + $0x1b0] sm:$0xf0] }
  0x5e   :  { %1950 = vmatpush.bf16.msra.mxu2 %v4199_v20  ;;  %v5206_v20 = vld [vmem:[%s10148_s1 + $0x4ac] sm:$0xf0] }
  0x5f   :  { %1979 = vmatpush.bf16.msra.mxu3 %v4203_v25  ;;  %1921 = vmatpush.bf16.msra.mxu1 %v4195_v30  ;;  %v4591_v22 = vor.u32 %v5206_v20, %v4590_v18  ;;  %v4603_v25 = vor.u32 %v5191_v23, %v4600_v24  ;;  %v4592_v30 = vld [vmem:[%s10148_s1 + $0x4b0] sm:$0xf0]  ;;  %v5079_v18 = vld [vmem:[%s10148_s1 + $0xb4] sm:$0xf0]  ;;  %v4078_v20 = vld [vmem:[%s10148_s1 + $0x30] sm:$0xf] }
  0x60   :  { %v4595_v31 = vor.u32 %v5190_v28, %v4592_v30  ;;  %v5063_v23 = vld [vmem:[%s10148_s1 + $0x3c] sm:$0xf] }
  0x61   :  { %1893 = vmatpush.bf16.msra.mxu0 %v4063_v36  ;;  %v4471_v36 = vor.u32 %v5175_v33, %v4470_v32  ;;  %v4088_v24 = vld [vmem:[%s10148_s1 + $0xb8] sm:$0xf0]  ;;  %v4080_v32 = vld [vmem:[%s10148_s1 + $0xb0] sm:$0xf0] }
  0x62   :  { %1951 = vmatpush.bf16.msra.mxu2 %v4071_v34  ;;  %v4462_v34 = vld [vmem:[%s10148_s1 + $0x330] sm:$0xf]  ;;  %v4091_v28 = vor.u32 %v5063_v23, %v4088_v24  ;;  %v5240_v23 = vld [vmem:[%s10148_s1 + $0x5bc] sm:$0xf0]  ;;  %v5225_v24 = vld [vmem:[%s10148_s1 + $0x54c] sm:$0xf] }
  0x63   :  { %1980 = vmatpush.bf16.msra.mxu3 %v4075_v40  ;;  %1922 = vmatpush.bf16.msra.mxu1 %v4067_v42  ;;  %v4463_v40 = vor.u32 %v5174_v37, %v4462_v34 }
  0x64   :  { %1778 = vmatmul.bf16.vlgmr.msrb.gmra.mxu0 %v5545_v35  ;;  %1807 = vmatmul.bf16.vlgmr.msrb.gmra.mxu1 %v5545_v35 }
  0x65   :  { %1836 = vmatmul.bf16.vlgmr.msrb.gmra.mxu2 %v5545_v35  ;;  %2002 = vmatpush.bf16.msrb.mxu0 %v4975_v50  ;;  %v4334_v50 = vld [vmem:[%s10148_s1 + $0x230] sm:$0xf] }
  0x66   :  { %1865 = vmatmul.bf16.vlgmr.msrb.gmra.mxu3 %v5545_v35  ;;  %2060 = vmatpush.bf16.msrb.mxu2 %v4983_v46  ;;  %v4464_v46 = vld [vmem:[%s10148_s1 + $0x3b0] sm:$0xf0] }
  0x67   :  { %2089 = vmatpush.bf16.msrb.mxu3 %v4987_v51  ;;  %2031 = vmatpush.bf16.msrb.mxu1 %v4979_v55  ;;  %v4467_v48 = vor.u32 %v5158_v45, %v4464_v46  ;;  %v5142_v51 = vld [vmem:[%s10148_s1 + $0x2ac] sm:$0xf0]  ;;  %v4344_v55 = vld [vmem:[%s10148_s1 + $0x2b8] sm:$0xf0]  ;;  %v5304_v45 = vld [vmem:[%s10148_s1 + $0x7bc] sm:$0xf0] }
  0x68   :  { %v4335_v53 = vor.u32 %v5142_v51, %v4334_v50  ;;  %v4347_v57 = vor.u32 %v5127_v54, %v4344_v55  ;;  %v5289_v46 = vld [vmem:[%s10148_s1 + $0x74c] sm:$0xf]  ;;  %v5288_v54 = vld [vmem:[%s10148_s1 + $0x744] sm:$0xf] }
  0x69   :  { %2003 = vmatpush.bf16.msrb.mxu0 %v4847_v60  ;;  %v5003_v50 = vor.u32 %v5289_v46, %v5000_v47  ;;  %v4992_v55 = vld [vmem:[%s10148_s1 + $0x7c0] sm:$0xf0]  ;;  %v4614_v46 = vld [vmem:[%s10148_s1 + $0x448] sm:$0xf] }
  0x6a   :  { %2061 = vmatpush.bf16.msrb.mxu2 %v4855_v59  ;;  %v5209_v47 = vld [vmem:[%s10148_s1 + $0x4c4] sm:$0xf0] }
  0x6b   :  { %2090 = vmatpush.bf16.msrb.mxu3 %v4859_v63  ;;  %2032 = vmatpush.bf16.msrb.mxu1 %v4851_v2  ;;  %v4339_v63 = vor.u32 %v5126_v61, %v4336_v62  ;;  %v4206_v2 = vld [vmem:[%s10148_s1 + $0x130] sm:$0xf]  ;;  %v4870_v61 = vld [vmem:[%s10148_s1 + $0x648] sm:$0xf] }
  0x6c   :  { %v4207_v9 = vor.u32 %v5110_v5, %v4206_v2  ;;  %v5273_v62 = vld [vmem:[%s10148_s1 + $0x6c4] sm:$0xf0]  ;;  %v5257_v2 = vld [vmem:[%s10148_s1 + $0x64c] sm:$0xf] }
  0x6d   :  { %2004 = vmatpush.bf16.msrb.mxu0 %v4719_v11  ;;  %v4871_v0 = vor.u32 %v5273_v62, %v4870_v61 }
  0x6e   :  { %2062 = vmatpush.bf16.msrb.mxu2 %v4727_v7  ;;  %v4216_v7 = vld [vmem:[%s10148_s1 + $0x1b8] sm:$0xf0] }
  0x6f   :  { %2091 = vmatpush.bf16.msrb.mxu3 %v4731_v12  ;;  %2033 = vmatpush.bf16.msrb.mxu1 %v4723_v16  ;;  %v4219_v10 = vor.u32 %v5095_v6, %v4216_v7  ;;  %v4211_v16 = vor.u32 %v5094_v14, %v4208_v15  ;;  %v5256_v15 = vld [vmem:[%s10148_s1 + $0x644] sm:$0xf] }
  0x71   :  { %2005 = vmatpush.bf16.msrb.mxu0 %v4591_v22  ;;  %v5078_v22 = vld [vmem:[%s10148_s1 + $0xac] sm:$0xf0] }
  0x72   :  { %2063 = vmatpush.bf16.msrb.mxu2 %v4599_v21  ;;  %v4087_v21 = vor.u32 %v5079_v18, %v4086_v17  ;;  %v4742_v18 = vld [vmem:[%s10148_s1 + $0x548] sm:$0xf] }
  0x73   :  { %2092 = vmatpush.bf16.msrb.mxu3 %v4603_v25  ;;  %2034 = vmatpush.bf16.msrb.mxu1 %v4595_v31  ;;  %v4079_v25 = vor.u32 %v5078_v22, %v4078_v20  ;;  %v5062_v31 = vld [vmem:[%s10148_s1 + $0x34] sm:$0xf]  ;;  %v5241_v20 = vld [vmem:[%s10148_s1 + $0x5c4] sm:$0xf0] }
  0x74   :  { %1783 = vmatmul.bf16.gmra.mxu0 %v5650_v19  ;;  %1812 = vmatmul.bf16.gmra.mxu1 %v5650_v19  ;;  %v4743_v22 = vor.u32 %v5241_v20, %v4742_v18  ;;  %v4478_v18 = vld [vmem:[%s10148_s1 + $0x340] sm:$0xf] }
  0x75   :  { %1841 = vmatmul.bf16.gmra.mxu2 %v5650_v19  ;;  %2006 = vmatpush.bf16.msrb.mxu0 %v4463_v40  ;;  %v4990_v40 = vld [vmem:[%s10148_s1 + $0x740] sm:$0xf] }
  0x76   :  { %1870 = vmatmul.bf16.gmra.mxu3 %v5650_v19  ;;  %2064 = vmatpush.bf16.msrb.mxu2 %v4471_v36  ;;  %v4083_v36 = vor.u32 %v5062_v31, %v4080_v32  ;;  %v4991_v49 = vor.u32 %v5304_v45, %v4990_v40  ;;  %v5224_v40 = vld [vmem:[%s10148_s1 + $0x544] sm:$0xf] }
  0x77   :  { %2035 = vmatpush.bf16.msrb.mxu1 %v4467_v48 }
  0x79   :  { %2007 = vmatpush.bf16.msrb.mxu0 %v4335_v53 }
  0x7a   :  { %2065 = vmatpush.bf16.msrb.mxu2 %v4343_v52 }
  0x7b   :  { %2036 = vmatpush.bf16.msrb.mxu1 %v4339_v63  ;;  %v4862_v63 = vld [vmem:[%s10148_s1 + $0x640] sm:$0xf] }
  0x7c   :  { %v4863_v6 = vor.u32 %v5272_v1, %v4862_v63 }
  0x7d   :  { %2008 = vmatpush.bf16.msrb.mxu0 %v4207_v9 }
  0x7e   :  { %2066 = vmatpush.bf16.msrb.mxu2 %v4215_v4  ;;  %v4872_v4 = vld [vmem:[%s10148_s1 + $0x6c8] sm:$0xf0] }
  0x7f   :  { %2037 = vmatpush.bf16.msrb.mxu1 %v4211_v16  ;;  %v4875_v7 = vor.u32 %v5257_v2, %v4872_v4  ;;  %v4864_v16 = vld [vmem:[%s10148_s1 + $0x6c0] sm:$0xf0] }
  0x80   :  { %v4867_v17 = vor.u32 %v5256_v15, %v4864_v16  ;;  %v6335_v4 = vld [vmem:[%s10149_s0] sm:$0xff]  ;;  %v4486_v16 = vld [vmem:[%s10148_s1 + $0x348] sm:$0xf] }
  0x81   :  { %2009 = vmatpush.bf16.msrb.mxu0 %v4079_v25  ;;  %v4744_v25 = vld [vmem:[%s10148_s1 + $0x5c8] sm:$0xf0] }
  0x82   :  { %2067 = vmatpush.bf16.msrb.mxu2 %v4087_v21  ;;  %v4734_v21 = vld [vmem:[%s10148_s1 + $0x540] sm:$0xf]  ;;  %v4747_v32 = vor.u32 %v5225_v24, %v4744_v25 }
  0x83   :  { %2038 = vmatpush.bf16.msrb.mxu1 %v4083_v36  ;;  %v4735_v31 = vor.u32 %v5240_v23, %v4734_v21  ;;  %v5176_v21 = vld [vmem:[%s10148_s1 + $0x3bc] sm:$0xf0]  ;;  %v4488_v23 = vld [vmem:[%s10148_s1 + $0x3c8] sm:$0xf0] }
  0x84   :  { %1788 = vmatmul.bf16.gmra.mxu0 %v5743_v3  ;;  %1817 = vmatmul.bf16.gmra.mxu1 %v5743_v3  ;;  %v4479_v25 = vor.u32 %v5176_v21, %v4478_v18  ;;  %v4352_v21 = vld [vmem:[%s10148_s1 + $0x2c0] sm:$0xf0] }
  0x85   :  { %1846 = vmatmul.bf16.gmra.mxu2 %v5743_v3 }
  0x86   :  { %1875 = vmatmul.bf16.gmra.mxu3 %v5743_v3 }
  0x94   :  { %1793 = vmatmul.bf16.gmra.mxu0 %v5800_v29  ;;  %1822 = vmatmul.bf16.gmra.mxu1 %v5800_v29 }
  0x95   :  { %1851 = vmatmul.bf16.gmra.mxu2 %v5800_v29 }
  0x96   :  { %1880 = vmatmul.bf16.gmra.mxu3 %v5800_v29 }
  0xa1   :  { %v6056_v26 = vpop.f32.mrf.mxu0  ;;  %v6058_v27 = vpop.f32.mrf.mxu1 }
  0xa4   :  { %1894 = vmatmul.bf16.vlgmr.msra.gmra.mxu0 %v5545_v35  ;;  %1923 = vmatmul.bf16.vlgmr.msra.gmra.mxu1 %v5545_v35 }
  0xa5   :  { %1952 = vmatmul.bf16.vlgmr.msra.gmra.mxu2 %v5545_v35  ;;  %2118 = vmatpush.bf16.msra.mxu0 %v4991_v49  ;;  %v4606_v49 = vld [vmem:[%s10148_s1 + $0x440] sm:$0xf] }
  0xa6   :  { %1981 = vmatmul.bf16.vlgmr.msra.gmra.mxu3 %v5545_v35  ;;  %v5159_v35 = vld [vmem:[%s10148_s1 + $0x33c] sm:$0xf] }
  0xa7   :  { %v4475_v41 = vor.u32 %v5159_v35, %v4472_v38  ;;  %v4998_v35 = vld [vmem:[%s10148_s1 + $0x748] sm:$0xf] }
  0xa8   :  { %v6088_v39 = vpop.f32.mrf.mxu2  ;;  %v5305_v38 = vld [vmem:[%s10148_s1 + $0x7c4] sm:$0xf0] }
  0xa9   :  { %v6090_v42 = vpop.f32.mrf.mxu3  ;;  %v6092_v43 = vpop.f32.mrf.mxu0  ;;  %2093 = vmatpush.bf16.msrb.mxu3 %v4475_v41  ;;  %v4999_v41 = vor.u32 %v5305_v38, %v4998_v35  ;;  %2119 = vmatpush.bf16.msra.mxu0 %v4863_v6  ;;  %v5192_v6 = vld [vmem:[%s10148_s1 + $0x444] sm:$0xf] }
  0xaa   :  { %v6094_v44 = vpop.f32.mrf.mxu1 }
  0xab   :  { %2176 = vmatpush.bf16.msra.mxu2 %v4999_v41  ;;  %v4736_v41 = vld [vmem:[%s10148_s1 + $0x5c0] sm:$0xf0] }
  0xac   :  { %v4739_v45 = vor.u32 %v5224_v40, %v4736_v41 }
  0xad   :  { %2094 = vmatpush.bf16.msrb.mxu3 %v4347_v57  ;;  %v4995_v57 = vor.u32 %v5288_v54, %v4992_v55  ;;  %2120 = vmatpush.bf16.msra.mxu0 %v4735_v31  ;;  %v5208_v54 = vld [vmem:[%s10148_s1 + $0x4bc] sm:$0xf0]  ;;  %v5193_v55 = vld [vmem:[%s10148_s1 + $0x44c] sm:$0xf] }
  0xae   :  { %v4607_v62 = vor.u32 %v5208_v54, %v4606_v49  ;;  %v4358_v49 = vld [vmem:[%s10148_s1 + $0x248] sm:$0xf]  ;;  %v4350_v54 = vld [vmem:[%s10148_s1 + $0x240] sm:$0xf] }
  0xaf   :  { %2147 = vmatpush.bf16.msra.mxu1 %v4995_v57  ;;  %2177 = vmatpush.bf16.msra.mxu2 %v4871_v0  ;;  %v4616_v57 = vld [vmem:[%s10148_s1 + $0x4c8] sm:$0xf0] }
  0xb0   :  { %v6120_v56 = vpop.f32.mrf.mxu2  ;;  %v4619_v63 = vor.u32 %v5193_v55, %v4616_v57  ;;  %v5144_v57 = vld [vmem:[%s10148_s1 + $0x2bc] sm:$0xf0] }
  0xb1   :  { %v6122_v58 = vpop.f32.mrf.mxu3  ;;  %v6124_v59 = vpop.f32.mrf.mxu0  ;;  %2095 = vmatpush.bf16.msrb.mxu3 %v4219_v10  ;;  %2121 = vmatpush.bf16.msra.mxu0 %v4607_v62  ;;  %v5129_v62 = vld [vmem:[%s10148_s1 + $0x24c] sm:$0xf] }
  0xb2   :  { %v6126_v60 = vpop.f32.mrf.mxu1 }
  0xb3   :  { %2148 = vmatpush.bf16.msra.mxu1 %v4867_v17  ;;  %2178 = vmatpush.bf16.msra.mxu2 %v4743_v22  ;;  %v5177_v17 = vld [vmem:[%s10148_s1 + $0x3c4] sm:$0xf0]  ;;  %v5161_v22 = vld [vmem:[%s10148_s1 + $0x34c] sm:$0xf] }
  0xb4   :  { %1899 = vmatmul.bf16.gmra.mxu0 %v5650_v19  ;;  %1928 = vmatmul.bf16.gmra.mxu1 %v5650_v19  ;;  %v4487_v20 = vor.u32 %v5177_v17, %v4486_v16  ;;  %v4491_v31 = vor.u32 %v5161_v22, %v4488_v23  ;;  %v6417_v22 = vld [vmem:[%s10149_s0 + $0x8] sm:$0xff] }
  0xb5   :  { %1957 = vmatmul.bf16.gmra.mxu2 %v5650_v19  ;;  %2096 = vmatpush.bf16.msrb.mxu3 %v4091_v28 }
  0xb6   :  { %1986 = vmatmul.bf16.gmra.mxu3 %v5650_v19  ;;  %2122 = vmatpush.bf16.msra.mxu0 %v4479_v25  ;;  %v5113_v25 = vld [vmem:[%s10148_s1 + $0x1c4] sm:$0xf0] }
  0xb7   :  { %2149 = vmatpush.bf16.msra.mxu1 %v4739_v45  ;;  %v5160_v45 = vld [vmem:[%s10148_s1 + $0x344] sm:$0xf] }
  0xb8   :  { %v6156_v8 = vpop.f32.mrf.mxu2 }
  0xb9   :  { %v6158_v11 = vpop.f32.mrf.mxu3  ;;  %v6160_v12 = vpop.f32.mrf.mxu0  ;;  %2205 = vmatpush.bf16.msra.mxu3 %v5003_v50  ;;  %v4615_v50 = vor.u32 %v5209_v47, %v4614_v46  ;;  %v4480_v46 = vld [vmem:[%s10148_s1 + $0x3c0] sm:$0xf0] }
  0xba   :  { %v6162_v13 = vpop.f32.mrf.mxu1  ;;  %v4483_v47 = vor.u32 %v5160_v45, %v4480_v46  ;;  %v5112_v46 = vld [vmem:[%s10148_s1 + $0x1bc] sm:$0xf0] }
  0xbb   :  { %2179 = vmatpush.bf16.msra.mxu2 %v4615_v50  ;;  %v5145_v50 = vld [vmem:[%s10148_s1 + $0x2c4] sm:$0xf0] }
  0xbc   :  { %v4359_v55 = vor.u32 %v5145_v50, %v4358_v49  ;;  %v4232_v49 = vld [vmem:[%s10148_s1 + $0x1c8] sm:$0xf0] }
  0xbd   :  { %2206 = vmatpush.bf16.msra.mxu3 %v4875_v7  ;;  %v4608_v7 = vld [vmem:[%s10148_s1 + $0x4c0] sm:$0xf0] }
  0xbe   :  { %v4611_v15 = vor.u32 %v5192_v6, %v4608_v7  ;;  %v4351_v7 = vor.u32 %v5144_v57, %v4350_v54 }
  0xbf   :  { %2180 = vmatpush.bf16.msra.mxu2 %v4487_v20  ;;  %v5128_v20 = vld [vmem:[%s10148_s1 + $0x244] sm:$0xf] }
  0xc0   :  { %v6188_v30 = vpop.f32.mrf.mxu2  ;;  %2150 = vmatpush.bf16.msra.mxu1 %v4611_v15  ;;  %2123 = vmatpush.bf16.msra.mxu0 %v4351_v7  ;;  %v4355_v23 = vor.u32 %v5128_v20, %v4352_v21  ;;  %v5096_v7 = vld [vmem:[%s10148_s1 + $0x144] sm:$0xf]  ;;  %v4102_v21 = vld [vmem:[%s10148_s1 + $0x48] sm:$0xf] }
  0xc1   :  { %v6196_v33 = vpop.f32.mrf.mxu3  ;;  %v6198_v34 = vpop.f32.mrf.mxu0  ;;  %2207 = vmatpush.bf16.msra.mxu3 %v4747_v32 }
  0xc2   :  { %v6200_v37 = vpop.f32.mrf.mxu1 }
  0xc3   :  { %2181 = vmatpush.bf16.msra.mxu2 %v4359_v55 }
  0xc4   :  { %1904 = vmatmul.bf16.gmra.mxu0 %v5743_v3  ;;  %1933 = vmatmul.bf16.gmra.mxu1 %v5743_v3 }
  0xc5   :  { %1962 = vmatmul.bf16.gmra.mxu2 %v5743_v3  ;;  %2208 = vmatpush.bf16.msra.mxu3 %v4619_v63  ;;  %v4360_v63 = vld [vmem:[%s10148_s1 + $0x2c8] sm:$0xf0] }
  0xc6   :  { %1991 = vmatmul.bf16.gmra.mxu3 %v5743_v3  ;;  %2151 = vmatpush.bf16.msra.mxu1 %v4483_v47  ;;  %v4363_v15 = vor.u32 %v5129_v62, %v4360_v63  ;;  %v5097_v47 = vld [vmem:[%s10148_s1 + $0x14c] sm:$0xf] }
  0xc7   :  { %v4235_v55 = vor.u32 %v5097_v47, %v4232_v49 }
  0xc8   :  { %v6224_v48 = vpop.f32.mrf.mxu2 }
  0xc9   :  { %v6226_v51 = vpop.f32.mrf.mxu3  ;;  %v6228_v52 = vpop.f32.mrf.mxu0  ;;  %2209 = vmatpush.bf16.msra.mxu3 %v4491_v31  ;;  %v4222_v31 = vld [vmem:[%s10148_s1 + $0x140] sm:$0xf] }
  0xca   :  { %v6230_v53 = vpop.f32.mrf.mxu1  ;;  %2152 = vmatpush.bf16.msra.mxu1 %v4355_v23  ;;  %v4223_v54 = vor.u32 %v5112_v46, %v4222_v31  ;;  %v5081_v23 = vld [vmem:[%s10148_s1 + $0xc4] sm:$0xf0]  ;;  %v5080_v31 = vld [vmem:[%s10148_s1 + $0xbc] sm:$0xf0]  ;;  %v4104_v46 = vld [vmem:[%s10148_s1 + $0xc8] sm:$0xf0] }
  0xcc   :  { %2124 = vmatpush.bf16.msra.mxu0 %v4223_v54 }
  0xcd   :  { %2210 = vmatpush.bf16.msra.mxu3 %v4363_v15  ;;  %v4224_v15 = vld [vmem:[%s10148_s1 + $0x1c0] sm:$0xf0] }
  0xce   :  { %v4227_v20 = vor.u32 %v5096_v7, %v4224_v15  ;;  %v4096_v7 = vld [vmem:[%s10148_s1 + $0xc0] sm:$0xf0] }
  0xd0   :  { %v6256_v5 = vpop.f32.mrf.mxu2  ;;  %2153 = vmatpush.bf16.msra.mxu1 %v4227_v20 }
  0xd1   :  { %v6258_v9 = vpop.f32.mrf.mxu3  ;;  %v6260_v10 = vpop.f32.mrf.mxu0  ;;  %2211 = vmatpush.bf16.msra.mxu3 %v4235_v55  ;;  %v5064_v55 = vld [vmem:[%s10148_s1 + $0x44] sm:$0xf] }
  0xd2   :  { %v6262_v14 = vpop.f32.mrf.mxu1 }
  0xd4   :  { %1909 = vmatmul.bf16.gmra.mxu0 %v5800_v29  ;;  %1938 = vmatmul.bf16.gmra.mxu1 %v5800_v29 }
  0xd5   :  { %1967 = vmatmul.bf16.gmra.mxu2 %v5800_v29 }
  0xd6   :  { %1996 = vmatmul.bf16.gmra.mxu3 %v5800_v29 }
  0xd8   :  { %v6292_v28 = vpop.f32.mrf.mxu2 }
  0xd9   :  { %v6294_v36 = vpop.f32.mrf.mxu3  ;;  %v6296_v35 = vpop.f32.mrf.mxu0 }
  0xda   :  { %v6298_v38 = vpop.f32.mrf.mxu1 }
  0xe0   :  { %v6324_v61 = vpop.f32.mrf.mxu2 }
  0xe1   :  { %v6326_v0 = vpop.f32.mrf.mxu3  ;;  %v6328_v1 = vpop.f32.mrf.mxu0 }
  0xe2   :  { %v6330_v2 = vpop.f32.mrf.mxu1 }
  0xe4   :  { %2010 = vmatmul.bf16.vlgmr.msrb.gmra.mxu0 %v6335_v4  ;;  %2039 = vmatmul.bf16.vlgmr.msrb.gmra.mxu1 %v6335_v4 }
  0xe5   :  { %2068 = vmatmul.bf16.vlgmr.msrb.gmra.mxu2 %v6335_v4 }
  0xe6   :  { %2097 = vmatmul.bf16.vlgmr.msrb.gmra.mxu3 %v6335_v4 }
  0xe8   :  { %v6365_v24 = vpop.f32.mrf.mxu2 }
  0xe9   :  { %v6367_v32 = vpop.f32.mrf.mxu3  ;;  %v6369_v40 = vpop.f32.mrf.mxu0 }
  0xea   :  { %v6371_v41 = vpop.f32.mrf.mxu1 }
  0xf0   :  { %v6397_v6 = vpop.f32.mrf.mxu2 }
  0xf1   :  { %v6399_v16 = vpop.f32.mrf.mxu3  ;;  %v6401_v17 = vpop.f32.mrf.mxu0 }
  0xf2   :  { %10487 = vst [vmem:[#allocation2_spill] sm:$0xff] %v6399_v16  ;;  %v6403_v18 = vpop.f32.mrf.mxu1  ;;  %v5228_v16 = vld [vmem:[%s10148_s1 + $0x564] sm:$0xf] }
  0xf4   :  { %2015 = vmatmul.bf16.gmra.mxu0 %v5650_v19  ;;  %2044 = vmatmul.bf16.gmra.mxu1 %v5650_v19 }
  0xf5   :  { %2073 = vmatmul.bf16.gmra.mxu2 %v5650_v19  ;;  %v4230_v19 = vld [vmem:[%s10148_s1 + $0x148] sm:$0xf] }
  0xf6   :  { %2102 = vmatmul.bf16.gmra.mxu3 %v6417_v22  ;;  %v4231_v45 = vor.u32 %v5113_v25, %v4230_v19  ;;  %v4094_v19 = vld [vmem:[%s10148_s1 + $0x40] sm:$0xf]  ;;  %v4103_v25 = vor.u32 %v5081_v23, %v4102_v21  ;;  %v4099_v21 = vor.u32 %v5064_v55, %v4096_v7 }
  0xf7   :  { %v4095_v49 = vor.u32 %v5080_v31, %v4094_v19  ;;  %v5014_v19 = vld [vmem:[%s10148_s1 + $0x758] sm:$0xf]  ;;  %v5006_v31 = vld [vmem:[%s10148_s1 + $0x750] sm:$0xf] }
  0xf8   :  { %v6438_v50 = vpop.f32.mrf.mxu2  ;;  %2182 = vmatpush.bf16.msra.mxu2 %v4231_v45  ;;  %v5065_v45 = vld [vmem:[%s10148_s1 + $0x4c] sm:$0xf]  ;;  %2154 = vmatpush.bf16.msra.mxu1 %v4099_v21 }
  0xf9   :  { %v6440_v57 = vpop.f32.mrf.mxu3  ;;  %v6442_v62 = vpop.f32.mrf.mxu0  ;;  %v4107_v54 = vor.u32 %v5065_v45, %v4104_v46  ;;  %2125 = vmatpush.bf16.msra.mxu0 %v4095_v49  ;;  %v5306_v46 = vld [vmem:[%s10148_s1 + $0x7cc] sm:$0xf0]  ;;  %v5016_v49 = vld [vmem:[%s10148_s1 + $0x7d8] sm:$0xf0] }
  0xfa   :  { %10488 = vst [vmem:[#allocation3_spill] sm:$0xff] %v6440_v57  ;;  %v6444_v63 = vpop.f32.mrf.mxu1  ;;  %v5007_v55 = vor.u32 %v5306_v46, %v5006_v31  ;;  %v4886_v31 = vld [vmem:[%s10148_s1 + $0x658] sm:$0xf]  ;;  %v4878_v46 = vld [vmem:[%s10148_s1 + $0x650] sm:$0xf] }
  0xfb   :  { %2212 = vmatpush.bf16.msra.mxu3 %v4107_v54 }
  0xfc   :  { %2183 = vmatpush.bf16.msra.mxu2 %v4103_v25  ;;  %v5307_v25 = vld [vmem:[%s10148_s1 + $0x7d4] sm:$0xf0] }
  0xfd   :  { %v5015_v45 = vor.u32 %v5307_v25, %v5014_v19  ;;  %2234 = vmatpush.bf16.msrb.mxu0 %v5007_v55  ;;  %v5290_v25 = vld [vmem:[%s10148_s1 + $0x754] sm:$0xf]  ;;  %v4888_v55 = vld [vmem:[%s10148_s1 + $0x6d8] sm:$0xf0] }
 0x100   :  { %v6470_v47 = vpop.f32.mrf.mxu2  ;;  %2292 = vmatpush.bf16.msrb.mxu2 %v5015_v45  ;;  %v5275_v45 = vld [vmem:[%s10148_s1 + $0x6d4] sm:$0xf0] }
 0x101   :  { %10489 = vst [vmem:[#allocation4_spill] sm:$0xff] %v6470_v47  ;;  %v6478_v15 = vpop.f32.mrf.mxu3  ;;  %v6480_v20 = vpop.f32.mrf.mxu0  ;;  %v5008_v47 = vld [vmem:[%s10148_s1 + $0x7d0] sm:$0xf0] }
 0x102   :  { %10490 = vst [vmem:[#allocation5_spill] sm:$0xff] %v6478_v15  ;;  %v6482_v23 = vpop.f32.mrf.mxu1 }
 0x103   :  { %10491 = vst [vmem:[#allocation6_spill] sm:$0xff] %v6482_v23  ;;  %v5226_v23 = vld [vmem:[%s10148_s1 + $0x554] sm:$0xf] }
 0x104   :  { %2020 = vmatmul.bf16.gmra.mxu0 %v5743_v3  ;;  %2049 = vmatmul.bf16.gmra.mxu1 %v5743_v3 }
 0x105   :  { %2078 = vmatmul.bf16.gmra.mxu2 %v5743_v3 }
 0x106   :  { %2107 = vmatmul.bf16.gmra.mxu3 %v5743_v3  ;;  %v5291_v3 = vld [vmem:[%s10148_s1 + $0x75c] sm:$0xf] }
 0x107   :  { %v5019_v7 = vor.u32 %v5291_v3, %v5016_v49  ;;  %v4887_v3 = vor.u32 %v5275_v45, %v4886_v31  ;;  %v5274_v49 = vld [vmem:[%s10148_s1 + $0x6cc] sm:$0xf0] }
 0x108   :  { %v6506_v54 = vpop.f32.mrf.mxu2 }
 0x109   :  { %10492 = vst [vmem:[#allocation7_spill] sm:$0xff] %v6506_v54  ;;  %v6508_v21 = vpop.f32.mrf.mxu3  ;;  %v6510_v15 = vpop.f32.mrf.mxu0  ;;  %2321 = vmatpush.bf16.msrb.mxu3 %v5019_v7  ;;  %v5011_v54 = vor.u32 %v5290_v25, %v5008_v47  ;;  %v5259_v47 = vld [vmem:[%s10148_s1 + $0x65c] sm:$0xf]  ;;  %v4879_v25 = vor.u32 %v5274_v49, %v4878_v46  ;;  %2293 = vmatpush.bf16.msrb.mxu2 %v4887_v3  ;;  %v4880_v46 = vld [vmem:[%s10148_s1 + $0x6d0] sm:$0xf0] }
 0x10a   :  { %10493 = vst [vmem:[#allocation8_spill] sm:$0xff] %v6508_v21  ;;  %v6512_v19 = vpop.f32.mrf.mxu1  ;;  %v4891_v21 = vor.u32 %v5259_v47, %v4888_v55  ;;  %v5243_v49 = vld [vmem:[%s10148_s1 + $0x5d4] sm:$0xf0]  ;;  %v4750_v47 = vld [vmem:[%s10148_s1 + $0x550] sm:$0xf] }
 0x10b   :  { %10494 = vst [vmem:[#allocation9_spill] sm:$0xff] %v6512_v19  ;;  %2263 = vmatpush.bf16.msrb.mxu1 %v5011_v54  ;;  %2235 = vmatpush.bf16.msrb.mxu0 %v4879_v25  ;;  %v5258_v54 = vld [vmem:[%s10148_s1 + $0x654] sm:$0xf]  ;;  %v5242_v25 = vld [vmem:[%s10148_s1 + $0x5cc] sm:$0xf0] }
 0x10c   :  { %v4883_v3 = vor.u32 %v5258_v54, %v4880_v46  ;;  %v4760_v54 = vld [vmem:[%s10148_s1 + $0x5d8] sm:$0xf0] }
 0x10d   :  { %2322 = vmatpush.bf16.msrb.mxu3 %v4891_v21  ;;  %v4758_v21 = vld [vmem:[%s10148_s1 + $0x558] sm:$0xf] }
 0x10e   :  { %v4759_v55 = vor.u32 %v5243_v49, %v4758_v21 }
 0x10f   :  { %2264 = vmatpush.bf16.msrb.mxu1 %v4883_v3 }
 0x110   :  { %v6538_v7 = vpop.f32.mrf.mxu2  ;;  %2294 = vmatpush.bf16.msrb.mxu2 %v4759_v55  ;;  %v5211_v55 = vld [vmem:[%s10148_s1 + $0x4d4] sm:$0xf0] }
 0x111   :  { %10495 = vst [vmem:[#allocation10_spill] sm:$0xff] %v6538_v7  ;;  %v6540_v19 = vpop.f32.mrf.mxu3  ;;  %v6542_v31 = vpop.f32.mrf.mxu0 }
 0x112   :  { %10496 = vst [vmem:[#allocation11_spill] sm:$0xff] %v6540_v19  ;;  %v6544_v45 = vpop.f32.mrf.mxu1  ;;  %v4751_v19 = vor.u32 %v5242_v25, %v4750_v47  ;;  %v4630_v47 = vld [vmem:[%s10148_s1 + $0x458] sm:$0xf]  ;;  %v5210_v25 = vld [vmem:[%s10148_s1 + $0x4cc] sm:$0xf0] }
 0x113   :  { %10497 = vst [vmem:[#allocation12_spill] sm:$0xff] %v6542_v31 }
 0x114   :  { %10498 = vst [vmem:[#allocation13_spill] sm:$0xff] %v6544_v45  ;;  %2025 = vmatmul.bf16.gmra.mxu0 %v5800_v29  ;;  %2054 = vmatmul.bf16.gmra.mxu1 %v5800_v29 }
 0x115   :  { %2083 = vmatmul.bf16.gmra.mxu2 %v5800_v29  ;;  %2236 = vmatpush.bf16.msrb.mxu0 %v4751_v19  ;;  %v4622_v19 = vld [vmem:[%s10148_s1 + $0x450] sm:$0xf] }
 0x116   :  { %2112 = vmatmul.bf16.gmra.mxu3 %v5800_v29  ;;  %v5227_v29 = vld [vmem:[%s10148_s1 + $0x55c] sm:$0xf] }
 0x117   :  { %v4763_v7 = vor.u32 %v5227_v29, %v4760_v54  ;;  %v4632_v29 = vld [vmem:[%s10148_s1 + $0x4d8] sm:$0xf0] }
 0x118   :  { %v6574_v46 = vpop.f32.mrf.mxu2 }
 0x119   :  { %10499 = vst [vmem:[#allocation14_spill] sm:$0xff] %v6574_v46  ;;  %v6576_v45 = vpop.f32.mrf.mxu3  ;;  %v6578_v21 = vpop.f32.mrf.mxu0  ;;  %2323 = vmatpush.bf16.msrb.mxu3 %v4763_v7  ;;  %v4752_v46 = vld [vmem:[%s10148_s1 + $0x5d0] sm:$0xf0]  ;;  %v4631_v7 = vor.u32 %v5211_v55, %v4630_v47 }
 0x11a   :  { %10500 = vst [vmem:[#allocation15_spill] sm:$0xff] %v6576_v45  ;;  %v6580_v49 = vpop.f32.mrf.mxu1  ;;  %v4755_v3 = vor.u32 %v5226_v23, %v4752_v46  ;;  %v5195_v23 = vld [vmem:[%s10148_s1 + $0x45c] sm:$0xf]  ;;  %v4623_v46 = vor.u32 %v5210_v25, %v4622_v19  ;;  %v4624_v19 = vld [vmem:[%s10148_s1 + $0x4d0] sm:$0xf0] }
 0x11b   :  { %10501 = vst [vmem:[#allocation16_spill] sm:$0xff] %v6578_v21  ;;  %2295 = vmatpush.bf16.msrb.mxu2 %v4631_v7  ;;  %v5179_v25 = vld [vmem:[%s10148_s1 + $0x3d4] sm:$0xf0] }
 0x11c   :  { %10502 = vst [vmem:[#allocation17_spill] sm:$0xff] %v6580_v49  ;;  %2265 = vmatpush.bf16.msrb.mxu1 %v4755_v3  ;;  %v4635_v49 = vor.u32 %v5195_v23, %v4632_v29  ;;  %2237 = vmatpush.bf16.msrb.mxu0 %v4623_v46  ;;  %v5194_v3 = vld [vmem:[%s10148_s1 + $0x454] sm:$0xf]  ;;  %v4494_v23 = vld [vmem:[%s10148_s1 + $0x350] sm:$0xf] }
 0x11d   :  { %v4627_v7 = vor.u32 %v5194_v3, %v4624_v19  ;;  %v5178_v46 = vld [vmem:[%s10148_s1 + $0x3cc] sm:$0xf0]  ;;  %v5163_v3 = vld [vmem:[%s10148_s1 + $0x35c] sm:$0xf] }
 0x11e   :  { %2324 = vmatpush.bf16.msrb.mxu3 %v4635_v49  ;;  %v4502_v49 = vld [vmem:[%s10148_s1 + $0x358] sm:$0xf]  ;;  %v4504_v19 = vld [vmem:[%s10148_s1 + $0x3d8] sm:$0xf0] }
 0x11f   :  { %v4503_v29 = vor.u32 %v5179_v25, %v4502_v49 }
 0x120   :  { %v6606_v54 = vpop.f32.mrf.mxu2  ;;  %2266 = vmatpush.bf16.msrb.mxu1 %v4627_v7 }
 0x121   :  { %10503 = vst [vmem:[#allocation18_spill] sm:$0xff] %v6606_v54  ;;  %v6608_v45 = vpop.f32.mrf.mxu3  ;;  %v6610_v47 = vpop.f32.mrf.mxu0  ;;  %v4495_v54 = vor.u32 %v5178_v46, %v4494_v23  ;;  %2296 = vmatpush.bf16.msrb.mxu2 %v4503_v29  ;;  %v4374_v23 = vld [vmem:[%s10148_s1 + $0x258] sm:$0xf]  ;;  %v5146_v46 = vld [vmem:[%s10148_s1 + $0x2cc] sm:$0xf0] }
 0x122   :  { %10504 = vst [vmem:[#allocation19_spill] sm:$0xff] %v6608_v45  ;;  %v6612_v55 = vpop.f32.mrf.mxu1  ;;  %v5147_v29 = vld [vmem:[%s10148_s1 + $0x2d4] sm:$0xf0] }
 0x123   :  { %10505 = vst [vmem:[#allocation20_spill] sm:$0xff] %v6610_v47  ;;  %2238 = vmatpush.bf16.msrb.mxu0 %v4495_v54  ;;  %v5162_v47 = vld [vmem:[%s10148_s1 + $0x354] sm:$0xf]  ;;  %v4366_v54 = vld [vmem:[%s10148_s1 + $0x250] sm:$0xf] }
 0x124   :  { %10506 = vst [vmem:[#allocation21_spill] sm:$0xff] %v6612_v55  ;;  %2126 = vmatmul.bf16.vlgmr.msra.gmra.mxu0 %v6335_v4  ;;  %2155 = vmatmul.bf16.vlgmr.msra.gmra.mxu1 %v6335_v4  ;;  %v4507_v55 = vor.u32 %v5163_v3, %v4504_v19  ;;  %v4367_v19 = vor.u32 %v5146_v46, %v4366_v54  ;;  %v4368_v54 = vld [vmem:[%s10148_s1 + $0x2d0] sm:$0xf0]  ;;  %v5115_v46 = vld [vmem:[%s10148_s1 + $0x1d4] sm:$0xf0] }
 0x125   :  { %2184 = vmatmul.bf16.vlgmr.msra.gmra.mxu2 %v6335_v4 }
 0x126   :  { %2213 = vmatmul.bf16.vlgmr.msra.gmra.mxu3 %v6335_v4 }
 0x127   :  { %2325 = vmatpush.bf16.msrb.mxu3 %v4507_v55  ;;  %v4375_v55 = vor.u32 %v5147_v29, %v4374_v23  ;;  %2239 = vmatpush.bf16.msrb.mxu0 %v4367_v19  ;;  %v5114_v19 = vld [vmem:[%s10148_s1 + $0x1cc] sm:$0xf0] }
 0x128   :  { %v6642_v45 = vpop.f32.mrf.mxu2 }
 0x129   :  { %10507 = vst [vmem:[#allocation22_spill] sm:$0xff] %v6642_v45  ;;  %v6644_v21 = vpop.f32.mrf.mxu3  ;;  %v6646_v49 = vpop.f32.mrf.mxu0  ;;  %v4496_v45 = vld [vmem:[%s10148_s1 + $0x3d0] sm:$0xf0]  ;;  %2297 = vmatpush.bf16.msrb.mxu2 %v4375_v55 }
 0x12a   :  { %10508 = vst [vmem:[#allocation23_spill] sm:$0xff] %v6644_v21  ;;  %v6648_v25 = vpop.f32.mrf.mxu1  ;;  %v4499_v7 = vor.u32 %v5162_v47, %v4496_v45  ;;  %v5131_v45 = vld [vmem:[%s10148_s1 + $0x25c] sm:$0xf] }
 0x12b   :  { %10509 = vst [vmem:[#allocation24_spill] sm:$0xff] %v6646_v49  ;;  %v4376_v47 = vld [vmem:[%s10148_s1 + $0x2d8] sm:$0xf0]  ;;  %v5098_v49 = vld [vmem:[%s10148_s1 + $0x154] sm:$0xf] }
 0x12c   :  { %10510 = vst [vmem:[#allocation25_spill] sm:$0xff] %v6648_v25  ;;  %2267 = vmatpush.bf16.msrb.mxu1 %v4499_v7  ;;  %v4379_v21 = vor.u32 %v5131_v45, %v4376_v47  ;;  %v5130_v7 = vld [vmem:[%s10148_s1 + $0x254] sm:$0xf]  ;;  %v4238_v45 = vld [vmem:[%s10148_s1 + $0x150] sm:$0xf] }
 0x12d   :  { %v4371_v55 = vor.u32 %v5130_v7, %v4368_v54  ;;  %v5099_v7 = vld [vmem:[%s10148_s1 + $0x15c] sm:$0xf] }
 0x12e   :  { %2326 = vmatpush.bf16.msrb.mxu3 %v4379_v21  ;;  %v4246_v21 = vld [vmem:[%s10148_s1 + $0x158] sm:$0xf]  ;;  %v4248_v54 = vld [vmem:[%s10148_s1 + $0x1d8] sm:$0xf0] }
 0x12f   :  { %v4247_v47 = vor.u32 %v5115_v46, %v4246_v21 }
 0x130   :  { %v6674_v3 = vpop.f32.mrf.mxu2  ;;  %2268 = vmatpush.bf16.msrb.mxu1 %v4371_v55 }
 0x131   :  { %10511 = vst [vmem:[#allocation26_spill] sm:$0xff] %v6674_v3  ;;  %v6676_v25 = vpop.f32.mrf.mxu3  ;;  %v6678_v23 = vpop.f32.mrf.mxu0  ;;  %2298 = vmatpush.bf16.msrb.mxu2 %v4247_v47  ;;  %v5083_v47 = vld [vmem:[%s10148_s1 + $0xd4] sm:$0xf0] }
 0x132   :  { %10512 = vst [vmem:[#allocation27_spill] sm:$0xff] %v6676_v25  ;;  %v6680_v29 = vpop.f32.mrf.mxu1 }
 0x133   :  { %10513 = vst [vmem:[#allocation28_spill] sm:$0xff] %v6678_v23  ;;  %v4251_v23 = vor.u32 %v5099_v7, %v4248_v54 }
 0x134   :  { %10514 = vst [vmem:[#allocation29_spill] sm:$0xff] %v6680_v29  ;;  %2131 = vmatmul.bf16.gmra.mxu0 %v6417_v22  ;;  %2160 = vmatmul.bf16.gmra.mxu1 %v6417_v22  ;;  %v4239_v29 = vor.u32 %v5114_v19, %v4238_v45  ;;  %v4118_v45 = vld [vmem:[%s10148_s1 + $0x58] sm:$0xf]  ;;  %v5082_v19 = vld [vmem:[%s10148_s1 + $0xcc] sm:$0xf0] }
 0x135   :  { %2189 = vmatmul.bf16.gmra.mxu2 %v6417_v22  ;;  %2327 = vmatpush.bf16.msrb.mxu3 %v4251_v23  ;;  %v4110_v23 = vld [vmem:[%s10148_s1 + $0x50] sm:$0xf] }
 0x136   :  { %2218 = vmatmul.bf16.gmra.mxu3 %v6417_v22  ;;  %2240 = vmatpush.bf16.msrb.mxu0 %v4239_v29  ;;  %v4119_v29 = vor.u32 %v5083_v47, %v4118_v45  ;;  %v4111_v54 = vor.u32 %v5082_v19, %v4110_v23  ;;  %v4112_v45 = vld [vmem:[%s10148_s1 + $0xd0] sm:$0xf0] }
 0x137   :  { %v6759_v23 = vld [vmem:[%s10149_s0 + $0x10] sm:$0xff] }
 0x138   :  { %v6710_v25 = vpop.f32.mrf.mxu2  ;;  %2299 = vmatpush.bf16.msrb.mxu2 %v4119_v29  ;;  %v5030_v29 = vld [vmem:[%s10148_s1 + $0x768] sm:$0xf] }
 0x139   :  { %10515 = vst [vmem:[#allocation30_spill] sm:$0xff] %v6710_v25  ;;  %v6712_v3 = vpop.f32.mrf.mxu3  ;;  %v6714_v21 = vpop.f32.mrf.mxu0  ;;  %v4240_v25 = vld [vmem:[%s10148_s1 + $0x1d0] sm:$0xf0] }
 0x13a   :  { %10516 = vst [vmem:[#allocation31_spill] sm:$0xff] %v6712_v3  ;;  %v6716_v46 = vpop.f32.mrf.mxu1  ;;  %v4243_v55 = vor.u32 %v5098_v49, %v4240_v25  ;;  %v5067_v49 = vld [vmem:[%s10148_s1 + $0x5c] sm:$0xf]  ;;  %2241 = vmatpush.bf16.msrb.mxu0 %v4111_v54  ;;  %v5032_v54 = vld [vmem:[%s10148_s1 + $0x7e8] sm:$0xf0] }
 0x13b   :  { %10517 = vst [vmem:[#allocation32_spill] sm:$0xff] %v6714_v21  ;;  %v4120_v25 = vld [vmem:[%s10148_s1 + $0xd8] sm:$0xf0] }
 0x13c   :  { %10518 = vst [vmem:[#allocation33_spill] sm:$0xff] %v6716_v46  ;;  %2269 = vmatpush.bf16.msrb.mxu1 %v4243_v55  ;;  %v4123_v3 = vor.u32 %v5067_v49, %v4120_v25  ;;  %v5066_v55 = vld [vmem:[%s10148_s1 + $0x54] sm:$0xf]  ;;  %v5308_v49 = vld [vmem:[%s10148_s1 + $0x7dc] sm:$0xf0] }
 0x13d   :  { %v4115_v21 = vor.u32 %v5066_v55, %v4112_v45  ;;  %v5293_v25 = vld [vmem:[%s10148_s1 + $0x76c] sm:$0xf] }
 0x13e   :  { %2328 = vmatpush.bf16.msrb.mxu3 %v4123_v3  ;;  %v5309_v3 = vld [vmem:[%s10148_s1 + $0x7e4] sm:$0xf0] }
 0x13f   :  { %v5031_v19 = vor.u32 %v5309_v3, %v5030_v29  ;;  %v5292_v3 = vld [vmem:[%s10148_s1 + $0x764] sm:$0xf] }
 0x140   :  { %v6742_v7 = vpop.f32.mrf.mxu2  ;;  %2270 = vmatpush.bf16.msrb.mxu1 %v4115_v21  ;;  %v5022_v21 = vld [vmem:[%s10148_s1 + $0x760] sm:$0xf] }
 0x141   :  { %10519 = vst [vmem:[#allocation34_spill] sm:$0xff] %v6742_v7  ;;  %v6750_v47 = vpop.f32.mrf.mxu3  ;;  %v6752_v46 = vpop.f32.mrf.mxu0  ;;  %v5023_v45 = vor.u32 %v5308_v49, %v5022_v21  ;;  %2408 = vmatpush.bf16.msra.mxu2 %v5031_v19  ;;  %v4902_v21 = vld [vmem:[%s10148_s1 + $0x668] sm:$0xf] }
 0x142   :  { %10520 = vst [vmem:[#allocation35_spill] sm:$0xff] %v6750_v47  ;;  %v6754_v57 = vpop.f32.mrf.mxu1  ;;  %v5277_v19 = vld [vmem:[%s10148_s1 + $0x6e4] sm:$0xf0] }
 0x143   :  { %10521 = vst [vmem:[#allocation36_spill] sm:$0xff] %v6752_v46  ;;  %2350 = vmatpush.bf16.msra.mxu0 %v5023_v45  ;;  %v5024_v46 = vld [vmem:[%s10148_s1 + $0x7e0] sm:$0xf0]  ;;  %v4903_v49 = vor.u32 %v5277_v19, %v4902_v21 }
 0x144   :  { %10522 = vst [vmem:[#allocation37_spill] sm:$0xff] %v6754_v57  ;;  %2136 = vmatmul.bf16.gmra.mxu0 %v6759_v23  ;;  %2165 = vmatmul.bf16.gmra.mxu1 %v6759_v23  ;;  %v5035_v57 = vor.u32 %v5293_v25, %v5032_v54  ;;  %v5276_v25 = vld [vmem:[%s10148_s1 + $0x6dc] sm:$0xf0]  ;;  %v4904_v54 = vld [vmem:[%s10148_s1 + $0x6e8] sm:$0xf0] }
 0x145   :  { %2194 = vmatmul.bf16.gmra.mxu2 %v6759_v23 }
 0x146   :  { %2223 = vmatmul.bf16.gmra.mxu3 %v6759_v23  ;;  %2409 = vmatpush.bf16.msra.mxu2 %v4903_v49  ;;  %v4774_v49 = vld [vmem:[%s10148_s1 + $0x568] sm:$0xf] }
 0x147   :  { %2437 = vmatpush.bf16.msra.mxu3 %v5035_v57  ;;  %v4894_v57 = vld [vmem:[%s10148_s1 + $0x660] sm:$0xf] }
 0x148   :  { %v6783_v55 = vpop.f32.mrf.mxu2 }
 0x149   :  { %10523 = vst [vmem:[#allocation38_spill] sm:$0xff] %v6783_v55  ;;  %v6785_v47 = vpop.f32.mrf.mxu3  ;;  %v6787_v7 = vpop.f32.mrf.mxu0  ;;  %v5027_v55 = vor.u32 %v5292_v3, %v5024_v46  ;;  %v5261_v46 = vld [vmem:[%s10148_s1 + $0x66c] sm:$0xf]  ;;  %v4895_v3 = vor.u32 %v5276_v25, %v4894_v57  ;;  %v4896_v57 = vld [vmem:[%s10148_s1 + $0x6e0] sm:$0xf0] }
 0x14a   :  { %10524 = vst [vmem:[#allocation39_spill] sm:$0xff] %v6785_v47  ;;  %v6789_v29 = vpop.f32.mrf.mxu1  ;;  %v4907_v47 = vor.u32 %v5261_v46, %v4904_v54  ;;  %v5245_v25 = vld [vmem:[%s10148_s1 + $0x5e4] sm:$0xf0]  ;;  %v4766_v46 = vld [vmem:[%s10148_s1 + $0x560] sm:$0xf] }
 0x14b   :  { %10525 = vst [vmem:[#allocation40_spill] sm:$0xff] %v6787_v7  ;;  %2379 = vmatpush.bf16.msra.mxu1 %v5027_v55  ;;  %2351 = vmatpush.bf16.msra.mxu0 %v4895_v3  ;;  %v6826_v7 = vld [vmem:[%s10149_s0 + $0x18] sm:$0xff]  ;;  %v5260_v55 = vld [vmem:[%s10148_s1 + $0x664] sm:$0xf]  ;;  %v4775_v54 = vor.u32 %v5245_v25, %v4774_v49  ;;  %v5244_v3 = vld [vmem:[%s10148_s1 + $0x5dc] sm:$0xf0] }
 0x14c   :  { %10526 = vst [vmem:[#allocation41_spill] sm:$0xff] %v6789_v29  ;;  %2438 = vmatpush.bf16.msra.mxu3 %v4907_v47  ;;  %v4899_v47 = vor.u32 %v5260_v55, %v4896_v57  ;;  %v5229_v55 = vld [vmem:[%s10148_s1 + $0x56c] sm:$0xf] }
 0x14d   :  { %v4776_v57 = vld [vmem:[%s10148_s1 + $0x5e8] sm:$0xf0]  ;;  %2410 = vmatpush.bf16.msra.mxu2 %v4775_v54  ;;  %v5213_v54 = vld [vmem:[%s10148_s1 + $0x4e4] sm:$0xf0] }
 0x14f   :  { %2380 = vmatpush.bf16.msra.mxu1 %v4899_v47 }
 0x150   :  { %v6815_v45 = vpop.f32.mrf.mxu2 }
 0x151   :  { %10527 = vst [vmem:[#allocation42_spill] sm:$0xff] %v6815_v45  ;;  %v6817_v29 = vpop.f32.mrf.mxu3  ;;  %v6819_v21 = vpop.f32.mrf.mxu0  ;;  %v4767_v45 = vor.u32 %v5244_v3, %v4766_v46  ;;  %v4646_v46 = vld [vmem:[%s10148_s1 + $0x468] sm:$0xf]  ;;  %v5212_v3 = vld [vmem:[%s10148_s1 + $0x4dc] sm:$0xf0] }
 0x152   :  { %10528 = vst [vmem:[#allocation43_spill] sm:$0xff] %v6817_v29  ;;  %v6821_v19 = vpop.f32.mrf.mxu1 }
 0x153   :  { %10529 = vst [vmem:[#allocation44_spill] sm:$0xff] %v6819_v21  ;;  %2352 = vmatpush.bf16.msra.mxu0 %v4767_v45  ;;  %v4638_v45 = vld [vmem:[%s10148_s1 + $0x460] sm:$0xf] }
 0x154   :  { %10530 = vst [vmem:[#allocation45_spill] sm:$0xff] %v6821_v19  ;;  %2141 = vmatmul.bf16.gmra.mxu0 %v6826_v7  ;;  %2170 = vmatmul.bf16.gmra.mxu1 %v6826_v7  ;;  %v4779_v19 = vor.u32 %v5229_v55, %v4776_v57  ;;  %v4639_v57 = vor.u32 %v5212_v3, %v4638_v45  ;;  %v4640_v45 = vld [vmem:[%s10148_s1 + $0x4e0] sm:$0xf0]  ;;  %v5181_v3 = vld [vmem:[%s10148_s1 + $0x3e4] sm:$0xf0] }
 0x155   :  { %2199 = vmatmul.bf16.gmra.mxu2 %v6826_v7 }
 0x156   :  { %2228 = vmatmul.bf16.gmra.mxu3 %v6826_v7 }
 0x157   :  { %2439 = vmatpush.bf16.msra.mxu3 %v4779_v19  ;;  %v4647_v19 = vor.u32 %v5213_v54, %v4646_v46  ;;  %2353 = vmatpush.bf16.msra.mxu0 %v4639_v57  ;;  %v5180_v57 = vld [vmem:[%s10148_s1 + $0x3dc] sm:$0xf0] }
 0x158   :  { %v6856_v29 = vpop.f32.mrf.mxu2 }
 0x159   :  { %10531 = vst [vmem:[#allocation46_spill] sm:$0xff] %v6856_v29  ;;  %v6858_v21 = vpop.f32.mrf.mxu3  ;;  %v6860_v49 = vpop.f32.mrf.mxu0  ;;  %v4768_v29 = vld [vmem:[%s10148_s1 + $0x5e0] sm:$0xf0]  ;;  %2411 = vmatpush.bf16.msra.mxu2 %v4647_v19 }
 0x15a   :  { %10532 = vst [vmem:[#allocation47_spill] sm:$0xff] %v6858_v21  ;;  %v6862_v25 = vpop.f32.mrf.mxu1  ;;  %v4771_v47 = vor.u32 %v5228_v16, %v4768_v29  ;;  %v5197_v16 = vld [vmem:[%s10148_s1 + $0x46c] sm:$0xf] }
 0x15b   :  { %10533 = vst [vmem:[#allocation48_spill] sm:$0xff] %v6860_v49  ;;  %v4648_v29 = vld [vmem:[%s10148_s1 + $0x4e8] sm:$0xf0] }
 0x15c   :  { %10534 = vst [vmem:[#allocation49_spill] sm:$0xff] %v6862_v25  ;;  %2381 = vmatpush.bf16.msra.mxu1 %v4771_v47  ;;  %v4651_v25 = vor.u32 %v5197_v16, %v4648_v29  ;;  %v5196_v47 = vld [vmem:[%s10148_s1 + $0x464] sm:$0xf]  ;;  %v4510_v16 = vld [vmem:[%s10148_s1 + $0x360] sm:$0xf] }
 0x15d   :  { %v4643_v19 = vor.u32 %v5196_v47, %v4640_v45  ;;  %v4520_v47 = vld [vmem:[%s10148_s1 + $0x3e8] sm:$0xf0] }
 0x15e   :  { %2440 = vmatpush.bf16.msra.mxu3 %v4651_v25  ;;  %v4518_v25 = vld [vmem:[%s10148_s1 + $0x368] sm:$0xf] }
 0x15f   :  { %v4519_v29 = vor.u32 %v5181_v3, %v4518_v25 }
 0x160   :  { %v6888_v55 = vpop.f32.mrf.mxu2  ;;  %2382 = vmatpush.bf16.msra.mxu1 %v4643_v19 }
 0x161   :  { %10535 = vst [vmem:[#allocation50_spill] sm:$0xff] %v6888_v55  ;;  %v6890_v21 = vpop.f32.mrf.mxu3  ;;  %v6892_v46 = vpop.f32.mrf.mxu0  ;;  %2412 = vmatpush.bf16.msra.mxu2 %v4519_v29  ;;  %v5149_v29 = vld [vmem:[%s10148_s1 + $0x2e4] sm:$0xf0] }
 0x162   :  { %10536 = vst [vmem:[#allocation51_spill] sm:$0xff] %v6890_v21  ;;  %v6894_v54 = vpop.f32.mrf.mxu1  ;;  %v4511_v21 = vor.u32 %v5180_v57, %v4510_v16  ;;  %v4390_v16 = vld [vmem:[%s10148_s1 + $0x268] sm:$0xf]  ;;  %v5148_v57 = vld [vmem:[%s10148_s1 + $0x2dc] sm:$0xf0] }
 0x163   :  { %10537 = vst [vmem:[#allocation52_spill] sm:$0xff] %v6892_v46  ;;  %v5102_v46 = vld [vmem:[%s10148_s1 + $0x174] sm:$0xf] }
 0x164   :  { %10538 = vst [vmem:[#allocation53_spill] sm:$0xff] %v6894_v54  ;;  %2242 = vmatmul.bf16.vlgmr.msrb.gmra.mxu0 %v6335_v4  ;;  %2271 = vmatmul.bf16.vlgmr.msrb.gmra.mxu1 %v6335_v4  ;;  %v5164_v54 = vld [vmem:[%s10148_s1 + $0x364] sm:$0xf] }
 0x165   :  { %2300 = vmatmul.bf16.vlgmr.msrb.gmra.mxu2 %v6335_v4  ;;  %2354 = vmatpush.bf16.msra.mxu0 %v4511_v21  ;;  %v4382_v21 = vld [vmem:[%s10148_s1 + $0x260] sm:$0xf] }
 0x166   :  { %2329 = vmatmul.bf16.vlgmr.msrb.gmra.mxu3 %v6335_v4  ;;  %v5165_v4 = vld [vmem:[%s10148_s1 + $0x36c] sm:$0xf] }
 0x167   :  { %v4523_v55 = vor.u32 %v5165_v4, %v4520_v47  ;;  %v4392_v4 = vld [vmem:[%s10148_s1 + $0x2e8] sm:$0xf0] }
 0x168   :  { %v6924_v45 = vpop.f32.mrf.mxu2 }
 0x169   :  { %10539 = vst [vmem:[#allocation54_spill] sm:$0xff] %v6924_v45  ;;  %v6926_v49 = vpop.f32.mrf.mxu3  ;;  %v6928_v25 = vpop.f32.mrf.mxu0  ;;  %2441 = vmatpush.bf16.msra.mxu3 %v4523_v55  ;;  %v4512_v45 = vld [vmem:[%s10148_s1 + $0x3e0] sm:$0xf0]  ;;  %v4391_v55 = vor.u32 %v5149_v29, %v4390_v16 }
 0x16a   :  { %10540 = vst [vmem:[#allocation55_spill] sm:$0xff] %v6926_v49  ;;  %v6930_v3 = vpop.f32.mrf.mxu1  ;;  %v4515_v19 = vor.u32 %v5164_v54, %v4512_v45  ;;  %v5133_v54 = vld [vmem:[%s10148_s1 + $0x26c] sm:$0xf]  ;;  %v4383_v45 = vor.u32 %v5148_v57, %v4382_v21  ;;  %v4384_v21 = vld [vmem:[%s10148_s1 + $0x2e0] sm:$0xf0] }
 0x16b   :  { %10541 = vst [vmem:[#allocation56_spill] sm:$0xff] %v6928_v25  ;;  %2413 = vmatpush.bf16.msra.mxu2 %v4391_v55  ;;  %v5117_v57 = vld [vmem:[%s10148_s1 + $0x1e4] sm:$0xf0] }
 0x16c   :  { %10542 = vst [vmem:[#allocation57_spill] sm:$0xff] %v6930_v3  ;;  %2383 = vmatpush.bf16.msra.mxu1 %v4515_v19  ;;  %v4395_v3 = vor.u32 %v5133_v54, %v4392_v4  ;;  %2355 = vmatpush.bf16.msra.mxu0 %v4383_v45  ;;  %v5132_v19 = vld [vmem:[%s10148_s1 + $0x264] sm:$0xf]  ;;  %v4254_v54 = vld [vmem:[%s10148_s1 + $0x160] sm:$0xf] }
 0x16d   :  { %v4387_v55 = vor.u32 %v5132_v19, %v4384_v21  ;;  %v5116_v45 = vld [vmem:[%s10148_s1 + $0x1dc] sm:$0xf0]  ;;  %v4264_v19 = vld [vmem:[%s10148_s1 + $0x1e8] sm:$0xf0] }
 0x16e   :  { %2442 = vmatpush.bf16.msra.mxu3 %v4395_v3  ;;  %v4262_v3 = vld [vmem:[%s10148_s1 + $0x168] sm:$0xf] }
 0x16f   :  { %v4263_v4 = vor.u32 %v5117_v57, %v4262_v3 }
 0x170   :  { %v6956_v47 = vpop.f32.mrf.mxu2  ;;  %2384 = vmatpush.bf16.msra.mxu1 %v4387_v55 }
 0x171   :  { %10543 = vst [vmem:[#allocation58_spill] sm:$0xff] %v6956_v47  ;;  %v6958_v49 = vpop.f32.mrf.mxu3  ;;  %v6960_v16 = vpop.f32.mrf.mxu0  ;;  %2414 = vmatpush.bf16.msra.mxu2 %v4263_v4  ;;  %v5100_v47 = vld [vmem:[%s10148_s1 + $0x164] sm:$0xf]  ;;  %v5085_v4 = vld [vmem:[%s10148_s1 + $0xe4] sm:$0xf0] }
 0x172   :  { %10544 = vst [vmem:[#allocation59_spill] sm:$0xff] %v6958_v49  ;;  %v6962_v29 = vpop.f32.mrf.mxu1  ;;  %v4255_v49 = vor.u32 %v5116_v45, %v4254_v54  ;;  %v4134_v54 = vld [vmem:[%s10148_s1 + $0x68] sm:$0xf]  ;;  %v5084_v45 = vld [vmem:[%s10148_s1 + $0xdc] sm:$0xf0] }
 0x173   :  { %10545 = vst [vmem:[#allocation60_spill] sm:$0xff] %v6960_v16 }
 0x174   :  { %10546 = vst [vmem:[#allocation61_spill] sm:$0xff] %v6962_v29  ;;  %2247 = vmatmul.bf16.gmra.mxu0 %v6417_v22  ;;  %2276 = vmatmul.bf16.gmra.mxu1 %v6417_v22 }
 0x175   :  { %2305 = vmatmul.bf16.gmra.mxu2 %v6417_v22  ;;  %2356 = vmatpush.bf16.msra.mxu0 %v4255_v49  ;;  %v4126_v49 = vld [vmem:[%s10148_s1 + $0x60] sm:$0xf] }
 0x176   :  { %2334 = vmatmul.bf16.gmra.mxu3 %v6417_v22  ;;  %v5101_v22 = vld [vmem:[%s10148_s1 + $0x16c] sm:$0xf] }
 0x177   :  { %v4267_v29 = vor.u32 %v5101_v22, %v4264_v19  ;;  %v4136_v22 = vld [vmem:[%s10148_s1 + $0xe8] sm:$0xf0] }
 0x178   :  { %v6992_v21 = vpop.f32.mrf.mxu2 }
 0x179   :  { %10547 = vst [vmem:[#allocation62_spill] sm:$0xff] %v6992_v21  ;;  %v6994_v16 = vpop.f32.mrf.mxu3  ;;  %v6996_v3 = vpop.f32.mrf.mxu0  ;;  %2443 = vmatpush.bf16.msra.mxu3 %v4267_v29  ;;  %v4256_v21 = vld [vmem:[%s10148_s1 + $0x1e0] sm:$0xf0]  ;;  %v4135_v29 = vor.u32 %v5085_v4, %v4134_v54 }
 0x17a   :  { %10548 = vst [vmem:[#allocation63_spill] sm:$0xff] %v6994_v16  ;;  %v6998_v57 = vpop.f32.mrf.mxu1  ;;  %v4259_v55 = vor.u32 %v5100_v47, %v4256_v21  ;;  %v5069_v47 = vld [vmem:[%s10148_s1 + $0x6c] sm:$0xf]  ;;  %v4127_v21 = vor.u32 %v5084_v45, %v4126_v49  ;;  %v4128_v54 = vld [vmem:[%s10148_s1 + $0xe0] sm:$0xf0] }
 0x17b   :  { %10549 = vst [vmem:[#allocation64_spill] sm:$0xff] %v6996_v3  ;;  %v4139_v16 = vor.u32 %v5069_v47, %v4136_v22  ;;  %2415 = vmatpush.bf16.msra.mxu2 %v4135_v29  ;;  %v5046_v49 = vld [vmem:[%s10148_s1 + $0x778] sm:$0xf]  ;;  %v5310_v45 = vld [vmem:[%s10148_s1 + $0x7ec] sm:$0xf0] }
 0x17c   :  { %10550 = vst [vmem:[#allocation65_spill] sm:$0xff] %v6998_v57  ;;  %2385 = vmatpush.bf16.msra.mxu1 %v4259_v55  ;;  %v5068_v55 = vld [vmem:[%s10148_s1 + $0x64] sm:$0xf]  ;;  %2357 = vmatpush.bf16.msra.mxu0 %v4127_v21  ;;  %v5311_v29 = vld [vmem:[%s10148_s1 + $0x7f4] sm:$0xf0] }
 0x17d   :  { %v4131_v3 = vor.u32 %v5068_v55, %v4128_v54  ;;  %2444 = vmatpush.bf16.msra.mxu3 %v4139_v16  ;;  %v5038_v16 = vld [vmem:[%s10148_s1 + $0x770] sm:$0xf]  ;;  %v5295_v47 = vld [vmem:[%s10148_s1 + $0x77c] sm:$0xf] }
 0x17e   :  { %v5048_v22 = vld [vmem:[%s10148_s1 + $0x7f8] sm:$0xf0]  ;;  %v5039_v55 = vor.u32 %v5310_v45, %v5038_v16  ;;  %v4918_v16 = vld [vmem:[%s10148_s1 + $0x678] sm:$0xf]  ;;  %v4910_v45 = vld [vmem:[%s10148_s1 + $0x670] sm:$0xf] }
 0x17f   :  { %v5051_v54 = vor.u32 %v5295_v47, %v5048_v22  ;;  %v5278_v22 = vld [vmem:[%s10148_s1 + $0x6ec] sm:$0xf0] }
 0x180   :  { %v7024_v19 = vpop.f32.mrf.mxu2  ;;  %2386 = vmatpush.bf16.msra.mxu1 %v4131_v3  ;;  %v5047_v3 = vor.u32 %v5311_v29, %v5046_v49  ;;  %2466 = vmatpush.bf16.msrb.mxu0 %v5039_v55  ;;  %v5294_v29 = vld [vmem:[%s10148_s1 + $0x774] sm:$0xf]  ;;  %v4920_v55 = vld [vmem:[%s10148_s1 + $0x6f8] sm:$0xf0] }
 0x181   :  { %10551 = vst [vmem:[#allocation66_spill] sm:$0xff] %v7024_v19  ;;  %v7032_v4 = vpop.f32.mrf.mxu3  ;;  %v7034_v57 = vpop.f32.mrf.mxu0  ;;  %2553 = vmatpush.bf16.msrb.mxu3 %v5051_v54 }
 0x182   :  { %10552 = vst [vmem:[#allocation67_spill] sm:$0xff] %v7032_v4  ;;  %v7036_v25 = vpop.f32.mrf.mxu1  ;;  %2524 = vmatpush.bf16.msrb.mxu2 %v5047_v3  ;;  %v5279_v3 = vld [vmem:[%s10148_s1 + $0x6f4] sm:$0xf0] }
 0x183   :  { %10553 = vst [vmem:[#allocation68_spill] sm:$0xff] %v7034_v57  ;;  %v4919_v47 = vor.u32 %v5279_v3, %v4918_v16 }
 0x184   :  { %10554 = vst [vmem:[#allocation69_spill] sm:$0xff] %v7036_v25  ;;  %2252 = vmatmul.bf16.gmra.mxu0 %v6759_v23  ;;  %2281 = vmatmul.bf16.gmra.mxu1 %v6759_v23  ;;  %v5040_v25 = vld [vmem:[%s10148_s1 + $0x7f0] sm:$0xf0] }
 0x185   :  { %2310 = vmatmul.bf16.gmra.mxu2 %v6759_v23 }
 0x186   :  { %2339 = vmatmul.bf16.gmra.mxu3 %v6759_v23  ;;  %2525 = vmatpush.bf16.msrb.mxu2 %v4919_v47 }
 0x188   :  { %v7060_v21 = vpop.f32.mrf.mxu2 }
 0x189   :  { %10555 = vst [vmem:[#allocation70_spill] sm:$0xff] %v7060_v21  ;;  %v7062_v4 = vpop.f32.mrf.mxu3  ;;  %v7064_v19 = vpop.f32.mrf.mxu0  ;;  %v5043_v21 = vor.u32 %v5294_v29, %v5040_v25  ;;  %v5263_v25 = vld [vmem:[%s10148_s1 + $0x67c] sm:$0xf]  ;;  %v4911_v29 = vor.u32 %v5278_v22, %v4910_v45  ;;  %v4912_v45 = vld [vmem:[%s10148_s1 + $0x6f0] sm:$0xf0] }
 0x18a   :  { %10556 = vst [vmem:[#allocation71_spill] sm:$0xff] %v7062_v4  ;;  %v7066_v49 = vpop.f32.mrf.mxu1  ;;  %v5247_v22 = vld [vmem:[%s10148_s1 + $0x5f4] sm:$0xf0] }
 0x18b   :  { %10557 = vst [vmem:[#allocation72_spill] sm:$0xff] %v7064_v19  ;;  %2495 = vmatpush.bf16.msrb.mxu1 %v5043_v21  ;;  %2467 = vmatpush.bf16.msrb.mxu0 %v4911_v29  ;;  %v5262_v21 = vld [vmem:[%s10148_s1 + $0x674] sm:$0xf]  ;;  %v5246_v29 = vld [vmem:[%s10148_s1 + $0x5ec] sm:$0xf0] }
 0x18c   :  { %10558 = vst [vmem:[#allocation73_spill] sm:$0xff] %v7066_v49  ;;  %v4923_v49 = vor.u32 %v5263_v25, %v4920_v55  ;;  %v4915_v47 = vor.u32 %v5262_v21, %v4912_v45  ;;  %v4782_v25 = vld [vmem:[%s10148_s1 + $0x570] sm:$0xf]  ;;  %v5231_v21 = vld [vmem:[%s10148_s1 + $0x57c] sm:$0xf] }
 0x18d   :  { %v4792_v45 = vld [vmem:[%s10148_s1 + $0x5f8] sm:$0xf0]  ;;  %v5230_v19 = vld [vmem:[%s10148_s1 + $0x574] sm:$0xf] }
 0x18e   :  { %2554 = vmatpush.bf16.msrb.mxu3 %v4923_v49  ;;  %v4790_v49 = vld [vmem:[%s10148_s1 + $0x578] sm:$0xf] }
 0x18f   :  { %v4791_v55 = vor.u32 %v5247_v22, %v4790_v49  ;;  %2496 = vmatpush.bf16.msrb.mxu1 %v4915_v47 }
 0x190   :  { %v7092_v54 = vpop.f32.mrf.mxu2 }
 0x191   :  { %10559 = vst [vmem:[#allocation74_spill] sm:$0xff] %v7092_v54  ;;  %v7094_v4 = vpop.f32.mrf.mxu3  ;;  %v7096_v16 = vpop.f32.mrf.mxu0  ;;  %v4795_v54 = vor.u32 %v5231_v21, %v4792_v45  ;;  %2526 = vmatpush.bf16.msrb.mxu2 %v4791_v55  ;;  %v5215_v55 = vld [vmem:[%s10148_s1 + $0x4f4] sm:$0xf0] }
 0x192   :  { %10560 = vst [vmem:[#allocation75_spill] sm:$0xff] %v7094_v4  ;;  %v7098_v3 = vpop.f32.mrf.mxu1 }
 0x193   :  { %10561 = vst [vmem:[#allocation76_spill] sm:$0xff] %v7096_v16  ;;  %2555 = vmatpush.bf16.msrb.mxu3 %v4795_v54  ;;  %v4654_v54 = vld [vmem:[%s10148_s1 + $0x470] sm:$0xf] }
 0x194   :  { %10562 = vst [vmem:[#allocation77_spill] sm:$0xff] %v7098_v3  ;;  %2257 = vmatmul.bf16.gmra.mxu0 %v6826_v7  ;;  %2286 = vmatmul.bf16.gmra.mxu1 %v6826_v7  ;;  %v4783_v3 = vor.u32 %v5246_v29, %v4782_v25  ;;  %v4662_v25 = vld [vmem:[%s10148_s1 + $0x478] sm:$0xf]  ;;  %v5214_v29 = vld [vmem:[%s10148_s1 + $0x4ec] sm:$0xf0] }
 0x195   :  { %2315 = vmatmul.bf16.gmra.mxu2 %v6826_v7  ;;  %v4655_v45 = vor.u32 %v5214_v29, %v4654_v54  ;;  %v4656_v54 = vld [vmem:[%s10148_s1 + $0x4f0] sm:$0xf0]  ;;  %v5183_v29 = vld [vmem:[%s10148_s1 + $0x3f4] sm:$0xf0] }
 0x196   :  { %2344 = vmatmul.bf16.gmra.mxu3 %v6826_v7  ;;  %2468 = vmatpush.bf16.msrb.mxu0 %v4783_v3  ;;  %v4663_v3 = vor.u32 %v5215_v55, %v4662_v25 }
 0x198   :  { %v7128_v4 = vpop.f32.mrf.mxu2  ;;  %2527 = vmatpush.bf16.msrb.mxu2 %v4663_v3  ;;  %v4534_v3 = vld [vmem:[%s10148_s1 + $0x378] sm:$0xf] }
 0x199   :  { %10563 = vst [vmem:[#allocation78_spill] sm:$0xff] %v7128_v4  ;;  %v7130_v16 = vpop.f32.mrf.mxu3  ;;  %v7132_v49 = vpop.f32.mrf.mxu0  ;;  %v4784_v4 = vld [vmem:[%s10148_s1 + $0x5f0] sm:$0xf0] }
 0x19a   :  { %10564 = vst [vmem:[#allocation79_spill] sm:$0xff] %v7130_v16  ;;  %v7134_v22 = vpop.f32.mrf.mxu1  ;;  %v4787_v47 = vor.u32 %v5230_v19, %v4784_v4  ;;  %v5199_v19 = vld [vmem:[%s10148_s1 + $0x47c] sm:$0xf]  ;;  %2469 = vmatpush.bf16.msrb.mxu0 %v4655_v45  ;;  %v7171_v16 = vld [vmem:[%s10149_s0] sm:$0xff]  ;;  %v5182_v45 = vld [vmem:[%s10148_s1 + $0x3ec] sm:$0xf0] }
 0x19b   :  { %10565 = vst [vmem:[#allocation80_spill] sm:$0xff] %v7132_v49  ;;  %v4664_v4 = vld [vmem:[%s10148_s1 + $0x4f8] sm:$0xf0] }
 0x19c   :  { %10566 = vst [vmem:[#allocation81_spill] sm:$0xff] %v7134_v22  ;;  %2497 = vmatpush.bf16.msrb.mxu1 %v4787_v47  ;;  %v4667_v22 = vor.u32 %v5199_v19, %v4664_v4  ;;  %v5198_v47 = vld [vmem:[%s10148_s1 + $0x474] sm:$0xf]  ;;  %v4526_v19 = vld [vmem:[%s10148_s1 + $0x370] sm:$0xf]  ;;  %v4535_v4 = vor.u32 %v5183_v29, %v4534_v3 }
 0x19e   :  { %2556 = vmatpush.bf16.msrb.mxu3 %v4667_v22  ;;  %v4659_v22 = vor.u32 %v5198_v47, %v4656_v54  ;;  %v5167_v47 = vld [vmem:[%s10148_s1 + $0x37c] sm:$0xf]  ;;  %2528 = vmatpush.bf16.msrb.mxu2 %v4535_v4  ;;  %v5151_v4 = vld [vmem:[%s10148_s1 + $0x2f4] sm:$0xf0] }
 0x19f   :  { %v4536_v54 = vld [vmem:[%s10148_s1 + $0x3f8] sm:$0xf0] }
 0x1a0   :  { %v7160_v21 = vpop.f32.mrf.mxu2  ;;  %2498 = vmatpush.bf16.msrb.mxu1 %v4659_v22 }
 0x1a1   :  { %10567 = vst [vmem:[#allocation82_spill] sm:$0xff] %v7160_v21  ;;  %v7162_v49 = vpop.f32.mrf.mxu3  ;;  %v7164_v25 = vpop.f32.mrf.mxu0  ;;  %v4527_v21 = vor.u32 %v5182_v45, %v4526_v19  ;;  %v4406_v19 = vld [vmem:[%s10148_s1 + $0x278] sm:$0xf]  ;;  %v5150_v45 = vld [vmem:[%s10148_s1 + $0x2ec] sm:$0xf0] }
 0x1a2   :  { %10568 = vst [vmem:[#allocation83_spill] sm:$0xff] %v7162_v49  ;;  %v7166_v55 = vpop.f32.mrf.mxu1 }
 0x1a3   :  { %10569 = vst [vmem:[#allocation84_spill] sm:$0xff] %v7164_v25  ;;  %2470 = vmatpush.bf16.msrb.mxu0 %v4527_v21  ;;  %v5166_v25 = vld [vmem:[%s10148_s1 + $0x374] sm:$0xf]  ;;  %v4398_v21 = vld [vmem:[%s10148_s1 + $0x270] sm:$0xf] }
 0x1a4   :  { %10570 = vst [vmem:[#allocation85_spill] sm:$0xff] %v7166_v55  ;;  %2358 = vmatmul.bf16.vlgmr.msra.gmra.mxu0 %v7171_v16  ;;  %2387 = vmatmul.bf16.vlgmr.msra.gmra.mxu1 %v7171_v16  ;;  %v4539_v55 = vor.u32 %v5167_v47, %v4536_v54  ;;  %v4399_v54 = vor.u32 %v5150_v45, %v4398_v21  ;;  %v4400_v21 = vld [vmem:[%s10148_s1 + $0x2f0] sm:$0xf0]  ;;  %v5119_v45 = vld [vmem:[%s10148_s1 + $0x1f4] sm:$0xf0] }
 0x1a5   :  { %2416 = vmatmul.bf16.vlgmr.msra.gmra.mxu2 %v7171_v16 }
 0x1a6   :  { %2445 = vmatmul.bf16.vlgmr.msra.gmra.mxu3 %v7171_v16 }
 0x1a7   :  { %2557 = vmatpush.bf16.msrb.mxu3 %v4539_v55  ;;  %v4407_v55 = vor.u32 %v5151_v4, %v4406_v19  ;;  %2471 = vmatpush.bf16.msrb.mxu0 %v4399_v54  ;;  %v5118_v54 = vld [vmem:[%s10148_s1 + $0x1ec] sm:$0xf0] }
 0x1a8   :  { %v7201_v49 = vpop.f32.mrf.mxu2 }
 0x1a9   :  { %10571 = vst [vmem:[#allocation86_spill] sm:$0xff] %v7201_v49  ;;  %v7203_v57 = vpop.f32.mrf.mxu3  ;;  %v7205_v3 = vpop.f32.mrf.mxu0  ;;  %v4528_v49 = vld [vmem:[%s10148_s1 + $0x3f0] sm:$0xf0]  ;;  %2529 = vmatpush.bf16.msrb.mxu2 %v4407_v55  ;;  %v4278_v55 = vld [vmem:[%s10148_s1 + $0x178] sm:$0xf] }
 0x1aa   :  { %10572 = vst [vmem:[#allocation87_spill] sm:$0xff] %v7203_v57  ;;  %v7207_v29 = vpop.f32.mrf.mxu1  ;;  %v4531_v22 = vor.u32 %v5166_v25, %v4528_v49  ;;  %v5135_v49 = vld [vmem:[%s10148_s1 + $0x27c] sm:$0xf] }
 0x1ab   :  { %10573 = vst [vmem:[#allocation88_spill] sm:$0xff] %v7205_v3  ;;  %v4408_v25 = vld [vmem:[%s10148_s1 + $0x2f8] sm:$0xf0]  ;;  %v7244_v3 = vld [vmem:[%s10149_s0 + $0x8] sm:$0xff] }
 0x1ac   :  { %10574 = vst [vmem:[#allocation89_spill] sm:$0xff] %v7207_v29  ;;  %2499 = vmatpush.bf16.msrb.mxu1 %v4531_v22  ;;  %v4411_v29 = vor.u32 %v5135_v49, %v4408_v25  ;;  %v5134_v22 = vld [vmem:[%s10148_s1 + $0x274] sm:$0xf]  ;;  %v4270_v49 = vld [vmem:[%s10148_s1 + $0x170] sm:$0xf]  ;;  %v4279_v25 = vor.u32 %v5119_v45, %v4278_v55 }
 0x1ae   :  { %2558 = vmatpush.bf16.msrb.mxu3 %v4411_v29  ;;  %v4403_v29 = vor.u32 %v5134_v22, %v4400_v21  ;;  %v5103_v22 = vld [vmem:[%s10148_s1 + $0x17c] sm:$0xf]  ;;  %2530 = vmatpush.bf16.msrb.mxu2 %v4279_v25  ;;  %v5087_v25 = vld [vmem:[%s10148_s1 + $0xf4] sm:$0xf0] }
 0x1af   :  { %v4280_v21 = vld [vmem:[%s10148_s1 + $0x1f8] sm:$0xf0] }
 0x1b0   :  { %v7233_v47 = vpop.f32.mrf.mxu2  ;;  %2500 = vmatpush.bf16.msrb.mxu1 %v4403_v29 }
 0x1b1   :  { %10575 = vst [vmem:[#allocation90_spill] sm:$0xff] %v7233_v47  ;;  %v7235_v57 = vpop.f32.mrf.mxu3  ;;  %v7237_v19 = vpop.f32.mrf.mxu0 }
 0x1b2   :  { %10576 = vst [vmem:[#allocation91_spill] sm:$0xff] %v7235_v57  ;;  %v7239_v4 = vpop.f32.mrf.mxu1  ;;  %v4271_v57 = vor.u32 %v5118_v54, %v4270_v49  ;;  %v4150_v49 = vld [vmem:[%s10148_s1 + $0x78] sm:$0xf]  ;;  %v5086_v54 = vld [vmem:[%s10148_s1 + $0xec] sm:$0xf0] }
 0x1b3   :  { %10577 = vst [vmem:[#allocation92_spill] sm:$0xff] %v7237_v19  ;;  %v4283_v19 = vor.u32 %v5103_v22, %v4280_v21 }
 0x1b4   :  { %10578 = vst [vmem:[#allocation93_spill] sm:$0xff] %v7239_v4  ;;  %2363 = vmatmul.bf16.gmra.mxu0 %v7244_v3  ;;  %2392 = vmatmul.bf16.gmra.mxu1 %v7244_v3 }
 0x1b5   :  { %2421 = vmatmul.bf16.gmra.mxu2 %v7244_v3  ;;  %2472 = vmatpush.bf16.msrb.mxu0 %v4271_v57  ;;  %v4142_v57 = vld [vmem:[%s10148_s1 + $0x70] sm:$0xf] }
 0x1b6   :  { %2450 = vmatmul.bf16.gmra.mxu3 %v7244_v3  ;;  %v4143_v21 = vor.u32 %v5086_v54, %v4142_v57 }
 0x1b7   :  { %2559 = vmatpush.bf16.msrb.mxu3 %v4283_v19  ;;  %v4151_v19 = vor.u32 %v5087_v25, %v4150_v49  ;;  %v4144_v49 = vld [vmem:[%s10148_s1 + $0xf0] sm:$0xf0] }
 0x1b8   :  { %v7274_v4 = vpop.f32.mrf.mxu2 }
 0x1b9   :  { %10579 = vst [vmem:[#allocation94_spill] sm:$0xff] %v7274_v4  ;;  %v7276_v47 = vpop.f32.mrf.mxu3  ;;  %v7278_v55 = vpop.f32.mrf.mxu0  ;;  %v4272_v4 = vld [vmem:[%s10148_s1 + $0x1f0] sm:$0xf0]  ;;  %2531 = vmatpush.bf16.msrb.mxu2 %v4151_v19  ;;  %2473 = vmatpush.bf16.msrb.mxu0 %v4143_v21 }
 0x1ba   :  { %10580 = vst [vmem:[#allocation95_spill] sm:$0xff] %v7276_v47  ;;  %v7280_v45 = vpop.f32.mrf.mxu1  ;;  %v4275_v29 = vor.u32 %v5102_v46, %v4272_v4  ;;  %v5071_v46 = vld [vmem:[%s10148_s1 + $0x7c] sm:$0xf] }
 0x1bb   :  { %10581 = vst [vmem:[#allocation96_spill] sm:$0xff] %v7278_v55  ;;  %v4152_v4 = vld [vmem:[%s10148_s1 + $0xf8] sm:$0xf0] }
 0x1bc   :  { %10582 = vst [vmem:[#allocation97_spill] sm:$0xff] %v7280_v45  ;;  %2501 = vmatpush.bf16.msrb.mxu1 %v4275_v29  ;;  %v4155_v45 = vor.u32 %v5071_v46, %v4152_v4  ;;  %v5070_v29 = vld [vmem:[%s10148_s1 + $0x74] sm:$0xf] }
 0x1bd   :  { %v4147_v55 = vor.u32 %v5070_v29, %v4144_v49 }
 0x1be   :  { %2560 = vmatpush.bf16.msrb.mxu3 %v4155_v45 }
 0x1c0   :  { %v7306_v22 = vpop.f32.mrf.mxu2  ;;  %2502 = vmatpush.bf16.msrb.mxu1 %v4147_v55 }
 0x1c1   :  { %10583 = vst [vmem:[#allocation98_spill] sm:$0xff] %v7306_v22  ;;  %v7314_v25 = vpop.f32.mrf.mxu3  ;;  %v7316_v47 = vpop.f32.mrf.mxu0 }
 0x1c2   :  { %10584 = vst [vmem:[#allocation99_spill] sm:$0xff] %v7314_v25  ;;  %v7318_v31 = vpop.f32.mrf.mxu1 }
 0x1c3   :  { %10585 = vst [vmem:[#allocation100_spill] sm:$0xff] %v7316_v47 }
 0x1c4   :  { %10586 = vst [vmem:[#allocation101_spill] sm:$0xff] %v7318_v31  ;;  %2368 = vmatmul.bf16.gmra.mxu0 %v6759_v23  ;;  %2397 = vmatmul.bf16.gmra.mxu1 %v6759_v23 }
 0x1c5   :  { %2426 = vmatmul.bf16.gmra.mxu2 %v6759_v23 }
 0x1c6   :  { %2455 = vmatmul.bf16.gmra.mxu3 %v6759_v23 }
 0x1c8   :  { %v7324_v57 = vpop.f32.mrf.mxu2 }
 0x1c9   :  { %10587 = vst [vmem:[#allocation102_spill] sm:$0xff] %v7324_v57  ;;  %v7326_v54 = vpop.f32.mrf.mxu3  ;;  %v7328_v46 = vpop.f32.mrf.mxu0 }
 0x1ca   :  { %10588 = vst [vmem:[#allocation103_spill] sm:$0xff] %v7326_v54  ;;  %v7330_v19 = vpop.f32.mrf.mxu1 }
 0x1cb   :  { %10589 = vst [vmem:[#allocation104_spill] sm:$0xff] %v7328_v46 }
 0x1cc   :  { %10590 = vst [vmem:[#allocation105_spill] sm:$0xff] %v7330_v19 }
 0x1d0   :  { %v7332_v4 = vpop.f32.mrf.mxu2 }
 0x1d1   :  { %10591 = vst [vmem:[#allocation106_spill] sm:$0xff] %v7332_v4  ;;  %v7334_v45 = vpop.f32.mrf.mxu3  ;;  %v7336_v55 = vpop.f32.mrf.mxu0 }
 0x1d2   :  { %10592 = vst [vmem:[#allocation107_spill] sm:$0xff] %v7334_v45  ;;  %v7338_v21 = vpop.f32.mrf.mxu1 }
 0x1d3   :  { %10593 = vst [vmem:[#allocation108_spill] sm:$0xff] %v7336_v55 }
 0x1d4   :  { %10594 = vst [vmem:[#allocation109_spill] sm:$0xff] %v7338_v21  ;;  %2373 = vmatmul.bf16.gmra.mxu0 %v6826_v7  ;;  %2402 = vmatmul.bf16.gmra.mxu1 %v6826_v7 }
 0x1d5   :  { %2431 = vmatmul.bf16.gmra.mxu2 %v6826_v7 }
 0x1d6   :  { %2460 = vmatmul.bf16.gmra.mxu3 %v6826_v7 }
 0x1d8   :  { %v7344_v29 = vpop.f32.mrf.mxu2 }
 0x1d9   :  { %10595 = vst [vmem:[#allocation110_spill] sm:$0xff] %v7344_v29  ;;  %v7346_v49 = vpop.f32.mrf.mxu3  ;;  %v7348_v19 = vpop.f32.mrf.mxu0 }
 0x1da   :  { %10596 = vst [vmem:[#allocation111_spill] sm:$0xff] %v7346_v49  ;;  %v7350_v4 = vpop.f32.mrf.mxu1 }
 0x1db   :  { %10597 = vst [vmem:[#allocation112_spill] sm:$0xff] %v7348_v19 }
 0x1dc   :  { %10598 = vst [vmem:[#allocation113_spill] sm:$0xff] %v7350_v4 }
 0x1e0   :  { %v7352_v45 = vpop.f32.mrf.mxu2 }
 0x1e1   :  { %10599 = vst [vmem:[#allocation114_spill] sm:$0xff] %v7352_v45  ;;  %v7354_v55 = vpop.f32.mrf.mxu3  ;;  %v7356_v21 = vpop.f32.mrf.mxu0 }
 0x1e2   :  { %10600 = vst [vmem:[#allocation115_spill] sm:$0xff] %v7354_v55  ;;  %v7358_v54 = vpop.f32.mrf.mxu1 }
 0x1e4   :  { %2474 = vmatmul.bf16.vlgmr.msrb.gmra.mxu0 %v7171_v16  ;;  %2503 = vmatmul.bf16.vlgmr.msrb.gmra.mxu1 %v7171_v16 }
 0x1e5   :  { %2532 = vmatmul.bf16.vlgmr.msrb.gmra.mxu2 %v7171_v16 }
 0x1e6   :  { %2561 = vmatmul.bf16.vlgmr.msrb.gmra.mxu3 %v7171_v16 }
 0x1e8   :  { %v7364_v49 = vpop.f32.mrf.mxu2 }
 0x1e9   :  { %v7366_v19 = vpop.f32.mrf.mxu3  ;;  %v7368_v4 = vpop.f32.mrf.mxu0 }
 0x1ea   :  { %v7370_v45 = vpop.f32.mrf.mxu1 }
 0x1eb   :  { %10601 = vst [vmem:[#allocation116_spill] sm:$0xff] %v7370_v45 }
 0x1f0   :  { %v7372_v55 = vpop.f32.mrf.mxu2 }
 0x1f1   :  { %10602 = vst [vmem:[#allocation117_spill] sm:$0xff] %v7372_v55  ;;  %v7374_v29 = vpop.f32.mrf.mxu3  ;;  %v7376_v46 = vpop.f32.mrf.mxu0 }
 0x1f2   :  { %10603 = vst [vmem:[#allocation118_spill] sm:$0xff] %v7374_v29  ;;  %v7378_v25 = vpop.f32.mrf.mxu1 }
 0x1f3   :  { %10604 = vst [vmem:[#allocation119_spill] sm:$0xff] %v7376_v46 }
 0x1f4   :  { %10605 = vst [vmem:[#allocation120_spill] sm:$0xff] %v7378_v25  ;;  %2479 = vmatmul.bf16.gmra.mxu0 %v7244_v3  ;;  %2508 = vmatmul.bf16.gmra.mxu1 %v7244_v3  ;;  %v7397_v25 = vld [vmem:[%s10150_s2] sm:$0xff] }
 0x1f5   :  { %2537 = vmatmul.bf16.gmra.mxu2 %v7244_v3  ;;  %v7429_v55 = vperm.slane %v7397_v25, 3 }
 0x1f6   :  { %2566 = vmatmul.bf16.gmra.mxu3 %v7244_v3 }
 0x1f8   :  { %v7384_v16 = vpop.f32.mrf.mxu2 }
 0x1f9   :  { %10606 = vst [vmem:[#allocation121_spill] sm:$0xff] %v7384_v16  ;;  %v7386_v57 = vpop.f32.mrf.mxu3  ;;  %v7388_v31 = vpop.f32.mrf.mxu0  ;;  %v286_v16 = vperm.slane %v7397_v25, 0 }
 0x1fa   :  { %10607 = vst [vmem:[#allocation122_spill] sm:$0xff] %v7386_v57  ;;  %v7390_v22 = vpop.f32.mrf.mxu1  ;;  %v287_v57 = vperm.slane %v7397_v25, 1 }
 0x1fb   :  { %10608 = vst [vmem:[#allocation123_spill] sm:$0xff] %v7388_v31 }
 0x1fc   :  { %10609 = vst [vmem:[#allocation124_spill] sm:$0xff] %v7390_v22  ;;  %v7424_v22 = vadd.f32 %v6094_v44, %v287_v57 }
 0x1fe   :  { %10617 = vst [vmem:[#allocation132_spill] sm:$0xff] %v7424_v22 }
 0x200   :  { %v7392_v29 = vpop.f32.mrf.mxu2 }
 0x201   :  { %10610 = vst [vmem:[#allocation125_spill] sm:$0xff] %v7392_v29  ;;  %v7399_v46 = vpop.f32.mrf.mxu3  ;;  %v7401_v47 = vpop.f32.mrf.mxu0  ;;  %v7411_v29 = vperm.slane %v7397_v25, 2 }
 0x202   :  { %10611 = vst [vmem:[#allocation126_spill] sm:$0xff] %v7399_v46  ;;  %v7403_v3 = vpop.f32.mrf.mxu1  ;;  %v7415_v46 = vadd.f32 %v6056_v26, %v286_v16 }
 0x203   :  { %10612 = vst [vmem:[#allocation127_spill] sm:$0xff] %v7401_v47  ;;  %v7421_v47 = vadd.f32 %v6092_v43, %v286_v16  ;;  %v7437_v26 = vadd.f32 %v6088_v39, %v7411_v29 }
 0x204   :  { %10613 = vst [vmem:[#allocation128_spill] sm:$0xff] %v7403_v3  ;;  %2484 = vmatmul.bf16.gmra.mxu0 %v6759_v23  ;;  %2513 = vmatmul.bf16.gmra.mxu1 %v6759_v23  ;;  %v7418_v3 = vadd.f32 %v6058_v27, %v287_v57  ;;  %v7441_v27 = vadd.f32 %v6120_v56, %v7411_v29 }
 0x205   :  { %2542 = vmatmul.bf16.gmra.mxu2 %v6759_v23  ;;  %10614 = vst [vmem:[#allocation129_spill] sm:$0xff] %v7415_v46  ;;  %v7458_v56 = vadd.f32 %v6124_v59, %v286_v16  ;;  %v7478_v59 = vperm.slane %v7397_v25, 4 }
 0x206   :  { %2571 = vmatmul.bf16.gmra.mxu3 %v6759_v23  ;;  %10615 = vst [vmem:[#allocation130_spill] sm:$0xff] %v7418_v3  ;;  %v2582_v44 = vmax.f32 %v7415_v46, %v7418_v3  ;;  %v7464_v3 = vadd.f32 %v6160_v12, %v286_v16  ;;  %v7487_v12 = vadd.f32 %v6198_v34, %v286_v16 }
 0x207   :  { %10616 = vst [vmem:[#allocation131_spill] sm:$0xff] %v7421_v47  ;;  %v7511_v46 = vadd.f32 %v6224_v48, %v7411_v29 }
 0x208   :  { %v7426_v31 = vpop.f32.mrf.mxu2  ;;  %10621 = vst [vmem:[#allocation136_spill] sm:$0xff] %v7437_v26 }
 0x209   :  { %10618 = vst [vmem:[#allocation133_spill] sm:$0xff] %v7426_v31  ;;  %v7431_v45 = vpop.f32.mrf.mxu3  ;;  %v7433_v23 = vpop.f32.mrf.mxu0  ;;  %v2615_v31 = vmax.f32 %v7421_v47, %v7424_v22  ;;  %v7467_v22 = vadd.f32 %v6162_v13, %v287_v57  ;;  %v7490_v13 = vadd.f32 %v6200_v37, %v287_v57 }
 0x20a   :  { %10619 = vst [vmem:[#allocation134_spill] sm:$0xff] %v7431_v45  ;;  %v7443_v43 = vpop.f32.mrf.mxu1  ;;  %v7451_v45 = vadd.f32 %v6090_v42, %v7429_v55  ;;  %v7471_v42 = vadd.f32 %v6122_v58, %v7429_v55 }
 0x20b   :  { %10620 = vst [vmem:[#allocation135_spill] sm:$0xff] %v7433_v23  ;;  %v2583_v23 = vmax.f32 %v2582_v44, %v7437_v26  ;;  %v7455_v39 = vmax.f32 %v2615_v31, %v7441_v27  ;;  %v7475_v31 = vadd.f32 %v6156_v8, %v7411_v29  ;;  %v2681_v37 = vmax.f32 %v7464_v3, %v7467_v22 }
 0x20c   :  { %10622 = vst [vmem:[#allocation137_spill] sm:$0xff] %v7441_v27 }
 0x20d   :  { %10623 = vst [vmem:[#allocation138_spill] sm:$0xff] %v7443_v43  ;;  %v7461_v43 = vadd.f32 %v6126_v60, %v287_v57  ;;  %v7484_v60 = vadd.f32 %v6188_v30, %v7411_v29  ;;  %v2584_v8 = vmax.f32 %v2583_v23, %v7451_v45  ;;  %v2617_v47 = vmax.f32 %v7455_v39, %v7471_v42 }
 0x20e   :  { %10624 = vst [vmem:[#allocation139_spill] sm:$0xff] %v7451_v45  ;;  %v7503_v30 = vadd.f32 %v6158_v11, %v7429_v55  ;;  %v7514_v23 = vadd.f32 %v6228_v52, %v286_v16  ;;  %v7517_v39 = vadd.f32 %v6230_v53, %v287_v57  ;;  %v7522_v11 = vadd.f32 %v6196_v33, %v7429_v55 }
 0x20f   :  { %10625 = vst [vmem:[#allocation140_spill] sm:$0xff] %v7458_v56  ;;  %v2648_v26 = vmax.f32 %v7458_v56, %v7461_v43  ;;  %v7526_v56 = vadd.f32 %v6328_v1, %v7478_v59  ;;  %v2682_v48 = vmax.f32 %v2681_v37, %v7484_v60  ;;  %v2714_v52 = vmax.f32 %v7487_v12, %v7490_v13 }
 0x210   :  { %10626 = vst [vmem:[#allocation141_spill] sm:$0xff] %v7461_v43  ;;  %v7480_v44 = vpop.f32.mrf.mxu2  ;;  %v7537_v53 = vadd.f32 %v6256_v5, %v7411_v29  ;;  %v7543_v33 = vadd.f32 %v6226_v51, %v7429_v55  ;;  %v7546_v1 = vadd.f32 %v6260_v10, %v286_v16  ;;  %v7552_v37 = vperm.slane %v7397_v25, 6 }
 0x211   :  { %10627 = vst [vmem:[#allocation142_spill] sm:$0xff] %v7464_v3  ;;  %v7492_v58 = vpop.f32.mrf.mxu3  ;;  %v7494_v27 = vpop.f32.mrf.mxu0  ;;  %v2649_v43 = vmax.f32 %v2648_v26, %v7475_v31  ;;  %v7549_v26 = vadd.f32 %v6262_v14, %v287_v57  ;;  %v2715_v5 = vmax.f32 %v2714_v52, %v7511_v46  ;;  %v7562_v51 = vadd.f32 %v6298_v38, %v287_v57 }
 0x212   :  { %10628 = vst [vmem:[#allocation143_spill] sm:$0xff] %v7467_v22  ;;  %v7505_v34 = vpop.f32.mrf.mxu1  ;;  %v7529_v22 = vperm.slane %v7397_v25, 5  ;;  %v7566_v10 = vadd.f32 %v6292_v28, %v7411_v29  ;;  %v2585_v14 = vmax.f32 %v2584_v8, %v7526_v56  ;;  %v7575_v52 = vadd.f32 %v6369_v40, %v7478_v59 }
 0x213   :  { %10629 = vst [vmem:[#allocation144_spill] sm:$0xff] %v7471_v42  ;;  %v7583_v28 = vadd.f32 %v6324_v61, %v7411_v29  ;;  %v7587_v57 = vadd.f32 %v6401_v17, %v7478_v59  ;;  %v2683_v40 = vmax.f32 %v2682_v48, %v7522_v11  ;;  %v2780_v8 = vmax.f32 %v7546_v1, %v7549_v26 }
 0x214   :  { %10630 = vst [vmem:[#allocation145_spill] sm:$0xff] %v7475_v31  ;;  %2489 = vmatmul.bf16.gmra.mxu0 %v6826_v7  ;;  %2518 = vmatmul.bf16.gmra.mxu1 %v6826_v7  ;;  %v7601_v61 = vperm.slane %v7397_v25, 7  ;;  %v2716_v17 = vmax.f32 %v2715_v5, %v7543_v33  ;;  %v7619_v25 = vadd.f32 %v6294_v36, %v7429_v55 }
 0x215   :  { %10631 = vst [vmem:[#allocation146_spill] sm:$0xff] %v7484_v60  ;;  %2547 = vmatmul.bf16.gmra.mxu2 %v6826_v7  ;;  %v2618_v5 = vmax.f32 %v2617_v47, %v7575_v52 }
 0x216   :  { %10632 = vst [vmem:[#allocation147_spill] sm:$0xff] %v7487_v12  ;;  %2576 = vmatmul.bf16.gmra.mxu3 %v6826_v7  ;;  %v7559_v12 = vadd.f32 %v6296_v35, %v286_v16  ;;  %v7571_v7 = vadd.f32 %v6330_v2, %v7529_v22  ;;  %v2650_v35 = vmax.f32 %v2649_v43, %v7503_v30 }
 0x217   :  { %10633 = vst [vmem:[#allocation148_spill] sm:$0xff] %v7490_v13  ;;  %v2747_v13 = vmax.f32 %v7514_v23, %v7517_v39  ;;  %v7598_v43 = vadd.f32 %v6365_v24, %v7552_v37  ;;  %v2781_v24 = vmax.f32 %v2780_v8, %v7566_v10  ;;  %v7633_v8 = vld [vmem:[%s10150_s2 + $0x8] sm:$0xff]  ;;  %v7638_v47 = vadd.f32 %v6367_v32, %v7601_v61 }
 0x218   :  { %10634 = vst [vmem:[#allocation149_spill] sm:$0xff] %v7492_v58  ;;  %v2813_v48 = vmax.f32 %v7559_v12, %v7562_v51  ;;  %v7659_v32 = vadd.f32 %v6480_v20, %v7478_v59  ;;  %v7676_v20 = vadd.f32 %v6444_v63, %v7529_v22 }
 0x219   :  { %10635 = vst [vmem:[#allocation150_spill] sm:$0xff] %v7503_v30  ;;  %v2748_v38 = vmax.f32 %v2747_v13, %v7537_v53  ;;  %v7589_v2 = vpop.f32.mrf.mxu3  ;;  %v7591_v16 = vpop.f32.mrf.mxu0  ;;  %v7608_v13 = vadd.f32 %v6258_v9, %v7429_v55 }
 0x21a   :  { %10636 = vst [vmem:[#allocation151_spill] sm:$0xff] %v7505_v34  ;;  %v7603_v29 = vpop.f32.mrf.mxu1 }
 0x21b   :  { %10637 = vst [vmem:[#allocation152_spill] sm:$0xff] %v7511_v46  ;;  %v2749_v9 = vmax.f32 %v2748_v38, %v7608_v13  ;;  %v7654_v38 = vadd.f32 %v6438_v50, %v7552_v37 }
 0x21c   :  { %10638 = vst [vmem:[#allocation153_spill] sm:$0xff] %v7514_v23  ;;  %v2717_v23 = vmax.f32 %v2716_v17, %v7659_v32 }
 0x21d   :  { %10639 = vst [vmem:[#allocation154_spill] sm:$0xff] %v7517_v39  ;;  %v7577_v39 = vpop.f32.mrf.mxu2 }
 0x21e   :  { %10640 = vst [vmem:[#allocation155_spill] sm:$0xff] %v7522_v11 }
 0x21f   :  { %10641 = vst [vmem:[#allocation156_spill] sm:$0xff] %v7526_v56 }
 0x220   :  { %10642 = vst [vmem:[#allocation157_spill] sm:$0xff] %v7537_v53  ;;  %v2814_v53 = vmax.f32 %v2813_v48, %v7583_v28 }
 0x221   :  { %10643 = vst [vmem:[#allocation158_spill] sm:$0xff] %v7543_v33 }
 0x222   :  { %10644 = vst [vmem:[#allocation159_spill] sm:$0xff] %v7546_v1  ;;  %v2586_v1 = vmax.f32 %v2585_v14, %v7571_v7  ;;  %v7642_v14 = vadd.f32 %v6371_v41, %v7529_v22  ;;  %v2782_v41 = vmax.f32 %v2781_v24, %v7619_v25  ;;  %v10671_v24 = vld [vmem:[#allocation12_spill] sm:$0xff] }
 0x223   :  { %10645 = vst [vmem:[#allocation160_spill] sm:$0xff] %v7549_v26  ;;  %v7614_v26 = vadd.f32 %v6442_v62, %v7478_v59  ;;  %v7628_v62 = vadd.f32 %v6403_v18, %v7529_v22  ;;  %v7650_v18 = vadd.f32 %v6326_v0, %v7429_v55  ;;  %v7668_v0 = vperm.slane %v7633_v8, 0 }
 0x224   :  { %10646 = vst [vmem:[#allocation161_spill] sm:$0xff] %v7559_v12  ;;  %v2587_v36 = vmax.f32 %v2586_v1, %v7598_v43  ;;  %v2619_v48 = vmax.f32 %v2618_v5, %v7642_v14  ;;  %v7680_v5 = vadd.f32 %v10671_v24, %v7478_v59 }
 0x225   :  { %10647 = vst [vmem:[#allocation162_spill] sm:$0xff] %v7562_v51  ;;  %v2651_v51 = vmax.f32 %v2650_v35, %v7587_v57  ;;  %v7646_v35 = vadd.f32 %v6397_v6, %v7552_v37  ;;  %v2684_v1 = vmax.f32 %v2683_v40, %v7614_v26  ;;  %v7665_v6 = vadd.f32 %v6510_v15, %v7478_v59  ;;  %v7670_v55 = vpop.f32.mrf.mxu2  ;;  %v7684_v15 = vpop.f32.mrf.mxu0 }
 0x226   :  { %10648 = vst [vmem:[#allocation163_spill] sm:$0xff] %v7566_v10  ;;  %v2815_v50 = vmax.f32 %v2814_v53, %v7650_v18  ;;  %v2588_v12 = vmax.f32 %v2587_v36, %v7638_v47  ;;  %v10674_v53 = vld [vmem:[#allocation2_spill] sm:$0xff]  ;;  %v7696_v10 = vpop.f32.mrf.mxu1 }
 0x227   :  { %10649 = vst [vmem:[#allocation164_spill] sm:$0xff] %v7571_v7  ;;  %v2652_v40 = vmax.f32 %v2651_v51, %v7628_v62  ;;  %v10676_v51 = vld [vmem:[#allocation3_spill] sm:$0xff]  ;;  %v10678_v36 = vld [vmem:[#allocation6_spill] sm:$0xff]  ;;  %v2750_v46 = vmax.f32 %v2749_v9, %v7665_v6  ;;  %v10688_v9 = vld [vmem:[#allocation9_spill] sm:$0xff] }
 0x228   :  { %10650 = vst [vmem:[#allocation165_spill] sm:$0xff] %v7575_v52  ;;  %v7694_v63 = vadd.f32 %v10676_v51, %v7601_v61  ;;  %v7703_v33 = vadd.f32 %v10678_v36, %v7529_v22  ;;  %v10682_v51 = vld [vmem:[#allocation20_spill] sm:$0xff]  ;;  %v2783_v36 = vmax.f32 %v2782_v41, %v7680_v5 }
 0x229   :  { %10651 = vst [vmem:[#allocation166_spill] sm:$0xff] %v7577_v39  ;;  %v2653_v24 = vmax.f32 %v2652_v40, %v7654_v38  ;;  %v7715_v40 = vperm.slane %v7633_v8, 1  ;;  %v10694_v41 = vld [vmem:[#allocation24_spill] sm:$0xff] }
 0x22a   :  { %10652 = vst [vmem:[#allocation167_spill] sm:$0xff] %v7583_v28  ;;  %v7682_v28 = vpop.f32.mrf.mxu3 }
 0x22b   :  { %10653 = vst [vmem:[#allocation168_spill] sm:$0xff] %v7587_v57  ;;  %v2654_v3 = vmax.f32 %v2653_v24, %v7694_v63 }
 0x22c   :  { %10654 = vst [vmem:[#allocation169_spill] sm:$0xff] %v7589_v2 }
 0x22d   :  { %10655 = vst [vmem:[#allocation170_spill] sm:$0xff] %v7591_v16  ;;  %v7759_v30 = vpop.f32.mrf.mxu2 }
 0x22e   :  { %10656 = vst [vmem:[#allocation171_spill] sm:$0xff] %v7598_v43 }
 0x22f   :  { %10657 = vst [vmem:[#allocation172_spill] sm:$0xff] %v7603_v29  ;;  %v10796_v29 = vld [vmem:[#allocation86_spill] sm:$0xff] }
 0x230   :  { %10658 = vst [vmem:[#allocation173_spill] sm:$0xff] %v7608_v13  ;;  %v2685_v13 = vmax.f32 %v2684_v1, %v7676_v20  ;;  %v10684_v1 = vld [vmem:[#allocation7_spill] sm:$0xff] }
 0x231   :  { %10659 = vst [vmem:[#allocation174_spill] sm:$0xff] %v7614_v26  ;;  %v7712_v26 = vadd.f32 %v10682_v51, %v7668_v0  ;;  %v7719_v17 = vadd.f32 %v10684_v1, %v7552_v37  ;;  %v7731_v51 = vadd.f32 %v10688_v9, %v7529_v22  ;;  %v10692_v1 = vld [vmem:[#allocation16_spill] sm:$0xff]  ;;  %v10696_v9 = vld [vmem:[#allocation14_spill] sm:$0xff] }
 0x232   :  { %10660 = vst [vmem:[#allocation175_spill] sm:$0xff] %v7619_v25  ;;  %v2620_v25 = vmax.f32 %v2619_v48, %v7646_v35  ;;  %v10680_v48 = vld [vmem:[#allocation4_spill] sm:$0xff]  ;;  %v7739_v60 = vadd.f32 %v10692_v1, %v7478_v59  ;;  %v10698_v1 = vld [vmem:[#allocation21_spill] sm:$0xff] }
 0x233   :  { %10661 = vst [vmem:[#allocation176_spill] sm:$0xff] %v7628_v62  ;;  %v7750_v62 = vadd.f32 %v10696_v9, %v7552_v37  ;;  %v2751_v57 = vmax.f32 %v2750_v46, %v7731_v51  ;;  %v2589_v59 = vmax.f32 %v2588_v12, %v7712_v26  ;;  %v7770_v46 = vpop.f32.mrf.mxu3  ;;  %v7772_v12 = vpop.f32.mrf.mxu0 }
 0x234   :  { %10662 = vst [vmem:[#allocation177_spill] sm:$0xff] %v7638_v47  ;;  %v10746_v47 = vld [vmem:[#allocation53_spill] sm:$0xff] }
 0x235   :  { %10663 = vst [vmem:[#allocation178_spill] sm:$0xff] %v7642_v14 }
 0x236   :  { %10664 = vst [vmem:[#allocation179_spill] sm:$0xff] %v7646_v35 }
 0x237   :  { %10665 = vst [vmem:[#allocation180_spill] sm:$0xff] %v7650_v18  ;;  %v7690_v18 = vadd.f32 %v10674_v53, %v7601_v61  ;;  %v7707_v53 = vadd.f32 %v10680_v48, %v7552_v37  ;;  %v7727_v48 = vperm.slane %v7633_v8, 2 }
 0x238   :  { %10666 = vst [vmem:[#allocation181_spill] sm:$0xff] %v7654_v38  ;;  %v2718_v38 = vmax.f32 %v2717_v23, %v7703_v33  ;;  %v10700_v23 = vld [vmem:[#allocation8_spill] sm:$0xff] }
 0x239   :  { %10667 = vst [vmem:[#allocation182_spill] sm:$0xff] %v7659_v32  ;;  %v10686_v32 = vld [vmem:[#allocation13_spill] sm:$0xff]  ;;  %v7764_v24 = vadd.f32 %v10700_v23, %v7601_v61 }
 0x23a   :  { %10668 = vst [vmem:[#allocation183_spill] sm:$0xff] %v7665_v6  ;;  %v10690_v6 = vld [vmem:[#allocation10_spill] sm:$0xff] }
 0x23b   :  { %10669 = vst [vmem:[#allocation184_spill] sm:$0xff] %v7670_v55  ;;  %v7735_v11 = vadd.f32 %v10690_v6, %v7552_v37  ;;  %v2686_v6 = vmax.f32 %v2685_v13, %v7707_v53  ;;  %v7768_v13 = vperm.slane %v7633_v8, 3 }
 0x23c   :  { %10670 = vst [vmem:[#allocation185_spill] sm:$0xff] %v7676_v20  ;;  %v7724_v20 = vadd.f32 %v10686_v32, %v7529_v22  ;;  %v2621_v32 = vmax.f32 %v2620_v25, %v7690_v18  ;;  %v2719_v25 = vmax.f32 %v2718_v38, %v7719_v17 }
 0x23d   :  { %10672 = vst [vmem:[#allocation12_spill] sm:$0xff] %v7680_v5  ;;  %v7743_v5 = vadd.f32 %v10694_v41, %v7668_v0  ;;  %v7757_v41 = vadd.f32 %v10698_v1, %v7715_v40  ;;  %v2752_v1 = vmax.f32 %v2751_v57, %v7735_v11  ;;  %v10708_v57 = vld [vmem:[#allocation18_spill] sm:$0xff] }
 0x23e   :  { %10673 = vst [vmem:[#allocation186_spill] sm:$0xff] %v7682_v28  ;;  %v2784_v9 = vmax.f32 %v2783_v36, %v7724_v20  ;;  %v2720_v14 = vmax.f32 %v2719_v25, %v7764_v24 }
 0x23f   :  { %10675 = vst [vmem:[#allocation2_spill] sm:$0xff] %v7690_v18  ;;  %v2622_v23 = vmax.f32 %v2621_v32, %v7743_v5  ;;  %v10710_v32 = vld [vmem:[#allocation25_spill] sm:$0xff]  ;;  %v10722_v18 = vld [vmem:[#allocation23_spill] sm:$0xff] }
 0x240   :  { %10677 = vst [vmem:[#allocation3_spill] sm:$0xff] %v7694_v63  ;;  %v2785_v36 = vmax.f32 %v2784_v9, %v7750_v62  ;;  %v10706_v63 = vld [vmem:[#allocation17_spill] sm:$0xff]  ;;  %v10712_v9 = vld [vmem:[#allocation26_spill] sm:$0xff]  ;;  %v7828_v35 = vadd.f32 %v10722_v18, %v7768_v13 }
 0x241   :  { %10679 = vst [vmem:[#allocation6_spill] sm:$0xff] %v7703_v33  ;;  %v10702_v33 = vld [vmem:[#allocation22_spill] sm:$0xff]  ;;  %v7790_v31 = vadd.f32 %v10706_v63, %v7529_v22  ;;  %v10716_v22 = vld [vmem:[#allocation5_spill] sm:$0xff] }
 0x242   :  { %10681 = vst [vmem:[#allocation4_spill] sm:$0xff] %v7707_v53  ;;  %v7778_v38 = vadd.f32 %v10702_v33, %v7727_v48  ;;  %v2590_v33 = vmax.f32 %v2589_v59, %v7757_v41  ;;  %v7811_v63 = vadd.f32 %v10716_v22, %v7601_v61  ;;  %v10720_v59 = vld [vmem:[#allocation32_spill] sm:$0xff]  ;;  %v10724_v18 = vld [vmem:[#allocation29_spill] sm:$0xff] }
 0x243   :  { %10683 = vst [vmem:[#allocation20_spill] sm:$0xff] %v7712_v26 }
 0x244   :  { %10685 = vst [vmem:[#allocation7_spill] sm:$0xff] %v7719_v17  ;;  %v7781_v17 = vpop.f32.mrf.mxu1 }
 0x245   :  { %10687 = vst [vmem:[#allocation13_spill] sm:$0xff] %v7724_v20  ;;  %v10704_v20 = vld [vmem:[#allocation15_spill] sm:$0xff] }
 0x246   :  { %10689 = vst [vmem:[#allocation9_spill] sm:$0xff] %v7731_v51  ;;  %v2816_v51 = vmax.f32 %v2815_v50, %v7739_v60  ;;  %v7786_v53 = vadd.f32 %v10704_v20, %v7601_v61  ;;  %v7794_v50 = vadd.f32 %v10708_v57, %v7552_v37  ;;  %v10714_v20 = vld [vmem:[#allocation28_spill] sm:$0xff]  ;;  %v10718_v37 = vld [vmem:[#allocation11_spill] sm:$0xff] }
 0x247   :  { %10691 = vst [vmem:[#allocation10_spill] sm:$0xff] %v7735_v11  ;;  %v7807_v11 = vadd.f32 %v10714_v20, %v7668_v0  ;;  %v7815_v57 = vadd.f32 %v10718_v37, %v7601_v61  ;;  %v2591_v20 = vmax.f32 %v2590_v33, %v7778_v38  ;;  %v2687_v37 = vmax.f32 %v2686_v6, %v7811_v63  ;;  %v10726_v6 = vld [vmem:[#allocation19_spill] sm:$0xff] }
 0x248   :  { %10693 = vst [vmem:[#allocation16_spill] sm:$0xff] %v7739_v60  ;;  %v7799_v60 = vadd.f32 %v10710_v32, %v7715_v40  ;;  %v7819_v32 = vadd.f32 %v10720_v59, %v7668_v0  ;;  %v2786_v52 = vmax.f32 %v2785_v36, %v7786_v53  ;;  %v7848_v25 = vadd.f32 %v10726_v6, %v7601_v61  ;;  %v10728_v36 = vld [vmem:[#allocation52_spill] sm:$0xff]  ;;  %v10732_v61 = vld [vmem:[#allocation30_spill] sm:$0xff] }
 0x249   :  { %10695 = vst [vmem:[#allocation24_spill] sm:$0xff] %v7743_v5  ;;  %v7822_v5 = vperm.slane %v7633_v8, 4  ;;  %v2753_v59 = vmax.f32 %v2752_v1, %v7815_v57  ;;  %v2655_v33 = vmax.f32 %v2654_v3, %v7807_v11  ;;  %v7858_v3 = vpop.f32.mrf.mxu3  ;;  %v10734_v6 = vld [vmem:[#allocation36_spill] sm:$0xff] }
 0x24a   :  { %10697 = vst [vmem:[#allocation14_spill] sm:$0xff] %v7750_v62  ;;  %v7803_v62 = vadd.f32 %v10712_v9, %v7727_v48  ;;  %v2817_v9 = vmax.f32 %v2816_v51, %v7790_v31  ;;  %v2623_v22 = vmax.f32 %v2622_v23, %v7799_v60  ;;  %v7844_v23 = vpop.f32.mrf.mxu2  ;;  %v2688_v1 = vmax.f32 %v2687_v37, %v7819_v32 }
 0x24b   :  { %10699 = vst [vmem:[#allocation21_spill] sm:$0xff] %v7757_v41  ;;  %v7869_v37 = vadd.f32 %v10732_v61, %v7727_v48  ;;  %v7890_v61 = vperm.slane %v7633_v8, 6 }
 0x24c   :  { %10701 = vst [vmem:[#allocation8_spill] sm:$0xff] %v7764_v24  ;;  %v7836_v42 = vmax.f32 %v2817_v9, %v7794_v50  ;;  %v2624_v51 = vmax.f32 %v2623_v22, %v7803_v62  ;;  %v7853_v9 = vadd.f32 %v10728_v36, %v7822_v5  ;;  %v7856_v22 = vperm.slane %v7633_v8, 5  ;;  %v7875_v24 = vpop.f32.mrf.mxu1 }
 0x24d   :  { %10703 = vst [vmem:[#allocation22_spill] sm:$0xff] %v7778_v38  ;;  %v7873_v36 = vadd.f32 %v10734_v6, %v7668_v0 }
 0x24e   :  { %10705 = vst [vmem:[#allocation15_spill] sm:$0xff] %v7786_v53  ;;  %v10730_v53 = vld [vmem:[#allocation27_spill] sm:$0xff]  ;;  %v2819_v6 = vmax.f32 %v7836_v42, %v7848_v25  ;;  %v7908_v43 = vadd.f32 %v10746_v47, %v7856_v22 }
 0x24f   :  { %10707 = vst [vmem:[#allocation17_spill] sm:$0xff] %v7790_v31  ;;  %v7842_v31 = vadd.f32 %v10724_v18, %v7715_v40  ;;  %v2592_v18 = vmax.f32 %v2591_v20, %v7828_v35  ;;  %v10738_v20 = vld [vmem:[#allocation34_spill] sm:$0xff] }
 0x250   :  { %10709 = vst [vmem:[#allocation18_spill] sm:$0xff] %v7794_v50  ;;  %v7860_v50 = vpop.f32.mrf.mxu0 }
 0x251   :  { %10711 = vst [vmem:[#allocation25_spill] sm:$0xff] %v7799_v60  ;;  %v2593_v26 = vmax.f32 %v2592_v18, %v7853_v9  ;;  %v10752_v18 = vld [vmem:[#allocation54_spill] sm:$0xff] }
 0x252   :  { %10713 = vst [vmem:[#allocation26_spill] sm:$0xff] %v7803_v62 }
 0x253   :  { %10715 = vst [vmem:[#allocation28_spill] sm:$0xff] %v7807_v11  ;;  %v7883_v11 = vadd.f32 %v10738_v20, %v7727_v48  ;;  %v10744_v20 = vld [vmem:[#allocation31_spill] sm:$0xff] }
 0x254   :  { %10717 = vst [vmem:[#allocation5_spill] sm:$0xff] %v7811_v63  ;;  %v7902_v41 = vadd.f32 %v10744_v20, %v7768_v13 }
 0x255   :  { %10719 = vst [vmem:[#allocation11_spill] sm:$0xff] %v7815_v57  ;;  %v7865_v57 = vadd.f32 %v10730_v53, %v7768_v13  ;;  %v10740_v53 = vld [vmem:[#allocation40_spill] sm:$0xff] }
 0x256   :  { %10721 = vst [vmem:[#allocation32_spill] sm:$0xff] %v7819_v32  ;;  %v10736_v32 = vld [vmem:[#allocation33_spill] sm:$0xff]  ;;  %v7887_v62 = vadd.f32 %v10740_v53, %v7668_v0 }
 0x257   :  { %10723 = vst [vmem:[#allocation23_spill] sm:$0xff] %v7828_v35  ;;  %v7879_v63 = vadd.f32 %v10736_v32, %v7715_v40  ;;  %v2625_v60 = vmax.f32 %v2624_v51, %v7865_v57  ;;  %v2656_v35 = vmax.f32 %v2655_v33, %v7842_v31  ;;  %v10742_v32 = vld [vmem:[#allocation44_spill] sm:$0xff]  ;;  %v10748_v51 = vld [vmem:[#allocation35_spill] sm:$0xff] }
 0x258   :  { %10725 = vst [vmem:[#allocation29_spill] sm:$0xff] %v7842_v31  ;;  %v7898_v38 = vadd.f32 %v10742_v32, %v7668_v0  ;;  %v7913_v33 = vadd.f32 %v10748_v51, %v7768_v13  ;;  %v2721_v32 = vmax.f32 %v2720_v14, %v7873_v36  ;;  %v7931_v51 = vadd.f32 %v10752_v18, %v7890_v61  ;;  %v10760_v18 = vld [vmem:[#allocation41_spill] sm:$0xff] }
 0x259   :  { %10727 = vst [vmem:[#allocation19_spill] sm:$0xff] %v7848_v25  ;;  %v2689_v53 = vmax.f32 %v2688_v1, %v7879_v63  ;;  %v2657_v42 = vmax.f32 %v2656_v35, %v7869_v37  ;;  %v10750_v25 = vld [vmem:[#allocation37_spill] sm:$0xff]  ;;  %v7923_v1 = vld [vmem:[%s10150_s2 + $0x10] sm:$0xff]  ;;  %v2754_v35 = vmax.f32 %v2753_v59, %v7887_v62  ;;  %v7934_v14 = vperm.slane %v7633_v8, 7 }
 0x25a   :  { %10729 = vst [vmem:[#allocation52_spill] sm:$0xff] %v7853_v9  ;;  %v7918_v20 = vadd.f32 %v10750_v25, %v7715_v40  ;;  %v10754_v25 = vld [vmem:[#allocation38_spill] sm:$0xff]  ;;  %v7953_v8 = vadd.f32 %v10760_v18, %v7715_v40 }
 0x25b   :  { %10731 = vst [vmem:[#allocation27_spill] sm:$0xff] %v7865_v57  ;;  %v7926_v47 = vmax.f32 %v2689_v53, %v7883_v11  ;;  %v10758_v53 = vld [vmem:[#allocation56_spill] sm:$0xff]  ;;  %v7965_v57 = vpop.f32.mrf.mxu0  ;;  %v10764_v18 = vld [vmem:[#allocation46_spill] sm:$0xff] }
 0x25c   :  { %10733 = vst [vmem:[#allocation30_spill] sm:$0xff] %v7869_v37  ;;  %v10756_v37 = vld [vmem:[#allocation45_spill] sm:$0xff]  ;;  %v7947_v59 = vadd.f32 %v10758_v53, %v7822_v5  ;;  %v2658_v53 = vmax.f32 %v2657_v42, %v7902_v41  ;;  %v2722_v9 = vmax.f32 %v2721_v32, %v7918_v20  ;;  %v7971_v7 = vadd.f32 %v10764_v18, %v7727_v48  ;;  %v10768_v42 = vld [vmem:[#allocation55_spill] sm:$0xff] }
 0x25d   :  { %10735 = vst [vmem:[#allocation36_spill] sm:$0xff] %v7873_v36  ;;  %v7938_v36 = vadd.f32 %v10754_v25, %v7727_v48  ;;  %v7943_v31 = vadd.f32 %v10756_v37, %v7715_v40  ;;  %v7963_v37 = vpop.f32.mrf.mxu3  ;;  %v2755_v45 = vmax.f32 %v2754_v35, %v7953_v8  ;;  %v7985_v32 = vadd.f32 %v10768_v42, %v7934_v14  ;;  %v10772_v35 = vld [vmem:[#allocation47_spill] sm:$0xff]  ;;  %v10774_v42 = vld [vmem:[#allocation84_spill] sm:$0xff] }
 0x25e   :  { %10737 = vst [vmem:[#allocation33_spill] sm:$0xff] %v7879_v63  ;;  %v2787_v63 = vmax.f32 %v2786_v52, %v7898_v38  ;;  %v2594_v52 = vmax.f32 %v2593_v26, %v7908_v43  ;;  %v7977_v26 = vpop.f32.mrf.mxu1 }
 0x25f   :  { %10739 = vst [vmem:[#allocation34_spill] sm:$0xff] %v7883_v11  ;;  %v10762_v11 = vld [vmem:[#allocation42_spill] sm:$0xff]  ;;  %v2723_v18 = vmax.f32 %v2722_v9, %v7938_v36  ;;  %v8006_v9 = vperm.slane %v7923_v1, 1 }
 0x260   :  { %10741 = vst [vmem:[#allocation40_spill] sm:$0xff] %v7887_v62  ;;  %v7949_v62 = vpop.f32.mrf.mxu2  ;;  %v7957_v25 = vadd.f32 %v10762_v11, %v7727_v48  ;;  %v10766_v11 = vld [vmem:[#allocation48_spill] sm:$0xff]  ;;  %v2595_v28 = vmax.f32 %v2594_v52, %v7931_v51  ;;  %v7999_v52 = vadd.f32 %v10772_v35, %v7768_v13 }
 0x261   :  { %10743 = vst [vmem:[#allocation44_spill] sm:$0xff] %v7898_v38  ;;  %v7961_v38 = vperm.slane %v7923_v1, 0  ;;  %v7975_v56 = vadd.f32 %v10766_v11, %v7668_v0  ;;  %v2788_v0 = vmax.f32 %v2787_v63, %v7943_v31  ;;  %v2626_v11 = vmax.f32 %v2625_v60, %v7947_v59  ;;  %v10776_v60 = vld [vmem:[#allocation57_spill] sm:$0xff] }
 0x262   :  { %10745 = vst [vmem:[#allocation31_spill] sm:$0xff] %v7902_v41 }
 0x263   :  { %10747 = vst [vmem:[#allocation53_spill] sm:$0xff] %v7908_v43  ;;  %v2691_v43 = vmax.f32 %v7926_v47, %v7913_v33  ;;  %v7995_v47 = vmax.f32 %v2755_v45, %v7957_v25  ;;  %v2820_v63 = vmax.f32 %v2819_v6, %v7975_v56  ;;  %v8014_v45 = vadd.f32 %v10776_v60, %v7856_v22 }
 0x264   :  { %10749 = vst [vmem:[#allocation35_spill] sm:$0xff] %v7913_v33  ;;  %v10782_v33 = vld [vmem:[#allocation60_spill] sm:$0xff]  ;;  %v8030_v6 = vperm.slane %v7923_v1, 2 }
 0x265   :  { %10751 = vst [vmem:[#allocation37_spill] sm:$0xff] %v7918_v20  ;;  %v10770_v20 = vld [vmem:[#allocation39_spill] sm:$0xff] }
 0x266   :  { %10753 = vst [vmem:[#allocation54_spill] sm:$0xff] %v7931_v51  ;;  %v7990_v41 = vadd.f32 %v10770_v20, %v7768_v13  ;;  %v8009_v20 = vmax.f32 %v2788_v0, %v7971_v7  ;;  %v8027_v0 = vadd.f32 %v10782_v33, %v7822_v5  ;;  %v8076_v2 = vadd.f32 %v10796_v29, %v8030_v6 }
 0x267   :  { %10755 = vst [vmem:[#allocation38_spill] sm:$0xff] %v7938_v36  ;;  %v2596_v36 = vmax.f32 %v2595_v28, %v7985_v32 }
 0x268   :  { %10757 = vst [vmem:[#allocation45_spill] sm:$0xff] %v7943_v31  ;;  %v10778_v31 = vld [vmem:[#allocation58_spill] sm:$0xff]  ;;  %v2724_v60 = vmax.f32 %v2723_v18, %v7990_v41  ;;  %v8042_v28 = vpop.f32.mrf.mxu2 }
 0x269   :  { %10759 = vst [vmem:[#allocation56_spill] sm:$0xff] %v7947_v59  ;;  %v8018_v35 = vadd.f32 %v10778_v31, %v7890_v61  ;;  %v2627_v31 = vmax.f32 %v2626_v11, %v8014_v45  ;;  %v8055_v11 = vpop.f32.mrf.mxu3 }
 0x26a   :  { %10761 = vst [vmem:[#allocation41_spill] sm:$0xff] %v7953_v8  ;;  %v8003_v8 = vadd.f32 %v10774_v42, %v7961_v38 }
 0x26b   :  { %10763 = vst [vmem:[#allocation42_spill] sm:$0xff] %v7957_v25  ;;  %v10780_v25 = vld [vmem:[#allocation43_spill] sm:$0xff] }
 0x26c   :  { %10765 = vst [vmem:[#allocation46_spill] sm:$0xff] %v7971_v7  ;;  %v8022_v42 = vadd.f32 %v10780_v25, %v7768_v13  ;;  %v10786_v25 = vld [vmem:[#allocation64_spill] sm:$0xff]  ;;  %v2597_v18 = vmax.f32 %v2596_v36, %v8003_v8  ;;  %v8067_v36 = vpop.f32.mrf.mxu1 }
 0x26d   :  { %10767 = vst [vmem:[#allocation48_spill] sm:$0xff] %v7975_v56  ;;  %v10784_v56 = vld [vmem:[#allocation49_spill] sm:$0xff]  ;;  %v8040_v59 = vadd.f32 %v10786_v25, %v7822_v5  ;;  %v2790_v25 = vmax.f32 %v8009_v20, %v7999_v52  ;;  %v8079_v20 = vperm.slane %v7923_v1, 3 }
 0x26e   :  { %10769 = vst [vmem:[#allocation55_spill] sm:$0xff] %v7985_v32  ;;  %v8035_v7 = vadd.f32 %v10784_v56, %v7715_v40  ;;  %v2757_v33 = vmax.f32 %v7995_v47, %v8022_v42  ;;  %v10788_v32 = vld [vmem:[#allocation68_spill] sm:$0xff]  ;;  %v10790_v56 = vld [vmem:[#allocation85_spill] sm:$0xff]  ;;  %v10792_v47 = vld [vmem:[#allocation50_spill] sm:$0xff] }
 0x26f   :  { %10771 = vst [vmem:[#allocation39_spill] sm:$0xff] %v7990_v41  ;;  %v8048_v51 = vadd.f32 %v10788_v32, %v7822_v5  ;;  %v8053_v40 = vadd.f32 %v10790_v56, %v8006_v9  ;;  %v8057_v41 = vpop.f32.mrf.mxu0  ;;  %v2628_v32 = vmax.f32 %v2627_v31, %v8018_v35  ;;  %v2659_v56 = vmax.f32 %v2658_v53, %v8027_v0  ;;  %v10800_v31 = vld [vmem:[#allocation62_spill] sm:$0xff] }
 0x270   :  { %10773 = vst [vmem:[#allocation47_spill] sm:$0xff] %v7999_v52  ;;  %v2692_v53 = vmax.f32 %v2691_v43, %v8040_v59  ;;  %v10804_v52 = vld [vmem:[#allocation69_spill] sm:$0xff] }
 0x271   :  { %10775 = vst [vmem:[#allocation84_spill] sm:$0xff] %v8003_v8  ;;  %v10794_v8 = vld [vmem:[#allocation61_spill] sm:$0xff]  ;;  %v2725_v29 = vmax.f32 %v2724_v60, %v8048_v51  ;;  %v10810_v60 = vld [vmem:[#allocation66_spill] sm:$0xff] }
 0x272   :  { %10777 = vst [vmem:[#allocation57_spill] sm:$0xff] %v8014_v45  ;;  %v2821_v45 = vmax.f32 %v2820_v63, %v8035_v7  ;;  %v8072_v55 = vadd.f32 %v10794_v8, %v7856_v22  ;;  %v10802_v8 = vld [vmem:[#allocation88_spill] sm:$0xff] }
 0x273   :  { %10779 = vst [vmem:[#allocation58_spill] sm:$0xff] %v8018_v35  ;;  %v2598_v35 = vmax.f32 %v2597_v18, %v8053_v40  ;;  %v10812_v18 = vld [vmem:[#allocation70_spill] sm:$0xff] }
 0x274   :  { %10781 = vst [vmem:[#allocation43_spill] sm:$0xff] %v8022_v42  ;;  %v8064_v42 = vadd.f32 %v10792_v47, %v7727_v48  ;;  %v10798_v48 = vld [vmem:[#allocation59_spill] sm:$0xff]  ;;  %v8087_v47 = vadd.f32 %v10800_v31, %v7890_v61 }
 0x275   :  { %10783 = vst [vmem:[#allocation60_spill] sm:$0xff] %v8027_v0  ;;  %v8083_v63 = vadd.f32 %v10798_v48, %v7934_v14  ;;  %v8097_v0 = vadd.f32 %v10804_v52, %v7856_v22  ;;  %v8101_v48 = vperm.slane %v7923_v1, 4  ;;  %v10806_v31 = vld [vmem:[#allocation51_spill] sm:$0xff]  ;;  %v2660_v52 = vmax.f32 %v2659_v56, %v8072_v55 }
 0x276   :  { %10785 = vst [vmem:[#allocation49_spill] sm:$0xff] %v8035_v7  ;;  %v8092_v7 = vadd.f32 %v10802_v8, %v7961_v38  ;;  %v8105_v16 = vadd.f32 %v10806_v31, %v7768_v13  ;;  %v10808_v8 = vld [vmem:[#allocation65_spill] sm:$0xff]  ;;  %v2599_v39 = vmax.f32 %v2598_v35, %v8076_v2  ;;  %v10814_v13 = vld [vmem:[#allocation87_spill] sm:$0xff] }
 0x277   :  { %10787 = vst [vmem:[#allocation64_spill] sm:$0xff] %v8040_v59  ;;  %v2629_v43 = vmax.f32 %v2628_v32, %v8083_v63  ;;  %v8110_v59 = vadd.f32 %v10808_v8, %v7856_v22  ;;  %v8124_v31 = vadd.f32 %v10814_v13, %v8079_v20  ;;  %v8127_v32 = vmax.f32 %v2821_v45, %v8064_v42  ;;  %v10816_v8 = vld [vmem:[#allocation63_spill] sm:$0xff] }
 0x278   :  { %10789 = vst [vmem:[#allocation68_spill] sm:$0xff] %v8048_v51  ;;  %v8114_v51 = vadd.f32 %v10810_v60, %v7890_v61  ;;  %v2726_v35 = vmax.f32 %v2725_v29, %v8097_v0  ;;  %v8141_v13 = vadd.f32 %v7356_v21, %v8101_v48  ;;  %v8144_v45 = vperm.slane %v7923_v1, 5  ;;  %v10825_v21 = vld [vmem:[#allocation90_spill] sm:$0xff] }
 0x279   :  { %10791 = vst [vmem:[#allocation85_spill] sm:$0xff] %v8053_v40  ;;  %v8119_v40 = vadd.f32 %v10812_v18, %v7890_v61  ;;  %v2693_v60 = vmax.f32 %v2692_v53, %v8110_v59  ;;  %v2630_v56 = vmax.f32 %v2629_v43, %v8092_v7  ;;  %v2661_v18 = vmax.f32 %v2660_v52, %v8087_v47  ;;  %v10821_v43 = vld [vmem:[#allocation72_spill] sm:$0xff]  ;;  %v10823_v52 = vld [vmem:[#allocation89_spill] sm:$0xff] }
 0x27a   :  { %10793 = vst [vmem:[#allocation50_spill] sm:$0xff] %v8064_v42  ;;  %v8146_v42 = vpop.f32.mrf.mxu3  ;;  %v8157_v29 = vadd.f32 %v10823_v52, %v8006_v9  ;;  %v8195_v52 = vadd.f32 %v7358_v54, %v8144_v45  ;;  %v10839_v54 = vld [vmem:[#allocation74_spill] sm:$0xff] }
 0x27b   :  { %10795 = vst [vmem:[#allocation61_spill] sm:$0xff] %v8072_v55  ;;  %v8135_v55 = vpop.f32.mrf.mxu2  ;;  %v2694_v53 = vmax.f32 %v2693_v60, %v8114_v51 }
 0x27c   :  { %10797 = vst [vmem:[#allocation86_spill] sm:$0xff] %v8076_v2  ;;  %v10828_v2 = vld [vmem:[#allocation71_spill] sm:$0xff] }
 0x27d   :  { %10799 = vst [vmem:[#allocation59_spill] sm:$0xff] %v8083_v63  ;;  %v8131_v63 = vadd.f32 %v10816_v8, %v7934_v14  ;;  %v8148_v8 = vpop.f32.mrf.mxu0  ;;  %v8170_v60 = vadd.f32 %v10828_v2, %v7934_v14 }
 0x27e   :  { %10801 = vst [vmem:[#allocation62_spill] sm:$0xff] %v8087_v47  ;;  %v8163_v47 = vpop.f32.mrf.mxu1 }
 0x27f   :  { %10803 = vst [vmem:[#allocation88_spill] sm:$0xff] %v8092_v7  ;;  %v8166_v7 = vmax.f32 %v2726_v35, %v8119_v40  ;;  %v2662_v2 = vmax.f32 %v2661_v18, %v8131_v63  ;;  %v8207_v18 = vld [vmem:[%s10150_s2 + $0x18] sm:$0xff] }
 0x280   :  { %10805 = vst [vmem:[#allocation69_spill] sm:$0xff] %v8097_v0  ;;  %v8161_v0 = vadd.f32 %v10825_v21, %v8030_v6  ;;  %v10830_v21 = vld [vmem:[#allocation67_spill] sm:$0xff] }
 0x281   :  { %10807 = vst [vmem:[#allocation51_spill] sm:$0xff] %v8105_v16 }
 0x282   :  { %10809 = vst [vmem:[#allocation65_spill] sm:$0xff] %v8110_v59  ;;  %v8153_v59 = vadd.f32 %v10821_v43, %v7822_v5  ;;  %v2600_v43 = vmax.f32 %v2599_v39, %v8124_v31  ;;  %v10834_v39 = vld [vmem:[#allocation92_spill] sm:$0xff] }
 0x283   :  { %10811 = vst [vmem:[#allocation66_spill] sm:$0xff] %v8114_v51  ;;  %v8174_v51 = vperm.slane %v7923_v1, 6 }
 0x284   :  { %10813 = vst [vmem:[#allocation70_spill] sm:$0xff] %v8119_v40  ;;  %v2631_v40 = vmax.f32 %v2630_v56, %v8157_v29  ;;  %v2758_v34 = vmax.f32 %v2757_v33, %v8153_v59 }
 0x285   :  { %10815 = vst [vmem:[#allocation87_spill] sm:$0xff] %v8124_v31  ;;  %v8190_v31 = vadd.f32 %v10834_v39, %v7961_v38  ;;  %v8213_v39 = vadd.f32 %v10839_v54, %v7890_v61  ;;  %v8217_v33 = vadd.f32 %v7364_v49, %v8174_v51  ;;  %v8233_v54 = vadd.f32 %v7368_v4, %v8101_v48 }
 0x286   :  { %10817 = vst [vmem:[#allocation63_spill] sm:$0xff] %v8131_v63  ;;  %v2632_v56 = vmax.f32 %v2631_v40, %v8161_v0 }
 0x287   :  { %10818 = vst [vmem:[#allocation187_spill] sm:$0xff] %v8141_v13  ;;  %v2663_v49 = vmax.f32 %v2662_v2, %v8190_v31  ;;  %v10853_v2 = vld [vmem:[#allocation78_spill] sm:$0xff] }
 0x288   :  { %10819 = vst [vmem:[#allocation188_spill] sm:$0xff] %v8146_v42  ;;  %v8180_v42 = vadd.f32 %v10830_v21, %v7934_v14 }
 0x289   :  { %10820 = vst [vmem:[#allocation189_spill] sm:$0xff] %v8148_v8  ;;  %v2601_v8 = vmax.f32 %v2600_v43, %v8141_v13  ;;  %v2728_v43 = vmax.f32 %v8166_v7, %v8170_v60 }
 0x28a   :  { %10822 = vst [vmem:[#allocation72_spill] sm:$0xff] %v8153_v59  ;;  %v2695_v21 = vmax.f32 %v2694_v53, %v8180_v42  ;;  %v8220_v53 = vperm.slane %v7923_v1, 7  ;;  %v10847_v1 = vld [vmem:[#allocation93_spill] sm:$0xff] }
 0x28b   :  { %10824 = vst [vmem:[#allocation89_spill] sm:$0xff] %v8157_v29  ;;  %v8240_v63 = vadd.f32 %v10847_v1, %v8006_v9 }
 0x28c   :  { %10826 = vst [vmem:[#allocation90_spill] sm:$0xff] %v8161_v0  ;;  %v10851_v0 = vld [vmem:[#allocation75_spill] sm:$0xff] }
 0x28d   :  { %10827 = vst [vmem:[#allocation190_spill] sm:$0xff] %v8163_v47  ;;  %v10832_v47 = vld [vmem:[#allocation76_spill] sm:$0xff]  ;;  %v8253_v29 = vadd.f32 %v10851_v0, %v7934_v14  ;;  %v8273_v0 = vadd.f32 %v7366_v19, %v8220_v53 }
 0x28e   :  { %10829 = vst [vmem:[#allocation71_spill] sm:$0xff] %v8170_v60  ;;  %v8184_v35 = vadd.f32 %v10832_v47, %v7822_v5  ;;  %v10837_v47 = vld [vmem:[#allocation73_spill] sm:$0xff]  ;;  %v8235_v60 = vpop.f32.mrf.mxu2 }
 0x28f   :  { %10831 = vst [vmem:[#allocation67_spill] sm:$0xff] %v8180_v42  ;;  %v8201_v58 = vadd.f32 %v10837_v47, %v7856_v22  ;;  %v10842_v47 = vld [vmem:[#allocation77_spill] sm:$0xff]  ;;  %v10844_v42 = vld [vmem:[#allocation91_spill] sm:$0xff] }
 0x290   :  { %10833 = vst [vmem:[#allocation76_spill] sm:$0xff] %v8184_v35  ;;  %v2791_v40 = vmax.f32 %v2790_v25, %v8184_v35  ;;  %v8225_v59 = vadd.f32 %v10842_v47, %v7856_v22  ;;  %v8229_v7 = vadd.f32 %v10844_v42, %v8079_v20  ;;  %v2602_v25 = vmax.f32 %v2601_v8, %v8195_v52  ;;  %v8246_v35 = vpop.f32.mrf.mxu3  ;;  %v8248_v42 = vpop.f32.mrf.mxu0 }
 0x291   :  { %10835 = vst [vmem:[#allocation92_spill] sm:$0xff] %v8190_v31  ;;  %v8244_v47 = vperm.slane %v8207_v18, 0  ;;  %v2759_v4 = vmax.f32 %v2758_v34, %v8201_v58  ;;  %v8257_v31 = vadd.f32 %v10853_v2, %v7890_v61  ;;  %v8260_v8 = vpop.f32.mrf.mxu1 }
 0x292   :  { %10836 = vst [vmem:[#allocation191_spill] sm:$0xff] %v8195_v52  ;;  %v2633_v1 = vmax.f32 %v2632_v56, %v8229_v7  ;;  %v10856_v52 = vld [vmem:[#allocation94_spill] sm:$0xff]  ;;  %v2603_v34 = vmax.f32 %v2602_v25, %v8217_v33  ;;  %v2792_v56 = vmax.f32 %v2791_v40, %v8225_v59  ;;  %v2664_v25 = vmax.f32 %v2663_v49, %v8240_v63  ;;  %v10870_v49 = vld [vmem:[#allocation117_spill] sm:$0xff] }
 0x293   :  { %10838 = vst [vmem:[#allocation73_spill] sm:$0xff] %v8201_v58  ;;  %v8264_v13 = vadd.f32 %v10856_v52, %v8030_v6  ;;  %v8276_v2 = vmax.f32 %v2759_v4, %v8213_v39  ;;  %v10861_v58 = vld [vmem:[#allocation79_spill] sm:$0xff]  ;;  %v8291_v19 = vadd.f32 %v7684_v15, %v8244_v47  ;;  %v8294_v4 = vperm.slane %v8207_v18, 1 }
 0x294   :  { %10840 = vst [vmem:[#allocation74_spill] sm:$0xff] %v8213_v39  ;;  %v2634_v52 = vmax.f32 %v2633_v1, %v8233_v54  ;;  %v8297_v40 = vmax.f32 %v2792_v56, %v8257_v31  ;;  %v10868_v1 = vld [vmem:[#allocation116_spill] sm:$0xff]  ;;  %v8315_v56 = vperm.slane %v8207_v18, 2 }
 0x295   :  { %10841 = vst [vmem:[#allocation192_spill] sm:$0xff] %v8217_v33  ;;  %v2665_v15 = vmax.f32 %v2664_v25, %v8264_v13 }
 0x296   :  { %10843 = vst [vmem:[#allocation77_spill] sm:$0xff] %v8225_v59 }
 0x297   :  { %10845 = vst [vmem:[#allocation91_spill] sm:$0xff] %v8229_v7  ;;  %v8281_v7 = vadd.f32 %v10861_v58, %v7934_v14  ;;  %v10866_v58 = vld [vmem:[#allocation95_spill] sm:$0xff] }
 0x298   :  { %10846 = vst [vmem:[#allocation193_spill] sm:$0xff] %v8233_v54  ;;  %v8301_v59 = vadd.f32 %v10866_v58, %v8079_v20  ;;  %v2761_v58 = vmax.f32 %v8276_v2, %v8253_v29  ;;  %v10874_v54 = vld [vmem:[#allocation100_spill] sm:$0xff] }
 0x299   :  { %10848 = vst [vmem:[#allocation93_spill] sm:$0xff] %v8240_v63  ;;  %v2604_v63 = vmax.f32 %v2603_v34, %v8273_v0 }
 0x29a   :  { %10849 = vst [vmem:[#allocation194_spill] sm:$0xff] %v8246_v35  ;;  %v10858_v35 = vld [vmem:[#allocation96_spill] sm:$0xff]  ;;  %v2666_v33 = vmax.f32 %v2665_v15, %v8301_v59 }
 0x29b   :  { %10850 = vst [vmem:[#allocation195_spill] sm:$0xff] %v8248_v42  ;;  %v8268_v42 = vadd.f32 %v10858_v35, %v7961_v38  ;;  %v10863_v35 = vld [vmem:[#allocation80_spill] sm:$0xff]  ;;  %v2605_v2 = vmax.f32 %v2604_v63, %v8291_v19 }
 0x29c   :  { %10852 = vst [vmem:[#allocation75_spill] sm:$0xff] %v8253_v29  ;;  %v8345_v29 = vpop.f32.mrf.mxu0 }
 0x29d   :  { %10854 = vst [vmem:[#allocation78_spill] sm:$0xff] %v8257_v31  ;;  %v2696_v39 = vmax.f32 %v2695_v21, %v8268_v42  ;;  %v10872_v31 = vld [vmem:[#allocation97_spill] sm:$0xff]  ;;  %v10876_v21 = vld [vmem:[#allocation98_spill] sm:$0xff] }
 0x29e   :  { %10855 = vst [vmem:[#allocation196_spill] sm:$0xff] %v8260_v8  ;;  %v8286_v8 = vadd.f32 %v10863_v35, %v7822_v5  ;;  %v8305_v5 = vadd.f32 %v10868_v1, %v8144_v45  ;;  %v8309_v35 = vadd.f32 %v10870_v49, %v8174_v51  ;;  %v8321_v1 = vadd.f32 %v10872_v31, %v8006_v9 }
 0x29f   :  { %10857 = vst [vmem:[#allocation94_spill] sm:$0xff] %v8264_v13  ;;  %v8325_v49 = vadd.f32 %v10874_v54, %v7961_v38  ;;  %v8328_v13 = vpop.f32.mrf.mxu2  ;;  %v8332_v34 = vadd.f32 %v10876_v21, %v8030_v6  ;;  %v8341_v31 = vadd.f32 %v7696_v10, %v8294_v4  ;;  %v8343_v54 = vpop.f32.mrf.mxu3  ;;  %v10882_v21 = vmax.f32 %v8127_v32, %v8105_v16  ;;  %v10891_v16 = vld [vmem:[#allocation120_spill] sm:$0xff] }
 0x2a0   :  { %10859 = vst [vmem:[#allocation96_spill] sm:$0xff] %v8268_v42  ;;  %v2635_v25 = vmax.f32 %v2634_v52, %v8305_v5  ;;  %v10878_v42 = vld [vmem:[#allocation119_spill] sm:$0xff]  ;;  %v8366_v52 = vadd.f32 %v7759_v30, %v8315_v56  ;;  %v8369_v32 = vperm.slane %v8207_v18, 3 }
 0x2a1   :  { %10860 = vst [vmem:[#allocation197_spill] sm:$0xff] %v8273_v0  ;;  %v8336_v0 = vadd.f32 %v10878_v42, %v8101_v48  ;;  %v10883_v42 = vld [vmem:[#allocation81_spill] sm:$0xff] }
 0x2a2   :  { %10862 = vst [vmem:[#allocation79_spill] sm:$0xff] %v8281_v7  ;;  %v8357_v63 = vadd.f32 %v10883_v42, %v7856_v22  ;;  %v2636_v10 = vmax.f32 %v2635_v25, %v8309_v35  ;;  %v10886_v22 = vld [vmem:[#allocation101_spill] sm:$0xff]  ;;  %v10888_v25 = vld [vmem:[#allocation118_spill] sm:$0xff] }
 0x2a3   :  { %10864 = vst [vmem:[#allocation80_spill] sm:$0xff] %v8286_v8  ;;  %v8374_v42 = vadd.f32 %v10886_v22, %v8006_v9  ;;  %v2667_v15 = vmax.f32 %v2666_v33, %v8336_v0  ;;  %v10895_v33 = vld [vmem:[#allocation99_spill] sm:$0xff]  ;;  %v8412_v22 = vadd.f32 %v7770_v46, %v8369_v32 }
 0x2a4   :  { %10865 = vst [vmem:[#allocation198_spill] sm:$0xff] %v8291_v19  ;;  %v8360_v19 = vpop.f32.mrf.mxu1 }
 0x2a5   :  { %10867 = vst [vmem:[#allocation95_spill] sm:$0xff] %v8301_v59  ;;  %v8399_v59 = vperm.slane %v8207_v18, 4 }
 0x2a6   :  { %10869 = vst [vmem:[#allocation116_spill] sm:$0xff] %v8305_v5  ;;  %v8353_v5 = vmax.f32 %v10882_v21, %v8286_v8  ;;  %v2729_v21 = vmax.f32 %v2728_v43, %v8325_v49  ;;  %v8378_v8 = vadd.f32 %v10888_v25, %v8220_v53  ;;  %v2606_v43 = vmax.f32 %v2605_v2, %v8341_v31  ;;  %v10893_v25 = vld [vmem:[#allocation102_spill] sm:$0xff] }
 0x2a7   :  { %10871 = vst [vmem:[#allocation117_spill] sm:$0xff] %v8309_v35 }
 0x2a8   :  { %10873 = vst [vmem:[#allocation97_spill] sm:$0xff] %v8321_v1  ;;  %v2607_v2 = vmax.f32 %v2606_v43, %v8366_v52  ;;  %v10904_v43 = vld [vmem:[#allocation82_spill] sm:$0xff] }
 0x2a9   :  { %10875 = vst [vmem:[#allocation100_spill] sm:$0xff] %v8325_v49  ;;  %v8395_v49 = vadd.f32 %v10893_v25, %v8030_v6  ;;  %v2730_v25 = vmax.f32 %v2729_v21, %v8374_v42 }
 0x2aa   :  { %10877 = vst [vmem:[#allocation98_spill] sm:$0xff] %v8332_v34 }
 0x2ab   :  { %10879 = vst [vmem:[#allocation119_spill] sm:$0xff] %v8336_v0 }
 0x2ac   :  { %10880 = vst [vmem:[#allocation199_spill] sm:$0xff] %v8341_v31  ;;  %v8435_v31 = vperm.slane %v8207_v18, 5 }
 0x2ad   :  { %10881 = vst [vmem:[#allocation200_spill] sm:$0xff] %v8343_v54  ;;  %v2697_v54 = vmax.f32 %v2696_v39, %v8321_v1  ;;  %v8382_v39 = vadd.f32 %v7772_v12, %v8244_v47  ;;  %v8388_v1 = vadd.f32 %v10891_v16, %v8144_v45  ;;  %v2637_v12 = vmax.f32 %v2636_v10, %v8378_v8  ;;  %v10897_v16 = vld [vmem:[#allocation121_spill] sm:$0xff]  ;;  %v10900_v10 = vld [vmem:[#allocation104_spill] sm:$0xff] }
 0x2ae   :  { %10884 = vst [vmem:[#allocation81_spill] sm:$0xff] %v8357_v63  ;;  %v8417_v0 = vadd.f32 %v10900_v10, %v7961_v38  ;;  %v2475_v10 = vpop.f32.mrf.mxu0 }
 0x2af   :  { %10885 = vst [vmem:[#allocation201_spill] sm:$0xff] %v8366_v52  ;;  %v2698_v30 = vmax.f32 %v2697_v54, %v8332_v34  ;;  %v8403_v54 = vadd.f32 %v10895_v33, %v8079_v20  ;;  %v8407_v34 = vadd.f32 %v10897_v16, %v8174_v51  ;;  %v2638_v35 = vmax.f32 %v2637_v12, %v8382_v39  ;;  %v8424_v16 = vpop.f32.mrf.mxu2  ;;  %v10907_v12 = vld [vmem:[#allocation103_spill] sm:$0xff] }
 0x2b0   :  { %10887 = vst [vmem:[#allocation101_spill] sm:$0xff] %v8374_v42  ;;  %v8428_v52 = vadd.f32 %v10904_v43, %v7890_v61  ;;  %v2668_v21 = vmax.f32 %v2667_v15, %v8388_v1  ;;  %v8432_v42 = vpop.f32.mrf.mxu3  ;;  %v8444_v61 = vadd.f32 %v7781_v17, %v8294_v4  ;;  %v2504_v15 = vpop.f32.mrf.mxu1 }
 0x2b1   :  { %10889 = vst [vmem:[#allocation118_spill] sm:$0xff] %v8378_v8  ;;  %v10902_v8 = vld [vmem:[#allocation123_spill] sm:$0xff]  ;;  %v2699_v46 = vmax.f32 %v2698_v30, %v8403_v54  ;;  %v8447_v30 = vadd.f32 %v2475_v10, %v8399_v59  ;;  %v2762_v10 = vmax.f32 %v2761_v58, %v8417_v0  ;;  %v10919_v58 = vld [vmem:[#allocation124_spill] sm:$0xff] }
 0x2b2   :  { %10890 = vst [vmem:[#allocation202_spill] sm:$0xff] %v8382_v39  ;;  %v8421_v33 = vadd.f32 %v10902_v8, %v8101_v48  ;;  %v2731_v8 = vmax.f32 %v2730_v25, %v8395_v49  ;;  %v8440_v39 = vadd.f32 %v10907_v12, %v8079_v20  ;;  %v2669_v43 = vmax.f32 %v2668_v21, %v8407_v34 }
 0x2b3   :  { %10892 = vst [vmem:[#allocation120_spill] sm:$0xff] %v8388_v1  ;;  %v2608_v25 = vmax.f32 %v2607_v2, %v8412_v22  ;;  %v8457_v12 = vadd.f32 %v7844_v23, %v8315_v56  ;;  %v2639_v21 = vmax.f32 %v2638_v35, %v8444_v61  ;;  %v8475_v23 = vperm.slane %v8207_v18, 6  ;;  %v10921_v35 = vld [vmem:[#allocation125_spill] sm:$0xff] }
 0x2b4   :  { %10894 = vst [vmem:[#allocation102_spill] sm:$0xff] %v8395_v49  ;;  %v10914_v49 = vld [vmem:[#allocation83_spill] sm:$0xff] }
 0x2b5   :  { %10896 = vst [vmem:[#allocation99_spill] sm:$0xff] %v8403_v54  ;;  %v10911_v54 = vld [vmem:[#allocation122_spill] sm:$0xff]  ;;  %v8461_v17 = vadd.f32 %v10914_v49, %v7934_v14  ;;  %v2609_v2 = vmax.f32 %v2608_v25, %v8447_v30  ;;  %v10917_v14 = vld [vmem:[#allocation105_spill] sm:$0xff]  ;;  %v8490_v25 = vperm.slane %v8207_v18, 7  ;;  %v8507_v18 = vadd.f32 %v7858_v3, %v8369_v32 }
 0x2b6   :  { %10898 = vst [vmem:[#allocation121_spill] sm:$0xff] %v8407_v34  ;;  %v8452_v1 = vadd.f32 %v10911_v54, %v8220_v53  ;;  %v8468_v54 = vadd.f32 %v7860_v50, %v8244_v47  ;;  %v8472_v34 = vadd.f32 %v2504_v15, %v8435_v31  ;;  %v8479_v49 = vadd.f32 %v10917_v14, %v8006_v9 }
 0x2b7   :  { %10899 = vst [vmem:[#allocation203_spill] sm:$0xff] %v8412_v22  ;;  %v8487_v50 = vadd.f32 %v10921_v35, %v8174_v51  ;;  %v2732_v15 = vmax.f32 %v2731_v8, %v8440_v39  ;;  %v10925_v35 = vld [vmem:[#allocation127_spill] sm:$0xff]  ;;  %v2533_v8 = vpop.f32.mrf.mxu2 }
 0x2b8   :  { %10901 = vst [vmem:[#allocation104_spill] sm:$0xff] %v8417_v0  ;;  %v10923_v0 = vld [vmem:[#allocation106_spill] sm:$0xff]  ;;  %v2670_v14 = vmax.f32 %v2669_v43, %v8452_v1  ;;  %v8503_v22 = vadd.f32 %v10925_v35, %v8101_v48  ;;  %v8512_v43 = vadd.f32 %v7875_v24, %v8294_v4  ;;  %v10929_v35 = vld [vmem:[#allocation108_spill] sm:$0xff]  ;;  %v2506_v24 = vpop.f32.mrf.mxu1 }
 0x2b9   :  { %10903 = vst [vmem:[#allocation123_spill] sm:$0xff] %v8421_v33 }
 0x2ba   :  { %10905 = vst [vmem:[#allocation82_spill] sm:$0xff] %v8428_v52 }
 0x2bb   :  { %10906 = vst [vmem:[#allocation204_spill] sm:$0xff] %v8432_v42  ;;  %v2700_v42 = vmax.f32 %v2699_v46, %v8421_v33  ;;  %v8483_v46 = vadd.f32 %v10919_v58, %v8144_v45  ;;  %v8495_v33 = vadd.f32 %v10923_v0, %v8030_v6  ;;  %v2763_v58 = vmax.f32 %v2762_v10, %v8479_v49 }
 0x2bc   :  { %10908 = vst [vmem:[#allocation103_spill] sm:$0xff] %v8440_v39  ;;  %v2671_v0 = vmax.f32 %v2670_v14, %v8468_v54  ;;  %v8516_v10 = vadd.f32 %v2533_v8, %v8475_v23  ;;  %v8520_v39 = vadd.f32 %v10929_v35, %v7961_v38 }
 0x2bd   :  { %10909 = vst [vmem:[#allocation205_spill] sm:$0xff] %v8444_v61  ;;  %v2640_v61 = vmax.f32 %v2639_v21, %v8457_v12  ;;  %v2610_v21 = vmax.f32 %v2609_v2, %v8472_v34  ;;  %v2764_v2 = vmax.f32 %v2763_v58, %v8495_v33  ;;  %v8547_v58 = vadd.f32 %v7965_v57, %v8244_v47 }
 0x2be   :  { %10910 = vst [vmem:[#allocation206_spill] sm:$0xff] %v8447_v30  ;;  %v2701_v30 = vmax.f32 %v2700_v42, %v8483_v46  ;;  %v2562_v42 = vpop.f32.mrf.mxu3 }
 0x2bf   :  { %10912 = vst [vmem:[#allocation122_spill] sm:$0xff] %v8452_v1  ;;  %v2641_v8 = vmax.f32 %v2640_v61, %v8507_v18  ;;  %v2611_v35 = vmax.f32 %v2610_v21, %v8516_v10  ;;  %v10932_v1 = vld [vmem:[#allocation126_spill] sm:$0xff]  ;;  %v2672_v21 = vmax.f32 %v2671_v0, %v8512_v43  ;;  %v10944_v0 = vmax.f32 %v8297_v40, %v8281_v7 }
 0x2c0   :  { %10913 = vst [vmem:[#allocation207_spill] sm:$0xff] %v8457_v12  ;;  %v2702_v3 = vmax.f32 %v2701_v30, %v8487_v50  ;;  %v8538_v30 = vadd.f32 %v10932_v1, %v8220_v53  ;;  %v10942_v12 = vld [vmem:[#allocation133_spill] sm:$0xff] }
 0x2c1   :  { %10915 = vst [vmem:[#allocation83_spill] sm:$0xff] %v8461_v17 }
 0x2c2   :  { %10916 = vst [vmem:[#allocation208_spill] sm:$0xff] %v8468_v54  ;;  %v8533_v54 = vadd.f32 %v7949_v62, %v8315_v56  ;;  %v10937_v62 = vmax.f32 %v8353_v5, %v8357_v63  ;;  %v2703_v57 = vmax.f32 %v2702_v3, %v8538_v30  ;;  %v8567_v5 = vadd.f32 %v10942_v12, %v8174_v51 }
 0x2c3   :  { %10918 = vst [vmem:[#allocation105_spill] sm:$0xff] %v8479_v49  ;;  %v2477_v49 = vpop.f32.mrf.mxu0 }
 0x2c4   :  { %10920 = vst [vmem:[#allocation124_spill] sm:$0xff] %v8483_v46  ;;  %v8524_v46 = vadd.f32 %v2562_v42, %v8490_v25  ;;  %v8527_v14 = vadd.f32 %v2477_v49, %v8399_v59  ;;  %v2733_v42 = vmax.f32 %v2732_v15, %v8503_v22  ;;  %v10934_v49 = vld [vmem:[#allocation128_spill] sm:$0xff]  ;;  %v2826_v61 = vmax.f32 %v10937_v62, %v8428_v52  ;;  %v10938_v15 = vld [vmem:[#allocation107_spill] sm:$0xff] }
 0x2c5   :  { %10922 = vst [vmem:[#allocation125_spill] sm:$0xff] %v8487_v50  ;;  %v8543_v50 = vadd.f32 %v10934_v49, %v8144_v45  ;;  %v10940_v49 = vld [vmem:[#allocation109_spill] sm:$0xff]  ;;  %v8576_v62 = vadd.f32 %v7963_v37, %v8369_v32  ;;  %v2704_v40 = vmax.f32 %v2703_v57, %v8547_v58  ;;  %v10951_v37 = vld [vmem:[#allocation112_spill] sm:$0xff]  ;;  %v10954_v57 = vld [vmem:[#allocation134_spill] sm:$0xff] }
 0x2c6   :  { %10924 = vst [vmem:[#allocation106_spill] sm:$0xff] %v8495_v33  ;;  %v2642_v1 = vmax.f32 %v2641_v8, %v8527_v14  ;;  %v2612_v33 = vmax.f32 %v2611_v35, %v8524_v46  ;;  %v2795_v8 = vmax.f32 %v10944_v0, %v8520_v39  ;;  %v2673_v35 = vmax.f32 %v2672_v21, %v8533_v54  ;;  %v2535_v0 = vpop.f32.mrf.mxu2  ;;  %v10949_v21 = vld [vmem:[#allocation110_spill] sm:$0xff] }
 0x2c7   :  { %10926 = vst [vmem:[#allocation127_spill] sm:$0xff] %v8503_v22  ;;  %v8558_v22 = vadd.f32 %v10938_v15, %v8079_v20  ;;  %v8579_v15 = vadd.f32 %v2506_v24, %v8435_v31  ;;  %v2734_v12 = vmax.f32 %v2733_v42, %v8543_v50  ;;  %v8590_v63 = vadd.f32 %v10949_v21, %v8030_v6  ;;  %v2564_v42 = vpop.f32.mrf.mxu3 }
 0x2c8   :  { %10927 = vst [vmem:[#allocation209_spill] sm:$0xff] %v8507_v18  ;;  %v8562_v18 = vadd.f32 %v10940_v49, %v8006_v9  ;;  %2613 = vmax.xlane.f32.xlu0 %v2612_v33  ;;  %v10947_v49 = vld [vmem:[#allocation135_spill] sm:$0xff]  ;;  %v8594_v24 = vadd.f32 %v10951_v37, %v7961_v38  ;;  %v8603_v7 = vadd.f32 %v10954_v57, %v8220_v53  ;;  %v2509_v37 = vpop.f32.mrf.mxu1 }
 0x2c9   :  { %10928 = vst [vmem:[#allocation210_spill] sm:$0xff] %v8512_v43  ;;  %v2765_v3 = vmax.f32 %v2764_v2, %v8558_v22  ;;  %v8585_v52 = vadd.f32 %v10947_v49, %v8101_v48  ;;  %v2643_v33 = vmax.f32 %v2642_v1, %v8579_v15  ;;  %v8598_v2 = vadd.f32 %v2535_v0, %v8475_v23 }
 0x2ca   :  { %10930 = vst [vmem:[#allocation108_spill] sm:$0xff] %v8520_v39  ;;  %v2735_v49 = vmax.f32 %v2734_v12, %v8567_v5  ;;  %v8607_v21 = vadd.f32 %v7977_v26, %v8294_v4  ;;  %v2674_v1 = vmax.f32 %v2673_v35, %v8576_v62  ;;  %v8615_v0 = vadd.f32 %v8042_v28, %v8315_v56 }
 0x2cb   :  { %10931 = vst [vmem:[#allocation211_spill] sm:$0xff] %v8533_v54  ;;  %v2480_v39 = vpop.f32.mrf.mxu0  ;;  %v2644_v12 = vmax.f32 %v2643_v33, %v8598_v2  ;;  %v2827_v57 = vmax.f32 %v2826_v61, %v8461_v17  ;;  %v2796_v26 = vmax.f32 %v2795_v8, %v8562_v18  ;;  %v8627_v35 = vadd.f32 %v8057_v41, %v8244_v47  ;;  %v10962_v61 = vld [vmem:[#allocation111_spill] sm:$0xff] }
 0x2cc   :  { %10933 = vst [vmem:[#allocation126_spill] sm:$0xff] %v8538_v30  ;;  %v8610_v38 = vadd.f32 %v2480_v39, %v8399_v59  ;;  %v2705_v39 = vmax.f32 %v2704_v40, %v8607_v21  ;;  %v8637_v8 = vadd.f32 %v10962_v61, %v8079_v20  ;;  %v8645_v41 = vadd.f32 %v7480_v44, %v8174_v51  ;;  %v10969_v61 = vld [vmem:[#allocation114_spill] sm:$0xff]  ;;  %v11057_v30 = vld [vmem:[#allocation87_spill] sm:$0xff] }
 0x2cd   :  { %10935 = vst [vmem:[#allocation128_spill] sm:$0xff] %v8543_v50  ;;  %v8631_v50 = vadd.f32 %v2509_v37, %v8435_v31  ;;  %v10967_v37 = vld [vmem:[#allocation113_spill] sm:$0xff]  ;;  %v8661_v44 = vadd.f32 %v7494_v27, %v8101_v48 }
 0x2ce   :  { %10936 = vst [vmem:[#allocation212_spill] sm:$0xff] %v8547_v58  ;;  %v2675_v28 = vmax.f32 %v2674_v1, %v8610_v38  ;;  %v2828_v1 = vmax.f32 %v2827_v57, %v8594_v24  ;;  %v8650_v17 = vadd.f32 %v10967_v37, %v8006_v9  ;;  %v8665_v57 = vadd.f32 %v8055_v11, %v8369_v32  ;;  %v2538_v9 = vpop.f32.mrf.mxu2  ;;  %v11054_v58 = vld [vmem:[#allocation132_spill] sm:$0xff] }
 0x2cf   :  { %10939 = vst [vmem:[#allocation107_spill] sm:$0xff] %v8558_v22  ;;  %v8619_v22 = vadd.f32 %v2564_v42, %v8490_v25  ;;  %v2797_v42 = vmax.f32 %v2796_v26, %v8590_v63  ;;  %v2706_v26 = vmax.f32 %v2705_v39, %v8615_v0  ;;  %v8670_v39 = vadd.f32 %v8067_v36, %v8294_v4 }
 0x2d0   :  { %10941 = vst [vmem:[#allocation109_spill] sm:$0xff] %v8562_v18  ;;  %v2829_v36 = vmax.f32 %v2828_v1, %v8650_v17  ;;  %v10982_v1 = vld [vmem:[#allocation189_spill] sm:$0xff] }
 0x2d1   :  { %10943 = vst [vmem:[#allocation133_spill] sm:$0xff] %v8567_v5  ;;  %v2766_v5 = vmax.f32 %v2765_v3, %v8585_v52  ;;  %v2645_v33 = vmax.f32 %v2644_v12, %v8619_v22  ;;  %v10964_v3 = vld [vmem:[#allocation138_spill] sm:$0xff]  ;;  %v2736_v12 = vmax.f32 %v2735_v49, %v8603_v7  ;;  %v2798_v27 = vmax.f32 %v2797_v42, %v8637_v8  ;;  %v10978_v42 = vld [vmem:[#allocation149_spill] sm:$0xff] }
 0x2d2   :  { %10945 = vst [vmem:[#allocation213_spill] sm:$0xff] %v8576_v62  ;;  %v8641_v40 = vadd.f32 %v10964_v3, %v8144_v45 }
 0x2d3   :  { %10946 = vst [vmem:[#allocation214_spill] sm:$0xff] %v8579_v15  ;;  %2646 = vmax.xlane.f32.xlu0 %v2645_v33  ;;  %v2737_v49 = vmax.f32 %v2736_v12, %v8627_v35  ;;  %v8674_v33 = vadd.f32 %v2538_v9, %v8475_v23  ;;  %v2482_v37 = vpop.f32.mrf.mxu0  ;;  %v8688_v9 = vadd.f32 %v8135_v55, %v8315_v56 }
 0x2d4   :  { %10948 = vst [vmem:[#allocation135_spill] sm:$0xff] %v8585_v52  ;;  %v2767_v3 = vmax.f32 %v2766_v5, %v8641_v40  ;;  %v2567_v5 = vpop.f32.mrf.mxu3  ;;  %v8682_v12 = vadd.f32 %v2482_v37, %v8399_v59  ;;  %v10980_v37 = vld [vmem:[#allocation151_spill] sm:$0xff] }
 0x2d5   :  { %10950 = vst [vmem:[#allocation110_spill] sm:$0xff] %v8590_v63  ;;  %v8656_v63 = vadd.f32 %v10969_v61, %v8030_v6  ;;  %v2676_v6 = vmax.f32 %v2675_v28, %v8631_v50  ;;  %v8679_v11 = vadd.f32 %v2567_v5, %v8490_v25  ;;  %v2707_v28 = vmax.f32 %v2706_v26, %v8665_v57 }
 0x2d6   :  { %10952 = vst [vmem:[#allocation112_spill] sm:$0xff] %v8594_v24  ;;  %v2768_v61 = vmax.f32 %v2767_v3, %v8645_v41  ;;  %v2511_v24 = vpop.f32.mrf.mxu1  ;;  %v8693_v3 = vadd.f32 %v10978_v42, %v8220_v53  ;;  %v2799_v5 = vmax.f32 %v2798_v27, %v8661_v44  ;;  %v2738_v55 = vmax.f32 %v2737_v49, %v8670_v39  ;;  %v10984_v27 = vld [vmem:[#allocation166_spill] sm:$0xff] }
 0x2d7   :  { %10953 = vst [vmem:[#allocation215_spill] sm:$0xff] %v8598_v2  ;;  %v2677_v18 = vmax.f32 %v2676_v6, %v8674_v33  ;;  %v2830_v26 = vmax.f32 %v2829_v36, %v8656_v63  ;;  %v2708_v6 = vmax.f32 %v2707_v28, %v8682_v12  ;;  %v10988_v36 = vld [vmem:[#allocation188_spill] sm:$0xff]  ;;  %v8723_v49 = vadd.f32 %v2511_v24, %v8435_v31 }
 0x2d8   :  { %10955 = vst [vmem:[#allocation134_spill] sm:$0xff] %v8603_v7  ;;  %v2769_v42 = vmax.f32 %v2768_v61, %v8693_v3  ;;  %v10991_v61 = vld [vmem:[#allocation170_spill] sm:$0xff] }
 0x2d9   :  { %10956 = vst [vmem:[#allocation216_spill] sm:$0xff] %v8607_v21  ;;  %v8728_v28 = vadd.f32 %v10991_v61, %v8101_v48  ;;  %v10996_v48 = vld [vmem:[#allocation190_spill] sm:$0xff]  ;;  %v11053_v21 = vld [vmem:[#allocation131_spill] sm:$0xff] }
 0x2da   :  { %10957 = vst [vmem:[#allocation217_spill] sm:$0xff] %v8610_v38  ;;  %v8743_v61 = vadd.f32 %v10996_v48, %v8294_v4  ;;  %v11046_v7 = vld [vmem:[#allocation22_spill] sm:$0xff]  ;;  %v11061_v38 = vld [vmem:[#allocation197_spill] sm:$0xff] }
 0x2db   :  { %10958 = vst [vmem:[#allocation218_spill] sm:$0xff] %v8615_v0  ;;  %v2485_v24 = vpop.f32.mrf.mxu0 }
 0x2dc   :  { %10959 = vst [vmem:[#allocation219_spill] sm:$0xff] %v8619_v22 }
 0x2dd   :  { %10960 = vst [vmem:[#allocation220_spill] sm:$0xff] %v8627_v35 }
 0x2de   :  { %10961 = vst [vmem:[#allocation221_spill] sm:$0xff] %v8631_v50 }
 0x2df   :  { %10963 = vst [vmem:[#allocation111_spill] sm:$0xff] %v8637_v8  ;;  %v8698_v8 = vadd.f32 %v10980_v37, %v8144_v45  ;;  %v10986_v37 = vld [vmem:[#allocation115_spill] sm:$0xff] }
 0x2e0   :  { %10965 = vst [vmem:[#allocation138_spill] sm:$0xff] %v8641_v40  ;;  %v8715_v40 = vadd.f32 %v10986_v37, %v8079_v20  ;;  %v2540_v20 = vpop.f32.mrf.mxu2 }
 0x2e1   :  { %10966 = vst [vmem:[#allocation222_spill] sm:$0xff] %v8645_v41  ;;  %v2678_v41 = vmax.f32 %v2677_v18, %v8679_v11  ;;  %v2800_v18 = vmax.f32 %v2799_v5, %v8698_v8  ;;  %v10994_v5 = vld [vmem:[#allocation169_spill] sm:$0xff] }
 0x2e2   :  { %10968 = vst [vmem:[#allocation113_spill] sm:$0xff] %v8650_v17  ;;  %v8702_v17 = vadd.f32 %v10982_v1, %v8244_v47  ;;  %v2739_v1 = vmax.f32 %v2738_v55, %v8688_v9  ;;  %v2831_v37 = vmax.f32 %v2830_v26, %v8715_v40  ;;  %v2709_v55 = vmax.f32 %v2708_v6, %v8723_v49  ;;  %v2514_v26 = vpop.f32.mrf.mxu1 }
 0x2e3   :  { %10970 = vst [vmem:[#allocation114_spill] sm:$0xff] %v8656_v63  ;;  %v8720_v63 = vadd.f32 %v10988_v36, %v8369_v32  ;;  %2679 = vmax.xlane.f32.xlu1 %v2678_v41  ;;  %v8734_v36 = vadd.f32 %v2540_v20, %v8475_v23  ;;  %v8751_v20 = vadd.f32 %v8235_v60, %v8315_v56 }
 0x2e4   :  { %10971 = vst [vmem:[#allocation223_spill] sm:$0xff] %v8661_v44  ;;  %v8711_v44 = vadd.f32 %v10984_v27, %v8174_v51  ;;  %v2770_v27 = vmax.f32 %v2769_v42, %v8702_v17  ;;  %v8746_v42 = vadd.f32 %v2485_v24, %v8399_v59 }
 0x2e5   :  { %10972 = vst [vmem:[#allocation224_spill] sm:$0xff] %v8665_v57  ;;  %v2740_v6 = vmax.f32 %v2739_v1, %v8720_v63  ;;  %v8765_v1 = vadd.f32 %v2514_v26, %v8435_v31  ;;  %v11008_v26 = vld [vmem:[#allocation194_spill] sm:$0xff] }
 0x2e6   :  { %10973 = vst [vmem:[#allocation225_spill] sm:$0xff] %v8670_v39  ;;  %v2801_v41 = vmax.f32 %v2800_v18, %v8711_v44  ;;  %v2710_v18 = vmax.f32 %v2709_v55, %v8734_v36  ;;  %v2771_v48 = vmax.f32 %v2770_v27, %v8743_v61  ;;  %v11004_v55 = vld [vmem:[#allocation172_spill] sm:$0xff] }
 0x2e7   :  { %10974 = vst [vmem:[#allocation226_spill] sm:$0xff] %v8674_v33  ;;  %v8770_v52 = vadd.f32 %v11004_v55, %v8144_v45  ;;  %v11010_v45 = vld [vmem:[#allocation196_spill] sm:$0xff] }
 0x2e8   :  { %10975 = vst [vmem:[#allocation227_spill] sm:$0xff] %v8679_v11  ;;  %v8786_v55 = vadd.f32 %v11010_v45, %v8294_v4  ;;  %v8802_v45 = vadd.f32 %v8328_v13, %v8315_v56  ;;  %v11058_v11 = vld [vmem:[#allocation187_spill] sm:$0xff] }
 0x2e9   :  { %10976 = vst [vmem:[#allocation228_spill] sm:$0xff] %v8682_v12  ;;  %v11052_v12 = vld [vmem:[#allocation84_spill] sm:$0xff] }
 0x2ea   :  { %10977 = vst [vmem:[#allocation229_spill] sm:$0xff] %v8688_v9 }
 0x2eb   :  { %10979 = vst [vmem:[#allocation149_spill] sm:$0xff] %v8693_v3  ;;  %v2569_v3 = vpop.f32.mrf.mxu3 }
 0x2ec   :  { %10981 = vst [vmem:[#allocation151_spill] sm:$0xff] %v8698_v8  ;;  %v8739_v8 = vadd.f32 %v10994_v5, %v8220_v53  ;;  %v2832_v5 = vmax.f32 %v2831_v37, %v8728_v28  ;;  %v11006_v37 = vld [vmem:[#allocation184_spill] sm:$0xff] }
 0x2ed   :  { %10983 = vst [vmem:[#allocation189_spill] sm:$0xff] %v8702_v17  ;;  %v2741_v17 = vmax.f32 %v2740_v6, %v8746_v42  ;;  %v8775_v27 = vadd.f32 %v11006_v37, %v8174_v51 }
 0x2ee   :  { %10985 = vst [vmem:[#allocation166_spill] sm:$0xff] %v8711_v44  ;;  %v11001_v44 = vld [vmem:[#allocation195_spill] sm:$0xff]  ;;  %v2833_v6 = vmax.f32 %v2832_v5, %v8770_v52 }
 0x2ef   :  { %10987 = vst [vmem:[#allocation115_spill] sm:$0xff] %v8715_v40  ;;  %v8755_v40 = vadd.f32 %v2569_v3, %v8490_v25  ;;  %v8761_v24 = vadd.f32 %v11001_v44, %v8244_v47  ;;  %v2802_v3 = vmax.f32 %v2801_v41, %v8739_v8  ;;  %v2772_v44 = vmax.f32 %v2771_v48, %v8751_v20 }
 0x2f0   :  { %10989 = vst [vmem:[#allocation188_spill] sm:$0xff] %v8720_v63  ;;  %v2742_v41 = vmax.f32 %v2741_v17, %v8765_v1  ;;  %v11044_v63 = vld [vmem:[#allocation20_spill] sm:$0xff] }
 0x2f1   :  { %10990 = vst [vmem:[#allocation230_spill] sm:$0xff] %v8723_v49  ;;  %v2711_v60 = vmax.f32 %v2710_v18, %v8755_v40  ;;  %v2543_v18 = vpop.f32.mrf.mxu2  ;;  %v11050_v49 = vld [vmem:[#allocation54_spill] sm:$0xff] }
 0x2f2   :  { %10992 = vst [vmem:[#allocation170_spill] sm:$0xff] %v8728_v28  ;;  %v8781_v28 = vadd.f32 %v11008_v26, %v8369_v32  ;;  %v8790_v51 = vadd.f32 %v2543_v18, %v8475_v23  ;;  %v2516_v26 = vpop.f32.mrf.mxu1  ;;  %v11016_v18 = vld [vmem:[#allocation186_spill] sm:$0xff] }
 0x2f3   :  { %10993 = vst [vmem:[#allocation231_spill] sm:$0xff] %v8734_v36  ;;  %2712 = vmax.xlane.f32.xlu1 %v2711_v60  ;;  %v2572_v48 = vpop.f32.mrf.mxu3  ;;  %v2487_v60 = vpop.f32.mrf.mxu0  ;;  %v11049_v36 = vld [vmem:[#allocation53_spill] sm:$0xff] }
 0x2f4   :  { %10995 = vst [vmem:[#allocation169_spill] sm:$0xff] %v8739_v8  ;;  %v8793_v5 = vadd.f32 %v2572_v48, %v8490_v25  ;;  %v8796_v37 = vadd.f32 %v2487_v60, %v8399_v59  ;;  %v2743_v17 = vmax.f32 %v2742_v41, %v8790_v51  ;;  %v8812_v60 = vadd.f32 %v8345_v29, %v8244_v47  ;;  %v11019_v41 = vld [vmem:[#allocation200_spill] sm:$0xff] }
 0x2f5   :  { %10997 = vst [vmem:[#allocation190_spill] sm:$0xff] %v8743_v61  ;;  %v2803_v61 = vmax.f32 %v2802_v3, %v8761_v24  ;;  %v2834_v3 = vmax.f32 %v2833_v6, %v8775_v27  ;;  %v8820_v8 = vadd.f32 %v11019_v41, %v8369_v32 }
 0x2f6   :  { %10998 = vst [vmem:[#allocation232_spill] sm:$0xff] %v8746_v42 }
 0x2f7   :  { %10999 = vst [vmem:[#allocation233_spill] sm:$0xff] %v8751_v20  ;;  %v2804_v48 = vmax.f32 %v2803_v61, %v8786_v55 }
 0x2f8   :  { %11000 = vst [vmem:[#allocation234_spill] sm:$0xff] %v8755_v40  ;;  %v11048_v40 = vld [vmem:[#allocation52_spill] sm:$0xff] }
 0x2f9   :  { %11002 = vst [vmem:[#allocation195_spill] sm:$0xff] %v8761_v24  ;;  %v8807_v24 = vadd.f32 %v11016_v18, %v8220_v53  ;;  %v2805_v13 = vmax.f32 %v2804_v48, %v8802_v45  ;;  %v8823_v53 = vadd.f32 %v2516_v26, %v8435_v31  ;;  %v2545_v61 = vpop.f32.mrf.mxu2  ;;  %v8832_v18 = vadd.f32 %v8360_v19, %v8294_v4 }
 0x2fa   :  { %11003 = vst [vmem:[#allocation235_spill] sm:$0xff] %v8765_v1  ;;  %v2519_v26 = vpop.f32.mrf.mxu1 }
 0x2fb   :  { %11005 = vst [vmem:[#allocation172_spill] sm:$0xff] %v8770_v52  ;;  %v2773_v52 = vmax.f32 %v2772_v44, %v8781_v28  ;;  %v2744_v44 = vmax.f32 %v2743_v17, %v8793_v5  ;;  %v2574_v17 = vpop.f32.mrf.mxu3  ;;  %v8849_v4 = vadd.f32 %v2519_v26, %v8435_v31 }
 0x2fc   :  { %11007 = vst [vmem:[#allocation184_spill] sm:$0xff] %v8775_v27  ;;  %v2835_v27 = vmax.f32 %v2834_v3, %v8807_v24  ;;  %v2490_v3 = vpop.f32.mrf.mxu0  ;;  %v8844_v41 = vadd.f32 %v2574_v17, %v8490_v25 }
 0x2fd   :  { %11009 = vst [vmem:[#allocation194_spill] sm:$0xff] %v8781_v28  ;;  %v2774_v6 = vmax.f32 %v2773_v52, %v8796_v37  ;;  %2745 = vmax.xlane.f32.xlu2 %v2744_v44  ;;  %v8828_v52 = vadd.f32 %v2545_v61, %v8475_v23  ;;  %v8835_v48 = vadd.f32 %v2490_v3, %v8399_v59 }
 0x2fe   :  { %11011 = vst [vmem:[#allocation196_spill] sm:$0xff] %v8786_v55  ;;  %v2836_v29 = vmax.f32 %v2835_v27, %v8812_v60  ;;  %v2806_v44 = vmax.f32 %v2805_v13, %v8820_v8  ;;  %v8840_v27 = vadd.f32 %v8424_v16, %v8315_v56  ;;  %v11028_v56 = vld [vmem:[#allocation204_spill] sm:$0xff] }
 0x2ff   :  { %11012 = vst [vmem:[#allocation236_spill] sm:$0xff] %v8790_v51  ;;  %v2775_v47 = vmax.f32 %v2774_v6, %v8823_v53  ;;  %v8855_v16 = vadd.f32 %v11028_v56, %v8369_v32 }
 0x300   :  { %11013 = vst [vmem:[#allocation237_spill] sm:$0xff] %v8793_v5  ;;  %v2837_v61 = vmax.f32 %v2836_v29, %v8832_v18  ;;  %v2807_v19 = vmax.f32 %v2806_v44, %v8835_v48  ;;  %v11043_v5 = vld [vmem:[#allocation177_spill] sm:$0xff] }
 0x301   :  { %11014 = vst [vmem:[#allocation238_spill] sm:$0xff] %v8796_v37  ;;  %v2776_v6 = vmax.f32 %v2775_v47, %v8828_v52 }
 0x302   :  { %11015 = vst [vmem:[#allocation239_spill] sm:$0xff] %v8802_v45  ;;  %v2838_v13 = vmax.f32 %v2837_v61, %v8840_v27  ;;  %v2808_v47 = vmax.f32 %v2807_v19, %v8849_v4  ;;  %v11041_v45 = vld [vmem:[#allocation164_spill] sm:$0xff] }
 0x303   :  { %11017 = vst [vmem:[#allocation186_spill] sm:$0xff] %v8807_v24  ;;  %v2777_v3 = vmax.f32 %v2776_v6, %v8844_v41  ;;  %v2577_v29 = vpop.f32.mrf.mxu3 }
 0x304   :  { %11018 = vst [vmem:[#allocation240_spill] sm:$0xff] %v8812_v60  ;;  %v2548_v60 = vpop.f32.mrf.mxu2  ;;  %v2492_v44 = vpop.f32.mrf.mxu0  ;;  %v8862_v26 = vadd.f32 %v2577_v29, %v8490_v25  ;;  %v2839_v61 = vmax.f32 %v2838_v13, %v8855_v16 }
 0x305   :  { %11020 = vst [vmem:[#allocation200_spill] sm:$0xff] %v8820_v8  ;;  %2778 = vmax.xlane.f32.xlu2 %v2777_v3  ;;  %v8859_v17 = vadd.f32 %v2548_v60, %v8475_v23  ;;  %v8865_v6 = vadd.f32 %v2492_v44, %v8399_v59 }
 0x306   :  { %11021 = vst [vmem:[#allocation241_spill] sm:$0xff] %v8823_v53  ;;  %v11042_v53 = vld [vmem:[#allocation171_spill] sm:$0xff] }
 0x307   :  { %11022 = vst [vmem:[#allocation242_spill] sm:$0xff] %v8828_v52  ;;  %v2809_v3 = vmax.f32 %v2808_v47, %v8859_v17  ;;  %v2840_v32 = vmax.f32 %v2839_v61, %v8865_v6  ;;  %v2846_v61 = vlaneseq }
 0x308   :  { %11023 = vst [vmem:[#allocation243_spill] sm:$0xff] %v8832_v18 }
 0x309   :  { %11024 = vst [vmem:[#allocation244_spill] sm:$0xff] %v8835_v48  ;;  %v2810_v19 = vmax.f32 %v2809_v3, %v8862_v26  ;;  %v8883_v3 = vand.u32 127, %v2846_v61 }
 0x30a   :  { %11025 = vst [vmem:[#allocation245_spill] sm:$0xff] %v8840_v27  ;;  %v2521_v27 = vpop.f32.mrf.mxu1 }
 0x30b   :  { %11026 = vst [vmem:[#allocation246_spill] sm:$0xff] %v8844_v41  ;;  %v8872_v60 = vadd.f32 %v2521_v27, %v8435_v31  ;;  %2811 = vmax.xlane.f32.xlu0 %v2810_v19  ;;  %v2579_v59 = vpop.f32.mrf.mxu3  ;;  %v8888_v27 = vadd.s32 128, %v8883_v3  ;;  %v8911_v61 = vadd.s32 768, %v8883_v3  ;;  %v8932_v24 = vadd.s32 1536, %v8883_v3 }
 0x30c   :  { %11027 = vst [vmem:[#allocation247_spill] sm:$0xff] %v8849_v4  ;;  %v2550_v56 = vpop.f32.mrf.mxu2  ;;  %v8880_v47 = vadd.f32 %v2579_v59, %v8490_v25  ;;  %v8895_v25 = vadd.s32 256, %v8883_v3  ;;  %v11038_v59 = vld [vmem:[#allocation136_spill] sm:$0xff]  ;;  %v8943_v4 = vadd.s32 1920, %v8883_v3  ;;  %v8958_v55 = vadd.s32 2432, %v8883_v3 }
 0x30d   :  { %11029 = vst [vmem:[#allocation204_spill] sm:$0xff] %v8855_v16  ;;  %v2841_v29 = vmax.f32 %v2840_v32, %v8872_v60  ;;  %v8876_v18 = vadd.f32 %v2550_v56, %v8475_v23  ;;  %v11036_v23 = vld [vmem:[#allocation129_spill] sm:$0xff]  ;;  %v11037_v32 = vld [vmem:[#allocation130_spill] sm:$0xff]  ;;  %v8973_v37 = vadd.s32 2944, %v8883_v3  ;;  %v8988_v51 = vadd.s32 3456, %v8883_v3 }
 0x30e   :  { %11030 = vst [vmem:[#allocation248_spill] sm:$0xff] %v8859_v17  ;;  %v11040_v17 = vld [vmem:[#allocation156_spill] sm:$0xff]  ;;  %v9003_v9 = vadd.s32 3968, %v8883_v3 }
 0x30f   :  { %11031 = vst [vmem:[#allocation249_spill] sm:$0xff] %v8862_v26  ;;  %v2842_v13 = vmax.f32 %v2841_v29, %v8876_v18  ;;  %v8900_v29 = vadd.s32 384, %v8883_v3  ;;  %v8935_v26 = vadd.s32 1664, %v8883_v3 }
 0x310   :  { %11032 = vst [vmem:[#allocation250_spill] sm:$0xff] %v8865_v6 }
 0x311   :  { %11033 = vst [vmem:[#allocation251_spill] sm:$0xff] %v8872_v60  ;;  %v2843_v44 = vmax.f32 %v2842_v13, %v8880_v47  ;;  %v8905_v13 = vadd.s32 512, %v8883_v3  ;;  %v8928_v60 = vadd.s32 1408, %v8883_v3 }
 0x312   :  { %11034 = vst [vmem:[#allocation252_spill] sm:$0xff] %v8876_v18  ;;  %v8925_v18 = vadd.s32 1280, %v8883_v3 }
 0x313   :  { %11035 = vst [vmem:[#allocation253_spill] sm:$0xff] %v8880_v47  ;;  %2844 = vmax.xlane.f32.xlu1 %v2843_v44  ;;  %v8908_v44 = vadd.s32 640, %v8883_v3  ;;  %v8920_v47 = vadd.s32 1152, %v8883_v3 }
 0x33b   :  { %v8885_v31 = vpop.xlane.xlu0 %2613 }
 0x33c   :  { %vm2879_vm0 = vcmp.ge.f32.partialorder %v11036_v23, %v8885_v31  ;;  %vm2880_vm1 = vcmp.ge.f32.partialorder %v11037_v32, %v8885_v31  ;;  %vm2881_vm2 = vcmp.ge.f32.partialorder %v11038_v59, %v8885_v31  ;;  %v8914_v23 = vadd.s32 896, %v8883_v3  ;;  %v11039_v59 = vld [vmem:[#allocation139_spill] sm:$0xff] }
 0x33d   :  { %v3135_v19 = vsel %vm2879_vm0, %v8883_v3, 4096  ;;  %v3136_v56 = vsel %vm2880_vm1, %v8888_v27, 4096  ;;  %v8917_v32 = vadd.s32 1024, %v8883_v3  ;;  %vm2882_vm3 = vcmp.ge.f32.partialorder %v11039_v59, %v8885_v31 }
 0x33e   :  { %vm3391_vm4 = vcmp.lt.s32.totalorder %v3135_v19, %v3136_v56  ;;  %v3137_v6 = vsel %vm2881_vm2, %v8895_v25, 4096  ;;  %vm2883_vm5 = vcmp.ge.f32.partialorder %v11040_v17, %v8885_v31  ;;  %v8940_v59 = vadd.s32 1792, %v8883_v3 }
 0x33f   :  { %v3392_v16 = vsel %vm3391_vm4, %v3135_v19, %v3136_v56  ;;  %v3138_v48 = vsel %vm2882_vm3, %v8900_v29, 4096  ;;  %v8947_v19 = vadd.s32 2048, %v8883_v3  ;;  %v8950_v56 = vadd.s32 2176, %v8883_v3 }
 0x340   :  { %vm3393_vm6 = vcmp.lt.s32.totalorder %v3392_v16, %v3137_v6  ;;  %vm2884_vm7 = vcmp.ge.f32.partialorder %v11041_v45, %v8885_v31  ;;  %v8955_v17 = vadd.s32 2304, %v8883_v3  ;;  %v3139_v41 = vsel %vm2883_vm5, %v8905_v13, 4096 }
 0x341   :  { %v3394_v8 = vsel %vm3393_vm6, %v3392_v16, %v3137_v6  ;;  %v8962_v16 = vadd.s32 2560, %v8883_v3  ;;  %v8965_v6 = vadd.s32 2688, %v8883_v3  ;;  %vm2885_vm9 = vcmp.ge.f32.partialorder %v11042_v53, %v8885_v31 }
 0x342   :  { %vm3395_vm8 = vcmp.lt.s32.totalorder %v3394_v8, %v3138_v48  ;;  %v8970_v45 = vadd.s32 2816, %v8883_v3  ;;  %v3140_v28 = vsel %vm2884_vm7, %v8908_v44, 4096  ;;  %vm2886_vm11 = vcmp.ge.f32.partialorder %v11043_v5, %v8885_v31 }
 0x343   :  { %v3396_v52 = vsel %vm3395_vm8, %v3394_v8, %v3138_v48  ;;  %v8977_v8 = vadd.s32 3072, %v8883_v3  ;;  %v8980_v48 = vadd.s32 3200, %v8883_v3  ;;  %v8985_v53 = vadd.s32 3328, %v8883_v3 }
 0x344   :  { %vm3397_vm10 = vcmp.lt.s32.totalorder %v3396_v52, %v3139_v41  ;;  %v3141_v1 = vsel %vm2885_vm9, %v8911_v61, 4096  ;;  %vm2887_vm13 = vcmp.ge.f32.partialorder %v11044_v63, %v8885_v31  ;;  %v9000_v5 = vadd.s32 3840, %v8883_v3  ;;  %v11047_v63 = vld [vmem:[#allocation23_spill] sm:$0xff] }
 0x345   :  { %v3398_v20 = vsel %vm3397_vm10, %v3396_v52, %v3139_v41  ;;  %v8992_v52 = vadd.s32 3584, %v8883_v3  ;;  %v8995_v41 = vadd.s32 3712, %v8883_v3  ;;  %v3142_v39 = vsel %vm2886_vm11, %v8914_v23, 4096 }
 0x346   :  { %vm3399_vm12 = vcmp.lt.s32.totalorder %v3398_v20, %v3140_v28  ;;  %vm2889_vm0 = vcmp.ge.f32.partialorder %v11046_v7, %v8885_v31  ;;  %vm2890_vm1 = vcmp.ge.f32.partialorder %v11047_v63, %v8885_v31  ;;  %vm2891_vm3 = vcmp.ge.f32.partialorder %v11048_v40, %v8885_v31  ;;  %v11062_v7 = vld [vmem:[#allocation137_spill] sm:$0xff]  ;;  %v11064_v63 = vld [vmem:[#allocation199_spill] sm:$0xff] }
 0x347   :  { %v3400_v42 = vsel %vm3399_vm12, %v3398_v20, %v3140_v28  ;;  %v9006_v28 = vpop.xlane.xlu0 %2646  ;;  %v11045_v20 = vld [vmem:[#allocation21_spill] sm:$0xff]  ;;  %vm2892_vm4 = vcmp.ge.f32.partialorder %v11049_v36, %v8885_v31  ;;  %vm2893_vm5 = vcmp.ge.f32.partialorder %v11050_v49, %v8885_v31  ;;  %vm2895_vm7 = vcmp.ge.f32.partialorder %v11052_v12, %v8885_v31  ;;  %v11067_v49 = vld [vmem:[#allocation203_spill] sm:$0xff] }
 0x348   :  { %vm3401_vm14 = vcmp.lt.s32.totalorder %v3400_v42, %v3141_v1  ;;  %vm2888_vm15 = vcmp.ge.f32.partialorder %v11045_v20, %v8885_v31  ;;  %v11051_v20 = vld [vmem:[#allocation55_spill] sm:$0xff]  ;;  %vm2911_vm9 = vcmp.ge.f32.partialorder %v11053_v21, %v9006_v28  ;;  %vm2912_vm10 = vcmp.ge.f32.partialorder %v11054_v58, %v9006_v28  ;;  %v11066_v40 = vld [vmem:[#allocation201_spill] sm:$0xff] }
 0x349   :  { %v3402_v35 = vsel %vm3401_vm14, %v3400_v42, %v3141_v1  ;;  %v3143_v42 = vsel %vm2887_vm13, %v8917_v32, 4096  ;;  %vm2894_vm6 = vcmp.ge.f32.partialorder %v11051_v20, %v8885_v31  ;;  %v3144_v57 = vsel %vm2888_vm15, %v8920_v47, 4096  ;;  %v11069_v20 = vld [vmem:[#allocation206_spill] sm:$0xff] }
 0x34a   :  { %vm3403_vm2 = vcmp.lt.s32.totalorder %v3402_v35, %v3142_v39  ;;  %vm2898_vm13 = vcmp.ge.f32.partialorder %v11057_v30, %v8885_v31  ;;  %v3145_v58 = vsel %vm2889_vm0, %v8925_v18, 4096  ;;  %v3167_v33 = vsel %vm2911_vm9, %v8883_v3, 4096 }
 0x34b   :  { %v3404_v1 = vsel %vm3403_vm2, %v3402_v35, %v3142_v39  ;;  %v11055_v35 = vld [vmem:[#allocation85_spill] sm:$0xff]  ;;  %v11056_v39 = vld [vmem:[#allocation86_spill] sm:$0xff]  ;;  %v3168_v50 = vsel %vm2912_vm10, %v8888_v27, 4096  ;;  %vm2902_vm15 = vcmp.ge.f32.partialorder %v11061_v38, %v8885_v31  ;;  %v3146_v62 = vsel %vm2890_vm1, %v8928_v60, 4096 }
 0x34c   :  { %vm3405_vm8 = vcmp.lt.s32.totalorder %v3404_v1, %v3143_v42  ;;  %vm2896_vm11 = vcmp.ge.f32.partialorder %v11055_v35, %v8885_v31  ;;  %vm2913_vm0 = vcmp.ge.f32.partialorder %v11062_v7, %v9006_v28  ;;  %v3148_v43 = vsel %vm2892_vm4, %v8935_v26, 4096  ;;  %v11065_v7 = vld [vmem:[#allocation144_spill] sm:$0xff] }
 0x34d   :  { %v3406_v0 = vsel %vm3405_vm8, %v3404_v1, %v3143_v42  ;;  %v11059_v42 = vld [vmem:[#allocation191_spill] sm:$0xff]  ;;  %v11060_v1 = vld [vmem:[#allocation192_spill] sm:$0xff]  ;;  %vm2904_vm1 = vcmp.ge.f32.partialorder %v11064_v63, %v8885_v31  ;;  %vm2914_vm10 = vcmp.ge.f32.partialorder %v11065_v7, %v9006_v28  ;;  %v3150_v36 = vsel %vm2894_vm6, %v8943_v4, 4096  ;;  %v11068_v7 = vld [vmem:[#allocation165_spill] sm:$0xff] }
 0x34e   :  { %vm3407_vm14 = vcmp.lt.s32.totalorder %v3406_v0, %v3144_v57  ;;  %vm2900_vm2 = vcmp.ge.f32.partialorder %v11059_v42, %v8885_v31  ;;  %vm2901_vm8 = vcmp.ge.f32.partialorder %v11060_v1, %v8885_v31  ;;  %v3169_v22 = vsel %vm2913_vm0, %v8895_v25, 4096 }
 0x34f   :  { %v3408_v21 = vsel %vm3407_vm14, %v3406_v0, %v3144_v57  ;;  %v11063_v0 = vld [vmem:[#allocation198_spill] sm:$0xff]  ;;  %v3147_v57 = vsel %vm2891_vm3, %v8932_v24, 4096  ;;  %v3156_v30 = vsel %vm2900_vm2, %v8965_v6, 4096  ;;  %v3158_v42 = vsel %vm2902_vm15, %v8973_v37, 4096 }
 0x350   :  { %vm3409_vm12 = vcmp.lt.s32.totalorder %v3408_v21, %v3145_v58  ;;  %vm2903_vm14 = vcmp.ge.f32.partialorder %v11063_v0, %v8885_v31  ;;  %v9147_v38 = vsel %vm2904_vm1, %v8980_v48, 4096 }
 0x351   :  { %v3410_v54 = vsel %vm3409_vm12, %v3408_v21, %v3145_v58  ;;  %v3149_v58 = vsel %vm2893_vm5, %v8940_v59, 4096  ;;  %vm3467_vm12 = vcmp.lt.s32.totalorder %v3167_v33, %v3168_v50  ;;  %vm2906_vm5 = vcmp.ge.f32.partialorder %v11067_v49, %v8885_v31 }
 0x352   :  { %vm3411_vm9 = vcmp.lt.s32.totalorder %v3410_v54, %v3146_v62  ;;  %v3468_v2 = vsel %vm3467_vm12, %v3167_v33, %v3168_v50  ;;  %v3152_v50 = vsel %vm2896_vm11, %v8950_v56, 4096  ;;  %v3170_v33 = vsel %vm2914_vm10, %v8900_v29, 4096 }
 0x353   :  { %v3412_v21 = vsel %vm3411_vm9, %v3410_v54, %v3146_v62  ;;  %v3151_v54 = vsel %vm2895_vm7, %v8947_v19, 4096  ;;  %vm2915_vm9 = vcmp.ge.f32.partialorder %v11068_v7, %v9006_v28  ;;  %vm3469_vm3 = vcmp.lt.s32.totalorder %v3468_v2, %v3169_v22 }
 0x354   :  { %vm3413_vm4 = vcmp.lt.s32.totalorder %v3412_v21, %v3147_v57  ;;  %v3470_v15 = vsel %vm3469_vm3, %v3468_v2, %v3169_v22  ;;  %vm2908_vm7 = vcmp.ge.f32.partialorder %v8472_v34, %v8885_v31  ;;  %vm11070_vm12 = vcmp.ge.f32.partialorder %v11056_v39, %v8885_v31 }
 0x355   :  { %v3414_v62 = vsel %vm3413_vm4, %v3412_v21, %v3147_v57  ;;  %v3153_v12 = vsel %vm11070_vm12, %v8955_v17, 4096  ;;  %v11071_v21 = vld [vmem:[#allocation178_spill] sm:$0xff]  ;;  %vm3471_vm6 = vcmp.lt.s32.totalorder %v3470_v15, %v3170_v33  ;;  %v3154_v22 = vsel %vm2898_vm13, %v8958_v55, 4096 }
 0x356   :  { %vm3415_vm0 = vcmp.lt.s32.totalorder %v3414_v62, %v3148_v43  ;;  %vm2916_vm4 = vcmp.ge.f32.partialorder %v11071_v21, %v9006_v28  ;;  %v3171_v2 = vsel %vm2915_vm9, %v8905_v13, 4096  ;;  %v3472_v35 = vsel %vm3471_vm6, %v3470_v15, %v3170_v33 }
 0x357   :  { %v3416_v57 = vsel %vm3415_vm0, %v3414_v62, %v3148_v43  ;;  %vm2910_vm3 = vcmp.ge.f32.partialorder %v8524_v46, %v8885_v31  ;;  %vm11072_vm0 = vcmp.ge.f32.partialorder %v11058_v11, %v8885_v31  ;;  %v11073_v62 = vld [vmem:[#allocation179_spill] sm:$0xff]  ;;  %vm3473_vm11 = vcmp.lt.s32.totalorder %v3472_v35, %v3171_v2 }
 0x358   :  { %vm3417_vm10 = vcmp.lt.s32.totalorder %v3416_v57, %v3149_v58  ;;  %v3155_v43 = vsel %vm11072_vm0, %v8962_v16, 4096  ;;  %vm2917_vm12 = vcmp.ge.f32.partialorder %v11073_v62, %v9006_v28  ;;  %v3172_v15 = vsel %vm2916_vm4, %v8908_v44, 4096  ;;  %v11077_v62 = vld [vmem:[#allocation25_spill] sm:$0xff] }
 0x359   :  { %v3418_v39 = vsel %vm3417_vm10, %v3416_v57, %v3149_v58  ;;  %v3474_v7 = vsel %vm3473_vm11, %v3472_v35, %v3171_v2  ;;  %v3157_v11 = vsel %vm2901_vm8, %v8970_v45, 4096  ;;  %v11074_v58 = vld [vmem:[#allocation2_spill] sm:$0xff]  ;;  %v3173_v57 = vsel %vm2917_vm12, %v8911_v61, 4096  ;;  %v11075_v2 = vld [vmem:[#allocation24_spill] sm:$0xff] }
 0x35a   :  { %vm3419_vm13 = vcmp.lt.s32.totalorder %v3418_v39, %v3150_v36  ;;  %vm2918_vm9 = vcmp.ge.f32.partialorder %v11074_v58, %v9006_v28  ;;  %vm3475_vm6 = vcmp.lt.s32.totalorder %v3474_v7, %v3172_v15  ;;  %v9139_v1 = vsel %vm2903_vm14, %v8977_v8, 4096 }
 0x35b   :  { %v3420_v33 = vsel %vm3419_vm13, %v3418_v39, %v3150_v36  ;;  %v3476_v21 = vsel %vm3475_vm6, %v3474_v7, %v3172_v15  ;;  %vm2919_vm8 = vcmp.ge.f32.partialorder %v11075_v2, %v9006_v28  ;;  %v3174_v35 = vsel %vm2918_vm9, %v8914_v23, 4096 }
 0x35c   :  { %vm3421_vm2 = vcmp.lt.s32.totalorder %v3420_v33, %v3151_v54  ;;  %vm3477_vm4 = vcmp.lt.s32.totalorder %v3476_v21, %v3173_v57  ;;  %vm11076_vm14 = vcmp.ge.f32.partialorder %v11066_v40, %v8885_v31  ;;  %vm2920_vm11 = vcmp.ge.f32.partialorder %v11077_v62, %v9006_v28  ;;  %v11085_v62 = vld [vmem:[#allocation59_spill] sm:$0xff] }
 0x35d   :  { %v3422_v36 = vsel %vm3421_vm2, %v3420_v33, %v3151_v54  ;;  %v3478_v39 = vsel %vm3477_vm4, %v3476_v21, %v3173_v57  ;;  %v9154_v0 = vsel %vm11076_vm14, %v8985_v53, 4096  ;;  %v9162_v63 = vsel %vm2906_vm5, %v8988_v51, 4096  ;;  %v11079_v33 = vld [vmem:[#allocation26_spill] sm:$0xff]  ;;  %v11081_v21 = vld [vmem:[#allocation27_spill] sm:$0xff] }
 0x35e   :  { %vm3423_vm15 = vcmp.lt.s32.totalorder %v3422_v36, %v3152_v50  ;;  %vm3479_vm10 = vcmp.lt.s32.totalorder %v3478_v39, %v3174_v35  ;;  %v3175_v15 = vsel %vm2919_vm8, %v8917_v32, 4096  ;;  %vm11078_vm0 = vcmp.ge.f32.partialorder %v11069_v20, %v8885_v31 }
 0x35f   :  { %v3424_v54 = vsel %vm3423_vm15, %v3422_v36, %v3152_v50  ;;  %v3480_v7 = vsel %vm3479_vm10, %v3478_v39, %v3174_v35  ;;  %v9169_v40 = vsel %vm11078_vm0, %v8992_v52, 4096  ;;  %vm2921_vm12 = vcmp.ge.f32.partialorder %v11079_v33, %v9006_v28  ;;  %v11084_v39 = vld [vmem:[#allocation58_spill] sm:$0xff] }
 0x360   :  { %vm3425_vm1 = vcmp.lt.s32.totalorder %v3424_v54, %v3153_v12  ;;  %vm3481_vm13 = vcmp.lt.s32.totalorder %v3480_v7, %v3175_v15  ;;  %v9177_v49 = vsel %vm2908_vm7, %v8995_v41, 4096  ;;  %v3176_v58 = vsel %vm2920_vm11, %v8920_v47, 4096 }
 0x361   :  { %v3426_v50 = vsel %vm3425_vm1, %v3424_v54, %v3153_v12  ;;  %v3482_v57 = vsel %vm3481_vm13, %v3480_v7, %v3175_v15  ;;  %vm11080_vm9 = vcmp.ge.f32.partialorder %v8516_v10, %v8885_v31  ;;  %vm2922_vm6 = vcmp.ge.f32.partialorder %v11081_v21, %v9006_v28  ;;  %v11082_v10 = vld [vmem:[#allocation56_spill] sm:$0xff]  ;;  %v11087_v15 = vld [vmem:[#allocation89_spill] sm:$0xff] }
 0x362   :  { %vm3427_vm5 = vcmp.lt.s32.totalorder %v3426_v50, %v3154_v22  ;;  %v9184_v20 = vsel %vm11080_vm9, %v9000_v5, 4096  ;;  %vm3483_vm2 = vcmp.lt.s32.totalorder %v3482_v57, %v3176_v58  ;;  %v9192_v34 = vsel %vm2910_vm3, %v9003_v9, 4096 }
 0x363   :  { %v3428_v12 = vsel %vm3427_vm5, %v3426_v50, %v3154_v22  ;;  %v3177_v36 = vsel %vm2921_vm12, %v8925_v18, 4096  ;;  %v3484_v2 = vsel %vm3483_vm2, %v3482_v57, %v3176_v58  ;;  %vm2923_vm8 = vcmp.ge.f32.partialorder %v11082_v10, %v9006_v28  ;;  %v11083_v22 = vld [vmem:[#allocation57_spill] sm:$0xff]  ;;  %v11088_v58 = vld [vmem:[#allocation90_spill] sm:$0xff]  ;;  %v9213_v57 = vpop.xlane.xlu1 %2679 }
 0x364   :  { %vm3429_vm7 = vcmp.lt.s32.totalorder %v3428_v12, %v3155_v43  ;;  %vm2924_vm4 = vcmp.ge.f32.partialorder %v11083_v22, %v9006_v28  ;;  %vm3485_vm15 = vcmp.lt.s32.totalorder %v3484_v2, %v3177_v36  ;;  %vm2925_vm11 = vcmp.ge.f32.partialorder %v11084_v39, %v9006_v28 }
 0x365   :  { %v3430_v35 = vsel %vm3429_vm7, %v3428_v12, %v3155_v43  ;;  %v3178_v46 = vsel %vm2922_vm6, %v8928_v60, 4096  ;;  %v3486_v31 = vsel %vm3485_vm15, %v3484_v2, %v3177_v36  ;;  %vm2926_vm3 = vcmp.ge.f32.partialorder %v11085_v62, %v9006_v28  ;;  %v11086_v43 = vld [vmem:[#allocation88_spill] sm:$0xff]  ;;  %v11090_v12 = vld [vmem:[#allocation193_spill] sm:$0xff] }
 0x366   :  { %vm3431_vm14 = vcmp.lt.s32.totalorder %v3430_v35, %v3156_v30  ;;  %vm2927_vm10 = vcmp.ge.f32.partialorder %v11086_v43, %v9006_v28  ;;  %vm3487_vm1 = vcmp.lt.s32.totalorder %v3486_v31, %v3178_v46  ;;  %vm2928_vm12 = vcmp.ge.f32.partialorder %v11087_v15, %v9006_v28  ;;  %v11091_v2 = vld [vmem:[#allocation116_spill] sm:$0xff] }
 0x367   :  { %v3432_v54 = vsel %vm3431_vm14, %v3430_v35, %v3156_v30  ;;  %v3179_v7 = vsel %vm2923_vm8, %v8932_v24, 4096  ;;  %v3488_v50 = vsel %vm3487_vm1, %v3486_v31, %v3178_v46  ;;  %vm2929_vm13 = vcmp.ge.f32.partialorder %v11088_v58, %v9006_v28  ;;  %v11089_v30 = vld [vmem:[#allocation91_spill] sm:$0xff]  ;;  %v11092_v35 = vld [vmem:[#allocation117_spill] sm:$0xff]  ;;  %v11093_v31 = vld [vmem:[#allocation140_spill] sm:$0xff] }
 0x368   :  { %vm3433_vm0 = vcmp.lt.s32.totalorder %v3432_v54, %v3157_v11  ;;  %vm2930_vm5 = vcmp.ge.f32.partialorder %v11089_v30, %v9006_v28  ;;  %vm3489_vm9 = vcmp.lt.s32.totalorder %v3488_v50, %v3179_v7  ;;  %vm2931_vm2 = vcmp.ge.f32.partialorder %v11090_v12, %v9006_v28  ;;  %v11096_v30 = vld [vmem:[#allocation118_spill] sm:$0xff] }
 0x369   :  { %v3434_v33 = vsel %vm3433_vm0, %v3432_v54, %v3157_v11  ;;  %v3180_v21 = vsel %vm2924_vm4, %v8935_v26, 4096  ;;  %v3490_v36 = vsel %vm3489_vm9, %v3488_v50, %v3179_v7  ;;  %vm2932_vm7 = vcmp.ge.f32.partialorder %v11091_v2, %v9006_v28  ;;  %v11094_v54 = vld [vmem:[#allocation141_spill] sm:$0xff] }
 0x36a   :  { %vm3435_vm6 = vcmp.lt.s32.totalorder %v3434_v33, %v3158_v42  ;;  %vm2933_vm8 = vcmp.ge.f32.partialorder %v11092_v35, %v9006_v28  ;;  %vm3491_vm15 = vcmp.lt.s32.totalorder %v3490_v36, %v3180_v21  ;;  %v3181_v10 = vsel %vm2925_vm11, %v8940_v59, 4096  ;;  %v11099_v35 = vld [vmem:[#allocation168_spill] sm:$0xff] }
 0x36b   :  { %v3436_v11 = vsel %vm3435_vm6, %v3434_v33, %v3158_v42  ;;  %v3182_v22 = vsel %vm2926_vm3, %v8943_v4, 4096  ;;  %v3492_v42 = vsel %vm3491_vm15, %v3490_v36, %v3180_v21  ;;  %vm2943_vm1 = vcmp.ge.f32.partialorder %v11093_v31, %v9213_v57  ;;  %v11095_v36 = vld [vmem:[#allocation145_spill] sm:$0xff] }
 0x36c   :  { %vm3437_vm14 = vcmp.lt.s32.totalorder %v3436_v11, %v9139_v1  ;;  %vm3493_vm4 = vcmp.lt.s32.totalorder %v3492_v42, %v3181_v10  ;;  %vm2944_vm0 = vcmp.ge.f32.partialorder %v11094_v54, %v9213_v57  ;;  %v3183_v39 = vsel %vm2927_vm10, %v8947_v19, 4096  ;;  %v11098_v54 = vld [vmem:[#allocation202_spill] sm:$0xff] }
 0x36d   :  { %v3438_v46 = vsel %vm3437_vm14, %v3436_v11, %v9139_v1  ;;  %v3184_v62 = vsel %vm2928_vm12, %v8950_v56, 4096  ;;  %v3494_v1 = vsel %vm3493_vm4, %v3492_v42, %v3181_v10  ;;  %v3185_v50 = vsel %vm2929_vm13, %v8955_v17, 4096 }
 0x36e   :  { %vm3439_vm9 = vcmp.lt.s32.totalorder %v3438_v46, %v9147_v38  ;;  %v3186_v33 = vsel %vm2930_vm5, %v8958_v55, 4096  ;;  %vm3495_vm11 = vcmp.lt.s32.totalorder %v3494_v1, %v3182_v22  ;;  %v3199_v15 = vsel %vm2943_vm1, %v8883_v3, 4096 }
 0x36f   :  { %v3440_v7 = vsel %vm3439_vm9, %v3438_v46, %v9147_v38  ;;  %v3496_v43 = vsel %vm3495_vm11, %v3494_v1, %v3182_v22  ;;  %v3200_v21 = vsel %vm2944_vm0, %v8888_v27, 4096  ;;  %v3187_v58 = vsel %vm2931_vm2, %v8962_v16, 4096  ;;  %v11097_v22 = vld [vmem:[#allocation150_spill] sm:$0xff] }
 0x370   :  { %vm3441_vm3 = vcmp.lt.s32.totalorder %v3440_v7, %v9154_v0  ;;  %vm3497_vm10 = vcmp.lt.s32.totalorder %v3496_v43, %v3183_v39  ;;  %vm2945_vm12 = vcmp.ge.f32.partialorder %v11095_v36, %v9213_v57  ;;  %vm2934_vm5 = vcmp.ge.f32.partialorder %v11096_v30, %v9006_v28 }
 0x371   :  { %v3442_v38 = vsel %vm3441_vm3, %v3440_v7, %v9154_v0  ;;  %v3188_v11 = vsel %vm2932_vm7, %v8965_v6, 4096  ;;  %v3189_v0 = vsel %vm2933_vm8, %v8970_v45, 4096  ;;  %v3498_v12 = vsel %vm3497_vm10, %v3496_v43, %v3183_v39  ;;  %v11100_v7 = vld [vmem:[#allocation176_spill] sm:$0xff] }
 0x372   :  { %vm3443_vm13 = vcmp.lt.s32.totalorder %v3442_v38, %v9162_v63  ;;  %vm3499_vm6 = vcmp.lt.s32.totalorder %v3498_v12, %v3184_v62  ;;  %vm2946_vm2 = vcmp.ge.f32.partialorder %v11097_v22, %v9213_v57  ;;  %vm3543_vm15 = vcmp.lt.s32.totalorder %v3199_v15, %v3200_v21 }
 0x373   :  { %v3444_v10 = vsel %vm3443_vm13, %v3442_v38, %v9162_v63  ;;  %v3500_v42 = vsel %vm3499_vm6, %v3498_v12, %v3184_v62  ;;  %v3201_v46 = vsel %vm2945_vm12, %v8895_v25, 4096  ;;  %v3544_v2 = vsel %vm3543_vm15, %v3199_v15, %v3200_v21 }
 0x374   :  { %vm3445_vm14 = vcmp.lt.s32.totalorder %v3444_v10, %v9169_v40  ;;  %vm2935_vm7 = vcmp.ge.f32.partialorder %v11098_v54, %v9006_v28  ;;  %vm3501_vm8 = vcmp.lt.s32.totalorder %v3500_v42, %v3185_v50  ;;  %vm2947_vm4 = vcmp.ge.f32.partialorder %v11099_v35, %v9213_v57  ;;  %v11108_v54 = vld [vmem:[#allocation209_spill] sm:$0xff] }
 0x375   :  { %v3446_v31 = vsel %vm3445_vm14, %v3444_v10, %v9169_v40  ;;  %vm3545_vm1 = vcmp.lt.s32.totalorder %v3544_v2, %v3201_v46  ;;  %v3502_v63 = vsel %vm3501_vm8, %v3500_v42, %v3185_v50  ;;  %v3202_v39 = vsel %vm2946_vm2, %v8900_v29, 4096  ;;  %v11101_v50 = vld [vmem:[#allocation181_spill] sm:$0xff] }
 0x376   :  { %vm3447_vm0 = vcmp.lt.s32.totalorder %v3446_v31, %v9177_v49  ;;  %v3546_v1 = vsel %vm3545_vm1, %v3544_v2, %v3201_v46  ;;  %vm3503_vm9 = vcmp.lt.s32.totalorder %v3502_v63, %v3186_v33  ;;  %vm2948_vm11 = vcmp.ge.f32.partialorder %v11100_v7, %v9213_v57  ;;  %v11107_v7 = vld [vmem:[#allocation30_spill] sm:$0xff] }
 0x377   :  { %v3448_v62 = vsel %vm3447_vm0, %v3446_v31, %v9177_v49  ;;  %vm3547_vm3 = vcmp.lt.s32.totalorder %v3546_v1, %v3202_v39  ;;  %v3504_v40 = vsel %vm3503_vm9, %v3502_v63, %v3186_v33  ;;  %v3203_v43 = vsel %vm2947_vm4, %v8905_v13, 4096  ;;  %v11102_v33 = vld [vmem:[#allocation3_spill] sm:$0xff]  ;;  %v11105_v63 = vld [vmem:[#allocation29_spill] sm:$0xff] }
 0x378   :  { %vm3449_vm10 = vcmp.lt.s32.totalorder %v3448_v62, %v9184_v20  ;;  %v3548_v15 = vsel %vm3547_vm3, %v3546_v1, %v3202_v39  ;;  %vm3505_vm12 = vcmp.lt.s32.totalorder %v3504_v40, %v3187_v58  ;;  %vm2949_vm13 = vcmp.ge.f32.partialorder %v11101_v50, %v9213_v57  ;;  %v11109_v50 = vld [vmem:[#allocation31_spill] sm:$0xff] }
 0x379   :  { %v3450_v21 = vsel %vm3449_vm10, %v3448_v62, %v9184_v20  ;;  %vm3549_vm6 = vcmp.lt.s32.totalorder %v3548_v15, %v3203_v43  ;;  %v3506_v49 = vsel %vm3505_vm12, %v3504_v40, %v3187_v58  ;;  %v3204_v38 = vsel %vm2948_vm11, %v8908_v44, 4096  ;;  %v11106_v62 = vld [vmem:[#allocation207_spill] sm:$0xff] }
 0x37a   :  { %vm3451_vm2 = vcmp.lt.s32.totalorder %v3450_v21, %v9192_v34  ;;  %v3550_v36 = vsel %vm3549_vm6, %v3548_v15, %v3203_v43  ;;  %vm3507_vm15 = vcmp.lt.s32.totalorder %v3506_v49, %v3188_v11  ;;  %vm2950_vm14 = vcmp.ge.f32.partialorder %v11102_v33, %v9213_v57 }
 0x37b   :  { %v9301_v12 = vsel %vm3451_vm2, %v3450_v21, %v9192_v34  ;;  %vm3551_vm8 = vcmp.lt.s32.totalorder %v3550_v36, %v3204_v38  ;;  %v3508_v10 = vsel %vm3507_vm15, %v3506_v49, %v3188_v11  ;;  %v3205_v22 = vsel %vm2949_vm13, %v8911_v61, 4096  ;;  %v11103_v34 = vld [vmem:[#allocation28_spill] sm:$0xff]  ;;  %v11104_v11 = vld [vmem:[#allocation205_spill] sm:$0xff] }
 0x37c   :  { %v3454_v20 = vshra.s32 %v9301_v12, 16  ;;  %v3552_v42 = vsel %vm3551_vm8, %v3550_v36, %v3204_v38  ;;  %v3190_v58 = vsel %vm2934_vm5, %v8973_v37, 4096  ;;  %vm3509_vm4 = vcmp.lt.s32.totalorder %v3508_v10, %v3189_v0 }
 0x37d   :  { %vm2951_vm1 = vcmp.ge.f32.partialorder %v11103_v34, %v9213_v57  ;;  %vm3553_vm0 = vcmp.lt.s32.totalorder %v3552_v42, %v3205_v22  ;;  %v3510_v2 = vsel %vm3509_vm4, %v3508_v10, %v3189_v0  ;;  %v3206_v31 = vsel %vm2950_vm14, %v8914_v23, 4096  ;;  %v11111_v34 = vld [vmem:[#allocation214_spill] sm:$0xff] }
 0x37e   :  { %v9313_v46 = vcvt.s32.f32 %v3454_v20  ;;  %v3554_v35 = vsel %vm3553_vm0, %v3552_v42, %v3205_v22  ;;  %vm2936_vm9 = vcmp.ge.f32.partialorder %v11104_v11, %v9006_v28  ;;  %vm3511_vm11 = vcmp.lt.s32.totalorder %v3510_v2, %v3190_v58  ;;  %v11110_v20 = vld [vmem:[#allocation60_spill] sm:$0xff] }
 0x37f   :  { %vm2952_vm3 = vcmp.ge.f32.partialorder %v11105_v63, %v9213_v57  ;;  %vm3555_vm10 = vcmp.lt.s32.totalorder %v3554_v35, %v3206_v31  ;;  %v3191_v30 = vsel %vm2935_vm7, %v8977_v8, 4096  ;;  %v3512_v39 = vsel %vm3511_vm11, %v3510_v2, %v3190_v58  ;;  %v11112_v2 = vld [vmem:[#allocation61_spill] sm:$0xff]  ;;  %v11113_v63 = vld [vmem:[#allocation215_spill] sm:$0xff] }
 0x380   :  { %3457 = vmin.xlane.f32.xlu2 %v9313_v46  ;;  %v3207_v0 = vsel %vm2951_vm1, %v8917_v32, 4096  ;;  %v3556_v1 = vsel %vm3555_vm10, %v3554_v35, %v3206_v31  ;;  %vm2937_vm5 = vcmp.ge.f32.partialorder %v11106_v62, %v9006_v28  ;;  %vm3513_vm12 = vcmp.lt.s32.totalorder %v3512_v39, %v3191_v30 }
 0x381   :  { %vm2953_vm13 = vcmp.ge.f32.partialorder %v11107_v7, %v9213_v57  ;;  %vm3557_vm6 = vcmp.lt.s32.totalorder %v3556_v1, %v3207_v0  ;;  %v3192_v40 = vsel %vm2936_vm9, %v8980_v48, 4096  ;;  %v3514_v43 = vsel %vm3513_vm12, %v3512_v39, %v3191_v30  ;;  %v11114_v30 = vld [vmem:[#allocation62_spill] sm:$0xff]  ;;  %v11115_v7 = vld [vmem:[#allocation219_spill] sm:$0xff] }
 0x382   :  { %v3208_v15 = vsel %vm2952_vm3, %v8920_v47, 4096  ;;  %v3558_v21 = vsel %vm3557_vm6, %v3556_v1, %v3207_v0  ;;  %vm2938_vm7 = vcmp.ge.f32.partialorder %v11108_v54, %v9006_v28  ;;  %vm3515_vm2 = vcmp.lt.s32.totalorder %v3514_v43, %v3192_v40 }
 0x383   :  { %vm2954_vm15 = vcmp.ge.f32.partialorder %v11109_v50, %v9213_v57  ;;  %vm3559_vm14 = vcmp.lt.s32.totalorder %v3558_v21, %v3208_v15  ;;  %v3193_v49 = vsel %vm2937_vm5, %v8985_v53, 4096  ;;  %v3516_v38 = vsel %vm3515_vm2, %v3514_v43, %v3192_v40  ;;  %v11116_v40 = vld [vmem:[#allocation63_spill] sm:$0xff]  ;;  %v11117_v50 = vld [vmem:[#allocation92_spill] sm:$0xff] }
 0x384   :  { %v3209_v36 = vsel %vm2953_vm13, %v8925_v18, 4096  ;;  %v3560_v33 = vsel %vm3559_vm14, %v3558_v21, %v3208_v15  ;;  %vm2939_vm8 = vcmp.ge.f32.partialorder %v8527_v14, %v9006_v28  ;;  %vm3517_vm4 = vcmp.lt.s32.totalorder %v3516_v38, %v3193_v49 }
 0x385   :  { %vm2955_vm1 = vcmp.ge.f32.partialorder %v11110_v20, %v9213_v57  ;;  %vm3561_vm0 = vcmp.lt.s32.totalorder %v3560_v33, %v3209_v36  ;;  %v3194_v10 = vsel %vm2938_vm7, %v8988_v51, 4096  ;;  %v3518_v22 = vsel %vm3517_vm4, %v3516_v38, %v3193_v49  ;;  %v9364_v49 = vpop.xlane.xlu1 %2712  ;;  %v11118_v20 = vld [vmem:[#allocation93_spill] sm:$0xff] }
 0x386   :  { %v3210_v42 = vsel %vm2954_vm15, %v8928_v60, 4096  ;;  %v3562_v58 = vsel %vm3561_vm0, %v3560_v33, %v3209_v36  ;;  %vm2940_vm9 = vcmp.ge.f32.partialorder %v11111_v34, %v9006_v28  ;;  %vm3519_vm11 = vcmp.lt.s32.totalorder %v3518_v22, %v3194_v10 }
 0x387   :  { %vm2956_vm3 = vcmp.ge.f32.partialorder %v11112_v2, %v9213_v57  ;;  %vm3563_vm10 = vcmp.lt.s32.totalorder %v3562_v58, %v3210_v42  ;;  %v3195_v14 = vsel %vm2939_vm8, %v8992_v52, 4096  ;;  %v3520_v31 = vsel %vm3519_vm11, %v3518_v22, %v3194_v10  ;;  %v11119_v22 = vld [vmem:[#allocation94_spill] sm:$0xff] }
 0x388   :  { %v3211_v35 = vsel %vm2955_vm1, %v8932_v24, 4096  ;;  %v3564_v11 = vsel %vm3563_vm10, %v3562_v58, %v3210_v42  ;;  %vm2941_vm5 = vcmp.ge.f32.partialorder %v11113_v63, %v9006_v28  ;;  %vm3521_vm12 = vcmp.lt.s32.totalorder %v3520_v31, %v3195_v14  ;;  %v11120_v2 = vld [vmem:[#allocation142_spill] sm:$0xff]  ;;  %v11122_v63 = vld [vmem:[#allocation95_spill] sm:$0xff] }
 0x389   :  { %vm2957_vm13 = vcmp.ge.f32.partialorder %v11114_v30, %v9213_v57  ;;  %vm3565_vm6 = vcmp.lt.s32.totalorder %v3564_v11, %v3211_v35  ;;  %v3196_v39 = vsel %vm2940_vm9, %v8995_v41, 4096  ;;  %v3522_v0 = vsel %vm3521_vm12, %v3520_v31, %v3195_v14  ;;  %v11121_v14 = vld [vmem:[#allocation143_spill] sm:$0xff] }
 0x38a   :  { %v3212_v1 = vsel %vm2956_vm3, %v8935_v26, 4096  ;;  %v3566_v62 = vsel %vm3565_vm6, %v3564_v11, %v3211_v35  ;;  %vm2942_vm7 = vcmp.ge.f32.partialorder %v11115_v7, %v9006_v28  ;;  %vm3523_vm2 = vcmp.lt.s32.totalorder %v3522_v0, %v3196_v39  ;;  %v11124_v7 = vld [vmem:[#allocation146_spill] sm:$0xff] }
 0x38b   :  { %vm2958_vm15 = vcmp.ge.f32.partialorder %v11116_v40, %v9213_v57  ;;  %vm3567_vm14 = vcmp.lt.s32.totalorder %v3566_v62, %v3212_v1  ;;  %v3197_v43 = vsel %vm2941_vm5, %v9000_v5, 4096  ;;  %v3524_v15 = vsel %vm3523_vm2, %v3522_v0, %v3196_v39  ;;  %v11125_v40 = vld [vmem:[#allocation120_spill] sm:$0xff] }
 0x38c   :  { %v3213_v21 = vsel %vm2957_vm13, %v8940_v59, 4096  ;;  %v3568_v54 = vsel %vm3567_vm14, %v3566_v62, %v3212_v1  ;;  %vm3525_vm8 = vcmp.lt.s32.totalorder %v3524_v15, %v3197_v43  ;;  %vm2959_vm4 = vcmp.ge.f32.partialorder %v11117_v50, %v9213_v57  ;;  %v11123_v62 = vld [vmem:[#allocation119_spill] sm:$0xff] }
 0x38d   :  { %vm3569_vm1 = vcmp.lt.s32.totalorder %v3568_v54, %v3213_v21  ;;  %v3198_v28 = vsel %vm2942_vm7, %v9003_v9, 4096  ;;  %v3526_v38 = vsel %vm3525_vm8, %v3524_v15, %v3197_v43  ;;  %v3214_v36 = vsel %vm2958_vm15, %v8943_v4, 4096 }
 0x38e   :  { %v3570_v33 = vsel %vm3569_vm1, %v3568_v54, %v3213_v21  ;;  %vm3527_vm0 = vcmp.lt.s32.totalorder %v3526_v38, %v3198_v28  ;;  %vm2960_vm9 = vcmp.ge.f32.partialorder %v11118_v20, %v9213_v57  ;;  %vm2961_vm3 = vcmp.ge.f32.partialorder %v11119_v22, %v9213_v57  ;;  %v11126_v21 = vld [vmem:[#allocation121_spill] sm:$0xff]  ;;  %v11127_v54 = vld [vmem:[#allocation155_spill] sm:$0xff]  ;;  %v11129_v20 = vld [vmem:[#allocation174_spill] sm:$0xff] }
 0x38f   :  { %vm3571_vm11 = vcmp.lt.s32.totalorder %v3570_v33, %v3214_v36  ;;  %v9370_v10 = vsel %vm3527_vm0, %v3526_v38, %v3198_v28  ;;  %v3215_v42 = vsel %vm2959_vm4, %v8947_v19, 4096  ;;  %vm2975_vm5 = vcmp.ge.f32.partialorder %v11120_v2, %v9364_v49  ;;  %v11130_v2 = vld [vmem:[#allocation208_spill] sm:$0xff] }
 0x390   :  { %v3572_v58 = vsel %vm3571_vm11, %v3570_v33, %v3214_v36  ;;  %v3530_v34 = vshra.s32 %v9370_v10, 16  ;;  %vm2976_vm12 = vcmp.ge.f32.partialorder %v11121_v14, %v9364_v49  ;;  %v3216_v31 = vsel %vm2960_vm9, %v8950_v56, 4096  ;;  %v11128_v33 = vld [vmem:[#allocation122_spill] sm:$0xff]  ;;  %v11131_v14 = vld [vmem:[#allocation185_spill] sm:$0xff] }
 0x391   :  { %vm3573_vm10 = vcmp.lt.s32.totalorder %v3572_v58, %v3215_v42  ;;  %vm2962_vm13 = vcmp.ge.f32.partialorder %v11122_v63, %v9213_v57  ;;  %v3217_v30 = vsel %vm2961_vm3, %v8955_v17, 4096  ;;  %v3231_v0 = vsel %vm2975_vm5, %v8883_v3, 4096 }
 0x392   :  { %v3574_v35 = vsel %vm3573_vm10, %v3572_v58, %v3215_v42  ;;  %v9381_v11 = vcvt.s32.f32 %v3530_v34  ;;  %v3232_v1 = vsel %vm2976_vm12, %v8888_v27, 4096  ;;  %vm2963_vm7 = vcmp.ge.f32.partialorder %v11123_v62, %v9213_v57 }
 0x393   :  { %vm3575_vm6 = vcmp.lt.s32.totalorder %v3574_v35, %v3216_v31  ;;  %vm2977_vm15 = vcmp.ge.f32.partialorder %v11124_v7, %v9364_v49  ;;  %vm2964_vm14 = vcmp.ge.f32.partialorder %v11125_v40, %v9213_v57  ;;  %v3218_v43 = vsel %vm2962_vm13, %v8958_v55, 4096 }
 0x394   :  { %v3576_v39 = vsel %vm3575_vm6, %v3574_v35, %v3216_v31  ;;  %3533 = vmin.xlane.f32.xlu0 %v9381_v11  ;;  %vm2965_vm8 = vcmp.ge.f32.partialorder %v11126_v21, %v9213_v57  ;;  %vm2978_vm1 = vcmp.ge.f32.partialorder %v11127_v54, %v9364_v49  ;;  %vm3619_vm0 = vcmp.lt.s32.totalorder %v3231_v0, %v3232_v1 }
 0x395   :  { %vm3577_vm2 = vcmp.lt.s32.totalorder %v3576_v39, %v3217_v30  ;;  %v3219_v50 = vsel %vm2963_vm7, %v8962_v16, 4096  ;;  %v3233_v38 = vsel %vm2977_vm15, %v8895_v25, 4096  ;;  %v3620_v36 = vsel %vm3619_vm0, %v3231_v0, %v3232_v1  ;;  %v11133_v0 = vld [vmem:[#allocation4_spill] sm:$0xff] }
 0x396   :  { %v3578_v15 = vsel %vm3577_vm2, %v3576_v39, %v3217_v30  ;;  %vm2966_vm9 = vcmp.ge.f32.partialorder %v11128_v33, %v9213_v57  ;;  %vm2979_vm3 = vcmp.ge.f32.partialorder %v11129_v20, %v9364_v49  ;;  %vm3621_vm10 = vcmp.lt.s32.totalorder %v3620_v36, %v3233_v38  ;;  %v11132_v39 = vld [vmem:[#allocation210_spill] sm:$0xff] }
 0x397   :  { %vm3579_vm4 = vcmp.lt.s32.totalorder %v3578_v15, %v3218_v43  ;;  %v3220_v22 = vsel %vm2964_vm14, %v8965_v6, 4096  ;;  %v3234_v58 = vsel %vm2978_vm1, %v8900_v29, 4096  ;;  %v3622_v34 = vsel %vm3621_vm10, %v3620_v36, %v3233_v38  ;;  %v11136_v38 = vld [vmem:[#allocation213_spill] sm:$0xff]  ;;  %v11137_v36 = vld [vmem:[#allocation32_spill] sm:$0xff] }
 0x398   :  { %v3580_v28 = vsel %vm3579_vm4, %v3578_v15, %v3218_v43  ;;  %vm2967_vm5 = vcmp.ge.f32.partialorder %v11130_v2, %v9213_v57  ;;  %vm2980_vm13 = vcmp.ge.f32.partialorder %v11131_v14, %v9364_v49  ;;  %vm3623_vm6 = vcmp.lt.s32.totalorder %v3622_v34, %v3234_v58  ;;  %v11134_v43 = vld [vmem:[#allocation211_spill] sm:$0xff]  ;;  %v11135_v15 = vld [vmem:[#allocation5_spill] sm:$0xff] }
 0x399   :  { %vm3581_vm11 = vcmp.lt.s32.totalorder %v3580_v28, %v3219_v50  ;;  %v3221_v31 = vsel %vm2965_vm8, %v8970_v45, 4096  ;;  %v3235_v63 = vsel %vm2979_vm3, %v8905_v13, 4096  ;;  %v3624_v30 = vsel %vm3623_vm6, %v3622_v34, %v3234_v58  ;;  %v11138_v58 = vld [vmem:[#allocation217_spill] sm:$0xff] }
 0x39a   :  { %v3582_v42 = vsel %vm3581_vm11, %v3580_v28, %v3219_v50  ;;  %vm2968_vm7 = vcmp.ge.f32.partialorder %v11132_v39, %v9213_v57  ;;  %vm2981_vm15 = vcmp.ge.f32.partialorder %v11133_v0, %v9364_v49  ;;  %vm3625_vm14 = vcmp.lt.s32.totalorder %v3624_v30, %v3235_v63  ;;  %v11139_v34 = vld [vmem:[#allocation33_spill] sm:$0xff] }
 0x39b   :  { %vm3583_vm12 = vcmp.lt.s32.totalorder %v3582_v42, %v3220_v22  ;;  %v3222_v1 = vsel %vm2966_vm9, %v8973_v37, 4096  ;;  %v3236_v7 = vsel %vm2980_vm13, %v8908_v44, 4096  ;;  %v3626_v40 = vsel %vm3625_vm14, %v3624_v30, %v3235_v63  ;;  %v11140_v63 = vld [vmem:[#allocation221_spill] sm:$0xff]  ;;  %v11141_v30 = vld [vmem:[#allocation34_spill] sm:$0xff] }
 0x39c   :  { %v3584_v35 = vsel %vm3583_vm12, %v3582_v42, %v3220_v22  ;;  %vm2969_vm8 = vcmp.ge.f32.partialorder %v11134_v43, %v9213_v57  ;;  %vm2982_vm1 = vcmp.ge.f32.partialorder %v11135_v15, %v9364_v49  ;;  %vm3627_vm0 = vcmp.lt.s32.totalorder %v3626_v40, %v3236_v7 }
 0x39d   :  { %vm3585_vm2 = vcmp.lt.s32.totalorder %v3584_v35, %v3221_v31  ;;  %v3223_v21 = vsel %vm2967_vm5, %v8977_v8, 4096  ;;  %v3237_v50 = vsel %vm2981_vm15, %v8911_v61, 4096  ;;  %v3628_v28 = vsel %vm3627_vm0, %v3626_v40, %v3236_v7  ;;  %v11142_v7 = vld [vmem:[#allocation226_spill] sm:$0xff]  ;;  %v11143_v40 = vld [vmem:[#allocation35_spill] sm:$0xff] }
 0x39e   :  { %v3586_v62 = vsel %vm3585_vm2, %v3584_v35, %v3221_v31  ;;  %vm2970_vm9 = vcmp.ge.f32.partialorder %v11136_v38, %v9213_v57  ;;  %vm2983_vm3 = vcmp.ge.f32.partialorder %v11137_v36, %v9364_v49  ;;  %vm3629_vm10 = vcmp.lt.s32.totalorder %v3628_v28, %v3237_v50 }
 0x39f   :  { %vm3587_vm4 = vcmp.lt.s32.totalorder %v3586_v62, %v3222_v1  ;;  %v3224_v33 = vsel %vm2968_vm7, %v8980_v48, 4096  ;;  %v3238_v22 = vsel %vm2982_vm1, %v8914_v23, 4096  ;;  %v3630_v42 = vsel %vm3629_vm10, %v3628_v28, %v3237_v50  ;;  %v11144_v50 = vld [vmem:[#allocation227_spill] sm:$0xff]  ;;  %v11145_v28 = vld [vmem:[#allocation64_spill] sm:$0xff] }
 0x3a0   :  { %v3588_v54 = vsel %vm3587_vm4, %v3586_v62, %v3222_v1  ;;  %vm2971_vm5 = vcmp.ge.f32.partialorder %v11138_v58, %v9213_v57  ;;  %vm2984_vm13 = vcmp.ge.f32.partialorder %v11139_v34, %v9364_v49  ;;  %vm3631_vm6 = vcmp.lt.s32.totalorder %v3630_v42, %v3238_v22 }
 0x3a1   :  { %vm3589_vm11 = vcmp.lt.s32.totalorder %v3588_v54, %v3223_v21  ;;  %v3225_v2 = vsel %vm2969_vm8, %v8985_v53, 4096  ;;  %v3239_v31 = vsel %vm2983_vm3, %v8917_v32, 4096  ;;  %v3632_v35 = vsel %vm3631_vm6, %v3630_v42, %v3238_v22  ;;  %v11146_v22 = vld [vmem:[#allocation65_spill] sm:$0xff]  ;;  %v9482_v42 = vpop.xlane.xlu2 %2745 }
 0x3a2   :  { %v3590_v20 = vsel %vm3589_vm11, %v3588_v54, %v3223_v21  ;;  %vm2972_vm7 = vcmp.ge.f32.partialorder %v11140_v63, %v9213_v57  ;;  %vm2985_vm15 = vcmp.ge.f32.partialorder %v11141_v30, %v9364_v49  ;;  %vm3633_vm14 = vcmp.lt.s32.totalorder %v3632_v35, %v3239_v31  ;;  %v11148_v30 = vld [vmem:[#allocation67_spill] sm:$0xff] }
 0x3a3   :  { %vm3591_vm12 = vcmp.lt.s32.totalorder %v3590_v20, %v3224_v33  ;;  %v3226_v39 = vsel %vm2970_vm9, %v8988_v51, 4096  ;;  %v3240_v1 = vsel %vm2984_vm13, %v8920_v47, 4096  ;;  %v3634_v62 = vsel %vm3633_vm14, %v3632_v35, %v3239_v31  ;;  %v11147_v35 = vld [vmem:[#allocation66_spill] sm:$0xff] }
 0x3a4   :  { %v3592_v14 = vsel %vm3591_vm12, %v3590_v20, %v3224_v33  ;;  %vm2973_vm8 = vcmp.ge.f32.partialorder %v11142_v7, %v9213_v57  ;;  %vm2986_vm1 = vcmp.ge.f32.partialorder %v11143_v40, %v9364_v49  ;;  %vm3635_vm0 = vcmp.lt.s32.totalorder %v3634_v62, %v3240_v1 }
 0x3a5   :  { %vm3593_vm2 = vcmp.lt.s32.totalorder %v3592_v14, %v3225_v2  ;;  %v3227_v43 = vsel %vm2971_vm5, %v8992_v52, 4096  ;;  %v3241_v21 = vsel %vm2985_vm15, %v8925_v18, 4096  ;;  %v3636_v54 = vsel %vm3635_vm0, %v3634_v62, %v3240_v1  ;;  %v11149_v1 = vld [vmem:[#allocation147_spill] sm:$0xff] }
 0x3a6   :  { %v3594_v0 = vsel %vm3593_vm2, %v3592_v14, %v3225_v2  ;;  %vm2974_vm9 = vcmp.ge.f32.partialorder %v11144_v50, %v9213_v57  ;;  %vm2987_vm3 = vcmp.ge.f32.partialorder %v11145_v28, %v9364_v49  ;;  %vm3637_vm10 = vcmp.lt.s32.totalorder %v3636_v54, %v3241_v21  ;;  %v11150_v57 = vld [vmem:[#allocation148_spill] sm:$0xff] }
 0x3a7   :  { %vm3595_vm4 = vcmp.lt.s32.totalorder %v3594_v0, %v3226_v39  ;;  %v3228_v38 = vsel %vm2972_vm7, %v8995_v41, 4096  ;;  %v3242_v33 = vsel %vm2986_vm1, %v8928_v60, 4096  ;;  %v3638_v20 = vsel %vm3637_vm10, %v3636_v54, %v3241_v21  ;;  %v11152_v21 = vld [vmem:[#allocation97_spill] sm:$0xff] }
 0x3a8   :  { %v3596_v15 = vsel %vm3595_vm4, %v3594_v0, %v3226_v39  ;;  %vm2988_vm12 = vcmp.ge.f32.partialorder %v11146_v22, %v9364_v49  ;;  %vm3639_vm13 = vcmp.lt.s32.totalorder %v3638_v20, %v3242_v33  ;;  %v3229_v58 = vsel %vm2973_vm8, %v9000_v5, 4096  ;;  %v11155_v22 = vld [vmem:[#allocation99_spill] sm:$0xff] }
 0x3a9   :  { %vm3597_vm11 = vcmp.lt.s32.totalorder %v3596_v15, %v3227_v43  ;;  %v3243_v2 = vsel %vm2987_vm3, %v8932_v24, 4096  ;;  %v3640_v14 = vsel %vm3639_vm13, %v3638_v20, %v3242_v33  ;;  %v3230_v31 = vsel %vm2974_vm9, %v9003_v9, 4096  ;;  %v11153_v33 = vld [vmem:[#allocation98_spill] sm:$0xff]  ;;  %v11154_v20 = vld [vmem:[#allocation152_spill] sm:$0xff] }
 0x3aa   :  { %v3598_v36 = vsel %vm3597_vm11, %v3596_v15, %v3227_v43  ;;  %vm2989_vm7 = vcmp.ge.f32.partialorder %v11147_v35, %v9364_v49  ;;  %vm3641_vm2 = vcmp.lt.s32.totalorder %v3640_v14, %v3243_v2  ;;  %vm2990_vm15 = vcmp.ge.f32.partialorder %v11148_v30, %v9364_v49  ;;  %v11151_v15 = vld [vmem:[#allocation96_spill] sm:$0xff] }
 0x3ab   :  { %vm3599_vm5 = vcmp.lt.s32.totalorder %v3598_v36, %v3228_v38  ;;  %v3244_v39 = vsel %vm2988_vm12, %v8935_v26, 4096  ;;  %v3642_v0 = vsel %vm3641_vm2, %v3640_v14, %v3243_v2  ;;  %vm3007_vm4 = vcmp.ge.f32.partialorder %v11149_v1, %v9482_v42  ;;  %v11157_v14 = vld [vmem:[#allocation124_spill] sm:$0xff]  ;;  %v11160_v1 = vld [vmem:[#allocation182_spill] sm:$0xff] }
 0x3ac   :  { %v3600_v34 = vsel %vm3599_vm5, %v3598_v36, %v3228_v38  ;;  %vm3643_vm8 = vcmp.lt.s32.totalorder %v3642_v0, %v3244_v39  ;;  %vm3008_vm1 = vcmp.ge.f32.partialorder %v11150_v57, %v9482_v42  ;;  %v3245_v7 = vsel %vm2989_vm7, %v8940_v59, 4096 }
 0x3ad   :  { %vm3601_vm6 = vcmp.lt.s32.totalorder %v3600_v34, %v3229_v58  ;;  %v3644_v40 = vsel %vm3643_vm8, %v3642_v0, %v3244_v39  ;;  %vm2991_vm0 = vcmp.ge.f32.partialorder %v11151_v15, %v9364_v49  ;;  %vm2992_vm9 = vcmp.ge.f32.partialorder %v11152_v21, %v9364_v49  ;;  %v11159_v0 = vld [vmem:[#allocation125_spill] sm:$0xff]  ;;  %v11161_v15 = vld [vmem:[#allocation126_spill] sm:$0xff] }
 0x3ae   :  { %v3602_v63 = vsel %vm3601_vm6, %v3600_v34, %v3229_v58  ;;  %vm3645_vm11 = vcmp.lt.s32.totalorder %v3644_v40, %v3245_v7  ;;  %v3246_v54 = vsel %vm2990_vm15, %v8943_v4, 4096  ;;  %v3263_v28 = vsel %vm3007_vm4, %v8883_v3, 4096  ;;  %v11156_v58 = vld [vmem:[#allocation123_spill] sm:$0xff]  ;;  %v11162_v21 = vld [vmem:[#allocation6_spill] sm:$0xff] }
 0x3af   :  { %vm3603_vm14 = vcmp.lt.s32.totalorder %v3602_v63, %v3230_v31  ;;  %v3646_v50 = vsel %vm3645_vm11, %v3644_v40, %v3245_v7  ;;  %v3264_v38 = vsel %vm3008_vm1, %v8888_v27, 4096  ;;  %vm2993_vm3 = vcmp.ge.f32.partialorder %v11153_v33, %v9364_v49  ;;  %v11163_v33 = vld [vmem:[#allocation212_spill] sm:$0xff] }
 0x3b0   :  { %v9502_v62 = vsel %vm3603_vm14, %v3602_v63, %v3230_v31  ;;  %vm3647_vm10 = vcmp.lt.s32.totalorder %v3646_v50, %v3246_v54  ;;  %vm3009_vm5 = vcmp.ge.f32.partialorder %v11154_v20, %v9482_v42  ;;  %vm2994_vm12 = vcmp.ge.f32.partialorder %v11155_v22, %v9364_v49  ;;  %v11158_v31 = vld [vmem:[#allocation158_spill] sm:$0xff]  ;;  %v11164_v20 = vld [vmem:[#allocation7_spill] sm:$0xff] }
 0x3b1   :  { %v3606_v43 = vshra.s32 %v9502_v62, 16  ;;  %vm2995_vm13 = vcmp.ge.f32.partialorder %v11156_v58, %v9364_v49  ;;  %v3247_v34 = vsel %vm2991_vm0, %v8947_v19, 4096  ;;  %v3648_v2 = vsel %vm3647_vm10, %v3646_v50, %v3246_v54 }
 0x3b2   :  { %vm2996_vm6 = vcmp.ge.f32.partialorder %v11157_v14, %v9364_v49  ;;  %vm3649_vm7 = vcmp.lt.s32.totalorder %v3648_v2, %v3247_v34  ;;  %vm3010_vm2 = vcmp.ge.f32.partialorder %v11158_v31, %v9482_v42  ;;  %vm3695_vm15 = vcmp.lt.s32.totalorder %v3263_v28, %v3264_v38 }
 0x3b3   :  { %v9513_v36 = vcvt.s32.f32 %v3606_v43  ;;  %v3248_v35 = vsel %vm2992_vm9, %v8950_v56, 4096  ;;  %v3650_v63 = vsel %vm3649_vm7, %v3648_v2, %v3247_v34  ;;  %v3265_v30 = vsel %vm3009_vm5, %v8895_v25, 4096 }
 0x3b4   :  { %v3696_v39 = vsel %vm3695_vm15, %v3263_v28, %v3264_v38  ;;  %vm2997_vm14 = vcmp.ge.f32.partialorder %v11159_v0, %v9364_v49  ;;  %vm3651_vm8 = vcmp.lt.s32.totalorder %v3650_v63, %v3248_v35  ;;  %vm3011_vm4 = vcmp.ge.f32.partialorder %v11160_v1, %v9482_v42 }
 0x3b5   :  { %3609 = vmin.xlane.f32.xlu1 %v9513_v36  ;;  %vm3697_vm1 = vcmp.lt.s32.totalorder %v3696_v39, %v3265_v30  ;;  %v3249_v57 = vsel %vm2993_vm3, %v8955_v17, 4096  ;;  %v3652_v7 = vsel %vm3651_vm8, %v3650_v63, %v3248_v35  ;;  %v3266_v40 = vsel %vm3010_vm2, %v8900_v29, 4096  ;;  %v11165_v35 = vld [vmem:[#allocation216_spill] sm:$0xff] }
 0x3b6   :  { %v3698_v43 = vsel %vm3697_vm1, %v3696_v39, %v3265_v30  ;;  %vm2998_vm0 = vcmp.ge.f32.partialorder %v11161_v15, %v9364_v49  ;;  %vm3653_vm9 = vcmp.lt.s32.totalorder %v3652_v7, %v3249_v57  ;;  %vm3012_vm11 = vcmp.ge.f32.partialorder %v11162_v21, %v9482_v42  ;;  %v11166_v63 = vld [vmem:[#allocation8_spill] sm:$0xff] }
 0x3b7   :  { %vm3699_vm10 = vcmp.lt.s32.totalorder %v3698_v43, %v3266_v40  ;;  %v3250_v54 = vsel %vm2994_vm12, %v8958_v55, 4096  ;;  %v3654_v50 = vsel %vm3653_vm9, %v3652_v7, %v3249_v57  ;;  %v3267_v28 = vsel %vm3011_vm4, %v8905_v13, 4096  ;;  %v11167_v57 = vld [vmem:[#allocation218_spill] sm:$0xff]  ;;  %v11168_v7 = vld [vmem:[#allocation36_spill] sm:$0xff] }
 0x3b8   :  { %v3700_v38 = vsel %vm3699_vm10, %v3698_v43, %v3266_v40  ;;  %vm2999_vm3 = vcmp.ge.f32.partialorder %v11163_v33, %v9364_v49  ;;  %vm3655_vm5 = vcmp.lt.s32.totalorder %v3654_v50, %v3250_v54  ;;  %vm3013_vm7 = vcmp.ge.f32.partialorder %v11164_v20, %v9482_v42 }
 0x3b9   :  { %vm3701_vm2 = vcmp.lt.s32.totalorder %v3700_v38, %v3267_v28  ;;  %v3251_v34 = vsel %vm2995_vm13, %v8962_v16, 4096  ;;  %v3656_v2 = vsel %vm3655_vm5, %v3654_v50, %v3250_v54  ;;  %v3268_v22 = vsel %vm3012_vm11, %v8908_v44, 4096  ;;  %v11169_v54 = vld [vmem:[#allocation224_spill] sm:$0xff]  ;;  %v11170_v50 = vld [vmem:[#allocation37_spill] sm:$0xff] }
 0x3ba   :  { %v3702_v31 = vsel %vm3701_vm2, %v3700_v38, %v3267_v28  ;;  %vm3000_vm12 = vcmp.ge.f32.partialorder %v11165_v35, %v9364_v49  ;;  %vm3657_vm15 = vcmp.lt.s32.totalorder %v3656_v2, %v3251_v34  ;;  %vm3014_vm8 = vcmp.ge.f32.partialorder %v11166_v63, %v9482_v42 }
 0x3bb   :  { %vm3703_vm4 = vcmp.lt.s32.totalorder %v3702_v31, %v3268_v22  ;;  %v3252_v30 = vsel %vm2996_vm6, %v8965_v6, 4096  ;;  %v3658_v39 = vsel %vm3657_vm15, %v3656_v2, %v3251_v34  ;;  %v3269_v58 = vsel %vm3013_vm7, %v8911_v61, 4096  ;;  %v11171_v34 = vld [vmem:[#allocation228_spill] sm:$0xff]  ;;  %v11172_v2 = vld [vmem:[#allocation38_spill] sm:$0xff] }
 0x3bc   :  { %v3704_v1 = vsel %vm3703_vm4, %v3702_v31, %v3268_v22  ;;  %vm3001_vm13 = vcmp.ge.f32.partialorder %v11167_v57, %v9364_v49  ;;  %vm3659_vm1 = vcmp.lt.s32.totalorder %v3658_v39, %v3252_v30  ;;  %vm3015_vm9 = vcmp.ge.f32.partialorder %v11168_v7, %v9482_v42 }
 0x3bd   :  { %vm3705_vm11 = vcmp.lt.s32.totalorder %v3704_v1, %v3269_v58  ;;  %v3253_v40 = vsel %vm2997_vm14, %v8970_v45, 4096  ;;  %v3660_v43 = vsel %vm3659_vm1, %v3658_v39, %v3252_v30  ;;  %v3270_v14 = vsel %vm3014_vm8, %v8914_v23, 4096  ;;  %v11173_v30 = vld [vmem:[#allocation230_spill] sm:$0xff]  ;;  %v11174_v39 = vld [vmem:[#allocation39_spill] sm:$0xff] }
 0x3be   :  { %v3706_v21 = vsel %vm3705_vm11, %v3704_v1, %v3269_v58  ;;  %vm3002_vm6 = vcmp.ge.f32.partialorder %v11169_v54, %v9364_v49  ;;  %vm3661_vm10 = vcmp.lt.s32.totalorder %v3660_v43, %v3253_v40  ;;  %vm3016_vm5 = vcmp.ge.f32.partialorder %v11170_v50, %v9482_v42 }
 0x3bf   :  { %vm3707_vm7 = vcmp.lt.s32.totalorder %v3706_v21, %v3270_v14  ;;  %v3254_v28 = vsel %vm2998_vm0, %v8973_v37, 4096  ;;  %v3662_v38 = vsel %vm3661_vm10, %v3660_v43, %v3253_v40  ;;  %v3271_v0 = vsel %vm3015_vm9, %v8917_v32, 4096  ;;  %v11175_v40 = vld [vmem:[#allocation231_spill] sm:$0xff]  ;;  %v11176_v43 = vld [vmem:[#allocation68_spill] sm:$0xff] }
 0x3c0   :  { %v3708_v20 = vsel %vm3707_vm7, %v3706_v21, %v3270_v14  ;;  %vm3003_vm14 = vcmp.ge.f32.partialorder %v11171_v34, %v9364_v49  ;;  %vm3663_vm2 = vcmp.lt.s32.totalorder %v3662_v38, %v3254_v28  ;;  %vm3017_vm15 = vcmp.ge.f32.partialorder %v11172_v2, %v9482_v42 }
 0x3c1   :  { %vm3709_vm8 = vcmp.lt.s32.totalorder %v3708_v20, %v3271_v0  ;;  %v3255_v22 = vsel %vm2999_vm3, %v8977_v8, 4096  ;;  %v3664_v31 = vsel %vm3663_vm2, %v3662_v38, %v3254_v28  ;;  %v3272_v15 = vsel %vm3016_vm5, %v8920_v47, 4096  ;;  %v11177_v28 = vld [vmem:[#allocation234_spill] sm:$0xff]  ;;  %v11178_v38 = vld [vmem:[#allocation69_spill] sm:$0xff] }
 0x3c2   :  { %v3710_v63 = vsel %vm3709_vm8, %v3708_v20, %v3271_v0  ;;  %vm3004_vm0 = vcmp.ge.f32.partialorder %v11173_v30, %v9364_v49  ;;  %vm3665_vm4 = vcmp.lt.s32.totalorder %v3664_v31, %v3255_v22  ;;  %vm3018_vm1 = vcmp.ge.f32.partialorder %v11174_v39, %v9482_v42  ;;  %v11181_v30 = vld [vmem:[#allocation100_spill] sm:$0xff] }
 0x3c3   :  { %vm3711_vm9 = vcmp.lt.s32.totalorder %v3710_v63, %v3272_v15  ;;  %v3256_v58 = vsel %vm3000_vm12, %v8980_v48, 4096  ;;  %v3666_v1 = vsel %vm3665_vm4, %v3664_v31, %v3255_v22  ;;  %v3273_v33 = vsel %vm3017_vm15, %v8925_v18, 4096  ;;  %v11179_v31 = vld [vmem:[#allocation70_spill] sm:$0xff] }
 0x3c4   :  { %v3712_v7 = vsel %vm3711_vm9, %v3710_v63, %v3272_v15  ;;  %vm3005_vm3 = vcmp.ge.f32.partialorder %v11175_v40, %v9364_v49  ;;  %vm3667_vm11 = vcmp.lt.s32.totalorder %v3666_v1, %v3256_v58  ;;  %vm3019_vm10 = vcmp.ge.f32.partialorder %v11176_v43, %v9482_v42  ;;  %v11180_v63 = vld [vmem:[#allocation71_spill] sm:$0xff] }
 0x3c5   :  { %vm3713_vm5 = vcmp.lt.s32.totalorder %v3712_v7, %v3273_v33  ;;  %v3257_v14 = vsel %vm3001_vm13, %v8985_v53, 4096  ;;  %v3668_v21 = vsel %vm3667_vm11, %v3666_v1, %v3256_v58  ;;  %v3274_v35 = vsel %vm3018_vm1, %v8928_v60, 4096  ;;  %v9633_v58 = vpop.xlane.xlu2 %2778 }
 0x3c6   :  { %v3714_v50 = vsel %vm3713_vm5, %v3712_v7, %v3273_v33  ;;  %vm3006_vm12 = vcmp.ge.f32.partialorder %v11177_v28, %v9364_v49  ;;  %vm3669_vm7 = vcmp.lt.s32.totalorder %v3668_v21, %v3257_v14  ;;  %vm3020_vm2 = vcmp.ge.f32.partialorder %v11178_v38, %v9482_v42  ;;  %v11183_v38 = vld [vmem:[#allocation154_spill] sm:$0xff]  ;;  %v11184_v49 = vld [vmem:[#allocation101_spill] sm:$0xff] }
 0x3c7   :  { %vm3715_vm15 = vcmp.lt.s32.totalorder %v3714_v50, %v3274_v35  ;;  %v3258_v0 = vsel %vm3002_vm6, %v8988_v51, 4096  ;;  %v3670_v20 = vsel %vm3669_vm7, %v3668_v21, %v3257_v14  ;;  %v3275_v57 = vsel %vm3019_vm10, %v8932_v24, 4096  ;;  %v11185_v28 = vld [vmem:[#allocation102_spill] sm:$0xff] }
 0x3c8   :  { %v3716_v2 = vsel %vm3715_vm15, %v3714_v50, %v3274_v35  ;;  %v3259_v22 = vsel %vm3003_vm14, %v8992_v52, 4096  ;;  %vm3671_vm13 = vcmp.lt.s32.totalorder %v3670_v20, %v3258_v0  ;;  %vm3021_vm8 = vcmp.ge.f32.partialorder %v11179_v31, %v9482_v42  ;;  %v11182_v50 = vld [vmem:[#allocation153_spill] sm:$0xff] }
 0x3c9   :  { %vm3717_vm4 = vcmp.lt.s32.totalorder %v3716_v2, %v3275_v57  ;;  %v3672_v15 = vsel %vm3671_vm13, %v3670_v20, %v3258_v0  ;;  %vm3022_vm1 = vcmp.ge.f32.partialorder %v11180_v63, %v9482_v42  ;;  %v3276_v54 = vsel %vm3020_vm2, %v8935_v26, 4096  ;;  %v11186_v20 = vld [vmem:[#allocation103_spill] sm:$0xff] }
 0x3ca   :  { %v3718_v39 = vsel %vm3717_vm4, %v3716_v2, %v3275_v57  ;;  %v3260_v34 = vsel %vm3004_vm0, %v8995_v41, 4096  ;;  %v3261_v1 = vsel %vm3005_vm3, %v9000_v5, 4096  ;;  %vm3673_vm6 = vcmp.lt.s32.totalorder %v3672_v15, %v3259_v22 }
 0x3cb   :  { %vm3719_vm14 = vcmp.lt.s32.totalorder %v3718_v39, %v3276_v54  ;;  %v3262_v33 = vsel %vm3006_vm12, %v9003_v9, 4096  ;;  %v3674_v7 = vsel %vm3673_vm6, %v3672_v15, %v3259_v22  ;;  %v3277_v43 = vsel %vm3021_vm8, %v8940_v59, 4096 }
 0x3cc   :  { %v3720_v14 = vsel %vm3719_vm14, %v3718_v39, %v3276_v54  ;;  %vm3675_vm9 = vcmp.lt.s32.totalorder %v3674_v7, %v3260_v34  ;;  %vm3023_vm0 = vcmp.ge.f32.partialorder %v11181_v30, %v9482_v42  ;;  %v3278_v21 = vsel %vm3022_vm1, %v8943_v4, 4096  ;;  %v11187_v39 = vld [vmem:[#allocation157_spill] sm:$0xff] }
 0x3cd   :  { %vm3721_vm11 = vcmp.lt.s32.totalorder %v3720_v14, %v3277_v43  ;;  %v3676_v40 = vsel %vm3675_vm9, %v3674_v7, %v3260_v34  ;;  %vm3039_vm3 = vcmp.ge.f32.partialorder %v11182_v50, %v9633_v58  ;;  %vm3040_vm10 = vcmp.ge.f32.partialorder %v11183_v38, %v9633_v58  ;;  %v11189_v7 = vld [vmem:[#allocation128_spill] sm:$0xff]  ;;  %v11191_v38 = vld [vmem:[#allocation183_spill] sm:$0xff] }
 0x3ce   :  { %v3722_v35 = vsel %vm3721_vm11, %v3720_v14, %v3277_v43  ;;  %vm3677_vm5 = vcmp.lt.s32.totalorder %v3676_v40, %v3261_v1  ;;  %vm3024_vm12 = vcmp.ge.f32.partialorder %v11184_v49, %v9482_v42  ;;  %vm3025_vm7 = vcmp.ge.f32.partialorder %v11185_v28, %v9482_v42  ;;  %v11190_v14 = vld [vmem:[#allocation173_spill] sm:$0xff] }
 0x3cf   :  { %vm3723_vm2 = vcmp.lt.s32.totalorder %v3722_v35, %v3278_v21  ;;  %v3678_v0 = vsel %vm3677_vm5, %v3676_v40, %v3261_v1  ;;  %vm3026_vm15 = vcmp.ge.f32.partialorder %v11186_v20, %v9482_v42  ;;  %v3279_v57 = vsel %vm3023_vm0, %v8947_v19, 4096  ;;  %v11188_v1 = vld [vmem:[#allocation127_spill] sm:$0xff]  ;;  %v11192_v49 = vld [vmem:[#allocation133_spill] sm:$0xff] }
 0x3d0   :  { %v3724_v2 = vsel %vm3723_vm2, %v3722_v35, %v3278_v21  ;;  %vm3679_vm13 = vcmp.lt.s32.totalorder %v3678_v0, %v3262_v33  ;;  %v3295_v22 = vsel %vm3039_vm3, %v8883_v3, 4096  ;;  %v3296_v31 = vsel %vm3040_vm10, %v8888_v27, 4096 }
 0x3d1   :  { %vm3725_vm8 = vcmp.lt.s32.totalorder %v3724_v2, %v3279_v57  ;;  %v9664_v15 = vsel %vm3679_vm13, %v3678_v0, %v3262_v33  ;;  %v3280_v63 = vsel %vm3024_vm12, %v8950_v56, 4096  ;;  %vm3041_vm4 = vcmp.ge.f32.partialorder %v11187_v39, %v9633_v58 }
 0x3d2   :  { %v3726_v54 = vsel %vm3725_vm8, %v3724_v2, %v3279_v57  ;;  %v3682_v34 = vshra.s32 %v9664_v15, 16  ;;  %vm3027_vm1 = vcmp.ge.f32.partialorder %v11188_v1, %v9482_v42  ;;  %vm3028_vm6 = vcmp.ge.f32.partialorder %v11189_v7, %v9482_v42  ;;  %v11193_v2 = vld [vmem:[#allocation9_spill] sm:$0xff]  ;;  %v11196_v1 = vld [vmem:[#allocation220_spill] sm:$0xff]  ;;  %v11197_v7 = vld [vmem:[#allocation11_spill] sm:$0xff] }
 0x3d3   :  { %vm3727_vm14 = vcmp.lt.s32.totalorder %v3726_v54, %v3280_v63  ;;  %v3281_v33 = vsel %vm3025_vm7, %v8955_v17, 4096  ;;  %vm3042_vm9 = vcmp.ge.f32.partialorder %v11190_v14, %v9633_v58  ;;  %vm3771_vm0 = vcmp.lt.s32.totalorder %v3295_v22, %v3296_v31 }
 0x3d4   :  { %v3728_v43 = vsel %vm3727_vm14, %v3726_v54, %v3280_v63  ;;  %v9680_v30 = vcvt.s32.f32 %v3682_v34  ;;  %v3297_v21 = vsel %vm3041_vm4, %v8895_v25, 4096  ;;  %v3772_v40 = vsel %vm3771_vm0, %v3295_v22, %v3296_v31  ;;  %v11194_v22 = vld [vmem:[#allocation134_spill] sm:$0xff] }
 0x3d5   :  { %vm3729_vm11 = vcmp.lt.s32.totalorder %v3728_v43, %v3281_v33  ;;  %v3282_v35 = vsel %vm3026_vm15, %v8958_v55, 4096  ;;  %vm3043_vm3 = vcmp.ge.f32.partialorder %v11191_v38, %v9633_v58  ;;  %vm3773_vm10 = vcmp.lt.s32.totalorder %v3772_v40, %v3297_v21  ;;  %v11195_v34 = vld [vmem:[#allocation10_spill] sm:$0xff] }
 0x3d6   :  { %v3730_v50 = vsel %vm3729_vm11, %v3728_v43, %v3281_v33  ;;  %3685 = vmin.xlane.f32.xlu2 %v9680_v30  ;;  %vm3029_vm5 = vcmp.ge.f32.partialorder %v11192_v49, %v9482_v42  ;;  %v3298_v28 = vsel %vm3042_vm9, %v8900_v29, 4096  ;;  %v3774_v0 = vsel %vm3773_vm10, %v3772_v40, %v3297_v21  ;;  %v11198_v40 = vld [vmem:[#allocation225_spill] sm:$0xff]  ;;  %v11199_v49 = vld [vmem:[#allocation40_spill] sm:$0xff] }
 0x3d7   :  { %vm3731_vm12 = vcmp.lt.s32.totalorder %v3730_v50, %v3282_v35  ;;  %v3283_v20 = vsel %vm3027_vm1, %v8962_v16, 4096  ;;  %vm3044_vm7 = vcmp.ge.f32.partialorder %v11193_v2, %v9633_v58  ;;  %vm3775_vm2 = vcmp.lt.s32.totalorder %v3774_v0, %v3298_v28 }
 0x3d8   :  { %v3732_v57 = vsel %vm3731_vm12, %v3730_v50, %v3282_v35  ;;  %vm3030_vm15 = vcmp.ge.f32.partialorder %v11194_v22, %v9482_v42  ;;  %v3299_v31 = vsel %vm3043_vm3, %v8905_v13, 4096  ;;  %v3776_v63 = vsel %vm3775_vm2, %v3774_v0, %v3298_v28  ;;  %v11200_v0 = vld [vmem:[#allocation229_spill] sm:$0xff] }
 0x3d9   :  { %vm3733_vm13 = vcmp.lt.s32.totalorder %v3732_v57, %v3283_v20  ;;  %v3284_v54 = vsel %vm3028_vm6, %v8965_v6, 4096  ;;  %vm3045_vm8 = vcmp.ge.f32.partialorder %v11195_v34, %v9633_v58  ;;  %vm3777_vm4 = vcmp.lt.s32.totalorder %v3776_v63, %v3299_v31  ;;  %v11201_v22 = vld [vmem:[#allocation41_spill] sm:$0xff] }
 0x3da   :  { %v3734_v39 = vsel %vm3733_vm13, %v3732_v57, %v3283_v20  ;;  %vm3031_vm1 = vcmp.ge.f32.partialorder %v11196_v1, %v9482_v42  ;;  %v3300_v33 = vsel %vm3044_vm7, %v8908_v44, 4096  ;;  %v3778_v43 = vsel %vm3777_vm4, %v3776_v63, %v3299_v31  ;;  %v11202_v63 = vld [vmem:[#allocation188_spill] sm:$0xff]  ;;  %v11203_v1 = vld [vmem:[#allocation42_spill] sm:$0xff] }
 0x3db   :  { %vm3735_vm14 = vcmp.lt.s32.totalorder %v3734_v39, %v3284_v54  ;;  %v3285_v14 = vsel %vm3029_vm5, %v8970_v45, 4096  ;;  %vm3046_vm6 = vcmp.ge.f32.partialorder %v11197_v7, %v9633_v58  ;;  %vm3779_vm9 = vcmp.lt.s32.totalorder %v3778_v43, %v3300_v33 }
 0x3dc   :  { %v3736_v21 = vsel %vm3735_vm14, %v3734_v39, %v3284_v54  ;;  %vm3032_vm0 = vcmp.ge.f32.partialorder %v11198_v40, %v9482_v42  ;;  %v3301_v35 = vsel %vm3045_vm8, %v8911_v61, 4096  ;;  %v3780_v50 = vsel %vm3779_vm9, %v3778_v43, %v3300_v33  ;;  %v11204_v43 = vld [vmem:[#allocation232_spill] sm:$0xff]  ;;  %v11205_v40 = vld [vmem:[#allocation43_spill] sm:$0xff] }
 0x3dd   :  { %vm3737_vm11 = vcmp.lt.s32.totalorder %v3736_v21, %v3285_v14  ;;  %v3286_v38 = vsel %vm3030_vm15, %v8973_v37, 4096  ;;  %vm3047_vm3 = vcmp.ge.f32.partialorder %v11199_v49, %v9633_v58  ;;  %vm3781_vm10 = vcmp.lt.s32.totalorder %v3780_v50, %v3301_v35 }
 0x3de   :  { %v3738_v28 = vsel %vm3737_vm11, %v3736_v21, %v3285_v14  ;;  %vm3033_vm5 = vcmp.ge.f32.partialorder %v11200_v0, %v9482_v42  ;;  %v3302_v20 = vsel %vm3046_vm6, %v8914_v23, 4096  ;;  %v3782_v57 = vsel %vm3781_vm10, %v3780_v50, %v3301_v35  ;;  %v11206_v50 = vld [vmem:[#allocation235_spill] sm:$0xff]  ;;  %v11207_v0 = vld [vmem:[#allocation72_spill] sm:$0xff] }
 0x3df   :  { %vm3739_vm12 = vcmp.lt.s32.totalorder %v3738_v28, %v3286_v38  ;;  %v3287_v2 = vsel %vm3031_vm1, %v8977_v8, 4096  ;;  %vm3048_vm7 = vcmp.ge.f32.partialorder %v11201_v22, %v9633_v58  ;;  %vm3783_vm2 = vcmp.lt.s32.totalorder %v3782_v57, %v3302_v20 }
 0x3e0   :  { %v3740_v31 = vsel %vm3739_vm12, %v3738_v28, %v3286_v38  ;;  %vm3034_vm15 = vcmp.ge.f32.partialorder %v11202_v63, %v9482_v42  ;;  %v3303_v54 = vsel %vm3047_vm3, %v8917_v32, 4096  ;;  %v3784_v39 = vsel %vm3783_vm2, %v3782_v57, %v3302_v20  ;;  %v11208_v57 = vld [vmem:[#allocation236_spill] sm:$0xff]  ;;  %v11209_v63 = vld [vmem:[#allocation73_spill] sm:$0xff] }
 0x3e1   :  { %vm3741_vm13 = vcmp.lt.s32.totalorder %v3740_v31, %v3287_v2  ;;  %v3288_v34 = vsel %vm3032_vm0, %v8980_v48, 4096  ;;  %vm3049_vm8 = vcmp.ge.f32.partialorder %v11203_v1, %v9633_v58  ;;  %vm3785_vm4 = vcmp.lt.s32.totalorder %v3784_v39, %v3303_v54 }
 0x3e2   :  { %v3742_v33 = vsel %vm3741_vm13, %v3740_v31, %v3287_v2  ;;  %vm3035_vm1 = vcmp.ge.f32.partialorder %v11204_v43, %v9482_v42  ;;  %v3304_v14 = vsel %vm3048_vm7, %v8920_v47, 4096  ;;  %v3786_v21 = vsel %vm3785_vm4, %v3784_v39, %v3303_v54  ;;  %v11210_v39 = vld [vmem:[#allocation237_spill] sm:$0xff]  ;;  %v11211_v43 = vld [vmem:[#allocation74_spill] sm:$0xff] }
 0x3e3   :  { %vm3743_vm14 = vcmp.lt.s32.totalorder %v3742_v33, %v3288_v34  ;;  %v3289_v7 = vsel %vm3033_vm5, %v8985_v53, 4096  ;;  %vm3050_vm6 = vcmp.ge.f32.partialorder %v11205_v40, %v9633_v58  ;;  %vm3787_vm9 = vcmp.lt.s32.totalorder %v3786_v21, %v3304_v14 }
 0x3e4   :  { %v3744_v35 = vsel %vm3743_vm14, %v3742_v33, %v3288_v34  ;;  %vm3036_vm0 = vcmp.ge.f32.partialorder %v11206_v50, %v9482_v42  ;;  %v3305_v38 = vsel %vm3049_vm8, %v8925_v18, 4096  ;;  %v3788_v28 = vsel %vm3787_vm9, %v3786_v21, %v3304_v14  ;;  %v9780_v21 = vpop.xlane.xlu0 %2811 }
 0x3e5   :  { %vm3745_vm11 = vcmp.lt.s32.totalorder %v3744_v35, %v3289_v7  ;;  %v3290_v49 = vsel %vm3034_vm15, %v8988_v51, 4096  ;;  %vm3051_vm3 = vcmp.ge.f32.partialorder %v11207_v0, %v9633_v58  ;;  %vm3789_vm10 = vcmp.lt.s32.totalorder %v3788_v28, %v3305_v38 }
 0x3e6   :  { %v3746_v20 = vsel %vm3745_vm11, %v3744_v35, %v3289_v7  ;;  %vm3037_vm5 = vcmp.ge.f32.partialorder %v11208_v57, %v9482_v42  ;;  %v3306_v2 = vsel %vm3050_vm6, %v8928_v60, 4096  ;;  %v3790_v31 = vsel %vm3789_vm10, %v3788_v28, %v3305_v38  ;;  %v11212_v28 = vld [vmem:[#allocation75_spill] sm:$0xff] }
 0x3e7   :  { %vm3747_vm12 = vcmp.lt.s32.totalorder %v3746_v20, %v3290_v49  ;;  %v3291_v22 = vsel %vm3035_vm1, %v8992_v52, 4096  ;;  %vm3052_vm7 = vcmp.ge.f32.partialorder %v11209_v63, %v9633_v58  ;;  %vm3791_vm2 = vcmp.lt.s32.totalorder %v3790_v31, %v3306_v2  ;;  %v11214_v57 = vld [vmem:[#allocation159_spill] sm:$0xff]  ;;  %v11216_v63 = vld [vmem:[#allocation105_spill] sm:$0xff] }
 0x3e8   :  { %v3748_v54 = vsel %vm3747_vm12, %v3746_v20, %v3290_v49  ;;  %vm3038_vm15 = vcmp.ge.f32.partialorder %v11210_v39, %v9482_v42  ;;  %v3307_v34 = vsel %vm3051_vm3, %v8932_v24, 4096  ;;  %v3792_v33 = vsel %vm3791_vm2, %v3790_v31, %v3306_v2  ;;  %v11213_v49 = vld [vmem:[#allocation104_spill] sm:$0xff] }
 0x3e9   :  { %vm3749_vm13 = vcmp.lt.s32.totalorder %v3748_v54, %v3291_v22  ;;  %v3292_v1 = vsel %vm3036_vm0, %v8995_v41, 4096  ;;  %vm3053_vm8 = vcmp.ge.f32.partialorder %v11211_v43, %v9633_v58  ;;  %vm3793_vm4 = vcmp.lt.s32.totalorder %v3792_v33, %v3307_v34  ;;  %v11215_v2 = vld [vmem:[#allocation160_spill] sm:$0xff]  ;;  %v11217_v43 = vld [vmem:[#allocation106_spill] sm:$0xff] }
 0x3ea   :  { %v3750_v14 = vsel %vm3749_vm13, %v3748_v54, %v3291_v22  ;;  %v3293_v7 = vsel %vm3037_vm5, %v9000_v5, 4096  ;;  %v3308_v35 = vsel %vm3052_vm7, %v8935_v26, 4096  ;;  %v3794_v40 = vsel %vm3793_vm4, %v3792_v33, %v3307_v34 }
 0x3eb   :  { %vm3751_vm1 = vcmp.lt.s32.totalorder %v3750_v14, %v3292_v1  ;;  %v3294_v38 = vsel %vm3038_vm15, %v9003_v9, 4096  ;;  %vm3054_vm14 = vcmp.ge.f32.partialorder %v11212_v28, %v9633_v58  ;;  %vm3795_vm6 = vcmp.lt.s32.totalorder %v3794_v40, %v3308_v35 }
 0x3ec   :  { %v3752_v50 = vsel %vm3751_vm1, %v3750_v14, %v3292_v1  ;;  %vm3055_vm0 = vcmp.ge.f32.partialorder %v11213_v49, %v9633_v58  ;;  %v3309_v20 = vsel %vm3053_vm8, %v8940_v59, 4096  ;;  %v3796_v0 = vsel %vm3795_vm6, %v3794_v40, %v3308_v35  ;;  %v11219_v35 = vld [vmem:[#allocation163_spill] sm:$0xff]  ;;  %v11221_v49 = vld [vmem:[#allocation138_spill] sm:$0xff] }
 0x3ed   :  { %vm3753_vm9 = vcmp.lt.s32.totalorder %v3752_v50, %v3293_v7  ;;  %vm3797_vm11 = vcmp.lt.s32.totalorder %v3796_v0, %v3309_v20  ;;  %vm3071_vm3 = vcmp.ge.f32.partialorder %v11214_v57, %v9780_v21  ;;  %vm3072_vm10 = vcmp.ge.f32.partialorder %v11215_v2, %v9780_v21 }
 0x3ee   :  { %v3754_v42 = vsel %vm3753_vm9, %v3752_v50, %v3293_v7  ;;  %v3310_v31 = vsel %vm3054_vm14, %v8943_v4, 4096  ;;  %v3798_v22 = vsel %vm3797_vm11, %v3796_v0, %v3309_v20  ;;  %vm3056_vm12 = vcmp.ge.f32.partialorder %v11216_v63, %v9633_v58  ;;  %v11218_v7 = vld [vmem:[#allocation107_spill] sm:$0xff] }
 0x3ef   :  { %vm3755_vm5 = vcmp.lt.s32.totalorder %v3754_v42, %v3294_v38  ;;  %v3311_v39 = vsel %vm3055_vm0, %v8947_v19, 4096  ;;  %vm3799_vm7 = vcmp.lt.s32.totalorder %v3798_v22, %v3310_v31  ;;  %v3327_v1 = vsel %vm3071_vm3, %v8883_v3, 4096  ;;  %v11222_v20 = vld [vmem:[#allocation175_spill] sm:$0xff] }
 0x3f0   :  { %v9798_v54 = vsel %vm3755_vm5, %v3754_v42, %v3294_v38  ;;  %v3800_v33 = vsel %vm3799_vm7, %v3798_v22, %v3310_v31  ;;  %v3328_v14 = vsel %vm3072_vm10, %v8888_v27, 4096  ;;  %vm3057_vm2 = vcmp.ge.f32.partialorder %v11217_v43, %v9633_v58  ;;  %v11220_v38 = vld [vmem:[#allocation135_spill] sm:$0xff]  ;;  %v11223_v31 = vld [vmem:[#allocation222_spill] sm:$0xff]  ;;  %v11224_v22 = vld [vmem:[#allocation12_spill] sm:$0xff] }
 0x3f1   :  { %v3758_v34 = vshra.s32 %v9798_v54, 16  ;;  %vm3058_vm15 = vcmp.ge.f32.partialorder %v11218_v7, %v9633_v58  ;;  %vm3801_vm13 = vcmp.lt.s32.totalorder %v3800_v33, %v3311_v39  ;;  %vm3073_vm8 = vcmp.ge.f32.partialorder %v11219_v35, %v9780_v21  ;;  %v11225_v43 = vld [vmem:[#allocation149_spill] sm:$0xff] }
 0x3f2   :  { %vm3059_vm4 = vcmp.ge.f32.partialorder %v11220_v38, %v9633_v58  ;;  %v3312_v50 = vsel %vm3056_vm12, %v8950_v56, 4096  ;;  %v3802_v28 = vsel %vm3801_vm13, %v3800_v33, %v3311_v39  ;;  %vm3060_vm1 = vcmp.ge.f32.partialorder %v11221_v49, %v9633_v58 }
 0x3f3   :  { %v9812_v40 = vcvt.s32.f32 %v3758_v34  ;;  %vm3803_vm14 = vcmp.lt.s32.totalorder %v3802_v28, %v3312_v50  ;;  %vm3074_vm6 = vcmp.ge.f32.partialorder %v11222_v20, %v9780_v21  ;;  %vm3847_vm9 = vcmp.lt.s32.totalorder %v3327_v1, %v3328_v14  ;;  %v11228_v20 = vld [vmem:[#allocation14_spill] sm:$0xff] }
 0x3f4   :  { %v3313_v0 = vsel %vm3057_vm2, %v8955_v17, 4096  ;;  %v3804_v42 = vsel %vm3803_vm14, %v3802_v28, %v3312_v50  ;;  %v3329_v57 = vsel %vm3073_vm8, %v8895_v25, 4096  ;;  %v3848_v2 = vsel %vm3847_vm9, %v3327_v1, %v3328_v14  ;;  %v11226_v1 = vld [vmem:[#allocation13_spill] sm:$0xff] }
 0x3f5   :  { %3761 = vmin.xlane.f32.xlu0 %v9812_v40  ;;  %vm3061_vm0 = vcmp.ge.f32.partialorder %v11223_v31, %v9633_v58  ;;  %vm3805_vm11 = vcmp.lt.s32.totalorder %v3804_v42, %v3313_v0  ;;  %vm3075_vm3 = vcmp.ge.f32.partialorder %v11224_v22, %v9780_v21  ;;  %vm3849_vm10 = vcmp.lt.s32.totalorder %v3848_v2, %v3329_v57  ;;  %v11227_v28 = vld [vmem:[#allocation189_spill] sm:$0xff]  ;;  %v11230_v22 = vld [vmem:[#allocation15_spill] sm:$0xff] }
 0x3f6   :  { %v3314_v63 = vsel %vm3058_vm15, %v8958_v55, 4096  ;;  %v3806_v39 = vsel %vm3805_vm11, %v3804_v42, %v3313_v0  ;;  %v3330_v34 = vsel %vm3074_vm6, %v8900_v29, 4096  ;;  %v3850_v33 = vsel %vm3849_vm10, %v3848_v2, %v3329_v57  ;;  %v11229_v2 = vld [vmem:[#allocation190_spill] sm:$0xff] }
 0x3f7   :  { %vm3062_vm5 = vcmp.ge.f32.partialorder %v11225_v43, %v9633_v58  ;;  %vm3807_vm12 = vcmp.lt.s32.totalorder %v3806_v39, %v3314_v63  ;;  %vm3076_vm7 = vcmp.ge.f32.partialorder %v11226_v1, %v9780_v21  ;;  %vm3851_vm2 = vcmp.lt.s32.totalorder %v3850_v33, %v3330_v34  ;;  %v11232_v1 = vld [vmem:[#allocation44_spill] sm:$0xff] }
 0x3f8   :  { %v3315_v14 = vsel %vm3059_vm4, %v8962_v16, 4096  ;;  %v3808_v35 = vsel %vm3807_vm12, %v3806_v39, %v3314_v63  ;;  %v3331_v7 = vsel %vm3075_vm3, %v8905_v13, 4096  ;;  %v3852_v50 = vsel %vm3851_vm2, %v3850_v33, %v3330_v34  ;;  %v11231_v33 = vld [vmem:[#allocation233_spill] sm:$0xff] }
 0x3f9   :  { %vm3063_vm15 = vcmp.ge.f32.partialorder %v11227_v28, %v9633_v58  ;;  %vm3809_vm13 = vcmp.lt.s32.totalorder %v3808_v35, %v3315_v14  ;;  %vm3077_vm8 = vcmp.ge.f32.partialorder %v11228_v20, %v9780_v21  ;;  %vm3853_vm14 = vcmp.lt.s32.totalorder %v3852_v50, %v3331_v7  ;;  %v11234_v20 = vld [vmem:[#allocation45_spill] sm:$0xff] }
 0x3fa   :  { %v3316_v0 = vsel %vm3060_vm1, %v8965_v6, 4096  ;;  %v3810_v42 = vsel %vm3809_vm13, %v3808_v35, %v3315_v14  ;;  %v3332_v38 = vsel %vm3076_vm7, %v8908_v44, 4096  ;;  %v3854_v57 = vsel %vm3853_vm14, %v3852_v50, %v3331_v7  ;;  %v11233_v50 = vld [vmem:[#allocation194_spill] sm:$0xff] }
 0x3fb   :  { %vm3064_vm4 = vcmp.ge.f32.partialorder %v11229_v2, %v9633_v58  ;;  %vm3811_vm6 = vcmp.lt.s32.totalorder %v3810_v42, %v3316_v0  ;;  %vm3078_vm9 = vcmp.ge.f32.partialorder %v11230_v22, %v9780_v21  ;;  %vm3855_vm11 = vcmp.lt.s32.totalorder %v3854_v57, %v3332_v38  ;;  %v11236_v22 = vld [vmem:[#allocation46_spill] sm:$0xff] }
 0x3fc   :  { %v3317_v63 = vsel %vm3061_vm0, %v8970_v45, 4096  ;;  %v3812_v39 = vsel %vm3811_vm6, %v3810_v42, %v3316_v0  ;;  %v3333_v49 = vsel %vm3077_vm8, %v8911_v61, 4096  ;;  %v3856_v34 = vsel %vm3855_vm11, %v3854_v57, %v3332_v38  ;;  %v11235_v57 = vld [vmem:[#allocation238_spill] sm:$0xff] }
 0x3fd   :  { %vm3065_vm1 = vcmp.ge.f32.partialorder %v11231_v33, %v9633_v58  ;;  %vm3813_vm3 = vcmp.lt.s32.totalorder %v3812_v39, %v3317_v63  ;;  %vm3079_vm10 = vcmp.ge.f32.partialorder %v11232_v1, %v9780_v21  ;;  %vm3857_vm12 = vcmp.lt.s32.totalorder %v3856_v34, %v3333_v49  ;;  %v11238_v1 = vld [vmem:[#allocation47_spill] sm:$0xff] }
 0x3fe   :  { %v3318_v14 = vsel %vm3062_vm5, %v8973_v37, 4096  ;;  %v3814_v35 = vsel %vm3813_vm3, %v3812_v39, %v3317_v63  ;;  %v3334_v31 = vsel %vm3078_vm9, %v8914_v23, 4096  ;;  %v3858_v7 = vsel %vm3857_vm12, %v3856_v34, %v3333_v49  ;;  %v11237_v34 = vld [vmem:[#allocation241_spill] sm:$0xff] }
 0x3ff   :  { %vm3066_vm0 = vcmp.ge.f32.partialorder %v11233_v50, %v9633_v58  ;;  %vm3815_vm7 = vcmp.lt.s32.totalorder %v3814_v35, %v3318_v14  ;;  %vm3080_vm2 = vcmp.ge.f32.partialorder %v11234_v20, %v9780_v21  ;;  %vm3859_vm13 = vcmp.lt.s32.totalorder %v3858_v7, %v3334_v31  ;;  %v11240_v20 = vld [vmem:[#allocation76_spill] sm:$0xff] }
 0x400   :  { %v3319_v0 = vsel %vm3063_vm15, %v8977_v8, 4096  ;;  %v3816_v42 = vsel %vm3815_vm7, %v3814_v35, %v3318_v14  ;;  %v3335_v43 = vsel %vm3079_vm10, %v8917_v32, 4096  ;;  %v3860_v38 = vsel %vm3859_vm13, %v3858_v7, %v3334_v31  ;;  %v11239_v7 = vld [vmem:[#allocation242_spill] sm:$0xff] }
 0x401   :  { %vm3067_vm5 = vcmp.ge.f32.partialorder %v11235_v57, %v9633_v58  ;;  %vm3817_vm8 = vcmp.lt.s32.totalorder %v3816_v42, %v3319_v0  ;;  %vm3081_vm14 = vcmp.ge.f32.partialorder %v11236_v22, %v9780_v21  ;;  %vm3861_vm6 = vcmp.lt.s32.totalorder %v3860_v38, %v3335_v43  ;;  %v11241_v22 = vld [vmem:[#allocation77_spill] sm:$0xff] }
 0x402   :  { %v3320_v63 = vsel %vm3064_vm4, %v8980_v48, 4096  ;;  %v3818_v39 = vsel %vm3817_vm8, %v3816_v42, %v3319_v0  ;;  %v3336_v28 = vsel %vm3080_vm2, %v8920_v47, 4096  ;;  %v3862_v49 = vsel %vm3861_vm6, %v3860_v38, %v3335_v43 }
 0x403   :  { %vm3068_vm15 = vcmp.ge.f32.partialorder %v11237_v34, %v9633_v58  ;;  %vm3819_vm9 = vcmp.lt.s32.totalorder %v3818_v39, %v3320_v63  ;;  %vm3082_vm11 = vcmp.ge.f32.partialorder %v11238_v1, %v9780_v21  ;;  %vm3863_vm3 = vcmp.lt.s32.totalorder %v3862_v49, %v3336_v28  ;;  %v11243_v1 = vld [vmem:[#allocation246_spill] sm:$0xff] }
 0x404   :  { %v3321_v14 = vsel %vm3065_vm1, %v8985_v53, 4096  ;;  %v3820_v35 = vsel %vm3819_vm9, %v3818_v39, %v3320_v63  ;;  %v3337_v2 = vsel %vm3081_vm14, %v8925_v18, 4096  ;;  %v3864_v31 = vsel %vm3863_vm3, %v3862_v49, %v3336_v28  ;;  %v11242_v39 = vld [vmem:[#allocation78_spill] sm:$0xff]  ;;  %v9914_v49 = vpop.xlane.xlu1 %2844 }
 0x405   :  { %vm3069_vm4 = vcmp.ge.f32.partialorder %v11239_v7, %v9633_v58  ;;  %vm3821_vm10 = vcmp.lt.s32.totalorder %v3820_v35, %v3321_v14  ;;  %vm3083_vm12 = vcmp.ge.f32.partialorder %v11240_v20, %v9780_v21  ;;  %vm3865_vm7 = vcmp.lt.s32.totalorder %v3864_v31, %v3337_v2  ;;  %v11244_v20 = vld [vmem:[#allocation79_spill] sm:$0xff] }
 0x406   :  { %v3322_v0 = vsel %vm3066_vm0, %v8988_v51, 4096  ;;  %v3822_v42 = vsel %vm3821_vm10, %v3820_v35, %v3321_v14  ;;  %v3338_v33 = vsel %vm3082_vm11, %v8928_v60, 4096  ;;  %v3866_v43 = vsel %vm3865_vm7, %v3864_v31, %v3337_v2 }
 0x407   :  { %v3323_v38 = vsel %vm3067_vm5, %v8992_v52, 4096  ;;  %vm3823_vm1 = vcmp.lt.s32.totalorder %v3822_v42, %v3322_v0  ;;  %vm3084_vm2 = vcmp.ge.f32.partialorder %v11241_v22, %v9780_v21  ;;  %vm3867_vm13 = vcmp.lt.s32.totalorder %v3866_v43, %v3338_v33 }
 0x408   :  { %v3824_v63 = vsel %vm3823_vm1, %v3822_v42, %v3322_v0  ;;  %vm3085_vm8 = vcmp.ge.f32.partialorder %v11242_v39, %v9780_v21  ;;  %v3339_v50 = vsel %vm3083_vm12, %v8932_v24, 4096  ;;  %v3868_v28 = vsel %vm3867_vm13, %v3866_v43, %v3338_v33  ;;  %v11245_v33 = vld [vmem:[#allocation161_spill] sm:$0xff]  ;;  %v11246_v43 = vld [vmem:[#allocation162_spill] sm:$0xff] }
 0x409   :  { %vm3070_vm0 = vcmp.ge.f32.partialorder %v11243_v1, %v9633_v58  ;;  %v3324_v57 = vsel %vm3068_vm15, %v8995_v41, 4096  ;;  %vm3825_vm5 = vcmp.lt.s32.totalorder %v3824_v63, %v3323_v38  ;;  %vm3869_vm14 = vcmp.lt.s32.totalorder %v3868_v28, %v3339_v50 }
 0x40a   :  { %v3325_v14 = vsel %vm3069_vm4, %v9000_v5, 4096  ;;  %v3826_v35 = vsel %vm3825_vm5, %v3824_v63, %v3323_v38  ;;  %v3340_v2 = vsel %vm3084_vm2, %v8935_v26, 4096  ;;  %v3870_v31 = vsel %vm3869_vm14, %v3868_v28, %v3339_v50  ;;  %v11247_v38 = vld [vmem:[#allocation108_spill] sm:$0xff]  ;;  %v11248_v63 = vld [vmem:[#allocation109_spill] sm:$0xff] }
 0x40b   :  { %vm3827_vm6 = vcmp.lt.s32.totalorder %v3826_v35, %v3324_v57  ;;  %vm3086_vm9 = vcmp.ge.f32.partialorder %v11244_v20, %v9780_v21  ;;  %v3341_v0 = vsel %vm3085_vm8, %v8940_v59, 4096  ;;  %vm3871_vm11 = vcmp.lt.s32.totalorder %v3870_v31, %v3340_v2  ;;  %v11251_v20 = vld [vmem:[#allocation111_spill] sm:$0xff] }
 0x40c   :  { %v3828_v34 = vsel %vm3827_vm6, %v3826_v35, %v3324_v57  ;;  %v3872_v42 = vsel %vm3871_vm11, %v3870_v31, %v3340_v2  ;;  %vm3103_vm15 = vcmp.ge.f32.partialorder %v11245_v33, %v9914_v49  ;;  %vm3104_vm3 = vcmp.ge.f32.partialorder %v11246_v43, %v9914_v49  ;;  %v11249_v2 = vld [vmem:[#allocation167_spill] sm:$0xff]  ;;  %v11250_v31 = vld [vmem:[#allocation110_spill] sm:$0xff] }
 0x40d   :  { %v3326_v7 = vsel %vm3070_vm0, %v9003_v9, 4096  ;;  %vm3829_vm4 = vcmp.lt.s32.totalorder %v3828_v34, %v3325_v14  ;;  %vm3087_vm10 = vcmp.ge.f32.partialorder %v11247_v38, %v9780_v21  ;;  %vm3873_vm12 = vcmp.lt.s32.totalorder %v3872_v42, %v3341_v0  ;;  %v11253_v38 = vld [vmem:[#allocation16_spill] sm:$0xff] }
 0x40e   :  { %v3830_v22 = vsel %vm3829_vm4, %v3828_v34, %v3325_v14  ;;  %vm3088_vm7 = vcmp.ge.f32.partialorder %v11248_v63, %v9780_v21  ;;  %v3342_v39 = vsel %vm3086_vm9, %v8943_v4, 4096  ;;  %v3874_v50 = vsel %vm3873_vm12, %v3872_v42, %v3341_v0  ;;  %v11252_v0 = vld [vmem:[#allocation180_spill] sm:$0xff] }
 0x40f   :  { %vm3831_vm1 = vcmp.lt.s32.totalorder %v3830_v22, %v3326_v7  ;;  %vm3875_vm2 = vcmp.lt.s32.totalorder %v3874_v50, %v3342_v39  ;;  %v3359_v28 = vsel %vm3103_vm15, %v8883_v3, 4096  ;;  %v3360_v57 = vsel %vm3104_vm3, %v8888_v27, 4096 }
 0x410   :  { %v9945_v58 = vsel %vm3831_vm1, %v3830_v22, %v3326_v7  ;;  %v3343_v1 = vsel %vm3087_vm10, %v8947_v19, 4096  ;;  %v3876_v35 = vsel %vm3875_vm2, %v3874_v50, %v3342_v39  ;;  %vm3105_vm13 = vcmp.ge.f32.partialorder %v11249_v2, %v9914_v49  ;;  %v11254_v22 = vld [vmem:[#allocation223_spill] sm:$0xff] }
 0x411   :  { %v3834_v14 = vshra.s32 %v9945_v58, 16  ;;  %vm3089_vm8 = vcmp.ge.f32.partialorder %v11250_v31, %v9780_v21  ;;  %vm3090_vm0 = vcmp.ge.f32.partialorder %v11251_v20, %v9780_v21  ;;  %vm3877_vm5 = vcmp.lt.s32.totalorder %v3876_v35, %v3343_v1  ;;  %v11258_v31 = vld [vmem:[#allocation166_spill] sm:$0xff] }
 0x412   :  { %v3344_v3 = vsel %vm3088_vm7, %v8950_v56, 4096  ;;  %v3878_v27 = vsel %vm3877_vm5, %v3876_v35, %v3343_v1  ;;  %vm3106_vm14 = vcmp.ge.f32.partialorder %v11252_v0, %v9914_v49  ;;  %vm3923_vm6 = vcmp.lt.s32.totalorder %v3359_v28, %v3360_v57 }
 0x413   :  { %v9958_v34 = vcvt.s32.f32 %v3834_v14  ;;  %vm3879_vm9 = vcmp.lt.s32.totalorder %v3878_v27, %v3344_v3  ;;  %v3361_v42 = vsel %vm3105_vm13, %v8895_v25, 4096  ;;  %v3924_v33 = vsel %vm3923_vm6, %v3359_v28, %v3360_v57  ;;  %v11255_v28 = vld [vmem:[#allocation17_spill] sm:$0xff]  ;;  %v11256_v57 = vld [vmem:[#allocation151_spill] sm:$0xff]  ;;  %v11257_v14 = vld [vmem:[#allocation18_spill] sm:$0xff] }
 0x414   :  { %v3345_v43 = vsel %vm3089_vm8, %v8955_v17, 4096  ;;  %v3880_v7 = vsel %vm3879_vm9, %v3878_v27, %v3344_v3  ;;  %vm3107_vm11 = vcmp.ge.f32.partialorder %v11253_v38, %v9914_v49  ;;  %vm3925_vm15 = vcmp.lt.s32.totalorder %v3924_v33, %v3361_v42 }
 0x415   :  { %3837 = vmin.xlane.f32.xlu1 %v9958_v34  ;;  %vm3091_vm3 = vcmp.ge.f32.partialorder %v11254_v22, %v9780_v21  ;;  %vm3881_vm4 = vcmp.lt.s32.totalorder %v3880_v7, %v3345_v43  ;;  %v3362_v63 = vsel %vm3106_vm14, %v8900_v29, 4096  ;;  %v3926_v39 = vsel %vm3925_vm15, %v3924_v33, %v3361_v42  ;;  %v11260_v42 = vld [vmem:[#allocation169_spill] sm:$0xff]  ;;  %v11262_v22 = vld [vmem:[#allocation195_spill] sm:$0xff] }
 0x416   :  { %v3346_v25 = vsel %vm3090_vm0, %v8958_v55, 4096  ;;  %v3882_v50 = vsel %vm3881_vm4, %v3880_v7, %v3345_v43  ;;  %vm3108_vm10 = vcmp.ge.f32.partialorder %v11255_v28, %v9914_v49  ;;  %vm3927_vm12 = vcmp.lt.s32.totalorder %v3926_v39, %v3362_v63  ;;  %v11264_v28 = vld [vmem:[#allocation196_spill] sm:$0xff] }
 0x417   :  { %vm3092_vm7 = vcmp.ge.f32.partialorder %v11256_v57, %v9780_v21  ;;  %vm3883_vm1 = vcmp.lt.s32.totalorder %v3882_v50, %v3346_v25  ;;  %v3363_v1 = vsel %vm3107_vm11, %v8905_v13, 4096  ;;  %v3928_v35 = vsel %vm3927_vm12, %v3926_v39, %v3362_v63  ;;  %v11259_v13 = vld [vmem:[#allocation19_spill] sm:$0xff] }
 0x418   :  { %v3347_v29 = vsel %vm3091_vm3, %v8962_v16, 4096  ;;  %v3884_v2 = vsel %vm3883_vm1, %v3882_v50, %v3346_v25  ;;  %vm3109_vm2 = vcmp.ge.f32.partialorder %v11257_v14, %v9914_v49  ;;  %vm3929_vm13 = vcmp.lt.s32.totalorder %v3928_v35, %v3363_v1 }
 0x419   :  { %vm3093_vm8 = vcmp.ge.f32.partialorder %v11258_v31, %v9780_v21  ;;  %vm3885_vm0 = vcmp.lt.s32.totalorder %v3884_v2, %v3347_v29  ;;  %v3364_v20 = vsel %vm3108_vm10, %v8908_v44, 4096  ;;  %v3930_v3 = vsel %vm3929_vm13, %v3928_v35, %v3363_v1  ;;  %v11261_v44 = vld [vmem:[#allocation48_spill] sm:$0xff] }
 0x41a   :  { %v3348_v27 = vsel %vm3092_vm7, %v8965_v6, 4096  ;;  %v3886_v0 = vsel %vm3885_vm0, %v3884_v2, %v3347_v29  ;;  %vm3110_vm5 = vcmp.ge.f32.partialorder %v11259_v13, %v9914_v49  ;;  %vm3931_vm14 = vcmp.lt.s32.totalorder %v3930_v3, %v3364_v20  ;;  %v11266_v2 = vld [vmem:[#allocation239_spill] sm:$0xff] }
 0x41b   :  { %vm3094_vm6 = vcmp.ge.f32.partialorder %v11260_v42, %v9780_v21  ;;  %vm3887_vm9 = vcmp.lt.s32.totalorder %v3886_v0, %v3348_v27  ;;  %v3365_v33 = vsel %vm3109_vm2, %v8911_v61, 4096  ;;  %v3932_v43 = vsel %vm3931_vm14, %v3930_v3, %v3364_v20  ;;  %v11263_v61 = vld [vmem:[#allocation49_spill] sm:$0xff] }
 0x41c   :  { %v3349_v7 = vsel %vm3093_vm8, %v8970_v45, 4096  ;;  %v3888_v38 = vsel %vm3887_vm9, %v3886_v0, %v3348_v27  ;;  %vm3111_vm11 = vcmp.ge.f32.partialorder %v11261_v44, %v9914_v49  ;;  %vm3933_vm15 = vcmp.lt.s32.totalorder %v3932_v43, %v3365_v33  ;;  %v11268_v27 = vld [vmem:[#allocation200_spill] sm:$0xff] }
 0x41d   :  { %vm3095_vm3 = vcmp.ge.f32.partialorder %v11262_v22, %v9780_v21  ;;  %vm3889_vm4 = vcmp.lt.s32.totalorder %v3888_v38, %v3349_v7  ;;  %v3366_v63 = vsel %vm3110_vm5, %v8914_v23, 4096  ;;  %v3934_v39 = vsel %vm3933_vm15, %v3932_v43, %v3365_v33  ;;  %v11265_v23 = vld [vmem:[#allocation50_spill] sm:$0xff]  ;;  %v11270_v43 = vld [vmem:[#allocation244_spill] sm:$0xff] }
 0x41e   :  { %v3350_v25 = vsel %vm3094_vm6, %v8973_v37, 4096  ;;  %v3890_v50 = vsel %vm3889_vm4, %v3888_v38, %v3349_v7  ;;  %vm3112_vm10 = vcmp.ge.f32.partialorder %v11263_v61, %v9914_v49  ;;  %vm3935_vm12 = vcmp.lt.s32.totalorder %v3934_v39, %v3366_v63 }
 0x41f   :  { %vm3096_vm7 = vcmp.ge.f32.partialorder %v11264_v28, %v9780_v21  ;;  %vm3891_vm1 = vcmp.lt.s32.totalorder %v3890_v50, %v3350_v25  ;;  %v3367_v57 = vsel %vm3111_vm11, %v8917_v32, 4096  ;;  %v3936_v1 = vsel %vm3935_vm12, %v3934_v39, %v3366_v63  ;;  %v11267_v32 = vld [vmem:[#allocation51_spill] sm:$0xff]  ;;  %v11274_v28 = vld [vmem:[#allocation248_spill] sm:$0xff] }
 0x420   :  { %v3351_v35 = vsel %vm3095_vm3, %v8977_v8, 4096  ;;  %v3892_v29 = vsel %vm3891_vm1, %v3890_v50, %v3350_v25  ;;  %vm3113_vm2 = vcmp.ge.f32.partialorder %v11265_v23, %v9914_v49  ;;  %vm3937_vm13 = vcmp.lt.s32.totalorder %v3936_v1, %v3367_v57  ;;  %v11272_v63 = vld [vmem:[#allocation247_spill] sm:$0xff]  ;;  %v11276_v23 = vld [vmem:[#allocation249_spill] sm:$0xff] }
 0x421   :  { %vm3097_vm8 = vcmp.ge.f32.partialorder %v11266_v2, %v9780_v21  ;;  %vm3893_vm0 = vcmp.lt.s32.totalorder %v3892_v29, %v3351_v35  ;;  %v3368_v14 = vsel %vm3112_vm10, %v8920_v47, 4096  ;;  %v3938_v31 = vsel %vm3937_vm13, %v3936_v1, %v3367_v57  ;;  %v11269_v47 = vld [vmem:[#allocation80_spill] sm:$0xff] }
 0x422   :  { %v3352_v20 = vsel %vm3096_vm7, %v8980_v48, 4096  ;;  %v3894_v3 = vsel %vm3893_vm0, %v3892_v29, %v3351_v35  ;;  %vm3114_vm5 = vcmp.ge.f32.partialorder %v11267_v32, %v9914_v49  ;;  %vm3939_vm14 = vcmp.lt.s32.totalorder %v3938_v31, %v3368_v14 }
 0x423   :  { %vm3098_vm6 = vcmp.ge.f32.partialorder %v11268_v27, %v9780_v21  ;;  %vm3895_vm9 = vcmp.lt.s32.totalorder %v3894_v3, %v3352_v20  ;;  %v3369_v0 = vsel %vm3113_vm2, %v8925_v18, 4096  ;;  %v3940_v13 = vsel %vm3939_vm14, %v3938_v31, %v3368_v14  ;;  %v11271_v18 = vld [vmem:[#allocation81_spill] sm:$0xff] }
 0x424   :  { %v3353_v42 = vsel %vm3097_vm8, %v8985_v53, 4096  ;;  %v3896_v33 = vsel %vm3895_vm9, %v3894_v3, %v3352_v20  ;;  %vm3115_vm11 = vcmp.ge.f32.partialorder %v11269_v47, %v9914_v49  ;;  %vm3941_vm15 = vcmp.lt.s32.totalorder %v3940_v13, %v3369_v0 }
 0x425   :  { %vm3099_vm3 = vcmp.ge.f32.partialorder %v11270_v43, %v9780_v21  ;;  %vm3897_vm4 = vcmp.lt.s32.totalorder %v3896_v33, %v3353_v42  ;;  %v3370_v7 = vsel %vm3114_vm5, %v8928_v60, 4096  ;;  %v3942_v38 = vsel %vm3941_vm15, %v3940_v13, %v3369_v0  ;;  %v11273_v60 = vld [vmem:[#allocation82_spill] sm:$0xff] }
 0x426   :  { %v3354_v44 = vsel %vm3098_vm6, %v8988_v51, 4096  ;;  %v3898_v22 = vsel %vm3897_vm4, %v3896_v33, %v3353_v42  ;;  %vm3116_vm10 = vcmp.ge.f32.partialorder %v11271_v18, %v9914_v49  ;;  %vm3943_vm12 = vcmp.lt.s32.totalorder %v3942_v38, %v3370_v7  ;;  %v11279_v33 = vld [vmem:[#allocation114_spill] sm:$0xff] }
 0x427   :  { %vm3100_vm7 = vcmp.ge.f32.partialorder %v11272_v63, %v9780_v21  ;;  %vm3899_vm1 = vcmp.lt.s32.totalorder %v3898_v22, %v3354_v44  ;;  %v3371_v39 = vsel %vm3115_vm11, %v8932_v24, 4096  ;;  %v3944_v25 = vsel %vm3943_vm12, %v3942_v38, %v3370_v7  ;;  %v11275_v24 = vld [vmem:[#allocation83_spill] sm:$0xff]  ;;  %v11281_v18 = vld [vmem:[#allocation170_spill] sm:$0xff]  ;;  %v10059_v63 = vpop.xlane.xlu2 %3457 }
 0x428   :  { %v3355_v50 = vsel %vm3099_vm3, %v8992_v52, 4096  ;;  %v3900_v61 = vsel %vm3899_vm1, %v3898_v22, %v3354_v44  ;;  %vm3117_vm2 = vcmp.ge.f32.partialorder %v11273_v60, %v9914_v49  ;;  %vm3945_vm13 = vcmp.lt.s32.totalorder %v3944_v25, %v3371_v39  ;;  %v11280_v38 = vld [vmem:[#allocation115_spill] sm:$0xff] }
 0x429   :  { %vm3101_vm8 = vcmp.ge.f32.partialorder %v11274_v28, %v9780_v21  ;;  %vm3901_vm0 = vcmp.lt.s32.totalorder %v3900_v61, %v3355_v50  ;;  %v3372_v57 = vsel %vm3116_vm10, %v8935_v26, 4096  ;;  %v3946_v1 = vsel %vm3945_vm13, %v3944_v25, %v3371_v39  ;;  %v11277_v26 = vld [vmem:[#allocation112_spill] sm:$0xff]  ;;  %v10061_v39 = vpop.xlane.xlu0 %3533 }
 0x42a   :  { %v3356_v35 = vsel %vm3100_vm7, %v8995_v41, 4096  ;;  %v3902_v29 = vsel %vm3901_vm0, %v3900_v61, %v3355_v50  ;;  %vm3118_vm5 = vcmp.ge.f32.partialorder %v11275_v24, %v9914_v49  ;;  %vm3947_vm14 = vcmp.lt.s32.totalorder %v3946_v1, %v3372_v57  ;;  %v11285_v24 = vld [vmem:[#allocation240_spill] sm:$0xff] }
 0x42b   :  { %vm3102_vm6 = vcmp.ge.f32.partialorder %v11276_v23, %v9780_v21  ;;  %vm3903_vm9 = vcmp.lt.s32.totalorder %v3902_v29, %v3356_v35  ;;  %v3373_v2 = vsel %vm3117_vm2, %v8940_v59, 4096  ;;  %v3948_v14 = vsel %vm3947_vm14, %v3946_v1, %v3372_v57  ;;  %v11278_v21 = vld [vmem:[#allocation113_spill] sm:$0xff]  ;;  %v11284_v1 = vld [vmem:[#allocation186_spill] sm:$0xff] }
 0x42c   :  { %v3357_v31 = vsel %vm3101_vm8, %v9000_v5, 4096  ;;  %v3904_v20 = vsel %vm3903_vm9, %v3902_v29, %v3356_v35  ;;  %vm3119_vm11 = vcmp.ge.f32.partialorder %v11277_v26, %v9914_v49  ;;  %vm3949_vm15 = vcmp.lt.s32.totalorder %v3948_v14, %v3373_v2  ;;  %v11288_v26 = vld [vmem:[#allocation204_spill] sm:$0xff] }
 0x42d   :  { %vm3905_vm3 = vcmp.lt.s32.totalorder %v3904_v20, %v3357_v31  ;;  %v3374_v3 = vsel %vm3118_vm5, %v8943_v4, 4096  ;;  %v3950_v32 = vsel %vm3949_vm15, %v3948_v14, %v3373_v2  ;;  %v3358_v27 = vsel %vm3102_vm6, %v9003_v9, 4096  ;;  %v11286_v2 = vld [vmem:[#allocation243_spill] sm:$0xff] }
 0x42e   :  { %v3906_v0 = vsel %vm3905_vm3, %v3904_v20, %v3357_v31  ;;  %vm3120_vm4 = vcmp.ge.f32.partialorder %v11278_v21, %v9914_v49  ;;  %vm3951_vm10 = vcmp.lt.s32.totalorder %v3950_v32, %v3374_v3  ;;  %v3375_v59 = vsel %vm3119_vm11, %v8947_v19, 4096  ;;  %v11287_v31 = vld [vmem:[#allocation245_spill] sm:$0xff]  ;;  %v11290_v21 = vld [vmem:[#allocation251_spill] sm:$0xff] }
 0x42f   :  { %vm3907_vm12 = vcmp.lt.s32.totalorder %v3906_v0, %v3358_v27  ;;  %v3952_v13 = vsel %vm3951_vm10, %v3950_v32, %v3374_v3  ;;  %vm3121_vm7 = vcmp.ge.f32.partialorder %v11279_v33, %v9914_v49  ;;  %v3453_v4 = vand.u32 65535, %v9301_v12  ;;  %v11289_v32 = vld [vmem:[#allocation250_spill] sm:$0xff] }
 0x430   :  { %v10045_v42 = vsel %vm3907_vm12, %v3906_v0, %v3358_v27  ;;  %vm3953_vm1 = vcmp.lt.s32.totalorder %v3952_v13, %v3375_v59  ;;  %v3376_v43 = vsel %vm3120_vm4, %v8950_v56, 4096  ;;  %vm3122_vm2 = vcmp.ge.f32.partialorder %v11280_v38, %v9914_v49 }
 0x431   :  { %v3910_v47 = vshra.s32 %v10045_v42, 16  ;;  %v3954_v7 = vsel %vm3953_vm1, %v3952_v13, %v3375_v59  ;;  %v3377_v19 = vsel %vm3121_vm7, %v8955_v17, 4096  ;;  %vm3123_vm8 = vcmp.ge.f32.partialorder %v11281_v18, %v9914_v49  ;;  %v11282_v17 = vld [vmem:[#allocation172_spill] sm:$0xff]  ;;  %v3610_v18 = vpop.xlane.xlu1 %3609 }
 0x432   :  { %vm3955_vm13 = vcmp.lt.s32.totalorder %v3954_v7, %v3376_v43  ;;  %v3455_v12 = vcvt.s32.f32 %v3453_v4  ;;  %v3529_v56 = vand.u32 65535, %v9370_v10  ;;  %v3378_v25 = vsel %vm3122_vm2, %v8958_v55, 4096  ;;  %v11283_v10 = vld [vmem:[#allocation184_spill] sm:$0xff] }
 0x433   :  { %v10054_v44 = vcvt.s32.f32 %v3910_v47  ;;  %v3956_v22 = vsel %vm3955_vm13, %v3954_v7, %v3376_v43  ;;  %vm3459_vm5 = vcmp.eq.f32.partialorder %v9313_v46, %v10059_v63  ;;  %vm3124_vm14 = vcmp.ge.f32.partialorder %v11282_v17, %v9914_v49  ;;  %v11291_v13 = vld [vmem:[#allocation252_spill] sm:$0xff] }
 0x434   :  { %vm3957_vm0 = vcmp.lt.s32.totalorder %v3956_v22, %v3377_v19  ;;  %v3460_v61 = vsel %vm3459_vm5, %v3455_v12, inf  ;;  %v3379_v60 = vsel %vm3123_vm8, %v8962_v16, 4096  ;;  %vm3535_vm9 = vcmp.eq.f32.partialorder %v9381_v11, %v10061_v39 }
 0x435   :  { %3913 = vmin.xlane.f32.xlu2 %v10054_v44  ;;  %v3958_v50 = vsel %vm3957_vm0, %v3956_v22, %v3377_v19  ;;  %3461 = vmin.xlane.f32.xlu1 %v3460_v61  ;;  %vm3125_vm11 = vcmp.ge.f32.partialorder %v11283_v10, %v9914_v49  ;;  %v3531_v55 = vcvt.s32.f32 %v3529_v56  ;;  %v3380_v57 = vsel %vm3124_vm14, %v8965_v6, 4096 }
 0x436   :  { %vm3959_vm6 = vcmp.lt.s32.totalorder %v3958_v50, %v3378_v25  ;;  %vm3126_vm3 = vcmp.ge.f32.partialorder %v11284_v1, %v9914_v49  ;;  %v3381_v16 = vsel %vm3125_vm11, %v8970_v45, 4096  ;;  %vm3127_vm10 = vcmp.ge.f32.partialorder %v11285_v24, %v9914_v49 }
 0x437   :  { %v3960_v28 = vsel %vm3959_vm6, %v3958_v50, %v3378_v25  ;;  %v3536_v35 = vsel %vm3535_vm9, %v3531_v55, inf  ;;  %v3382_v11 = vsel %vm3126_vm3, %v8973_v37, 4096  ;;  %vm3128_vm7 = vcmp.ge.f32.partialorder %v11286_v2, %v9914_v49 }
 0x438   :  { %vm3961_vm15 = vcmp.lt.s32.totalorder %v3960_v28, %v3379_v60  ;;  %v3383_v6 = vsel %vm3127_vm10, %v8977_v8, 4096  ;;  %vm3129_vm2 = vcmp.ge.f32.partialorder %v11287_v31, %v9914_v49  ;;  %v3384_v45 = vsel %vm3128_vm7, %v8980_v48, 4096 }
 0x439   :  { %v3962_v46 = vsel %vm3961_vm15, %v3960_v28, %v3379_v60  ;;  %vm3130_vm8 = vcmp.ge.f32.partialorder %v11288_v26, %v9914_v49  ;;  %v3385_v37 = vsel %vm3129_vm2, %v8985_v53, 4096  ;;  %vm3131_vm5 = vcmp.ge.f32.partialorder %v11289_v32, %v9914_v49 }
 0x43a   :  { %vm3963_vm4 = vcmp.lt.s32.totalorder %v3962_v46, %v3380_v57  ;;  %v3386_v8 = vsel %vm3130_vm8, %v8988_v51, 4096  ;;  %v3681_v0 = vand.u32 65535, %v9664_v15  ;;  %vm3132_vm6 = vcmp.ge.f32.partialorder %v11290_v21, %v9914_v49  ;;  %v11292_v51 = vld [vmem:[#allocation253_spill] sm:$0xff] }
 0x43b   :  { %v3964_v29 = vsel %vm3963_vm4, %v3962_v46, %v3380_v57  ;;  %v3387_v48 = vsel %vm3131_vm5, %v8992_v52, 4096  ;;  %vm3133_vm11 = vcmp.ge.f32.partialorder %v11291_v13, %v9914_v49  ;;  %v3388_v53 = vsel %vm3132_vm6, %v8995_v41, 4096 }
 0x43c   :  { %vm3965_vm12 = vcmp.lt.s32.totalorder %v3964_v29, %v3381_v16  ;;  %v3683_v47 = vcvt.s32.f32 %v3681_v0  ;;  %vm3134_vm3 = vcmp.ge.f32.partialorder %v11292_v51, %v9914_v49  ;;  %v3389_v15 = vsel %vm3133_vm11, %v9000_v5, 4096 }
 0x43d   :  { %v3966_v23 = vsel %vm3965_vm12, %v3964_v29, %v3381_v16  ;;  %3537 = vmin.xlane.f32.xlu2 %v3536_v35  ;;  %v3390_v7 = vsel %vm3134_vm3, %v9003_v9, 4096  ;;  %v3605_v12 = vand.u32 65535, %v9502_v62  ;;  %v3757_v5 = vand.u32 65535, %v9798_v54 }
 0x43e   :  { %vm3967_vm1 = vcmp.lt.s32.totalorder %v3966_v23, %v3382_v11  ;;  %v3833_v50 = vand.u32 65535, %v9945_v58  ;;  %v3464_v60 = vcvt.f32.s32 %v10059_v63  ;;  %v3540_v58 = vcvt.f32.s32 %v10061_v39 }
 0x43f   :  { %v3968_v14 = vsel %vm3967_vm1, %v3966_v23, %v3382_v11  ;;  %vm3611_vm1 = vcmp.eq.f32.partialorder %v9513_v36, %v3610_v18  ;;  %v3759_v25 = vcvt.s32.f32 %v3757_v5  ;;  %v3909_v36 = vand.u32 65535, %v10045_v42 }
 0x440   :  { %vm3969_vm13 = vcmp.lt.s32.totalorder %v3968_v14, %v3383_v6  ;;  %v3835_v61 = vcvt.s32.f32 %v3833_v50  ;;  %v3465_v55 = vshll.u32 %v3464_v60, 16  ;;  %v3541_v42 = vshll.u32 %v3540_v58, 16 }
 0x441   :  { %v3970_v20 = vsel %vm3969_vm13, %v3968_v14, %v3383_v6  ;;  %v3911_v54 = vcvt.s32.f32 %v3909_v36  ;;  %v3616_v6 = vcvt.f32.s32 %v3610_v18 }
 0x442   :  { %vm3971_vm0 = vcmp.lt.s32.totalorder %v3970_v20, %v3384_v45 }
 0x443   :  { %v3972_v3 = vsel %vm3971_vm0, %v3970_v20, %v3384_v45  ;;  %vm3999_vm0 = vcmask 7168   ;;  %v3617_v31 = vshll.u32 %v3616_v6, 16 }
 0x444   :  { %vm3973_vm14 = vcmp.lt.s32.totalorder %v3972_v3, %v3385_v37 }
 0x445   :  { %v3974_v27 = vsel %vm3973_vm14, %v3972_v3, %v3385_v37 }
 0x446   :  { %vm3975_vm9 = vcmp.lt.s32.totalorder %v3974_v27, %v3386_v8 }
 0x447   :  { %v3976_v59 = vsel %vm3975_vm9, %v3974_v27, %v3386_v8 }
 0x448   :  { %vm3977_vm15 = vcmp.lt.s32.totalorder %v3976_v59, %v3387_v48 }
 0x449   :  { %v3978_v33 = vsel %vm3977_vm15, %v3976_v59, %v3387_v48  ;;  %v3686_v4 = vpop.xlane.xlu2 %3685 }
 0x44a   :  { %vm3979_vm4 = vcmp.lt.s32.totalorder %v3978_v33, %v3388_v53  ;;  %vm3687_vm10 = vcmp.eq.f32.partialorder %v9680_v30, %v3686_v4  ;;  %v3607_v30 = vcvt.s32.f32 %v3605_v12 }
 0x44b   :  { %v3980_v43 = vsel %vm3979_vm4, %v3978_v33, %v3388_v53  ;;  %v3688_v52 = vsel %vm3687_vm10, %v3683_v47, inf }
 0x44c   :  { %vm3981_vm12 = vcmp.lt.s32.totalorder %v3980_v43, %v3389_v15  ;;  %3689 = vmin.xlane.f32.xlu1 %v3688_v52  ;;  %v3612_v49 = vsel %vm3611_vm1, %v3607_v30, inf }
 0x44d   :  { %v3982_v38 = vsel %vm3981_vm12, %v3980_v43, %v3389_v15 }
 0x44e   :  { %vm3983_vm7 = vcmp.lt.s32.totalorder %v3982_v38, %v3390_v7 }
 0x44f   :  { %v3984_v41 = vsel %vm3983_vm7, %v3982_v38, %v3390_v7 }
 0x450   :  { %v3986_v19 = vshra.s32 %v3984_v41, 16  ;;  %v3985_v24 = vand.u32 65535, %v3984_v41 }
 0x452   :  { %v3988_v22 = vcvt.s32.f32 %v3986_v19  ;;  %v3987_v23 = vcvt.s32.f32 %v3985_v24 }
 0x454   :  { %3989 = vmin.xlane.f32.xlu0 %v3988_v22 }
 0x45c   :  { %3613 = vmin.xlane.f32.xlu0 %v3612_v49 }
 0x468   :  { %v3762_v56 = vpop.xlane.xlu0 %3761 }
 0x469   :  { %vm3763_vm2 = vcmp.eq.f32.partialorder %v9812_v40, %v3762_v56  ;;  %v3768_v26 = vcvt.f32.s32 %v3762_v56 }
 0x46a   :  { %v3764_v9 = vsel %vm3763_vm2, %v3759_v25, inf }
 0x46b   :  { %3765 = vmin.xlane.f32.xlu2 %v3764_v9  ;;  %v3769_v3 = vshll.u32 %v3768_v26, 16 }
 0x488   :  { %v3838_v17 = vpop.xlane.xlu1 %3837 }
 0x489   :  { %vm3839_vm13 = vcmp.eq.f32.partialorder %v9958_v34, %v3838_v17  ;;  %v3844_v27 = vcvt.f32.s32 %v3838_v17 }
 0x48a   :  { %v3840_v62 = vsel %vm3839_vm13, %v3835_v61, inf }
 0x48b   :  { %3841 = vmin.xlane.f32.xlu0 %v3840_v62  ;;  %v3845_v21 = vshll.u32 %v3844_v27, 16 }
 0x4a8   :  { %v3914_v28 = vpop.xlane.xlu2 %3913  ;;  %v3462_v40 = vpop.xlane.xlu1 %3461 }
 0x4a9   :  { %vm3915_vm8 = vcmp.eq.f32.partialorder %v10054_v44, %v3914_v28  ;;  %v3463_v57 = vcvt.f32.s32 %v3462_v40  ;;  %v3692_v44 = vcvt.f32.s32 %v3686_v4  ;;  %v3920_v13 = vcvt.f32.s32 %v3914_v28 }
 0x4aa   :  { %v3916_v10 = vsel %vm3915_vm8, %v3911_v54, inf }
 0x4ab   :  { %3917 = vmin.xlane.f32.xlu1 %v3916_v10  ;;  %v3466_v46 = vadd.s32 %v3465_v55, %v3463_v57  ;;  %v3693_v16 = vshll.u32 %v3692_v44, 16  ;;  %v3921_v33 = vshll.u32 %v3920_v13, 16 }
 0x4ad   :  { %4000 = vst.msk [vmem:[%s10151_s3] sm:$0xff] %vm3999_vm0, %v3466_v46 }
 0x4b0   :  { %v3538_v34 = vpop.xlane.xlu2 %3537 }
 0x4b1   :  { %v3539_v63 = vcvt.f32.s32 %v3538_v34 }
 0x4b3   :  { %v3542_v1 = vadd.s32 %v3541_v42, %v3539_v63 }
 0x4b5   :  { %4001 = vst.msk [vmem:[%s10151_s3 + $0x8] sm:$0xff] %vm3999_vm0, %v3542_v1 }
 0x4bf   :  { %v3690_v35 = vpop.xlane.xlu1 %3689 }
 0x4c0   :  { %v3691_v29 = vcvt.f32.s32 %v3690_v35 }
 0x4c2   :  { %v3694_v39 = vadd.s32 %v3693_v16, %v3691_v29 }
 0x4c4   :  { %4003 = vst.msk [vmem:[%s10151_s3 + $0x18] sm:$0xff] %vm3999_vm0, %v3694_v39 }
 0x4c7   :  { %v3990_v11 = vpop.xlane.xlu0 %3989 }
 0x4c8   :  { %vm3991_vm5 = vcmp.eq.f32.partialorder %v3988_v22, %v3990_v11  ;;  %v3996_v51 = vcvt.f32.s32 %v3990_v11 }
 0x4c9   :  { %v3992_v2 = vsel %vm3991_vm5, %v3987_v23, inf }
 0x4ca   :  { %3993 = vmin.xlane.f32.xlu2 %v3992_v2  ;;  %v3997_v43 = vshll.u32 %v3996_v51, 16 }
 0x4cf   :  { %v3614_v14 = vpop.xlane.xlu0 %3613 }
 0x4d0   :  { %v3615_v45 = vcvt.f32.s32 %v3614_v14 }
 0x4d2   :  { %v3618_v20 = vadd.s32 %v3617_v31, %v3615_v45 }
 0x4d4   :  { %4002 = vst.msk [vmem:[%s10151_s3 + $0x10] sm:$0xff] %vm3999_vm0, %v3618_v20 }
 0x4de   :  { %v3766_v37 = vpop.xlane.xlu2 %3765 }
 0x4df   :  { %v3767_v32 = vcvt.f32.s32 %v3766_v37 }
 0x4e1   :  { %v3770_v8 = vadd.s32 %v3769_v3, %v3767_v32 }
 0x4e3   :  { %4004 = vst.msk [vmem:[%s10151_s3 + $0x20] sm:$0xff] %vm3999_vm0, %v3770_v8 }
 0x4fe   :  { %v3842_v0 = vpop.xlane.xlu0 %3841 }
 0x4ff   :  { %v3843_v48 = vcvt.f32.s32 %v3842_v0 }
 0x501   :  { %v3846_v59 = vadd.s32 %v3845_v21, %v3843_v48 }
 0x503   :  { %4005 = vst.msk [vmem:[%s10151_s3 + $0x28] sm:$0xff] %vm3999_vm0, %v3846_v59 }
 0x51e   :  { %v3918_v53 = vpop.xlane.xlu1 %3917 }
 0x51f   :  { %v3919_v4 = vcvt.f32.s32 %v3918_v53 }
 0x521   :  { %v3922_v47 = vadd.s32 %v3921_v33, %v3919_v4 }
 0x523   :  { %4006 = vst.msk [vmem:[%s10151_s3 + $0x30] sm:$0xff] %vm3999_vm0, %v3922_v47 }
 0x53d   :  { %v3994_v15 = vpop.xlane.xlu2 %3993 }
 0x53e   :  { %v3995_v52 = vcvt.f32.s32 %v3994_v15 }
 0x540   :  { %v3998_v7 = vadd.s32 %v3997_v43, %v3995_v52 }
 0x542   :  { %4007 = vst.msk [vmem:[%s10151_s3 + $0x38] sm:$0xff] %vm3999_vm0, %v3998_v7 }

</bundles_post_ra>
